<compile_context>
chip_gen: v5e
topology: v5e:2x2
jax: 0.10.0
libtpu: 0.0.40
codegen_flags: <defaults>
</compile_context>

<pallas_src>
from math import pi

import numpy as np
import jax
import jax.numpy as jnp
from jax.experimental import pallas as pl
from jax.experimental.pallas import tpu as pltpu

_HIGHEST = jax.lax.Precision.HIGHEST


def _dft_kernel(uvw_ref, lmn_ref, sky_ref, acc_cos_ref, acc_sin_ref):
    """One (vis_tile x pixel_tile) tile of the non-uniform DFT.

    uvw_ref : (vis_tile, 8)   columns [u, v, w, 0, ...]   (raw units)
    lmn_ref : (8, pixel_tile) rows    [l, m, n-1, 0, ...]
    sky_ref : (pixel_tile, 2B)        columns [Re(sky) | Im(sky)]
    acc_*   : (vis_tile, 2B)  accumulators resident across the pixel grid axis
    """
    @pl.when(pl.program_id(1) == 0)
    def _():
        acc_cos_ref[...] = jnp.zeros_like(acc_cos_ref)
        acc_sin_ref[...] = jnp.zeros_like(acc_sin_ref)

    uvw = uvw_ref[...]                                # (TV, 8)
    lmn = lmn_ref[...]                                # (8, TP)

    # Phase in *turns*: t[j,p] = u_j*l_p + v_j*m_p + w_j*(n_p - 1).
    # Built on the VPU so t keeps full f32 precision before range reduction.
    t = (uvw[:, 0:1] * lmn[0:1, :]
         + uvw[:, 1:2] * lmn[1:2, :]
         + uvw[:, 2:3] * lmn[2:3, :])                 # (TV, TP)

    # Turns range reduction: t' in [-0.5, 0.5).  phase = -2*pi*t.
    t = t - jnp.floor(t + 0.5)

    # Fused sincos sharing the reduction and x = y^2:
    #   y = -pi*t'  (|y| <= pi/2),  s = sin(y),  c = cos(y)
    #   cos(phase) = cos(-2*pi*t') = 1 - 2 s^2
    #   sin(phase) = sin(-2*pi*t') = 2 s c
    y = t * jnp.float32(-pi)
    x = y * y
    s = y * (1.0 + x * (-1.66666667e-01
             + x * (8.33333333e-03
             + x * (-1.98412698e-04
             + x * (2.75573192e-06
             + x * (-2.50521084e-08))))))
    c = (1.0 + x * (-5.0e-01
         + x * (4.16666667e-02
         + x * (-1.38888889e-03
         + x * (2.48015873e-05
         + x * (-2.75573192e-07
         + x * 2.08767570e-09))))))
    s2 = s * s
    cos_p = 1.0 - (s2 + s2)                           # cos(phase)
    sin_p = (s + s) * c                               # sin(phase)

    sky = sky_ref[...]                                # (TP, 2B)

    # Contract the pixel axis on the MXU with both operands in native
    # (M,K) x (K,N) orientation -> no XLU transpose of the big trig tiles.
    acc_cos_ref[...] += jnp.dot(cos_p, sky, preferred_element_type=jnp.float32,
                                precision=_HIGHEST)
    acc_sin_ref[...] += jnp.dot(sin_p, sky, preferred_element_type=jnp.float32,
                                precision=_HIGHEST)


def _round_up(x, m):
    return ((x + m - 1) // m) * m


def chunked_dft_sincos(sky_values, l_coords, m_coords, n_coords,
                       u_coords, v_coords, w_coords,
                       *, pixel_tile=None, vis_tile=None,
                       vmem_limit_bytes=None):
    """Pallas equivalent of ChunkedDFT_sincos.forward (f32 compute, complex64 out).

    pixel_tile / vis_tile play the role of chunk_size / vis_chunk_size: they
    are the Pallas grid tile sizes over the pixel (reduction) and visibility
    (parallel) axes.  Defaults are auto-sized to be safe on v5e (16 MiB scoped
    VMEM default), v6e and v7x (64 MiB physical VMEM), and to keep >= 2 vis
    tiles where possible so both v7x TensorCores get work.
    """
    sky = jnp.asarray(sky_values)
    unbatched = (sky.ndim == 1)
    if unbatched:
        sky = sky[None, :]
    B, num_pixels = sky.shape
    num_vis = int(jnp.asarray(u_coords).shape[0])

    # --- tile presets -------------------------------------------------------
    if pixel_tile is None:
        pixel_tile = min(2048, _round_up(num_pixels, 128))
    if vis_tile is None:
        vis_tile = min(256, _round_up(num_vis, 128))
        # v7x megacore: prefer >= 2 tiles on the "parallel" (vis) axis.
        if num_vis > 128 and pl.cdiv(num_vis, vis_tile) < 2:
            vis_tile = max(128, vis_tile // 2)
    pixel_tile = max(128, _round_up(int(pixel_tile), 128))
    vis_tile = max(8, _round_up(int(vis_tile), 8))

    if vmem_limit_bytes is None:
        # phase/trig temporaries (~6-10 live tiles) + double-buffered blocks,
        # clamped so it also fits v7x's 64 MiB physical VMEM.
        est = 4 * vis_tile * pixel_tile * 10 + (8 << 20)
        vmem_limit_bytes = int(min(max(est, 32 << 20), 56 << 20))

    P = pl.cdiv(num_pixels, pixel_tile) * pixel_tile
    V = pl.cdiv(num_vis, vis_tile) * vis_tile

    # Stacked, pre-transposed sky: (P, 2B) = [Re | Im] columns; padded pixels
    # carry zero brightness -> no contribution.
    sky_re = jnp.real(sky).astype(jnp.float32)
    sky_im = jnp.imag(sky).astype(jnp.float32)
    sky_t = jnp.pad(jnp.concatenate([sky_re, sky_im], axis=0),
                    ((0, 0), (0, P - num_pixels))).T            # (P, 2B)

    # Stacked coordinates, kept in raw units (phase built in "turns" and the
    # -2*pi applied inside the kernel *after* the range reduction).
    def _f32(a):
        return jnp.asarray(a, jnp.float32)

    uvw = jnp.stack([_f32(u_coords), _f32(v_coords), _f32(w_coords)], axis=1)
    uvw = jnp.pad(uvw, ((0, V - num_vis), (0, 8 - 3)))          # (V, 8)
    lmn = jnp.stack([_f32(l_coords), _f32(m_coords),
                     _f32(n_coords) - 1.0], axis=0)
    lmn = jnp.pad(lmn, ((0, 8 - 3), (0, P - num_pixels)))       # (8, P)

    grid = (V // vis_tile, P // pixel_tile)

    out_spec = pl.BlockSpec((vis_tile, 2 * B), lambda i, k: (i, 0))
    acc_cos, acc_sin = pl.pallas_call(
        _dft_kernel,
        out_shape=(jax.ShapeDtypeStruct((V, 2 * B), jnp.float32),
                   jax.ShapeDtypeStruct((V, 2 * B), jnp.float32)),
        grid_spec=pltpu.PrefetchScalarGridSpec(
            num_scalar_prefetch=0,
            grid=grid,
            in_specs=[pl.BlockSpec((vis_tile, 8), lambda i, k: (i, 0)),
                      pl.BlockSpec((8, pixel_tile), lambda i, k: (0, k)),
                      pl.BlockSpec((pixel_tile, 2 * B), lambda i, k: (k, 0))],
            out_specs=[out_spec, out_spec]),
        compiler_params=pltpu.CompilerParams(
            dimension_semantics=("parallel", "arbitrary"),
            vmem_limit_bytes=vmem_limit_bytes),
    )(uvw, lmn, sky_t)

    # Recombine on the tiny (num_vis, 2B) accumulators:
    #   acc_cos[:, :B] = cos @ Re,  acc_cos[:, B:] = cos @ Im  (same for sin)
    #   re = cos@Re - sin@Im ,  im = sin@Re + cos@Im
    acc_cos = acc_cos[:num_vis]
    acc_sin = acc_sin[:num_vis]
    vis_re = (acc_cos[:, :B] - acc_sin[:, B:]).T
    vis_im = (acc_sin[:, :B] + acc_cos[:, B:]).T
    vis = jax.lax.complex(vis_re, vis_im)
    if unbatched:
        vis = vis[0]
    return vis


def _reference_dft_f32(sky, l, m, n, u, v, w):
    """Pure-jnp (float32) reference matching the PyTorch semantics."""
    sky = jnp.asarray(sky)
    if sky.ndim == 1:
        sky = sky[None, :]
    phase = (-2.0 * pi) * (u[:, None] * l[None, :]
                           + v[:, None] * m[None, :]
                           + w[:, None] * (n[None, :] - 1.0))
    cos_p = jnp.cos(phase)
    sin_p = jnp.sin(phase)
    sr = jnp.real(sky).astype(jnp.float32)
    si = jnp.imag(sky).astype(jnp.float32)
    re = (jnp.matmul(sr, cos_p.T, precision=_HIGHEST)
          - jnp.matmul(si, sin_p.T, precision=_HIGHEST))
    im = (jnp.matmul(sr, sin_p.T, precision=_HIGHEST)
          + jnp.matmul(si, cos_p.T, precision=_HIGHEST))
    return jax.lax.complex(re, im)


def _reference_dft_f64(sky, l, m, n, u, v, w):
    """Host numpy float64 reference (matches the complex128 PyTorch module)."""
    sky = np.asarray(sky).astype(np.complex128)
    if sky.ndim == 1:
        sky = sky[None, :]
    l = np.asarray(l, np.float64); m = np.asarray(m, np.float64)
    n = np.asarray(n, np.float64)
    u = np.asarray(u, np.float64); v = np.asarray(v, np.float64)
    w = np.asarray(w, np.float64)
    phase = -2.0 * pi * (u[:, None] * l[None, :]
                         + v[:, None] * m[None, :]
                         + w[:, None] * (n[None, :] - 1.0))
    e = np.cos(phase) + 1j * np.sin(phase)
    return sky @ e.T


if __name__ == "__main__":
    key = jax.random.PRNGKey(0)
    batch = 2
    num_pixels = 256
    num_vis = 300          # not a multiple of the tile -> exercises padding

    ks = jax.random.split(key, 8)
    sky = (jax.random.normal(ks[0], (batch, num_pixels), jnp.float32)
           + 1j * jax.random.normal(ks[1], (batch, num_pixels), jnp.float32))
    l = 0.01 * jax.random.normal(ks[2], (num_pixels,), jnp.float32)
    m = 0.01 * jax.random.normal(ks[3], (num_pixels,), jnp.float32)
    n = jnp.sqrt(jnp.clip(1.0 - l ** 2 - m ** 2, 0.0, 1.0))
    u = 10.0 * jax.random.normal(ks[4], (num_vis,), jnp.float32)
    v = 10.0 * jax.random.normal(ks[5], (num_vis,), jnp.float32)
    w = 1.0 * jax.random.normal(ks[6], (num_vis,), jnp.float32)

    ref32 = _reference_dft_f32(sky, l, m, n, u, v, w)

    # Default (auto) tiles.
    vis = jax.block_until_ready(chunked_dft_sincos(sky, l, m, n, u, v, w))
    assert vis.shape == (batch, num_vis)
    assert jnp.allclose(vis, ref32, rtol=1e-3, atol=1e-2), "mismatch (defaults)"

    # Small tiles: multi-tile pixel reduction + accumulator init path.
    vis_s = jax.block_until_ready(
        chunked_dft_sincos(sky, l, m, n, u, v, w,
                           pixel_tile=128, vis_tile=128))
    assert jnp.allclose(vis_s, ref32, rtol=1e-3, atol=1e-2), "mismatch (small tiles)"

    # Unbatched path.
    vis1 = jax.block_until_ready(chunked_dft_sincos(sky[0], l, m, n, u, v, w))
    assert vis1.shape == (num_vis,)
    assert jnp.allclose(vis1, ref32[0], rtol=1e-3, atol=1e-2), "mismatch (unbatched)"

    # Large-|uvw| case: the in-kernel "turns" range reduction keeps f32-level
    # accuracy against a host float64 reference (realistic interferometric
    # baselines; this is where un-reduced f32 sin/cos would diverge).
    ub = 2000.0 * jax.random.normal(ks[4], (num_vis,), jnp.float32)
    vb = 2000.0 * jax.random.normal(ks[5], (num_vis,), jnp.float32)
    wb = 200.0 * jax.random.normal(ks[6], (num_vis,), jnp.float32)
    ref64 = _reference_dft_f64(np.asarray(sky), np.asarray(l), np.asarray(m),
                               np.asarray(n), np.asarray(ub), np.asarray(vb),
                               np.asarray(wb))
    vis_b = jax.block_until_ready(chunked_dft_sincos(sky, l, m, n, ub, vb, wb))
    assert jnp.allclose(vis_b, jnp.asarray(ref64.astype(np.complex64)),
                        rtol=5e-3, atol=5e-2), "mismatch (large uvw)"

    print("KERNEL_OK")
</pallas_src>

<mosaic_0001>
module attributes {stable_mosaic.version = 11 : i64} {
  func.func @_dft_kernel(%arg0: i32, %arg1: i32, %arg2: memref<256x8xf32, #tpu.memory_space<vmem>>, %arg3: memref<8x256xf32, #tpu.memory_space<vmem>>, %arg4: memref<256x4xf32, #tpu.memory_space<vmem>>, %arg5: memref<256x4xf32, #tpu.memory_space<vmem>>, %arg6: memref<256x4xf32, #tpu.memory_space<vmem>>) attributes {dimension_semantics = [#tpu.dimension_semantics<parallel>, #tpu.dimension_semantics<arbitrary>], iteration_bounds = array<i64: 2, 1>, scalar_prefetch = 0 : i64, scratch_operands = 0 : i64, tpu.core_type = #tpu.core_type<tc>, window_params = [{transform_indices = @transform_0, window_bounds = array<i64: 256, 8>}, {transform_indices = @transform_1, window_bounds = array<i64: 8, 256>}, {transform_indices = @transform_2, window_bounds = array<i64: 256, 4>}, {transform_indices = @transform_3, window_bounds = array<i64: 256, 4>}, {transform_indices = @transform_4, window_bounds = array<i64: 256, 4>}]} {
    %c0_i32 = arith.constant 0 : i32
    %0 = arith.cmpi eq, %arg1, %c0_i32 : i32
    %1 = arith.extui %0 : i1 to i32
    %c0_i32_0 = arith.constant 0 : i32
    %2 = arith.cmpi ne, %1, %c0_i32_0 : i32
    scf.if %2 {
      %cst_31 = arith.constant 0.000000e+00 : f32
      %80 = vector.broadcast %cst_31 : f32 to vector<256x4xf32>
      %c0_32 = arith.constant 0 : index
      %c0_33 = arith.constant 0 : index
      %81 = vector.load %arg5[%c0_32, %c0_33] : memref<256x4xf32, #tpu.memory_space<vmem>>, vector<256x4xf32>
      tpu.vector_store %arg5[%c0_32, %c0_33], %80 {strides = array<i32>} : memref<256x4xf32, #tpu.memory_space<vmem>>, vector<256x4xf32>,
      %cst_34 = arith.constant 0.000000e+00 : f32
      %82 = vector.broadcast %cst_34 : f32 to vector<256x4xf32>
      %c0_35 = arith.constant 0 : index
      %c0_36 = arith.constant 0 : index
      %83 = vector.load %arg6[%c0_35, %c0_36] : memref<256x4xf32, #tpu.memory_space<vmem>>, vector<256x4xf32>
      tpu.vector_store %arg6[%c0_35, %c0_36], %82 {strides = array<i32>} : memref<256x4xf32, #tpu.memory_space<vmem>>, vector<256x4xf32>,
    } else {
    }
    %c0 = arith.constant 0 : index
    %c0_1 = arith.constant 0 : index
    %3 = vector.load %arg2[%c0, %c0_1] : memref<256x8xf32, #tpu.memory_space<vmem>>, vector<256x8xf32>
    %c0_2 = arith.constant 0 : index
    %c0_3 = arith.constant 0 : index
    %4 = vector.load %arg3[%c0_2, %c0_3] : memref<8x256xf32, #tpu.memory_space<vmem>>, vector<8x256xf32>
    %5 = vector.extract_strided_slice %3 {offsets = [0, 0], sizes = [256, 1], strides = [1, 1]} : vector<256x8xf32> to vector<256x1xf32>
    %6 = vector.extract_strided_slice %4 {offsets = [0, 0], sizes = [1, 256], strides = [1, 1]} : vector<8x256xf32> to vector<1x256xf32>
    %7 = vector.broadcast %5 : vector<256x1xf32> to vector<256x256xf32>
    %8 = vector.broadcast %6 : vector<1x256xf32> to vector<256x256xf32>
    %9 = arith.mulf %7, %8 : vector<256x256xf32>
    %10 = vector.extract_strided_slice %3 {offsets = [0, 1], sizes = [256, 1], strides = [1, 1]} : vector<256x8xf32> to vector<256x1xf32>
    %11 = vector.extract_strided_slice %4 {offsets = [1, 0], sizes = [1, 256], strides = [1, 1]} : vector<8x256xf32> to vector<1x256xf32>
    %12 = vector.broadcast %10 : vector<256x1xf32> to vector<256x256xf32>
    %13 = vector.broadcast %11 : vector<1x256xf32> to vector<256x256xf32>
    %14 = arith.mulf %12, %13 : vector<256x256xf32>
    %15 = arith.addf %9, %14 : vector<256x256xf32>
    %16 = vector.extract_strided_slice %3 {offsets = [0, 2], sizes = [256, 1], strides = [1, 1]} : vector<256x8xf32> to vector<256x1xf32>
    %17 = vector.extract_strided_slice %4 {offsets = [2, 0], sizes = [1, 256], strides = [1, 1]} : vector<8x256xf32> to vector<1x256xf32>
    %18 = vector.broadcast %16 : vector<256x1xf32> to vector<256x256xf32>
    %19 = vector.broadcast %17 : vector<1x256xf32> to vector<256x256xf32>
    %20 = arith.mulf %18, %19 : vector<256x256xf32>
    %21 = arith.addf %15, %20 : vector<256x256xf32>
    %cst = arith.constant 5.000000e-01 : f32
    %22 = vector.broadcast %cst : f32 to vector<256x256xf32>
    %23 = arith.addf %21, %22 : vector<256x256xf32>
    %24 = math.floor %23 : vector<256x256xf32>
    %25 = arith.subf %21, %24 : vector<256x256xf32>
    %cst_4 = arith.constant -3.14159274 : f32
    %26 = vector.broadcast %cst_4 : f32 to vector<256x256xf32>
    %27 = arith.mulf %25, %26 : vector<256x256xf32>
    %28 = arith.mulf %27, %27 : vector<256x256xf32>
    %cst_5 = arith.constant -2.50521079E-8 : f32
    %29 = vector.broadcast %cst_5 : f32 to vector<256x256xf32>
    %30 = arith.mulf %28, %29 : vector<256x256xf32>
    %cst_6 = arith.constant 2.75573188E-6 : f32
    %31 = vector.broadcast %cst_6 : f32 to vector<256x256xf32>
    %32 = arith.addf %31, %30 : vector<256x256xf32>
    %33 = arith.mulf %28, %32 : vector<256x256xf32>
    %cst_7 = arith.constant -1.98412701E-4 : f32
    %34 = vector.broadcast %cst_7 : f32 to vector<256x256xf32>
    %35 = arith.addf %34, %33 : vector<256x256xf32>
    %36 = arith.mulf %28, %35 : vector<256x256xf32>
    %cst_8 = arith.constant 0.00833333377 : f32
    %37 = vector.broadcast %cst_8 : f32 to vector<256x256xf32>
    %38 = arith.addf %37, %36 : vector<256x256xf32>
    %39 = arith.mulf %28, %38 : vector<256x256xf32>
    %cst_9 = arith.constant -0.166666672 : f32
    %40 = vector.broadcast %cst_9 : f32 to vector<256x256xf32>
    %41 = arith.addf %40, %39 : vector<256x256xf32>
    %42 = arith.mulf %28, %41 : vector<256x256xf32>
    %cst_10 = arith.constant 1.000000e+00 : f32
    %43 = vector.broadcast %cst_10 : f32 to vector<256x256xf32>
    %44 = arith.addf %43, %42 : vector<256x256xf32>
    %45 = arith.mulf %27, %44 : vector<256x256xf32>
    %cst_11 = arith.constant 2.08767581E-9 : f32
    %46 = vector.broadcast %cst_11 : f32 to vector<256x256xf32>
    %47 = arith.mulf %28, %46 : vector<256x256xf32>
    %cst_12 = arith.constant -2.755732E-7 : f32
    %48 = vector.broadcast %cst_12 : f32 to vector<256x256xf32>
    %49 = arith.addf %48, %47 : vector<256x256xf32>
    %50 = arith.mulf %28, %49 : vector<256x256xf32>
    %cst_13 = arith.constant 2.48015876E-5 : f32
    %51 = vector.broadcast %cst_13 : f32 to vector<256x256xf32>
    %52 = arith.addf %51, %50 : vector<256x256xf32>
    %53 = arith.mulf %28, %52 : vector<256x256xf32>
    %cst_14 = arith.constant -0.00138888892 : f32
    %54 = vector.broadcast %cst_14 : f32 to vector<256x256xf32>
    %55 = arith.addf %54, %53 : vector<256x256xf32>
    %56 = arith.mulf %28, %55 : vector<256x256xf32>
    %cst_15 = arith.constant 0.0416666679 : f32
    %57 = vector.broadcast %cst_15 : f32 to vector<256x256xf32>
    %58 = arith.addf %57, %56 : vector<256x256xf32>
    %59 = arith.mulf %28, %58 : vector<256x256xf32>
    %cst_16 = arith.constant -5.000000e-01 : f32
    %60 = vector.broadcast %cst_16 : f32 to vector<256x256xf32>
    %61 = arith.addf %60, %59 : vector<256x256xf32>
    %62 = arith.mulf %28, %61 : vector<256x256xf32>
    %cst_17 = arith.constant 1.000000e+00 : f32
    %63 = vector.broadcast %cst_17 : f32 to vector<256x256xf32>
    %64 = arith.addf %63, %62 : vector<256x256xf32>
    %65 = arith.mulf %45, %45 : vector<256x256xf32>
    %66 = arith.addf %65, %65 : vector<256x256xf32>
    %cst_18 = arith.constant 1.000000e+00 : f32
    %67 = vector.broadcast %cst_18 : f32 to vector<256x256xf32>
    %68 = arith.subf %67, %66 : vector<256x256xf32>
    %69 = arith.addf %45, %45 : vector<256x256xf32>
    %70 = arith.mulf %69, %64 : vector<256x256xf32>
    %c0_19 = arith.constant 0 : index
    %c0_20 = arith.constant 0 : index
    %71 = vector.load %arg4[%c0_19, %c0_20] : memref<256x4xf32, #tpu.memory_space<vmem>>, vector<256x4xf32>
    %c0_21 = arith.constant 0 : index
    %c0_22 = arith.constant 0 : index
    %72 = vector.load %arg5[%c0_21, %c0_22] : memref<256x4xf32, #tpu.memory_space<vmem>>, vector<256x4xf32>
    %cst_23 = arith.constant dense<0.000000e+00> : vector<256x4xf32>
    %73 = tpu.matmul %68, %71, %cst_23 {dimension_numbers = #tpu.dot_dimension_numbers<[1], [0], [0], [1], [0, 0, 1, 1], [], []>, precision = #tpu.contract_precision<fp32>} : vector<256x256xf32>, vector<256x4xf32>, vector<256x4xf32> -> vector<256x4xf32>
    %74 = arith.addf %72, %73 : vector<256x4xf32>
    %c0_24 = arith.constant 0 : index
    %c0_25 = arith.constant 0 : index
    %75 = vector.load %arg5[%c0_24, %c0_25] : memref<256x4xf32, #tpu.memory_space<vmem>>, vector<256x4xf32>
    tpu.vector_store %arg5[%c0_24, %c0_25], %74 {strides = array<i32>} : memref<256x4xf32, #tpu.memory_space<vmem>>, vector<256x4xf32>,
    %c0_26 = arith.constant 0 : index
    %c0_27 = arith.constant 0 : index
    %76 = vector.load %arg6[%c0_26, %c0_27] : memref<256x4xf32, #tpu.memory_space<vmem>>, vector<256x4xf32>
    %cst_28 = arith.constant dense<0.000000e+00> : vector<256x4xf32>
    %77 = tpu.matmul %70, %71, %cst_28 {dimension_numbers = #tpu.dot_dimension_numbers<[1], [0], [0], [1], [0, 0, 1, 1], [], []>, precision = #tpu.contract_precision<fp32>} : vector<256x256xf32>, vector<256x4xf32>, vector<256x4xf32> -> vector<256x4xf32>
    %78 = arith.addf %76, %77 : vector<256x4xf32>
    %c0_29 = arith.constant 0 : index
    %c0_30 = arith.constant 0 : index
    %79 = vector.load %arg6[%c0_29, %c0_30] : memref<256x4xf32, #tpu.memory_space<vmem>>, vector<256x4xf32>
    tpu.vector_store %arg6[%c0_29, %c0_30], %78 {strides = array<i32>} : memref<256x4xf32, #tpu.memory_space<vmem>>, vector<256x4xf32>,
    return
  }
  func.func @transform_0(%arg0: i32, %arg1: i32) -> (i32, i32) {
    %c0_i32 = arith.constant 0 : i32
    %c0_i32_0 = arith.constant 0 : i32
    return %arg0, %c0_i32 : i32, i32
  }
  func.func @transform_1(%arg0: i32, %arg1: i32) -> (i32, i32) {
    %c0_i32 = arith.constant 0 : i32
    %c0_i32_0 = arith.constant 0 : i32
    return %c0_i32, %arg1 : i32, i32
  }
  func.func @transform_2(%arg0: i32, %arg1: i32) -> (i32, i32) {
    %c0_i32 = arith.constant 0 : i32
    %c0_i32_0 = arith.constant 0 : i32
    return %arg1, %c0_i32 : i32, i32
  }
  func.func @transform_3(%arg0: i32, %arg1: i32) -> (i32, i32) {
    %c0_i32 = arith.constant 0 : i32
    %c0_i32_0 = arith.constant 0 : i32
    return %arg0, %c0_i32 : i32, i32
  }
  func.func @transform_4(%arg0: i32, %arg1: i32) -> (i32, i32) {
    %c0_i32 = arith.constant 0 : i32
    %c0_i32_0 = arith.constant 0 : i32
    return %arg0, %c0_i32 : i32, i32
  }
}

</mosaic_0001>

<bundles_post_ra>
// kernel: tpu_custom_call.1
= control target key start
LH: loop header
LB: loop body
LE: loop exit
PB: predicated region body
PF: predicated region fallthrough
CT: control target
= control target key end

     0   :  { %s8943_s15 = smov 0   ;;  %s8945_s16 = smov 0   ;;  %s14257_s0 = inlined_call_operand.vmem [shape: f32[512,8], index: 0, kind: input, shape index: {}]   ;;  %s14258_s1 = inlined_call_operand.vmem [shape: f32[8,256], index: 1, kind: input, shape index: {}]   ;;  %s14259_s2 = inlined_call_operand.vmem [shape: f32[256,4], index: 2, kind: input, shape index: {}]   ;;  %s14260_s3 = inlined_call_operand.vmem [shape: f32[512,4], index: 3, kind: output, shape index: {0}]   ;;  %s14261_s4 = inlined_call_operand.vmem [shape: f32[512,4], index: 4, kind: output, shape index: {1}]  }
   0x1   :  { %s8947_s17 = smov 0  }
   0x2 LB: > { %s27_s18 = sadd.s32 1, %s8908_s16  ;;  %p8796_p0 = scmp.ge.s32.totalorder %s8912_s17, 1  ;;  %s8912_s17 = sphi %s8947_s17, %s15_s17   ;;  %s8908_s16 = sphi %s8945_s16, %s16173_s16   ;;  %s8904_s15 = sphi %s8943_s15, %s16172_s15  }
   0x3   : > { %p29_p1 = scmp.ge.s32.totalorder %s27_s18, 2  ;;  %p200_p2 = scmp.lt.s32.totalorder %s8912_s17, 3 }
   0x5   : > { %s16175_s18 = smov (%p29_p1, %s27_s18), 0  ;;  %p201_p3 = pnand %p8796_p0, %p200_p2 }
   0x7   : > { %204 = sbr.rel (%p201_p3) target bundleno = 1971 (0x7b3), region = 32 }
   0xc   : > { %s8797_s19 = sshll.u32 %s8904_s15, 5  ;;  %v14266_v0 = vmov 2   ;;  %v14264_v1 = vmov 0   ;;  %v14262_v2 = vmov 1   ;;  %v3243_v16 = vld [vmem:[%s14259_s2 + $0x78] sm:$0xff]  ;;  %v3242_v19 = vld [vmem:[%s14259_s2 + $0x70] sm:$0xff] }
   0xd   : > { %8835 = vset.pattern.permute.xlu1 %v14266_v0  ;;  %8833 = vset.pattern.permute.xlu0 %v14264_v1  ;;  %p242_p4 = scmp.lt.s32.totalorder %s8797_s19, 63  ;;  %v9008_v17 = vand.u32 4294901760, %v3243_v16  ;;  %v9022_v21 = vand.u32 4294901760, %v3242_v19  ;;  %v3241_v22 = vld [vmem:[%s14259_s2 + $0x68] sm:$0xff]  ;;  %v3240_v26 = vld [vmem:[%s14259_s2 + $0x60] sm:$0xff]  ;;  %v3239_v32 = vld [vmem:[%s14259_s2 + $0x58] sm:$0xff] }
   0xe   : > { %8837 = vset.pattern.permute.xlu2 %v14262_v2  ;;  %v9034_v25 = vand.u32 4294901760, %v3241_v22  ;;  %v9053_v31 = vand.u32 4294901760, %v3240_v26  ;;  %v9071_v36 = vand.u32 4294901760, %v3239_v32  ;;  %v3238_v47 = vld [vmem:[%s14259_s2 + $0x50] sm:$0xff]  ;;  %v373_v48 = vld [vmem:[%s14258_s1 + $0x8] sm:$0xff]  ;;  %v372_v52 = vld [vmem:[%s14258_s1] sm:$0xff] }
   0xf   : > { %s16177_s19 = smov (!%p242_p4, %s8797_s19), 63  ;;  %14970 = vst [vmem:[#allocation2_spill] sm:$0xff] %v9008_v17  ;;  %v9012_v18 = vsub.f32 %v3243_v16, %v9008_v17  ;;  %4016 = vmatpush.msra.mxu3 %v9008_v17  ;;  %3293 = vmatpush.msra.mxu0 %v9008_v17  ;;  %v9032_v24 = vsub.f32 %v3242_v19, %v9022_v21  ;;  %v9110_v51 = vand.u32 4294901760, %v3238_v47  ;;  %v9116_v53 = vperm.slane %v372_v52, 0 }
  0x10   : > { %s8964_s20 = sshll.u32 %s16177_s19, 3  ;;  %14973 = vst [vmem:[#allocation5_spill] sm:$0xff] %v9022_v21  ;;  %v9050_v30 = vsub.f32 %v3241_v22, %v9034_v25  ;;  %v9068_v35 = vsub.f32 %v3240_v26, %v9053_v31  ;;  %v9086_v41 = vsub.f32 %v3239_v32, %v9071_v36  ;;  %v9118_v54 = vperm.slane %v373_v48, 0 }
  0x11   : > { %s8970_s23 = scalar_lea.vmem %s14257_s0, %s8964_s20  ;;  %14971 = vst [vmem:[#allocation3_spill] sm:$0xff] %v9012_v18  ;;  %v9020_v20 = vand.u32 4294901760, %v9012_v18  ;;  %3808 = vmatpush.msra.mxu2 %v9012_v18  ;;  %4018 = vmatpush.msra.mxu3 %v9022_v21  ;;  %v9047_v29 = vand.u32 4294901760, %v9032_v24  ;;  %v9125_v56 = vsub.f32 %v3238_v47, %v9110_v51  ;;  %v9127_v57 = vperm.slane %v373_v48, 1  ;;  %s12276_s29 = scalar_lea.vmem %s14260_s3, %s8964_s20 }
  0x12   : > { %v340_v3 = vld [vmem:[%s8970_s23] sm:$0xff]  ;;  %v341_v4 = vld [vmem:[%s8970_s23 + $0x8] sm:$0xff]  ;;  %v342_v5 = vld [vmem:[%s8970_s23 + $0x10] sm:$0xff]  ;;  %14974 = vst [vmem:[#allocation6_spill] sm:$0xff] %v9032_v24  ;;  %3295 = vmatpush.msra.mxu0 %v9022_v21  ;;  %v9065_v34 = vand.u32 4294901760, %v9050_v30  ;;  %v9083_v40 = vand.u32 4294901760, %v9068_v35  ;;  %s13823_s6 = scalar_lea.vmem %s14261_s4, %s8964_s20 }
  0x13   : > { %859 = vperm.xlu1 %8835, %v340_v3   ;;  %376 = vperm.xlu0 %8833, %v340_v3   ;;  %v343_v6 = vld [vmem:[%s8970_s23 + $0x18] sm:$0xff]  ;;  %v344_v8 = vld [vmem:[%s8970_s23 + $0x20] sm:$0xff]  ;;  %v349_v9 = vld [vmem:[%s8970_s23 + $0x48] sm:$0xff]  ;;  %14972 = vst [vmem:[#allocation4_spill] sm:$0xff] %v9020_v20  ;;  %v3584_v23 = vsub.f32 %v9012_v18, %v9020_v20  ;;  %v3590_v33 = vsub.f32 %v9032_v24, %v9047_v29  ;;  %v9095_v46 = vand.u32 4294901760, %v9086_v41  ;;  %v9135_v59 = vand.u32 4294901760, %v9125_v56 }
  0x14   : > { %605 = vperm.xlu2 %8837, %v341_v4   ;;  %v347_v7 = vld [vmem:[%s8970_s23 + $0x38] sm:$0xff]  ;;  %v345_v10 = vld [vmem:[%s8970_s23 + $0x28] sm:$0xff]  ;;  %v346_v11 = vld [vmem:[%s8970_s23 + $0x30] sm:$0xff]  ;;  %14975 = vst [vmem:[#allocation7_spill] sm:$0xff] %v9034_v25  ;;  %3811 = vmatpush.msra.mxu2 %v9032_v24  ;;  %v3596_v39 = vsub.f32 %v9050_v30, %v9065_v34  ;;  %v3602_v45 = vsub.f32 %v9068_v35, %v9083_v40  ;;  %v9138_v60 = vperm.slane %v372_v52, 1  ;;  %v9140_v61 = vperm.slane %v372_v52, 2 }
  0x15   : > { %v351_v12 = vld [vmem:[%s8970_s23 + $0x58] sm:$0xff]  ;;  %v348_v13 = vld [vmem:[%s8970_s23 + $0x40] sm:$0xff]  ;;  %v350_v15 = vld [vmem:[%s8970_s23 + $0x50] sm:$0xff]  ;;  %v9044_v28 = vand.u32 4294901760, %v3584_v23  ;;  %14977 = vst [vmem:[#allocation9_spill] sm:$0xff] %v9047_v29  ;;  %4020 = vmatpush.msra.mxu3 %v9034_v25  ;;  %3297 = vmatpush.msra.mxu0 %v9034_v25  ;;  %v9076_v38 = vand.u32 4294901760, %v3590_v33  ;;  %v3608_v50 = vsub.f32 %v9086_v41, %v9095_v46 }
  0x16   : > { %v8999_v14 = vld [vmem:[%s8970_s23 + $0x60] sm:$0xff]  ;;  %v9042_v27 = vld [vmem:[%s8970_s23 + $0x70] sm:$0xff]  ;;  %14978 = vst [vmem:[#allocation10_spill] sm:$0xff] %v9050_v30  ;;  %3814 = vmatpush.msra.mxu2 %v9050_v30  ;;  %v9090_v42 = vand.u32 4294901760, %v3596_v39  ;;  %v9106_v49 = vand.u32 4294901760, %v3602_v45  ;;  %v9144_v62 = vperm.slane %v373_v48, 2 }
  0x17   : > { %14976 = vst [vmem:[#allocation8_spill] sm:$0xff] %v9044_v28  ;;  %3586 = vmatpush.msra.mxu1 %v9044_v28  ;;  %4022 = vmatpush.msra.mxu3 %v9053_v31  ;;  %v9122_v55 = vand.u32 4294901760, %v3608_v50  ;;  %vm275_vm0 = vcmask 31744  }
  0x18   : > { %14979 = vst [vmem:[#allocation11_spill] sm:$0xff] %v9053_v31  ;;  %3817 = vmatpush.msra.mxu2 %v9068_v35  ;;  %3299 = vmatpush.msra.mxu0 %v9053_v31 }
  0x19   : > { %14980 = vst [vmem:[#allocation12_spill] sm:$0xff] %v9065_v34  ;;  %4024 = vmatpush.msra.mxu3 %v9071_v36  ;;  %3592 = vmatpush.msra.mxu1 %v9076_v38 }
  0x1a   : > { %14981 = vst [vmem:[#allocation13_spill] sm:$0xff] %v9068_v35  ;;  %3820 = vmatpush.msra.mxu2 %v9086_v41  ;;  %3301 = vmatpush.msra.mxu0 %v9071_v36  ;;  %v15011_v35 = vmov 1  }
  0x1b   : > { %8836 = vset.pattern.permute.xlu1 %v14264_v1  ;;  %8834 = vset.pattern.permute.xlu0 %v14262_v2  ;;  %14982 = vst [vmem:[#allocation14_spill] sm:$0xff] %v9071_v36 }
  0x1c   : > { %381 = vperm.xlu1 %8836, %v341_v4   ;;  %601 = vperm.xlu0 %8834, %v340_v3   ;;  %14983 = vst [vmem:[#allocation15_spill] sm:$0xff] %v9076_v38 }
  0x1d   : > { %8838 = vset.pattern.permute.xlu2 %v14266_v0  ;;  %14984 = vst [vmem:[#allocation16_spill] sm:$0xff] %v9083_v40  ;;  %3598 = vmatpush.msra.mxu1 %v9090_v42 }
  0x1e   : > { %863 = vperm.xlu2 %8838, %v341_v4   ;;  %14985 = vst [vmem:[#allocation17_spill] sm:$0xff] %v9086_v41  ;;  %4026 = vmatpush.msra.mxu3 %v9110_v51  ;;  %v3614_v4 = vsub.f32 %v9125_v56, %v9135_v59 }
  0x1f   : > { %14986 = vst [vmem:[#allocation18_spill] sm:$0xff] %v9090_v42  ;;  %3604 = vmatpush.msra.mxu1 %v9106_v49  ;;  %3823 = vmatpush.msra.mxu2 %v9125_v56 }
  0x20   : > { %14987 = vst [vmem:[#allocation19_spill] sm:$0xff] %v9095_v46  ;;  %3303 = vmatpush.msra.mxu0 %v9110_v51  ;;  %v9168_v19 = vand.u32 4294901760, %v3614_v4 }
  0x21   : > { %14988 = vst [vmem:[#allocation20_spill] sm:$0xff] %v9106_v49  ;;  %3610 = vmatpush.msra.mxu1 %v9122_v55 }
  0x22   : > { %14989 = vst [vmem:[#allocation21_spill] sm:$0xff] %v9110_v51 }
  0x23   : > { %14990 = vst [vmem:[#allocation22_spill] sm:$0xff] %v9122_v55  ;;  %3616 = vmatpush.msra.mxu1 %v9168_v19 }
  0x24   : > { %386 = vperm.xlu1 %8836, %v342_v5   ;;  %8840 = vset.pattern.permute.xlu0 %v14266_v0  ;;  %14991 = vst [vmem:[#allocation23_spill] sm:$0xff] %v9125_v56  ;;  %v355_v56 = vld [vmem:[%s8970_s23 + $0x78] sm:$0xff] }
  0x25   : > { %867 = vperm.xlu0 %8840, %v342_v5   ;;  %14992 = vst [vmem:[#allocation24_spill] sm:$0xff] %v9135_v59 }
  0x26   : > { %8839 = vset.pattern.permute.xlu2 %v14262_v2  ;;  %14994 = vst [vmem:[#allocation26_spill] sm:$0xff] %v9168_v19 }
  0x27   : > { %609 = vperm.xlu2 %8839, %v342_v5   ;;  %v3237_v5 = vld [vmem:[%s14259_s2 + $0x48] sm:$0xff] }
  0x2c   : > { %391 = vperm.xlu1 %8836, %v343_v6  }
  0x2d   : > { %887 = vperm.xlu0 %8840, %v347_v7  }
  0x2f   : > { %613 = vperm.xlu2 %8839, %v343_v6  }
  0x34   : > { %8841 = vset.pattern.permute.xlu1 %v14266_v0 }
  0x35   : > { %871 = vperm.xlu1 %8841, %v343_v6   ;;  %8847 = vset.pattern.permute.xlu0 %v14262_v2 }
  0x36   : > { %617 = vperm.xlu0 %8847, %v344_v8  }
  0x37   : > { %8842 = vset.pattern.permute.xlu2 %v14264_v1 }
  0x38   : > { %396 = vperm.xlu2 %8842, %v344_v8  }
  0x3d   : > { %875 = vperm.xlu1 %8841, %v344_v8  }
  0x3e   : > { %637 = vperm.xlu0 %8847, %v349_v9  }
  0x40   : > { %401 = vperm.xlu2 %8842, %v345_v10  }
  0x45   : > { %8843 = vset.pattern.permute.xlu1 %v14262_v2 }
  0x46   : > { %621 = vperm.xlu1 %8843, %v345_v10   ;;  %8850 = vset.pattern.permute.xlu0 %v14264_v1 }
  0x47   : > { %406 = vperm.xlu0 %8850, %v346_v11  }
  0x48   : > { %8844 = vset.pattern.permute.xlu2 %v14266_v0 }
  0x49   : > { %879 = vperm.xlu2 %8844, %v345_v10  }
  0x4e   : > { %625 = vperm.xlu1 %8843, %v346_v11  }
  0x4f   : > { %431 = vperm.xlu0 %8850, %v351_v12  }
  0x51   : > { %883 = vperm.xlu2 %8844, %v346_v11  }
  0x56   : > { %8845 = vset.pattern.permute.xlu1 %v14264_v1 }
  0x57   : > { %411 = vperm.xlu1 %8845, %v347_v7   ;;  %8855 = vset.pattern.permute.xlu0 %v14266_v0 }
  0x58   : > { %907 = vperm.xlu0 %8855, %v8999_v14  }
  0x59   : > { %8846 = vset.pattern.permute.xlu2 %v14262_v2 }
  0x5a   : > { %629 = vperm.xlu2 %8846, %v347_v7  }
  0x5f   : > { %416 = vperm.xlu1 %8845, %v348_v13  }
  0x60   : > { %8858 = vset.pattern.permute.xlu0 %v14262_v2 }
  0x61   : > { %657 = vperm.xlu0 %8858, %v9042_v27  }
  0x62   : > { %633 = vperm.xlu2 %8846, %v348_v13  }
  0x67   : > { %8848 = vset.pattern.permute.xlu1 %v14266_v0 }
  0x68   : > { %891 = vperm.xlu1 %8848, %v348_v13  }
  0x69   : > { %8861 = vset.pattern.permute.xlu0 %v14264_v1 }
  0x6a   : > { %8849 = vset.pattern.permute.xlu2 %v14264_v1 }
  0x6b   : > { %421 = vperm.xlu2 %8849, %v349_v9  }
  0x6e   : > { %v9073_v37 = vpop.permute.xlu2 %605 }
  0x6f   : > { %v733_v6 = vmul.f32 %v9127_v57, %v9073_v37 }
  0x70   : > { %895 = vperm.xlu1 %8848, %v349_v9   ;;  %v9156_v9 = vand.u32 4294901760, %v3237_v5 }
  0x72   : > { %14993 = vst [vmem:[#allocation25_spill] sm:$0xff] %v9156_v9  ;;  %v9171_v22 = vsub.f32 %v3237_v5, %v9156_v9  ;;  %4028 = vmatpush.msra.mxu3 %v9156_v9  ;;  %3305 = vmatpush.msra.mxu0 %v9156_v9 }
  0x73   : > { %426 = vperm.xlu2 %8849, %v350_v15  }
  0x74   : > { %14995 = vst [vmem:[#allocation27_spill] sm:$0xff] %v9171_v22  ;;  %v9183_v45 = vand.u32 4294901760, %v9171_v22  ;;  %3826 = vmatpush.msra.mxu2 %v9171_v22 }
  0x76   : > { %14997 = vst [vmem:[#allocation29_spill] sm:$0xff] %v9183_v45 }
  0x78   : > { %8851 = vset.pattern.permute.xlu1 %v14262_v2  ;;  %v9131_v58 = vpop.permute.xlu2 %863 }
  0x79   : > { %641 = vperm.xlu1 %8851, %v350_v15   ;;  %v991_v10 = vmul.f32 %v9144_v62, %v9131_v58 }
  0x7b   : > { %8852 = vset.pattern.permute.xlu2 %v14266_v0 }
  0x7c   : > { %899 = vperm.xlu2 %8852, %v350_v15   ;;  %v3236_v15 = vld [vmem:[%s14259_s2 + $0x40] sm:$0xff] }
  0x7d   : > { %v9173_v23 = vand.u32 4294901760, %v3236_v15 }
  0x7f   : > { %14996 = vst [vmem:[#allocation28_spill] sm:$0xff] %v9173_v23  ;;  %v9186_v47 = vsub.f32 %v3236_v15, %v9173_v23  ;;  %4030 = vmatpush.msra.mxu3 %v9173_v23  ;;  %3307 = vmatpush.msra.mxu0 %v9173_v23 }
  0x81   : > { %645 = vperm.xlu1 %8851, %v351_v12   ;;  %14998 = vst [vmem:[#allocation30_spill] sm:$0xff] %v9186_v47  ;;  %3829 = vmatpush.msra.mxu2 %v9186_v47 }
  0x84   : > { %903 = vperm.xlu2 %8852, %v351_v12  }
  0x85   : > { %v860_v43 = vpop.permute.xlu1 %859  ;;  %v377_v44 = vpop.permute.xlu0 %376 }
  0x86   : > { %v536_v63 = vmul.f32 %v9116_v53, %v377_v44  ;;  %v537_v3 = vmul.f32 %v9118_v54, %v377_v44  ;;  %v988_v16 = vmul.f32 %v9140_v61, %v860_v43  ;;  %v989_v26 = vmul.f32 %v9144_v62, %v860_v43  ;;  %v3235_v44 = vld [vmem:[%s14259_s2 + $0x38] sm:$0xff] }
  0x87   : > { %v9191_v52 = vand.u32 4294901760, %v3235_v44 }
  0x89   : > { %8853 = vset.pattern.permute.xlu1 %v14264_v1  ;;  %15000 = vst [vmem:[#allocation32_spill] sm:$0xff] %v9191_v52  ;;  %4032 = vmatpush.msra.mxu3 %v9191_v52 }
  0x8a   : > { %436 = vperm.xlu1 %8853, %v8999_v14   ;;  %3309 = vmatpush.msra.mxu0 %v9191_v52 }
  0x8c   : > { %8854 = vset.pattern.permute.xlu2 %v14262_v2 }
  0x8d   : > { %649 = vperm.xlu2 %8854, %v8999_v14   ;;  %v353_v14 = vld [vmem:[%s8970_s23 + $0x68] sm:$0xff] }
  0x8e   : > { %v382_v7 = vpop.permute.xlu1 %381  ;;  %v602_v8 = vpop.permute.xlu0 %601 }
  0x8f   : > { %v539_v11 = vmul.f32 %v9118_v54, %v382_v7  ;;  %v730_v12 = vmul.f32 %v9138_v60, %v602_v8  ;;  %v731_v13 = vmul.f32 %v9127_v57, %v602_v8  ;;  %v538_v4 = vmul.f32 %v9116_v53, %v382_v7  ;;  %v3234_v8 = vld [vmem:[%s14259_s2 + $0x30] sm:$0xff] }
  0x90   : > { %v732_v7 = vmul.f32 %v9138_v60, %v9073_v37  ;;  %v9222_v2 = vand.u32 4294901760, %v3234_v8 }
  0x91   : > { %v797_v32 = vadd.f32 %v733_v6, %v539_v11  ;;  %v794_v33 = vadd.f32 %v730_v12, %v536_v63  ;;  %v795_v39 = vadd.f32 %v731_v13, %v537_v3  ;;  %v3620_v63 = vsub.f32 %v9171_v22, %v9183_v45  ;;  %v610_v6 = vpop.permute.xlu2 %609 }
  0x92   : > { %441 = vperm.xlu1 %8853, %v353_v14   ;;  %v9196_v3 = vand.u32 4294901760, %v9186_v47  ;;  %15004 = vst [vmem:[#allocation36_spill] sm:$0xff] %v9222_v2  ;;  %v796_v1 = vadd.f32 %v732_v7, %v538_v4  ;;  %v734_v37 = vmul.f32 %v9138_v60, %v610_v6  ;;  %4034 = vmatpush.msra.mxu3 %v9222_v2 }
  0x93   : > { %v9188_v48 = vadd.f32 %v991_v10, %v797_v32  ;;  %v1052_v50 = vadd.f32 %v988_v16, %v794_v33  ;;  %v1053_v43 = vadd.f32 %v989_v26, %v795_v39  ;;  %v735_v10 = vmul.f32 %v9127_v57, %v610_v6  ;;  %3311 = vmatpush.msra.mxu0 %v9222_v2 }
  0x94   : > { %15001 = vst [vmem:[#allocation33_spill] sm:$0xff] %v9196_v3  ;;  %v9206_v12 = vand.u32 4294901760, %v3620_v63  ;;  %v3626_v13 = vsub.f32 %v9186_v47, %v9196_v3  ;;  %v9215_v32 = vsub.f32 %v3235_v44, %v9191_v52  ;;  %v990_v33 = vmul.f32 %v9140_v61, %v9131_v58 }
  0x95   : > { %14999 = vst [vmem:[#allocation31_spill] sm:$0xff] %v9188_v48  ;;  %v1117_v5 = vadd.f32 0.5, %v1053_v43  ;;  %653 = vperm.xlu2 %8854, %v353_v14   ;;  %v1116_v15 = vadd.f32 0.5, %v1052_v50  ;;  %v15005_v47 = vmov 2  }
  0x96   : > { %v387_v11 = vpop.permute.xlu1 %386  ;;  %15002 = vst [vmem:[#allocation34_spill] sm:$0xff] %v9206_v12  ;;  %3622 = vmatpush.msra.mxu1 %v9206_v12  ;;  %3832 = vmatpush.msra.mxu2 %v9215_v32  ;;  %v9228_v58 = vand.u32 4294901760, %v3626_v13  ;;  %v1054_v4 = vadd.f32 %v990_v33, %v796_v1 }
  0x97   : > { %v1181_v16 = vfloor.f32 %v1117_v5  ;;  %v868_v26 = vpop.permute.xlu0 %867  ;;  %15003 = vst [vmem:[#allocation35_spill] sm:$0xff] %v9215_v32  ;;  %v541_v39 = vmul.f32 %v9118_v54, %v387_v11  ;;  %v540_v5 = vmul.f32 %v9116_v53, %v387_v11  ;;  %v1180_v22 = vfloor.f32 %v1116_v15 }
  0x98   : > { %v993_v63 = vmul.f32 %v9144_v62, %v868_v26  ;;  %15006 = vst [vmem:[#allocation37_spill] sm:$0xff] %v9228_v58  ;;  %3628 = vmatpush.msra.mxu1 %v9228_v58  ;;  %v15008_v11 = vmov 0  }
  0x99   : > { %v1245_v0 = vsub.f32 %v1053_v43, %v1181_v16  ;;  %v799_v44 = vadd.f32 %v735_v10, %v541_v39  ;;  %v798_v6 = vadd.f32 %v734_v37, %v540_v5  ;;  %v992_v10 = vmul.f32 %v9140_v61, %v868_v26  ;;  %v614_v16 = vpop.permute.xlu2 %613 }
  0x9a   : > { %8856 = vset.pattern.permute.xlu1 %v15005_v47  ;;  %v1118_v26 = vadd.f32 0.5, %v1054_v4 }
  0x9b   : > { %911 = vperm.xlu1 %8856, %v353_v14   ;;  %v9232_v12 = vmul.f32 -3.1415927, %v1245_v0  ;;  %v9234_v43 = vadd.f32 %v993_v63, %v799_v44  ;;  %v9245_v0 = vsub.f32 %v3234_v8, %v9222_v2  ;;  %v1244_v14 = vsub.f32 %v1052_v50, %v1180_v22 }
  0x9c   : > { %v1056_v33 = vadd.f32 %v992_v10, %v798_v6  ;;  %v737_v8 = vmul.f32 %v9127_v57, %v614_v16  ;;  %v1182_v44 = vfloor.f32 %v1118_v26 }
  0x9d   : > { %15007 = vst [vmem:[#allocation38_spill] sm:$0xff] %v9234_v43  ;;  %8857 = vset.pattern.permute.xlu2 %v15008_v11  ;;  %v9241_v13 = vmul.f32 %v9232_v12, %v9232_v12  ;;  %3835 = vmatpush.msra.mxu2 %v9245_v0  ;;  %v9251_v5 = vmul.f32 -3.1415927, %v1244_v14 }
  0x9e   : > { %v392_v7 = vpop.permute.xlu1 %391  ;;  %446 = vperm.xlu2 %8857, %v9042_v27   ;;  %15009 = vst [vmem:[#allocation39_spill] sm:$0xff] %v9245_v0  ;;  %v1120_v58 = vadd.f32 0.5, %v1056_v33 }
  0x9f   : > { %v1437_v15 = vmul.f32 -2.5052108e-08, %v9241_v13  ;;  %v2141_v1 = vmul.f32 2.0876758e-09, %v9241_v13  ;;  %v543_v39 = vmul.f32 %v9118_v54, %v392_v7  ;;  %v9260_v10 = vmul.f32 %v9251_v5, %v9251_v5  ;;  %v9268_v41 = vpop.permute.xlu0 %887 }
  0xa0   : > { %v1184_v26 = vfloor.f32 %v1120_v58  ;;  %v356_v58 = vld [vmem:[%s8970_s23 + $0x80] sm:$0xff] }
  0xa1   : > { %v1501_v63 = vadd.f32 2.7557319e-06, %v1437_v15  ;;  %v2205_v37 = vadd.f32 -2.755732e-07, %v2141_v1  ;;  %v801_v19 = vadd.f32 %v737_v8, %v543_v39  ;;  %15010 = vst [vmem:[#allocation40_spill] sm:$0xff] %v9260_v10  ;;  %v542_v1 = vmul.f32 %v9116_v53, %v392_v7  ;;  %456 = vperm.xlu0 %8861, %v356_v58  }
  0xa2   : > { %v736_v8 = vmul.f32 %v9138_v60, %v614_v16  ;;  %v1248_v16 = vsub.f32 %v1056_v33, %v1184_v26 }
  0xa3   : > { %915 = vperm.xlu1 %8856, %v9042_v27   ;;  %v1565_v22 = vmul.f32 %v1501_v63, %v9241_v13  ;;  %v2269_v50 = vmul.f32 %v2205_v37, %v9241_v13  ;;  %v1246_v63 = vsub.f32 %v1054_v4, %v1182_v44 }
  0xa4   : > { %v800_v30 = vadd.f32 %v736_v8, %v542_v1 }
  0xa5   : > { %v1629_v55 = vadd.f32 -0.0001984127, %v1565_v22  ;;  %v2333_v6 = vadd.f32 2.4801588e-05, %v2269_v50  ;;  %v1436_v50 = vmul.f32 -2.5052108e-08, %v9260_v10 }
  0xa6   : > { %451 = vperm.xlu2 %8857, %v355_v56   ;;  %v9275_v7 = vmul.f32 -3.1415927, %v1246_v63  ;;  %v9286_v63 = vmul.f32 -3.1415927, %v1248_v16 }
  0xa7   : > { %v872_v14 = vpop.permute.xlu1 %871  ;;  %v1693_v15 = vmul.f32 %v1629_v55, %v9241_v13  ;;  %v2397_v27 = vmul.f32 %v2333_v6, %v9241_v13  ;;  %v1500_v49 = vadd.f32 2.7557319e-06, %v1436_v50 }
  0xa8   : > { %v994_v22 = vmul.f32 %v9140_v61, %v872_v14  ;;  %v995_v4 = vmul.f32 %v9144_v62, %v872_v14  ;;  %v9284_v14 = vmul.f32 %v9275_v7, %v9275_v7 }
  0xa9   : > { %v1757_v37 = vadd.f32 0.008333334, %v1693_v15  ;;  %v2461_v39 = vadd.f32 -0.0013888889, %v2397_v27  ;;  %8864 = vset.pattern.permute.xlu0 %v15005_v47 }
  0xaa   : > { %v1058_v27 = vadd.f32 %v994_v22, %v800_v30  ;;  %v9280_v1 = vadd.f32 %v995_v4, %v801_v19  ;;  %15013 = vst [vmem:[#allocation42_spill] sm:$0xff] %v9284_v14  ;;  %v1564_v30 = vmul.f32 %v1500_v49, %v9260_v10  ;;  %v9290_v22 = vand.u32 4294901760, %v9215_v32  ;;  %v618_v4 = vpop.permute.xlu0 %617 }
  0xab   : > { %8859 = vset.pattern.permute.xlu1 %v15011_v35  ;;  %v1821_v55 = vmul.f32 %v1757_v37, %v9241_v13  ;;  %v2525_v6 = vmul.f32 %v2461_v39, %v9241_v13  ;;  %v1438_v50 = vmul.f32 -2.5052108e-08, %v9284_v14 }
  0xac   : > { %661 = vperm.xlu1 %8859, %v355_v56   ;;  %15012 = vst [vmem:[#allocation41_spill] sm:$0xff] %v9280_v1  ;;  %v1122_v8 = vadd.f32 0.5, %v1058_v27 }
  0xad   : > { %v1885_v44 = vadd.f32 -0.16666667, %v1821_v55  ;;  %v2589_v15 = vadd.f32 0.041666668, %v2525_v6  ;;  %15014 = vst [vmem:[#allocation43_spill] sm:$0xff] %v9290_v22  ;;  %v9299_v55 = vmul.f32 %v9286_v63, %v9286_v63  ;;  %v397_v6 = vpop.permute.xlu2 %396 }
  0xae   : > { %8860 = vset.pattern.permute.xlu2 %v15005_v47 }
  0xaf   : > { %919 = vperm.xlu2 %8860, %v355_v56   ;;  %v1949_v37 = vmul.f32 %v1885_v44, %v9241_v13  ;;  %v2653_v39 = vmul.f32 %v2589_v15, %v9241_v13  ;;  %15016 = vst [vmem:[#allocation45_spill] sm:$0xff] %v9299_v55  ;;  %v1186_v44 = vfloor.f32 %v1122_v8  ;;  %v1628_v15 = vadd.f32 -0.0001984127, %v1564_v30  ;;  %v876_v18 = vpop.permute.xlu1 %875 }
  0xb0   : > { %v1440_v24 = vmul.f32 -2.5052108e-08, %v9299_v55 }
  0xb1   : > { %v2013_v33 = vadd.f32 1.0, %v1949_v37  ;;  %v2717_v26 = vadd.f32 -0.5, %v2653_v39  ;;  %v544_v39 = vmul.f32 %v9116_v53, %v397_v6  ;;  %v1250_v42 = vsub.f32 %v1058_v27, %v1186_v44  ;;  %v3233_v27 = vld [vmem:[%s14259_s2 + $0x28] sm:$0xff] }
  0xb2   : > { %v1692_v8 = vmul.f32 %v1628_v15, %v9260_v10 }
  0xb3   : > { %v9293_v56 = vmul.f32 %v2013_v33, %v9232_v12  ;;  %v2781_v19 = vmul.f32 %v2717_v26, %v9241_v13  ;;  %v545_v12 = vmul.f32 %v9118_v54, %v397_v6  ;;  %v3632_v13 = vsub.f32 %v9215_v32, %v9290_v22 }
  0xb4   : > { %665 = vperm.xlu1 %8859, %v356_v58   ;;  %v738_v33 = vmul.f32 %v9138_v60, %v618_v4  ;;  %v739_v26 = vmul.f32 %v9127_v57, %v618_v4  ;;  %v9324_v4 = vmul.f32 -3.1415927, %v1250_v42  ;;  %v1756_v44 = vadd.f32 0.008333334, %v1692_v8  ;;  %v3232_v42 = vld [vmem:[%s14259_s2 + $0x20] sm:$0xff] }
  0xb5   : > { %15015 = vst [vmem:[#allocation44_spill] sm:$0xff] %v9293_v56  ;;  %v2845_v49 = vadd.f32 1.0, %v2781_v19  ;;  %v3101_v16 = vadd.f32 %v9293_v56, %v9293_v56  ;;  %v1502_v19 = vadd.f32 2.7557319e-06, %v1438_v50  ;;  %v9314_v30 = vand.u32 4294901760, %v3632_v13  ;;  %v402_v15 = vpop.permute.xlu2 %401 }
  0xb6   : > { %v803_v38 = vadd.f32 %v739_v26, %v545_v12  ;;  %v802_v32 = vadd.f32 %v738_v33, %v544_v39  ;;  %v997_v50 = vmul.f32 %v9144_v62, %v876_v18  ;;  %v9327_v12 = vand.u32 4294901760, %v9245_v0 }
  0xb7   : > { %923 = vperm.xlu2 %8860, %v356_v58   ;;  %v9307_v37 = vmul.f32 %v3101_v16, %v2845_v49  ;;  %15018 = vst [vmem:[#allocation47_spill] sm:$0xff] %v9314_v30  ;;  %v996_v58 = vmul.f32 %v9140_v61, %v876_v18  ;;  %v1566_v6 = vmul.f32 %v1502_v19, %v9284_v14  ;;  %v1504_v49 = vadd.f32 2.7557319e-06, %v1440_v24  ;;  %v3231_v19 = vld [vmem:[%s14259_s2 + $0x18] sm:$0xff] }
  0xb8   : > { %3634 = vmatpush.msra.mxu1 %v9314_v30  ;;  %15019 = vst [vmem:[#allocation48_spill] sm:$0xff] %v9327_v12  ;;  %v9330_v13 = vadd.f32 %v997_v50, %v803_v38  ;;  %v3638_v18 = vsub.f32 %v9245_v0, %v9327_v12  ;;  %v9334_v39 = vand.u32 4294901760, %v3233_v27  ;;  %v9346_v38 = vmul.f32 %v9324_v4, %v9324_v4  ;;  %v622_v56 = vpop.permute.xlu1 %621 }
  0xb9   : > { %15017 = vst [vmem:[#allocation46_spill] sm:$0xff] %v9307_v37  ;;  %v1060_v16 = vadd.f32 %v996_v58, %v802_v32  ;;  %v357_v32 = vld [vmem:[%s8970_s23 + $0x88] sm:$0xff]  ;;  %v1630_v33 = vadd.f32 -0.0001984127, %v1566_v6  ;;  %v1568_v26 = vmul.f32 %v1504_v49, %v9299_v55  ;;  %v3230_v6 = vld [vmem:[%s14259_s2 + $0x10] sm:$0xff]  ;;  %v1820_v49 = vmul.f32 %v1756_v44, %v9260_v10 }
  0xba   : > { %15020 = vst [vmem:[#allocation49_spill] sm:$0xff] %v9330_v13  ;;  %927 = vperm.xlu0 %8864, %v357_v32   ;;  %v9348_v58 = vand.u32 4294901760, %v3638_v18  ;;  %v9351_v50 = vsub.f32 %v3233_v27, %v9334_v39  ;;  %4036 = vmatpush.msra.mxu3 %v9334_v39  ;;  %v9359_v37 = vand.u32 4294901760, %v3232_v42  ;;  %v9366_v27 = vand.u32 4294901760, %v3231_v19  ;;  %v358_v13 = vld [vmem:[%s8970_s23 + $0x90] sm:$0xff] }
  0xbb   : > { %v1124_v24 = vadd.f32 0.5, %v1060_v16  ;;  %15021 = vst [vmem:[#allocation50_spill] sm:$0xff] %v9334_v39  ;;  %3313 = vmatpush.msra.mxu0 %v9334_v39  ;;  %v1694_v18 = vmul.f32 %v1630_v33, %v9284_v14  ;;  %v1632_v30 = vadd.f32 -0.0001984127, %v1568_v26  ;;  %v9372_v44 = vand.u32 4294901760, %v3230_v6 }
  0xbc   : > { %8862 = vset.pattern.permute.xlu1 %v15008_v11  ;;  %15022 = vst [vmem:[#allocation51_spill] sm:$0xff] %v9346_v38  ;;  %3640 = vmatpush.msra.mxu1 %v9348_v58  ;;  %v9370_v28 = vsub.f32 %v3232_v42, %v9359_v37  ;;  %v9382_v33 = vsub.f32 %v3231_v19, %v9366_v27  ;;  %v1884_v26 = vadd.f32 -0.16666667, %v1820_v49 }
  0xbd   : > { %461 = vperm.xlu1 %8862, %v357_v32   ;;  %v1188_v8 = vfloor.f32 %v1124_v24  ;;  %15023 = vst [vmem:[#allocation52_spill] sm:$0xff] %v9348_v58  ;;  %v9363_v24 = vand.u32 4294901760, %v9351_v50  ;;  %3838 = vmatpush.msra.mxu2 %v9351_v50  ;;  %v9389_v58 = vsub.f32 %v3230_v6, %v9372_v44  ;;  %v1758_v1 = vadd.f32 0.008333334, %v1694_v18 }
  0xbe   : > { %15024 = vst [vmem:[#allocation53_spill] sm:$0xff] %v9351_v50  ;;  %4038 = vmatpush.msra.mxu3 %v9359_v37  ;;  %3315 = vmatpush.msra.mxu0 %v9359_v37  ;;  %v9385_v42 = vand.u32 4294901760, %v9370_v28  ;;  %v9400_v49 = vand.u32 4294901760, %v9382_v33  ;;  %v547_v6 = vmul.f32 %v9118_v54, %v402_v15 }
  0xbf   : > { %8863 = vset.pattern.permute.xlu2 %v15011_v35  ;;  %15025 = vst [vmem:[#allocation54_spill] sm:$0xff] %v9359_v37  ;;  %v1252_v0 = vsub.f32 %v1060_v16, %v1188_v8  ;;  %v1442_v16 = vmul.f32 -2.5052108e-08, %v9346_v38  ;;  %v3644_v8 = vsub.f32 %v9351_v50, %v9363_v24  ;;  %3841 = vmatpush.msra.mxu2 %v9370_v28  ;;  %v9408_v48 = vand.u32 4294901760, %v9389_v58 }
  0xc0   : > { %669 = vperm.xlu2 %8863, %v357_v32   ;;  %15026 = vst [vmem:[#allocation55_spill] sm:$0xff] %v9363_v24  ;;  %4040 = vmatpush.msra.mxu3 %v9366_v27  ;;  %v3650_v43 = vsub.f32 %v9370_v28, %v9385_v42  ;;  %v3656_v18 = vsub.f32 %v9382_v33, %v9400_v49  ;;  %v9438_v24 = vpop.permute.xlu0 %637 }
  0xc1   : > { %15027 = vst [vmem:[#allocation56_spill] sm:$0xff] %v9366_v27  ;;  %v9377_v32 = vmul.f32 -3.1415927, %v1252_v0  ;;  %v546_v0 = vmul.f32 %v9116_v53, %v402_v15  ;;  %v9397_v19 = vand.u32 4294901760, %v3644_v8  ;;  %3317 = vmatpush.msra.mxu0 %v9366_v27  ;;  %3844 = vmatpush.msra.mxu2 %v9382_v33  ;;  %v1696_v8 = vmul.f32 %v1632_v30, %v9299_v55  ;;  %v880_v27 = vpop.permute.xlu2 %879 }
  0xc2   : > { %15028 = vst [vmem:[#allocation57_spill] sm:$0xff] %v9370_v28  ;;  %4042 = vmatpush.msra.mxu3 %v9372_v44  ;;  %v1506_v37 = vadd.f32 2.7557319e-06, %v1442_v16  ;;  %v740_v15 = vmul.f32 %v9138_v60, %v622_v56  ;;  %v1948_v28 = vmul.f32 %v1884_v26, %v9260_v10  ;;  %v9420_v39 = vand.u32 4294901760, %v3650_v43  ;;  %v3229_v16 = vld [vmem:[%s14259_s2 + $0x8] sm:$0xff]  ;;  %8867 = vset.pattern.permute.xlu0 %v15011_v35 }
  0xc3   : > { %15029 = vst [vmem:[#allocation58_spill] sm:$0xff] %v9372_v44  ;;  %v9395_v50 = vmul.f32 %v9377_v32, %v9377_v32  ;;  %3646 = vmatpush.msra.mxu1 %v9397_v19  ;;  %3319 = vmatpush.msra.mxu0 %v9372_v44  ;;  %v3662_v30 = vsub.f32 %v9389_v58, %v9408_v48  ;;  %v9430_v44 = vand.u32 4294901760, %v3656_v18  ;;  %v9440_v2 = vand.u32 4294901760, %v3229_v16 }
  0xc4   : > { %15030 = vst [vmem:[#allocation59_spill] sm:$0xff] %v9377_v32  ;;  %3847 = vmatpush.msra.mxu2 %v9389_v58  ;;  %v741_v26 = vmul.f32 %v9127_v57, %v622_v56  ;;  %v804_v10 = vadd.f32 %v740_v15, %v546_v0  ;;  %v1822_v18 = vmul.f32 %v1758_v1, %v9284_v14 }
  0xc5   : > { %15031 = vst [vmem:[#allocation60_spill] sm:$0xff] %v9382_v33  ;;  %466 = vperm.xlu1 %8862, %v358_v13   ;;  %v1444_v33 = vmul.f32 -2.5052108e-08, %v9395_v50  ;;  %3652 = vmatpush.msra.mxu1 %v9420_v39  ;;  %v9435_v43 = vand.u32 4294901760, %v3662_v30  ;;  %v9447_v30 = vsub.f32 %v3229_v16, %v9440_v2 }
  0xc6   : > { %15032 = vst [vmem:[#allocation61_spill] sm:$0xff] %v9385_v42  ;;  %v998_v42 = vmul.f32 %v9140_v61, %v880_v27  ;;  %4044 = vmatpush.msra.mxu3 %v9440_v2  ;;  %3321 = vmatpush.msra.mxu0 %v9440_v2 }
  0xc7   : > { %15033 = vst [vmem:[#allocation62_spill] sm:$0xff] %v9389_v58  ;;  %v1570_v58 = vmul.f32 %v1506_v37, %v9346_v38  ;;  %3658 = vmatpush.msra.mxu1 %v9430_v44  ;;  %v1508_v32 = vadd.f32 2.7557319e-06, %v1444_v33  ;;  %3850 = vmatpush.msra.mxu2 %v9447_v30  ;;  %v3228_v33 = vld [vmem:[%s14259_s2] sm:$0xff] }
  0xc8   : > { %15034 = vst [vmem:[#allocation63_spill] sm:$0xff] %v9395_v50  ;;  %673 = vperm.xlu2 %8863, %v358_v13   ;;  %v1062_v56 = vadd.f32 %v998_v42, %v804_v10  ;;  %v1886_v42 = vadd.f32 -0.16666667, %v1822_v18  ;;  %v407_v18 = vpop.permute.xlu0 %406 }
  0xc9   : > { %15035 = vst [vmem:[#allocation64_spill] sm:$0xff] %v9397_v19  ;;  %v999_v19 = vmul.f32 %v9144_v62, %v880_v27  ;;  %v2012_v27 = vadd.f32 1.0, %v1948_v28  ;;  %3664 = vmatpush.msra.mxu1 %v9435_v43  ;;  %v1634_v0 = vadd.f32 -0.0001984127, %v1570_v58  ;;  %v9464_v58 = vand.u32 4294901760, %v9447_v30 }
  0xca   : > { %15036 = vst [vmem:[#allocation65_spill] sm:$0xff] %v9400_v49  ;;  %v805_v49 = vadd.f32 %v741_v26, %v547_v6  ;;  %v1126_v37 = vadd.f32 0.5, %v1062_v56  ;;  %v9467_v6 = vand.u32 4294901760, %v3228_v33  ;;  %v884_v26 = vpop.permute.xlu2 %883 }
  0xcb   : > { %15037 = vst [vmem:[#allocation66_spill] sm:$0xff] %v9408_v48  ;;  %v1760_v48 = vadd.f32 0.008333334, %v1696_v8  ;;  %v9455_v10 = vmul.f32 %v2012_v27, %v9251_v5  ;;  %v1698_v5 = vmul.f32 %v1634_v0, %v9346_v38  ;;  %v626_v8 = vpop.permute.xlu1 %625  ;;  %v3668_v16 = vsub.f32 %v9447_v30, %v9464_v58 }
  0xcc   : > { %15038 = vst [vmem:[#allocation67_spill] sm:$0xff] %v9420_v39  ;;  %v9444_v52 = vadd.f32 %v999_v19, %v805_v49  ;;  %v1190_v1 = vfloor.f32 %v1126_v37  ;;  %v1572_v19 = vmul.f32 %v1508_v32, %v9395_v50  ;;  %v1950_v32 = vmul.f32 %v1886_v42, %v9284_v14  ;;  %4046 = vmatpush.msra.mxu3 %v9467_v6 }
  0xcd   : > { %15039 = vst [vmem:[#allocation68_spill] sm:$0xff] %v9430_v44  ;;  %v1824_v28 = vmul.f32 %v1760_v48, %v9299_v55  ;;  %8865 = vset.pattern.permute.xlu1 %v15005_v47  ;;  %3323 = vmatpush.msra.mxu0 %v9467_v6 }
  0xce   : > { %15040 = vst [vmem:[#allocation69_spill] sm:$0xff] %v9435_v43  ;;  %931 = vperm.xlu1 %8865, %v358_v13   ;;  %v1254_v48 = vsub.f32 %v1062_v56, %v1190_v1  ;;  %v2908_v13 = vmul.f32 %v9455_v10, %v9455_v10  ;;  %v1636_v27 = vadd.f32 -0.0001984127, %v1572_v19  ;;  %v9477_v56 = vsub.f32 %v3228_v33, %v9467_v6 }
  0xcf   : > { %15041 = vst [vmem:[#allocation70_spill] sm:$0xff] %v9440_v2  ;;  %v1888_v49 = vadd.f32 -0.16666667, %v1824_v28  ;;  %v9485_v28 = vand.u32 4294901760, %v3668_v16  ;;  %v742_v1 = vmul.f32 %v9138_v60, %v626_v8  ;;  %4243 = vmatpush.msrb.mxu0 %v9020_v20  ;;  %v1762_v33 = vadd.f32 0.008333334, %v1698_v5 }
  0xd0   : > { %15042 = vst [vmem:[#allocation71_spill] sm:$0xff] %v9447_v30  ;;  %8866 = vset.pattern.permute.xlu2 %v15008_v11  ;;  %v9469_v15 = vmul.f32 -3.1415927, %v1254_v48  ;;  %v2972_v0 = vadd.f32 %v2908_v13, %v2908_v13  ;;  %v9491_v19 = vand.u32 4294901760, %v9477_v56  ;;  %3853 = vmatpush.msra.mxu2 %v9477_v56  ;;  %v743_v16 = vmul.f32 %v9127_v57, %v626_v8 }
  0xd1   : > { %15043 = vst [vmem:[#allocation72_spill] sm:$0xff] %v9455_v10  ;;  %v1952_v42 = vmul.f32 %v1888_v49, %v9299_v55  ;;  %3670 = vmatpush.msra.mxu1 %v9485_v28  ;;  %v548_v13 = vmul.f32 %v9116_v53, %v407_v18  ;;  %4247 = vmatpush.msrb.mxu0 %v9047_v29  ;;  %v2014_v10 = vadd.f32 1.0, %v1950_v32 }
  0xd2   : > { %15044 = vst [vmem:[#allocation73_spill] sm:$0xff] %v9464_v58  ;;  %v9483_v37 = vmul.f32 %v9469_v15, %v9469_v15  ;;  %v3036_v48 = vsub.f32 1.0, %v2972_v0  ;;  %v1700_v14 = vmul.f32 %v1636_v27, %v9395_v50  ;;  %v1000_v49 = vmul.f32 %v9140_v61, %v884_v26  ;;  %v359_v27 = vld [vmem:[%s8970_s23 + $0x98] sm:$0xff] }
  0xd3   : > { %15045 = vst [vmem:[#allocation74_spill] sm:$0xff] %v9467_v6  ;;  %v3674_v5 = vsub.f32 %v9477_v56, %v9491_v19  ;;  %v549_v0 = vmul.f32 %v9118_v54, %v407_v18  ;;  %4251 = vmatpush.msrb.mxu0 %v9065_v34  ;;  %v2016_v8 = vadd.f32 1.0, %v1952_v42  ;;  %v1826_v29 = vmul.f32 %v1762_v33, %v9346_v38 }
  0xd4   : > { %15046 = vst [vmem:[#allocation75_spill] sm:$0xff] %v9477_v56  ;;  %v1446_v55 = vmul.f32 -2.5052108e-08, %v9483_v37  ;;  %v9503_v20 = vand.u32 4294901760, %v3036_v48  ;;  %v1001_v30 = vmul.f32 %v9144_v62, %v884_v26  ;;  %677 = vperm.xlu0 %8867, %v359_v27   ;;  %v9514_v39 = vmul.f32 %v2014_v10, %v9275_v7  ;;  %471 = vperm.xlu2 %8866, %v359_v27  }
  0xd5   : > { %15047 = vst [vmem:[#allocation76_spill] sm:$0xff] %v9483_v37  ;;  %v9508_v32 = vand.u32 4294901760, %v3674_v5  ;;  %v807_v56 = vadd.f32 %v743_v16, %v549_v0  ;;  %v1764_v18 = vadd.f32 0.008333334, %v1700_v14  ;;  %v630_v5 = vpop.permute.xlu2 %629  ;;  %v1890_v7 = vadd.f32 -0.16666667, %v1826_v29  ;;  %4255 = vmatpush.msrb.mxu0 %v9083_v40 }
  0xd6   : > { %15048 = vst [vmem:[#allocation77_spill] sm:$0xff] %v9485_v28  ;;  %v806_v28 = vadd.f32 %v742_v1, %v548_v13  ;;  %v3325_v43 = vsub.f32 %v3036_v48, %v9503_v20  ;;  %v412_v1 = vpop.permute.xlu1 %411  ;;  %v1510_v42 = vadd.f32 2.7557319e-06, %v1446_v55  ;;  %935 = vperm.xlu1 %8865, %v359_v27   ;;  %v744_v14 = vmul.f32 %v9138_v60, %v630_v5 }
  0xd7   : > { %15049 = vst [vmem:[#allocation78_spill] sm:$0xff] %v9491_v19  ;;  %3676 = vmatpush.msra.mxu1 %v9508_v32  ;;  %v9518_v33 = vadd.f32 %v1001_v30, %v807_v56  ;;  %v1828_v55 = vmul.f32 %v1764_v18, %v9395_v50  ;;  %v745_v30 = vmul.f32 %v9127_v57, %v630_v5 }
  0xd8   : > { %15050 = vst [vmem:[#allocation79_spill] sm:$0xff] %v9503_v20  ;;  %v1064_v44 = vadd.f32 %v1000_v49, %v806_v28  ;;  %3678 = vmatmul.f32.vlgmr.msra.gmra.mxu1 %v9503_v20  ;;  %3856 = vmatmul.f32.vlgmr.msra.gmra.mxu2 %v3325_v43  ;;  %v3326_v26 = vand.u32 4294901760, %v3325_v43  ;;  %v9521_v28 = vmul.f32 %v2016_v8, %v9286_v63 }
  0xd9   : > { %15051 = vst [vmem:[#allocation80_spill] sm:$0xff] %v9508_v32  ;;  %4434 = vmatpush.msrb.mxu1 %v9008_v17  ;;  %v2910_v48 = vmul.f32 %v9514_v39, %v9514_v39  ;;  %v1002_v63 = vmul.f32 %v9140_v61, %v9268_v41  ;;  %v1574_v29 = vmul.f32 %v1510_v42, %v9483_v37  ;;  %v1892_v42 = vadd.f32 -0.16666667, %v1828_v55 }
  0xda   : > { %15052 = vst [vmem:[#allocation81_spill] sm:$0xff] %v9514_v39  ;;  %v1128_v13 = vadd.f32 0.5, %v1064_v44  ;;  %4050 = vmatmul.f32.vlgmr.msra.gmra.mxu3 %v3326_v26  ;;  %v3327_v56 = vsub.f32 %v3325_v43, %v3326_v26  ;;  %v550_v49 = vmul.f32 %v9116_v53, %v412_v1  ;;  %v1003_v0 = vmul.f32 %v9144_v62, %v9268_v41 }
  0xdb   : > { %15053 = vst [vmem:[#allocation82_spill] sm:$0xff] %v9521_v28  ;;  %4436 = vmatpush.msrb.mxu1 %v9022_v21  ;;  %v2974_v43 = vadd.f32 %v2910_v48, %v2910_v48  ;;  %v551_v27 = vmul.f32 %v9118_v54, %v412_v1  ;;  %4259 = vmatpush.msrb.mxu0 %v9095_v46  ;;  %v15064_v46 = vld [vmem:[#allocation50_spill] sm:$0xff] }
  0xdc   : > { %v1192_v10 = vfloor.f32 %v1128_v13  ;;  %v3328_v8 = vand.u32 4294901760, %v3327_v56  ;;  %v1954_v18 = vmul.f32 %v1890_v7, %v9346_v38  ;;  %v808_v26 = vadd.f32 %v744_v14, %v550_v49  ;;  %8870 = vset.pattern.permute.xlu0 %v15008_v11 }
  0xdd   : > { %4438 = vmatpush.msrb.mxu1 %v9034_v25  ;;  %v3038_v41 = vsub.f32 1.0, %v2974_v43  ;;  %v809_v5 = vadd.f32 %v745_v30, %v551_v27  ;;  %4263 = vmatpush.msrb.mxu0 %v9135_v59 }
  0xde   : > { %v1256_v16 = vsub.f32 %v1064_v44, %v1192_v10  ;;  %v2912_v44 = vmul.f32 %v9521_v28, %v9521_v28  ;;  %3329 = vmatmul.f32.vlgmr.msra.gmra.mxu0 %v3328_v8  ;;  %v1638_v10 = vadd.f32 -0.0001984127, %v1574_v29  ;;  %v1066_v7 = vadd.f32 %v1002_v63, %v808_v26  ;;  %v417_v48 = vpop.permute.xlu1 %416  ;;  %8868 = vset.pattern.permute.xlu1 %v15011_v35 }
  0xdf   : > { %4440 = vmatpush.msrb.mxu1 %v9053_v31  ;;  %v9552_v14 = vand.u32 4294901760, %v3038_v41  ;;  %v9554_v56 = vadd.f32 %v1003_v0, %v809_v5  ;;  %v2018_v55 = vadd.f32 1.0, %v1954_v18  ;;  %4267 = vmatpush.msrb.mxu0 %v9183_v45  ;;  %v1956_v63 = vmul.f32 %v1892_v42, %v9395_v50  ;;  %v360_v18 = vld [vmem:[%s8970_s23 + $0xa0] sm:$0xff] }
  0xe0   : > { %v9540_v13 = vmul.f32 -3.1415927, %v1256_v16  ;;  %v1130_v29 = vadd.f32 0.5, %v1066_v7  ;;  %v634_v16 = vpop.permute.xlu2 %633  ;;  %v2976_v0 = vadd.f32 %v2912_v44, %v2912_v44  ;;  %v1702_v8 = vmul.f32 %v1638_v10, %v9483_v37  ;;  %681 = vperm.xlu1 %8868, %v360_v18   ;;  %476 = vperm.xlu2 %8866, %v360_v18  }
  0xe1   : > { %15055 = vst [vmem:[#allocation84_spill] sm:$0xff] %v9552_v14  ;;  %4442 = vmatpush.msrb.mxu1 %v9071_v36  ;;  %v3333_v49 = vsub.f32 %v3038_v41, %v9552_v14  ;;  %4271 = vmatpush.msrb.mxu0 %v9196_v3  ;;  %v9568_v42 = vmul.f32 %v2018_v55, %v9324_v4  ;;  %v2020_v44 = vadd.f32 1.0, %v1956_v63 }
  0xe2   : > { %v9548_v1 = vmul.f32 %v9540_v13, %v9540_v13  ;;  %3682 = vmatmul.f32.gmra.mxu1 %v9552_v14  ;;  %v1194_v27 = vfloor.f32 %v1130_v29  ;;  %v3040_v5 = vsub.f32 1.0, %v2976_v0  ;;  %v1766_v29 = vadd.f32 0.008333334, %v1702_v8 }
  0xe3   : > { %4444 = vmatpush.msrb.mxu1 %v9110_v51  ;;  %3861 = vmatmul.f32.gmra.mxu2 %v3333_v49  ;;  %v3334_v26 = vand.u32 4294901760, %v3333_v49  ;;  %15056 = vst [vmem:[#allocation85_spill] sm:$0xff] %v9568_v42  ;;  %v749_v63 = vmul.f32 %v9127_v57, %v9438_v24  ;;  %v553_v8 = vmul.f32 %v9118_v54, %v417_v48 }
  0xe4   : > { %15054 = vst [vmem:[#allocation83_spill] sm:$0xff] %v9548_v1  ;;  %v1448_v30 = vmul.f32 -2.5052108e-08, %v9548_v1  ;;  %v1258_v41 = vsub.f32 %v1066_v7, %v1194_v27  ;;  %4275 = vmatpush.msrb.mxu0 %v9290_v22  ;;  %v2914_v7 = vmul.f32 %v9568_v42, %v9568_v42  ;;  %v15059_v27 = vld [vmem:[#allocation59_spill] sm:$0xff]  ;;  %v1830_v42 = vmul.f32 %v1766_v29, %v9483_v37 }
  0xe5   : > { %4446 = vmatpush.msrb.mxu1 %v9156_v9  ;;  %4056 = vmatmul.f32.gmra.mxu3 %v3334_v26  ;;  %v3335_v10 = vsub.f32 %v3333_v49, %v3334_v26  ;;  %v747_v49 = vmul.f32 %v9127_v57, %v634_v16  ;;  %v746_v50 = vmul.f32 %v9138_v60, %v634_v16  ;;  %v361_v22 = vld [vmem:[%s8970_s23 + $0xa8] sm:$0xff] }
  0xe6   : > { %v1512_v43 = vadd.f32 2.7557319e-06, %v1448_v30  ;;  %v9572_v30 = vand.u32 4294901760, %v3040_v5  ;;  %v9575_v39 = vmul.f32 -3.1415927, %v1258_v41  ;;  %4279 = vmatpush.msrb.mxu0 %v9327_v12  ;;  %481 = vperm.xlu0 %8870, %v361_v22  }
  0xe7   : > { %4448 = vmatpush.msrb.mxu1 %v9173_v23  ;;  %v3336_v55 = vand.u32 4294901760, %v3335_v10  ;;  %v892_v10 = vpop.permute.xlu1 %891  ;;  %v811_v38 = vadd.f32 %v747_v49, %v553_v8 }
  0xe8   : > { %v1576_v28 = vmul.f32 %v1512_v43, %v9548_v1  ;;  %15057 = vst [vmem:[#allocation86_spill] sm:$0xff] %v9572_v30  ;;  %v3341_v0 = vsub.f32 %v3040_v5, %v9572_v30  ;;  %v15058_v43 = vld [vmem:[#allocation32_spill] sm:$0xff]  ;;  %v9592_v26 = vmul.f32 %v9575_v39, %v9575_v39  ;;  %v552_v5 = vmul.f32 %v9116_v53, %v417_v48  ;;  %v422_v12 = vpop.permute.xlu2 %421 }
  0xe9   : > { %4450 = vmatpush.msrb.mxu1 %v15058_v43  ;;  %3337 = vmatmul.f32.gmra.mxu0 %v3336_v55  ;;  %v555_v55 = vmul.f32 %v9118_v54, %v422_v12  ;;  %v2978_v48 = vadd.f32 %v2914_v7, %v2914_v7  ;;  %v1004_v8 = vmul.f32 %v9140_v61, %v892_v10 }
  0xea   : > { %v1640_v4 = vadd.f32 -0.0001984127, %v1576_v28  ;;  %v9588_v28 = vmul.f32 %v2020_v44, %v15059_v27  ;;  %15061 = vst [vmem:[#allocation87_spill] sm:$0xff] %v9592_v26  ;;  %3686 = vmatmul.f32.gmra.mxu1 %v9572_v30  ;;  %v3342_v41 = vand.u32 4294901760, %v3341_v0  ;;  %v15062_v44 = vld [vmem:[#allocation36_spill] sm:$0xff]  ;;  %v15063_v27 = vld [vmem:[#allocation55_spill] sm:$0xff]  ;;  %685 = vperm.xlu1 %8868, %v361_v22   ;;  %v810_v29 = vadd.f32 %v746_v50, %v552_v5 }
  0xeb   : > { %4452 = vmatpush.msrb.mxu1 %v15062_v44  ;;  %4283 = vmatpush.msrb.mxu0 %v15063_v27  ;;  %v1450_v16 = vmul.f32 -2.5052108e-08, %v9592_v26  ;;  %v813_v49 = vadd.f32 %v749_v63, %v555_v55  ;;  %v1894_v27 = vadd.f32 -0.16666667, %v1830_v42  ;;  %v3042_v59 = vsub.f32 1.0, %v2978_v48  ;;  %v15067_v63 = vld [vmem:[#allocation54_spill] sm:$0xff] }
  0xec   : > { %15060 = vst [vmem:[#allocation59_spill] sm:$0xff] %v9588_v28  ;;  %v1704_v3 = vmul.f32 %v1640_v4, %v9548_v1  ;;  %3866 = vmatmul.f32.gmra.mxu2 %v3341_v0  ;;  %v3343_v45 = vsub.f32 %v3341_v0, %v3342_v41  ;;  %8869 = vset.pattern.permute.xlu2 %v15005_v47  ;;  %v15065_v0 = vld [vmem:[#allocation61_spill] sm:$0xff] }
  0xed   : > { %4062 = vmatmul.f32.gmra.mxu3 %v3342_v41  ;;  %939 = vperm.xlu2 %8869, %v360_v18   ;;  %v2916_v4 = vmul.f32 %v9588_v28, %v9588_v28  ;;  %v1005_v34 = vmul.f32 %v9144_v62, %v892_v10  ;;  %v1068_v32 = vadd.f32 %v1004_v8, %v810_v29  ;;  %v9611_v50 = vand.u32 4294901760, %v3042_v59  ;;  %v15068_v18 = vld [vmem:[#allocation65_spill] sm:$0xff] }
  0xee   : > { %4454 = vmatpush.msrb.mxu1 %v15064_v46  ;;  %4287 = vmatpush.msrb.mxu0 %v15065_v0  ;;  %v1768_v7 = vadd.f32 0.008333334, %v1704_v3  ;;  %v3344_v40 = vand.u32 4294901760, %v3343_v45  ;;  %v1514_v5 = vadd.f32 2.7557319e-06, %v1450_v16  ;;  %v15069_v45 = vld [vmem:[#allocation66_spill] sm:$0xff]  ;;  %v1958_v10 = vmul.f32 %v1894_v27, %v9483_v37 }
  0xef   : > { %15066 = vst [vmem:[#allocation88_spill] sm:$0xff] %v9611_v50  ;;  %v9615_v42 = vadd.f32 %v1005_v34, %v811_v38  ;;  %v1132_v41 = vadd.f32 0.5, %v1068_v32  ;;  %v3349_v3 = vsub.f32 %v3042_v59, %v9611_v50  ;;  %v2980_v29 = vadd.f32 %v2916_v4, %v2916_v4  ;;  %v896_v8 = vpop.permute.xlu1 %895  ;;  %v362_v16 = vld [vmem:[%s8970_s23 + $0xb0] sm:$0xff]  ;;  %8873 = vset.pattern.permute.xlu0 %v15005_v47  ;;  %v15072_v0 = vld [vmem:[#allocation58_spill] sm:$0xff] }
  0xf0   : > { %4456 = vmatpush.msrb.mxu1 %v15067_v63  ;;  %4291 = vmatpush.msrb.mxu0 %v15068_v18  ;;  %v1832_v55 = vmul.f32 %v1768_v7, %v9548_v1  ;;  %v748_v34 = vmul.f32 %v9138_v60, %v9438_v24  ;;  %v554_v38 = vmul.f32 %v9116_v53, %v422_v12  ;;  %v427_v7 = vpop.permute.xlu2 %426  ;;  %v366_v63 = vld [vmem:[%s8970_s23 + $0xd0] sm:$0xff] }
  0xf1   : > { %3345 = vmatmul.f32.gmra.mxu0 %v3344_v40  ;;  %v1196_v48 = vfloor.f32 %v1132_v41  ;;  %v15070_v40 = vld [vmem:[#allocation56_spill] sm:$0xff]  ;;  %v3350_v59 = vand.u32 4294901760, %v3349_v3  ;;  %v1578_v27 = vmul.f32 %v1514_v5, %v9592_v26  ;;  %v3044_v41 = vsub.f32 1.0, %v2980_v29  ;;  %947 = vperm.xlu0 %8873, %v362_v16  }
  0xf2   : > { %3690 = vmatmul.f32.gmra.mxu1 %v9611_v50  ;;  %4295 = vmatpush.msrb.mxu0 %v15069_v45  ;;  %v1006_v37 = vmul.f32 %v9140_v61, %v896_v8  ;;  %v2022_v45 = vadd.f32 1.0, %v1958_v10  ;;  %v1896_v18 = vadd.f32 -0.16666667, %v1832_v55  ;;  %v812_v5 = vadd.f32 %v748_v34, %v554_v38  ;;  %v371_v50 = vld [vmem:[%s8970_s23 + $0xf8] sm:$0xff] }
  0xf3   : > { %8871 = vset.pattern.permute.xlu1 %v15008_v11  ;;  %4458 = vmatpush.msrb.mxu1 %v15070_v40  ;;  %v1260_v28 = vsub.f32 %v1068_v32, %v1196_v48  ;;  %v3351_v4 = vsub.f32 %v3349_v3, %v3350_v59  ;;  %v9633_v12 = vand.u32 4294901760, %v3044_v41  ;;  %v1007_v48 = vmul.f32 %v9144_v62, %v896_v8 }
  0xf4   : > { %3871 = vmatmul.f32.gmra.mxu2 %v3349_v3  ;;  %486 = vperm.xlu1 %8871, %v362_v16   ;;  %v1070_v10 = vadd.f32 %v1006_v37, %v812_v5  ;;  %v9648_v29 = vmul.f32 %v2022_v45, %v9469_v15  ;;  %v1960_v8 = vmul.f32 %v1896_v18, %v9548_v1 }
  0xf5   : > { %943 = vperm.xlu2 %8869, %v361_v22   ;;  %4068 = vmatmul.f32.gmra.mxu3 %v3350_v59  ;;  %v9631_v24 = vmul.f32 -3.1415927, %v1260_v28  ;;  %15071 = vst [vmem:[#allocation89_spill] sm:$0xff] %v9633_v12  ;;  %v3352_v32 = vand.u32 4294901760, %v3351_v4  ;;  %v1642_v22 = vadd.f32 -0.0001984127, %v1578_v27  ;;  %v3357_v28 = vsub.f32 %v3044_v41, %v9633_v12 }
  0xf6   : > { %4460 = vmatpush.msrb.mxu1 %v15072_v0  ;;  %4299 = vmatpush.msrb.mxu0 %v9464_v58  ;;  %v9645_v55 = vadd.f32 %v1007_v48, %v813_v49  ;;  %15074 = vst [vmem:[#allocation91_spill] sm:$0xff] %v9648_v29  ;;  %v363_v59 = vld [vmem:[%s8970_s23 + $0xb8] sm:$0xff]  ;;  %v1134_v27 = vadd.f32 0.5, %v1070_v10  ;;  %v2024_v41 = vadd.f32 1.0, %v1960_v8  ;;  %v556_v4 = vmul.f32 %v9116_v53, %v427_v7 }
  0xf7   : > { %v9640_v3 = vmul.f32 %v9631_v24, %v9631_v24  ;;  %v3358_v38 = vand.u32 4294901760, %v3357_v28  ;;  %v1706_v37 = vmul.f32 %v1642_v22, %v9592_v26  ;;  %v642_v49 = vpop.permute.xlu1 %641 }
  0xf8   : > { %4462 = vmatpush.msrb.mxu1 %v9440_v2  ;;  %4303 = vmatpush.msrb.mxu0 %v9491_v19  ;;  %v1198_v45 = vfloor.f32 %v1134_v27  ;;  %v900_v5 = vpop.permute.xlu2 %899  ;;  %v750_v19 = vmul.f32 %v9138_v60, %v642_v49  ;;  %v557_v27 = vmul.f32 %v9118_v54, %v427_v7 }
  0xf9   : > { %15073 = vst [vmem:[#allocation90_spill] sm:$0xff] %v9640_v3  ;;  %3353 = vmatmul.f32.gmra.mxu0 %v3352_v32  ;;  %v1452_v34 = vmul.f32 -2.5052108e-08, %v9640_v3  ;;  %v3359_v18 = vsub.f32 %v3357_v28, %v3358_v38  ;;  %v2918_v32 = vmul.f32 %v9648_v29, %v9648_v29  ;;  %8876 = vset.pattern.permute.xlu0 %v15011_v35 }
  0xfa   : > { %3694 = vmatmul.f32.gmra.mxu1 %v9633_v12  ;;  %v1262_v48 = vsub.f32 %v1070_v10, %v1198_v45  ;;  %v1008_v22 = vmul.f32 %v9140_v61, %v900_v5  ;;  %v751_v29 = vmul.f32 %v9127_v57, %v642_v49  ;;  %v814_v58 = vadd.f32 %v750_v19, %v556_v4 }
  0xfb   : > { %4464 = vmatpush.msrb.mxu1 %v9467_v6  ;;  %v1516_v15 = vadd.f32 2.7557319e-06, %v1452_v34  ;;  %v3360_v1 = vand.u32 4294901760, %v3359_v18  ;;  %v1770_v34 = vadd.f32 0.008333334, %v1706_v37  ;;  %v9670_v10 = vmul.f32 %v2024_v41, %v9540_v13 }
  0xfc   : > { %3876 = vmatmul.f32.gmra.mxu2 %v3357_v28  ;;  %491 = vperm.xlu1 %8871, %v363_v59   ;;  %v2982_v28 = vadd.f32 %v2918_v32, %v2918_v32  ;;  %v815_v7 = vadd.f32 %v751_v29, %v557_v27  ;;  %v1072_v18 = vadd.f32 %v1008_v22, %v814_v58 }
  0xfd   : > { %8872 = vset.pattern.permute.xlu2 %v15011_v35  ;;  %4074 = vmatmul.f32.gmra.mxu3 %v3358_v38  ;;  %v1580_v8 = vmul.f32 %v1516_v15, %v9640_v3  ;;  %v9666_v38 = vmul.f32 -3.1415927, %v1262_v48  ;;  %15075 = vst [vmem:[#allocation92_spill] sm:$0xff] %v9670_v10  ;;  %v1834_v15 = vmul.f32 %v1770_v34, %v9592_v26 }
  0xfe   : > { %689 = vperm.xlu2 %8872, %v362_v16   ;;  %v1009_v16 = vmul.f32 %v9144_v62, %v900_v5  ;;  %v3046_v45 = vsub.f32 1.0, %v2982_v28  ;;  %v1136_v13 = vadd.f32 0.5, %v1072_v18  ;;  %v2920_v58 = vmul.f32 %v9670_v10, %v9670_v10 }
  0xff   : > { %v9674_v37 = vmul.f32 %v9666_v38, %v9666_v38  ;;  %v1898_v32 = vadd.f32 -0.16666667, %v1834_v15  ;;  %v646_v28 = vpop.permute.xlu1 %645 }
 0x100   : > { %v9678_v5 = vand.u32 4294901760, %v3046_v45  ;;  %v9681_v49 = vadd.f32 %v1009_v16, %v815_v7  ;;  %v1200_v4 = vfloor.f32 %v1136_v13  ;;  %v2984_v22 = vadd.f32 %v2920_v58, %v2920_v58  ;;  %v432_v58 = vpop.permute.xlu0 %431 }
 0x101   : > { %3361 = vmatmul.f32.gmra.mxu0 %v3360_v1  ;;  %15076 = vst [vmem:[#allocation93_spill] sm:$0xff] %v9674_v37  ;;  %v1644_v1 = vadd.f32 -0.0001984127, %v1580_v8  ;;  %v1454_v19 = vmul.f32 -2.5052108e-08, %v9674_v37 }
 0x102   : > { %15077 = vst [vmem:[#allocation94_spill] sm:$0xff] %v9678_v5  ;;  %3698 = vmatmul.f32.gmra.mxu1 %v9678_v5  ;;  %v3365_v41 = vsub.f32 %v3046_v45, %v9678_v5  ;;  %v1264_v27 = vsub.f32 %v1072_v18, %v1200_v4  ;;  %v1962_v45 = vmul.f32 %v1898_v32, %v9592_v26 }
 0x103   : > { %v1518_v29 = vadd.f32 2.7557319e-06, %v1454_v19  ;;  %v1708_v34 = vmul.f32 %v1644_v1, %v9640_v3  ;;  %v364_v19 = vld [vmem:[%s8970_s23 + $0xc0] sm:$0xff]  ;;  %v752_v4 = vmul.f32 %v9138_v60, %v646_v28 }
 0x104   : > { %8874 = vset.pattern.permute.xlu1 %v15005_v47  ;;  %3881 = vmatmul.f32.gmra.mxu2 %v3365_v41  ;;  %v3366_v48 = vand.u32 4294901760, %v3365_v41  ;;  %v9693_v15 = vmul.f32 -3.1415927, %v1264_v27  ;;  %v558_v27 = vmul.f32 %v9116_v53, %v432_v58 }
 0x105   : > { %951 = vperm.xlu1 %8874, %v363_v59   ;;  %v1582_v8 = vmul.f32 %v1518_v29, %v9674_v37  ;;  %v1772_v13 = vadd.f32 0.008333334, %v1708_v34  ;;  %697 = vperm.xlu0 %8876, %v364_v19   ;;  %v2026_v29 = vadd.f32 1.0, %v1962_v45  ;;  %v559_v45 = vmul.f32 %v9118_v54, %v432_v58 }
 0x106   : > { %693 = vperm.xlu2 %8872, %v363_v59   ;;  %4080 = vmatmul.f32.gmra.mxu3 %v3366_v48  ;;  %v3367_v16 = vsub.f32 %v3365_v41, %v3366_v48  ;;  %v3048_v59 = vsub.f32 1.0, %v2984_v22  ;;  %v904_v41 = vpop.permute.xlu2 %903  ;;  %v9702_v48 = vmul.f32 %v9693_v15, %v9693_v15  ;;  %v753_v22 = vmul.f32 %v9127_v57, %v646_v28 }
 0x107   : > { %v1646_v1 = vadd.f32 -0.0001984127, %v1582_v8  ;;  %v1836_v32 = vmul.f32 %v1772_v13, %v9640_v3  ;;  %v1010_v8 = vmul.f32 %v9140_v61, %v904_v41  ;;  %v1011_v26 = vmul.f32 %v9144_v62, %v904_v41 }
 0x108   : > { %v3368_v7 = vand.u32 4294901760, %v3367_v16  ;;  %v9690_v10 = vand.u32 4294901760, %v3048_v59  ;;  %15079 = vst [vmem:[#allocation96_spill] sm:$0xff] %v9702_v48  ;;  %v1456_v28 = vmul.f32 -2.5052108e-08, %v9702_v48 }
 0x109   : > { %v1710_v16 = vmul.f32 %v1646_v1, %v9674_v37  ;;  %v1900_v13 = vadd.f32 -0.16666667, %v1836_v32  ;;  %v817_v1 = vadd.f32 %v753_v22, %v559_v45 }
 0x10a   : > { %15078 = vst [vmem:[#allocation95_spill] sm:$0xff] %v9690_v10  ;;  %3369 = vmatmul.f32.gmra.mxu0 %v3368_v7  ;;  %3702 = vmatmul.f32.gmra.mxu1 %v9690_v10  ;;  %v3373_v18 = vsub.f32 %v3048_v59, %v9690_v10  ;;  %v9708_v59 = vmul.f32 %v2026_v29, %v9575_v39  ;;  %v1520_v32 = vadd.f32 2.7557319e-06, %v1456_v28 }
 0x10b   : > { %v816_v7 = vadd.f32 %v752_v4, %v558_v27  ;;  %v1774_v29 = vadd.f32 0.008333334, %v1710_v16  ;;  %v9716_v10 = vadd.f32 %v1011_v26, %v817_v1  ;;  %v1964_v41 = vmul.f32 %v1900_v13, %v9640_v3 }
 0x10c   : > { %3886 = vmatmul.f32.gmra.mxu2 %v3373_v18  ;;  %v3374_v34 = vand.u32 4294901760, %v3373_v18  ;;  %15080 = vst [vmem:[#allocation97_spill] sm:$0xff] %v9708_v59  ;;  %v2922_v58 = vmul.f32 %v9708_v59, %v9708_v59  ;;  %v1584_v13 = vmul.f32 %v1520_v32, %v9702_v48 }
 0x10d   : > { %955 = vperm.xlu1 %8874, %v364_v19   ;;  %8879 = vset.pattern.permute.xlu0 %v15008_v11  ;;  %v1074_v6 = vadd.f32 %v1010_v8, %v816_v7  ;;  %v1838_v22 = vmul.f32 %v1774_v29, %v9674_v37 }
 0x10e   : > { %8875 = vset.pattern.permute.xlu2 %v15008_v11  ;;  %4086 = vmatmul.f32.gmra.mxu3 %v3374_v34  ;;  %v3375_v39 = vsub.f32 %v3373_v18, %v3374_v34  ;;  %v650_v4 = vpop.permute.xlu2 %649  ;;  %v2986_v40 = vadd.f32 %v2922_v58, %v2922_v58  ;;  %v3259_v18 = vld [vmem:[%s14259_s2 + $0xf8] sm:$0xff] }
 0x10f   : > { %496 = vperm.xlu2 %8875, %v364_v19   ;;  %v437_v19 = vpop.permute.xlu1 %436  ;;  %v1138_v2 = vadd.f32 0.5, %v1074_v6  ;;  %v755_v26 = vmul.f32 %v9127_v57, %v650_v4  ;;  %v754_v16 = vmul.f32 %v9138_v60, %v650_v4  ;;  %v9727_v45 = vand.u32 4294901760, %v3259_v18  ;;  %v908_v4 = vpop.permute.xlu0 %907  ;;  %506 = vperm.xlu0 %8879, %v366_v63  }
 0x110   : > { %v3376_v0 = vand.u32 4294901760, %v3375_v39  ;;  %v3050_v8 = vsub.f32 1.0, %v2986_v40  ;;  %v560_v7 = vmul.f32 %v9116_v53, %v437_v19  ;;  %v365_v39 = vld [vmem:[%s8970_s23 + $0xc8] sm:$0xff]  ;;  %v1902_v29 = vadd.f32 -0.16666667, %v1838_v22 }
 0x111   : > { %v1202_v27 = vfloor.f32 %v1138_v2  ;;  %v561_v2 = vmul.f32 %v9118_v54, %v437_v19  ;;  %4595 = vmatpush.msrb.mxu2 %v9727_v45  ;;  %v9739_v40 = vsub.f32 %v3259_v18, %v9727_v45  ;;  %5318 = vmatpush.msra.mxu1 %v9727_v45  ;;  %v1012_v59 = vmul.f32 %v9140_v61, %v908_v4 }
 0x112   : > { %3377 = vmatmul.f32.gmra.mxu0 %v3376_v0  ;;  %v2028_v0 = vadd.f32 1.0, %v1964_v41  ;;  %v9735_v58 = vand.u32 4294901760, %v3050_v8  ;;  %v818_v32 = vadd.f32 %v754_v16, %v560_v7  ;;  %v1013_v16 = vmul.f32 %v9144_v62, %v908_v4 }
 0x113   : > { %v1266_v34 = vsub.f32 %v1074_v6, %v1202_v27  ;;  %v819_v6 = vadd.f32 %v755_v26, %v561_v2  ;;  %15082 = vst [vmem:[#allocation99_spill] sm:$0xff] %v9739_v40  ;;  %v9749_v27 = vand.u32 4294901760, %v9739_v40  ;;  %5110 = vmatpush.msra.mxu0 %v9739_v40  ;;  %v1648_v26 = vadd.f32 -0.0001984127, %v1584_v13 }
 0x114   : > { %15081 = vst [vmem:[#allocation98_spill] sm:$0xff] %v9735_v58  ;;  %3706 = vmatmul.f32.gmra.mxu1 %v9735_v58  ;;  %v3381_v41 = vsub.f32 %v3050_v8, %v9735_v58  ;;  %v9753_v18 = vmul.f32 %v2028_v0, %v9631_v24  ;;  %v1966_v8 = vmul.f32 %v1902_v29, %v9674_v37 }
 0x115   : > { %8877 = vset.pattern.permute.xlu1 %v15011_v35  ;;  %v9732_v28 = vmul.f32 -3.1415927, %v1266_v34  ;;  %15084 = vst [vmem:[#allocation101_spill] sm:$0xff] %v9749_v27  ;;  %v4886_v34 = vsub.f32 %v9739_v40, %v9749_v27  ;;  %v1076_v24 = vadd.f32 %v1012_v59, %v818_v32  ;;  %v9763_v0 = vadd.f32 %v1013_v16, %v819_v6  ;;  %v3258_v16 = vld [vmem:[%s14259_s2 + $0xf0] sm:$0xff] }
 0x116   : > { %701 = vperm.xlu1 %8877, %v365_v39   ;;  %15085 = vst [vmem:[#allocation102_spill] sm:$0xff] %v9753_v18  ;;  %3891 = vmatmul.f32.gmra.mxu2 %v3381_v41  ;;  %v3382_v22 = vand.u32 4294901760, %v3381_v41  ;;  %v654_v2 = vpop.permute.xlu2 %653  ;;  %v2924_v58 = vmul.f32 %v9753_v18, %v9753_v18  ;;  %v1712_v40 = vmul.f32 %v1648_v26, %v9702_v48  ;;  %v2030_v59 = vadd.f32 1.0, %v1966_v8 }
 0x117   : > { %v442_v1 = vpop.permute.xlu1 %441  ;;  %v9743_v19 = vmul.f32 %v9732_v28, %v9732_v28  ;;  %501 = vperm.xlu2 %8875, %v365_v39   ;;  %v9761_v3 = vand.u32 4294901760, %v4886_v34  ;;  %15087 = vst [vmem:[#allocation104_spill] sm:$0xff] %v9763_v0  ;;  %v757_v5 = vmul.f32 %v9127_v57, %v654_v2  ;;  %v1140_v29 = vadd.f32 0.5, %v1076_v24  ;;  %8882 = vset.pattern.permute.xlu0 %v15005_v47 }
 0x118   : > { %4092 = vmatmul.f32.gmra.mxu3 %v3382_v22  ;;  %v3383_v13 = vsub.f32 %v3381_v41, %v3382_v22  ;;  %v562_v37 = vmul.f32 %v9116_v53, %v442_v1  ;;  %v563_v34 = vmul.f32 %v9118_v54, %v442_v1  ;;  %v756_v32 = vmul.f32 %v9138_v60, %v654_v2 }
 0x119   : > { %15083 = vst [vmem:[#allocation100_spill] sm:$0xff] %v9743_v19  ;;  %v1458_v7 = vmul.f32 -2.5052108e-08, %v9743_v19  ;;  %4888 = vmatpush.msrb.mxu3 %v9761_v3  ;;  %v1204_v26 = vfloor.f32 %v1140_v29  ;;  %v2988_v18 = vadd.f32 %v2924_v58, %v2924_v58  ;;  %v9778_v8 = vand.u32 4294901760, %v3258_v16 }
 0x11a   : > { %15086 = vst [vmem:[#allocation103_spill] sm:$0xff] %v9761_v3  ;;  %v3384_v4 = vand.u32 4294901760, %v3383_v13  ;;  %v821_v22 = vadd.f32 %v757_v5, %v563_v34  ;;  %v1776_v13 = vadd.f32 0.008333334, %v1712_v40  ;;  %v820_v3 = vadd.f32 %v756_v32, %v562_v37 }
 0x11b   : > { %v1522_v41 = vadd.f32 2.7557319e-06, %v1458_v7  ;;  %v1268_v1 = vsub.f32 %v1076_v24, %v1204_v26  ;;  %15088 = vst [vmem:[#allocation105_spill] sm:$0xff] %v9778_v8  ;;  %v9782_v7 = vmul.f32 %v2030_v59, %v9666_v38  ;;  %v3052_v2 = vsub.f32 1.0, %v2988_v18  ;;  %4597 = vmatpush.msrb.mxu2 %v9778_v8  ;;  %5320 = vmatpush.msra.mxu1 %v9778_v8 }
 0x11c   : > { %3385 = vmatmul.f32.gmra.mxu0 %v3384_v4  ;;  %v1840_v37 = vmul.f32 %v1776_v13, %v9702_v48  ;;  %v9807_v13 = vsub.f32 %v3258_v16, %v9778_v8 }
 0x11d   : > { %15089 = vst [vmem:[#allocation106_spill] sm:$0xff] %v9782_v7  ;;  %v1586_v5 = vmul.f32 %v1522_v41, %v9743_v19  ;;  %v9786_v4 = vmul.f32 -3.1415927, %v1268_v1  ;;  %v9791_v58 = vand.u32 4294901760, %v3052_v2  ;;  %v2926_v24 = vmul.f32 %v9782_v7, %v9782_v7 }
 0x11e   : > { %705 = vperm.xlu1 %8877, %v366_v63   ;;  %v447_v26 = vpop.permute.xlu2 %446  ;;  %15093 = vst [vmem:[#allocation110_spill] sm:$0xff] %v9807_v13  ;;  %5113 = vmatpush.msra.mxu0 %v9807_v13 }
 0x11f   : > { %v912_v6 = vpop.permute.xlu1 %911  ;;  %8878 = vset.pattern.permute.xlu2 %v15005_v47  ;;  %15090 = vst [vmem:[#allocation107_spill] sm:$0xff] %v9791_v58  ;;  %v9797_v38 = vmul.f32 %v9786_v4, %v9786_v4  ;;  %3710 = vmatmul.f32.gmra.mxu1 %v9791_v58 }
 0x120   : > { %959 = vperm.xlu2 %8878, %v365_v39   ;;  %v1014_v46 = vmul.f32 %v9140_v61, %v912_v6  ;;  %v1015_v29 = vmul.f32 %v9144_v62, %v912_v6  ;;  %v1904_v6 = vadd.f32 -0.16666667, %v1840_v37  ;;  %v658_v37 = vpop.permute.xlu0 %657 }
 0x121   : > { %15092 = vst [vmem:[#allocation109_spill] sm:$0xff] %v9797_v38  ;;  %v1460_v34 = vmul.f32 -2.5052108e-08, %v9797_v38 }
 0x122   : > { %v1078_v39 = vadd.f32 %v1014_v46, %v820_v3  ;;  %v9793_v40 = vadd.f32 %v1015_v29, %v821_v22  ;;  %v3389_v46 = vsub.f32 %v3052_v2, %v9791_v58  ;;  %v1650_v3 = vadd.f32 -0.0001984127, %v1586_v5 }
 0x123   : > { %v1524_v32 = vadd.f32 2.7557319e-06, %v1460_v34  ;;  %v2990_v29 = vadd.f32 %v2926_v24, %v2926_v24 }
 0x124   : > { %15091 = vst [vmem:[#allocation108_spill] sm:$0xff] %v9793_v40  ;;  %v1142_v18 = vadd.f32 0.5, %v1078_v39  ;;  %3896 = vmatmul.f32.gmra.mxu2 %v3389_v46  ;;  %v3390_v41 = vand.u32 4294901760, %v3389_v46  ;;  %v1714_v2 = vmul.f32 %v1650_v3, %v9743_v19  ;;  %v565_v3 = vmul.f32 %v9118_v54, %v447_v26 }
 0x125   : > { %v1588_v5 = vmul.f32 %v1524_v32, %v9797_v38  ;;  %v3054_v34 = vsub.f32 1.0, %v2990_v29  ;;  %v367_v29 = vld [vmem:[%s8970_s23 + $0xd8] sm:$0xff] }
 0x126   : > { %8880 = vset.pattern.permute.xlu1 %v15008_v11  ;;  %v1206_v59 = vfloor.f32 %v1142_v18  ;;  %4098 = vmatmul.f32.gmra.mxu3 %v3390_v41  ;;  %v3391_v1 = vsub.f32 %v3389_v46, %v3390_v41  ;;  %v564_v46 = vmul.f32 %v9116_v53, %v447_v26  ;;  %v1778_v41 = vadd.f32 0.008333334, %v1714_v2  ;;  %v452_v58 = vpop.permute.xlu2 %451 }
 0x127   : > { %v1652_v16 = vadd.f32 -0.0001984127, %v1588_v5  ;;  %v759_v26 = vmul.f32 %v9127_v57, %v658_v37  ;;  %511 = vperm.xlu1 %8880, %v367_v29   ;;  %967 = vperm.xlu0 %8882, %v367_v29  }
 0x128   : > { %963 = vperm.xlu2 %8878, %v366_v63   ;;  %v1270_v22 = vsub.f32 %v1078_v39, %v1206_v59  ;;  %v9814_v63 = vand.u32 4294901760, %v9807_v13  ;;  %v1968_v39 = vmul.f32 %v1904_v6, %v9702_v48  ;;  %v3392_v18 = vand.u32 4294901760, %v3391_v1 }
 0x129   : > { %v758_v59 = vmul.f32 %v9138_v60, %v658_v37  ;;  %v1716_v5 = vmul.f32 %v1652_v16, %v9797_v38  ;;  %v9831_v48 = vand.u32 4294901760, %v3054_v34 }
 0x12a   : > { %v9811_v7 = vmul.f32 -3.1415927, %v1270_v22  ;;  %15094 = vst [vmem:[#allocation111_spill] sm:$0xff] %v9814_v63  ;;  %v4892_v24 = vsub.f32 %v9807_v13, %v9814_v63  ;;  %3393 = vmatmul.f32.gmra.mxu0 %v3392_v18  ;;  %v916_v22 = vpop.permute.xlu1 %915  ;;  %v2032_v1 = vadd.f32 1.0, %v1968_v39  ;;  %v823_v18 = vadd.f32 %v759_v26, %v565_v3 }
 0x12b   : > { %15097 = vst [vmem:[#allocation114_spill] sm:$0xff] %v9831_v48  ;;  %v822_v2 = vadd.f32 %v758_v59, %v564_v46  ;;  %3714 = vmatmul.f32.gmra.mxu1 %v9831_v48  ;;  %v1016_v13 = vmul.f32 %v9140_v61, %v916_v22  ;;  %v1842_v39 = vmul.f32 %v1778_v41, %v9743_v19  ;;  %v1780_v59 = vadd.f32 0.008333334, %v1716_v5 }
 0x12c   : > { %v9825_v32 = vmul.f32 %v9811_v7, %v9811_v7  ;;  %v9827_v6 = vand.u32 4294901760, %v4892_v24  ;;  %v3397_v24 = vsub.f32 %v3054_v34, %v9831_v48  ;;  %v1017_v37 = vmul.f32 %v9144_v62, %v916_v22 }
 0x12d   : > { %v9843_v46 = vmul.f32 %v2032_v1, %v9693_v15  ;;  %v1080_v26 = vadd.f32 %v1016_v13, %v822_v2  ;;  %v1906_v41 = vadd.f32 -0.16666667, %v1842_v39  ;;  %v1844_v12 = vmul.f32 %v1780_v59, %v9797_v38  ;;  %v368_v15 = vld [vmem:[%s8970_s23 + $0xe0] sm:$0xff] }
 0x12e   : > { %15095 = vst [vmem:[#allocation112_spill] sm:$0xff] %v9825_v32  ;;  %4894 = vmatpush.msrb.mxu3 %v9827_v6  ;;  %v1462_v16 = vmul.f32 -2.5052108e-08, %v9825_v32  ;;  %3901 = vmatmul.f32.gmra.mxu2 %v3397_v24  ;;  %v3398_v3 = vand.u32 4294901760, %v3397_v24  ;;  %v9845_v34 = vadd.f32 %v1017_v37, %v823_v18  ;;  %v920_v37 = vpop.permute.xlu2 %919 }
 0x12f   : > { %15096 = vst [vmem:[#allocation113_spill] sm:$0xff] %v9827_v6  ;;  %v1144_v6 = vadd.f32 0.5, %v1080_v26  ;;  %516 = vperm.xlu1 %8880, %v368_v15   ;;  %8885 = vset.pattern.permute.xlu0 %v15011_v35  ;;  %v1970_v2 = vmul.f32 %v1906_v41, %v9743_v19 }
 0x130   : > { %8881 = vset.pattern.permute.xlu2 %v15011_v35  ;;  %15098 = vst [vmem:[#allocation115_spill] sm:$0xff] %v9843_v46  ;;  %4104 = vmatmul.f32.gmra.mxu3 %v3398_v3  ;;  %v3399_v48 = vsub.f32 %v3397_v24, %v3398_v3  ;;  %v1526_v44 = vadd.f32 2.7557319e-06, %v1462_v16  ;;  %v567_v3 = vmul.f32 %v9118_v54, %v452_v58 }
 0x131   : > { %709 = vperm.xlu2 %8881, %v367_v29   ;;  %15099 = vst [vmem:[#allocation116_spill] sm:$0xff] %v9845_v34  ;;  %v1208_v43 = vfloor.f32 %v1144_v6  ;;  %v2928_v29 = vmul.f32 %v9843_v46, %v9843_v46  ;;  %v3257_v6 = vld [vmem:[%s14259_s2 + $0xe8] sm:$0xff] }
 0x132   : > { %v3400_v22 = vand.u32 4294901760, %v3399_v48  ;;  %v662_v13 = vpop.permute.xlu1 %661  ;;  %v1590_v18 = vmul.f32 %v1526_v44, %v9825_v32  ;;  %v1908_v48 = vadd.f32 -0.16666667, %v1844_v12  ;;  %v9859_v16 = vand.u32 4294901760, %v3257_v6 }
 0x133   : > { %v1272_v1 = vsub.f32 %v1080_v26, %v1208_v43  ;;  %v2992_v5 = vadd.f32 %v2928_v29, %v2928_v29  ;;  %v566_v43 = vmul.f32 %v9116_v53, %v452_v58  ;;  %v760_v59 = vmul.f32 %v9138_v60, %v662_v13 }
 0x134   : > { %3401 = vmatmul.f32.gmra.mxu0 %v3400_v22  ;;  %15100 = vst [vmem:[#allocation117_spill] sm:$0xff] %v9859_v16  ;;  %v1018_v26 = vmul.f32 %v9140_v61, %v920_v37  ;;  %4599 = vmatpush.msrb.mxu2 %v9859_v16  ;;  %v1019_v12 = vmul.f32 %v9144_v62, %v920_v37  ;;  %v2034_v58 = vadd.f32 1.0, %v1970_v2 }
 0x135   : > { %v9857_v24 = vmul.f32 -3.1415927, %v1272_v1  ;;  %v3056_v39 = vsub.f32 1.0, %v2992_v5  ;;  %5322 = vmatpush.msra.mxu1 %v9859_v16  ;;  %v9875_v22 = vsub.f32 %v3257_v6, %v9859_v16  ;;  %v761_v29 = vmul.f32 %v9127_v57, %v662_v13 }
 0x136   : > { %v1972_v1 = vmul.f32 %v1908_v48, %v9797_v38  ;;  %v1654_v5 = vadd.f32 -0.0001984127, %v1590_v18  ;;  %v824_v37 = vadd.f32 %v760_v59, %v566_v43  ;;  %v9893_v48 = vmul.f32 %v2034_v58, %v9732_v28 }
 0x137   : > { %v9866_v44 = vmul.f32 %v9857_v24, %v9857_v24  ;;  %v9872_v41 = vand.u32 4294901760, %v3056_v39  ;;  %15103 = vst [vmem:[#allocation120_spill] sm:$0xff] %v9875_v22  ;;  %v9883_v23 = vand.u32 4294901760, %v9875_v22  ;;  %v825_v9 = vadd.f32 %v761_v29, %v567_v3  ;;  %8883 = vset.pattern.permute.xlu1 %v15005_v47  ;;  %5116 = vmatpush.msra.mxu0 %v9875_v22 }
 0x138   : > { %971 = vperm.xlu1 %8883, %v368_v15   ;;  %v1082_v2 = vadd.f32 %v1018_v26, %v824_v37  ;;  %15106 = vst [vmem:[#allocation123_spill] sm:$0xff] %v9893_v48  ;;  %v1718_v43 = vmul.f32 %v1654_v5, %v9825_v32  ;;  %v2930_v28 = vmul.f32 %v9893_v48, %v9893_v48  ;;  %v924_v5 = vpop.permute.xlu2 %923 }
 0x139   : > { %713 = vperm.xlu2 %8881, %v368_v15   ;;  %15101 = vst [vmem:[#allocation118_spill] sm:$0xff] %v9866_v44  ;;  %v1464_v46 = vmul.f32 -2.5052108e-08, %v9866_v44  ;;  %3718 = vmatmul.f32.gmra.mxu1 %v9872_v41  ;;  %v3405_v19 = vsub.f32 %v3056_v39, %v9872_v41  ;;  %v4898_v13 = vsub.f32 %v9875_v22, %v9883_v23  ;;  %v2036_v39 = vadd.f32 1.0, %v1972_v1  ;;  %v457_v1 = vpop.permute.xlu0 %456 }
 0x13a   : > { %15102 = vst [vmem:[#allocation119_spill] sm:$0xff] %v9872_v41  ;;  %v9889_v18 = vadd.f32 %v1019_v12, %v825_v9  ;;  %v1146_v3 = vadd.f32 0.5, %v1082_v2  ;;  %v666_v26 = vpop.permute.xlu1 %665  ;;  %v369_v9 = vld [vmem:[%s8970_s23 + $0xe8] sm:$0xff]  ;;  %v1782_v58 = vadd.f32 0.008333334, %v1718_v43  ;;  %v2994_v38 = vadd.f32 %v2930_v28, %v2930_v28 }
 0x13b   : > { %15104 = vst [vmem:[#allocation121_spill] sm:$0xff] %v9883_v23  ;;  %3906 = vmatmul.f32.gmra.mxu2 %v3405_v19  ;;  %v3406_v6 = vand.u32 4294901760, %v3405_v19  ;;  %v1528_v15 = vadd.f32 2.7557319e-06, %v1464_v46  ;;  %v9896_v59 = vand.u32 4294901760, %v4898_v13  ;;  %v9901_v12 = vmul.f32 %v2036_v39, %v9786_v4  ;;  %717 = vperm.xlu0 %8885, %v369_v9  }
 0x13c   : > { %15105 = vst [vmem:[#allocation122_spill] sm:$0xff] %v9889_v18  ;;  %v1210_v29 = vfloor.f32 %v1146_v3  ;;  %v762_v3 = vmul.f32 %v9138_v60, %v666_v26  ;;  %v763_v22 = vmul.f32 %v9127_v57, %v666_v26  ;;  %v568_v39 = vmul.f32 %v9116_v53, %v457_v1 }
 0x13d   : > { %15107 = vst [vmem:[#allocation124_spill] sm:$0xff] %v9896_v59  ;;  %4110 = vmatmul.f32.gmra.mxu3 %v3406_v6  ;;  %v3407_v37 = vsub.f32 %v3405_v19, %v3406_v6  ;;  %v1592_v46 = vmul.f32 %v1528_v15, %v9866_v44  ;;  %v2932_v19 = vmul.f32 %v9901_v12, %v9901_v12  ;;  %v3058_v6 = vsub.f32 1.0, %v2994_v38 }
 0x13e   : > { %4900 = vmatpush.msrb.mxu3 %v9896_v59  ;;  %15108 = vst [vmem:[#allocation125_spill] sm:$0xff] %v9901_v12  ;;  %v1274_v4 = vsub.f32 %v1082_v2, %v1210_v29  ;;  %v569_v43 = vmul.f32 %v9118_v54, %v457_v1  ;;  %v1846_v15 = vmul.f32 %v1782_v58, %v9825_v32 }
 0x13f   : > { %v3408_v13 = vand.u32 4294901760, %v3407_v37  ;;  %v1656_v48 = vadd.f32 -0.0001984127, %v1592_v46  ;;  %v1020_v37 = vmul.f32 %v9140_v61, %v924_v5  ;;  %v1021_v28 = vmul.f32 %v9144_v62, %v924_v5 }
 0x140   : > { %975 = vperm.xlu1 %8883, %v369_v9   ;;  %v9915_v59 = vand.u32 4294901760, %v3058_v6  ;;  %v826_v26 = vadd.f32 %v762_v3, %v568_v39  ;;  %v827_v2 = vadd.f32 %v763_v22, %v569_v43  ;;  %v9917_v29 = vmul.f32 -3.1415927, %v1274_v4  ;;  %v3256_v4 = vld [vmem:[%s14259_s2 + $0xe0] sm:$0xff] }
 0x141   : > { %8884 = vset.pattern.permute.xlu2 %v15008_v11  ;;  %3409 = vmatmul.f32.gmra.mxu0 %v3408_v13  ;;  %v2996_v1 = vadd.f32 %v2932_v19, %v2932_v19  ;;  %v1910_v58 = vadd.f32 -0.16666667, %v1846_v15  ;;  %v1720_v5 = vmul.f32 %v1656_v48, %v9866_v44  ;;  %v670_v15 = vpop.permute.xlu2 %669 }
 0x142   : > { %521 = vperm.xlu2 %8884, %v369_v9   ;;  %15109 = vst [vmem:[#allocation126_spill] sm:$0xff] %v9915_v59  ;;  %3722 = vmatmul.f32.gmra.mxu1 %v9915_v59  ;;  %v3413_v38 = vsub.f32 %v3058_v6, %v9915_v59  ;;  %v1084_v9 = vadd.f32 %v1020_v37, %v826_v26  ;;  %v462_v46 = vpop.permute.xlu1 %461 }
 0x143   : > { %v9921_v13 = vadd.f32 %v1021_v28, %v827_v2  ;;  %8888 = vset.pattern.permute.xlu0 %v15008_v11  ;;  %v3060_v22 = vsub.f32 1.0, %v2996_v1  ;;  %v9931_v6 = vmul.f32 %v9917_v29, %v9917_v29  ;;  %v1974_v48 = vmul.f32 %v1910_v58, %v9825_v32 }
 0x144   : > { %3911 = vmatmul.f32.gmra.mxu2 %v3413_v38  ;;  %v3414_v12 = vand.u32 4294901760, %v3413_v38  ;;  %v1148_v3 = vadd.f32 0.5, %v1084_v9  ;;  %v1784_v43 = vadd.f32 0.008333334, %v1720_v5  ;;  %v9936_v28 = vand.u32 4294901760, %v3256_v4  ;;  %531 = vperm.xlu0 %8888, %v371_v50  }
 0x145   : > { %15110 = vst [vmem:[#allocation127_spill] sm:$0xff] %v9921_v13  ;;  %v9933_v11 = vand.u32 4294901760, %v3060_v22  ;;  %v2038_v58 = vadd.f32 1.0, %v1974_v48  ;;  %v570_v5 = vmul.f32 %v9116_v53, %v462_v46 }
 0x146   : > { %15111 = vst [vmem:[#allocation128_spill] sm:$0xff] %v9931_v6  ;;  %4116 = vmatmul.f32.gmra.mxu3 %v3414_v12  ;;  %v1212_v19 = vfloor.f32 %v1148_v3  ;;  %v3415_v39 = vsub.f32 %v3413_v38, %v3414_v12  ;;  %v764_v12 = vmul.f32 %v9138_v60, %v670_v15  ;;  %v765_v38 = vmul.f32 %v9127_v57, %v670_v15 }
 0x147   : > { %15112 = vst [vmem:[#allocation129_spill] sm:$0xff] %v9933_v11  ;;  %v3421_v2 = vsub.f32 %v3060_v22, %v9933_v11  ;;  %4601 = vmatpush.msrb.mxu2 %v9936_v28  ;;  %v9945_v1 = vsub.f32 %v3256_v4, %v9936_v28  ;;  %5324 = vmatpush.msra.mxu1 %v9936_v28 }
 0x148   : > { %8886 = vset.pattern.permute.xlu1 %v15011_v35  ;;  %v3416_v37 = vand.u32 4294901760, %v3415_v39  ;;  %15113 = vst [vmem:[#allocation130_spill] sm:$0xff] %v9936_v28  ;;  %v1466_v35 = vmul.f32 -2.5052108e-08, %v9931_v6  ;;  %v1276_v26 = vsub.f32 %v1084_v9, %v1212_v19  ;;  %v1848_v9 = vmul.f32 %v1784_v43, %v9866_v44  ;;  %v370_v39 = vld [vmem:[%s8970_s23 + $0xf0] sm:$0xff] }
 0x149   : > { %15114 = vst [vmem:[#allocation131_spill] sm:$0xff] %v9945_v1  ;;  %v9951_v3 = vand.u32 4294901760, %v9945_v1  ;;  %v571_v22 = vmul.f32 %v9118_v54, %v462_v46  ;;  %5119 = vmatpush.msra.mxu0 %v9945_v1  ;;  %721 = vperm.xlu1 %8886, %v370_v39   ;;  %v828_v43 = vadd.f32 %v764_v12, %v570_v5 }
 0x14a   : > { %3417 = vmatmul.f32.gmra.mxu0 %v3416_v37  ;;  %3726 = vmatmul.f32.gmra.mxu1 %v9933_v11  ;;  %v467_v19 = vpop.permute.xlu1 %466  ;;  %v1530_v15 = vadd.f32 2.7557319e-06, %v1466_v35  ;;  %v9956_v4 = vmul.f32 -3.1415927, %v1276_v26  ;;  %v928_v37 = vpop.permute.xlu0 %927  ;;  %v3422_v11 = vand.u32 4294901760, %v3421_v2  ;;  %v9961_v59 = vmul.f32 %v2038_v58, %v9811_v7 }
 0x14b   : > { %15115 = vst [vmem:[#allocation132_spill] sm:$0xff] %v9951_v3  ;;  %526 = vperm.xlu2 %8884, %v370_v39   ;;  %v4904_v48 = vsub.f32 %v9945_v1, %v9951_v3  ;;  %v829_v32 = vadd.f32 %v765_v38, %v571_v22  ;;  %v1912_v46 = vadd.f32 -0.16666667, %v1848_v9  ;;  %v1022_v35 = vmul.f32 %v9140_v61, %v928_v37  ;;  %v674_v1 = vpop.permute.xlu2 %673 }
 0x14c   : > { %3916 = vmatmul.f32.gmra.mxu2 %v3421_v2  ;;  %15116 = vst [vmem:[#allocation133_spill] sm:$0xff] %v9961_v59  ;;  %v1594_v26 = vmul.f32 %v1530_v15, %v9931_v6  ;;  %v9969_v13 = vmul.f32 %v9956_v4, %v9956_v4  ;;  %v1023_v12 = vmul.f32 %v9144_v62, %v928_v37 }
 0x14d   : > { %v9963_v41 = vand.u32 4294901760, %v4904_v48  ;;  %v1086_v7 = vadd.f32 %v1022_v35, %v828_v43  ;;  %v3423_v38 = vsub.f32 %v3421_v2, %v3422_v11  ;;  %v2934_v58 = vmul.f32 %v9961_v59, %v9961_v59  ;;  %v3255_v35 = vld [vmem:[%s14259_s2 + $0xd8] sm:$0xff]  ;;  %8889 = vset.pattern.permute.xlu0 %v15005_v47 }
 0x14e   : > { %4122 = vmatmul.f32.gmra.mxu3 %v3422_v11  ;;  %15118 = vst [vmem:[#allocation135_spill] sm:$0xff] %v9969_v13  ;;  %v1976_v9 = vmul.f32 %v1912_v46, %v9866_v44  ;;  %v9976_v5 = vadd.f32 %v1023_v12, %v829_v32  ;;  %v767_v22 = vmul.f32 %v9127_v57, %v674_v1  ;;  %v1658_v51 = vadd.f32 -0.0001984127, %v1594_v26 }
 0x14f   : > { %15117 = vst [vmem:[#allocation134_spill] sm:$0xff] %v9963_v41  ;;  %4906 = vmatpush.msrb.mxu3 %v9963_v41  ;;  %v1150_v15 = vadd.f32 0.5, %v1086_v7  ;;  %v3424_v48 = vand.u32 4294901760, %v3423_v38  ;;  %v573_v18 = vmul.f32 %v9118_v54, %v467_v19  ;;  %v1468_v37 = vmul.f32 -2.5052108e-08, %v9969_v13 }
 0x150   : > { %15119 = vst [vmem:[#allocation136_spill] sm:$0xff] %v9976_v5  ;;  %v572_v43 = vmul.f32 %v9116_v53, %v467_v19  ;;  %v766_v32 = vmul.f32 %v9138_v60, %v674_v1  ;;  %v2040_v26 = vadd.f32 1.0, %v1976_v9  ;;  %v2998_v38 = vadd.f32 %v2934_v58, %v2934_v58 }
 0x151   : > { %725 = vperm.xlu1 %8886, %v371_v50   ;;  %v1214_v11 = vfloor.f32 %v1150_v15  ;;  %v831_v2 = vadd.f32 %v767_v22, %v573_v18  ;;  %v9988_v59 = vand.u32 4294901760, %v3255_v35  ;;  %v1722_v19 = vmul.f32 %v1658_v51, %v9931_v6 }
 0x152   : > { %3425 = vmatmul.f32.gmra.mxu0 %v3424_v48  ;;  %v932_v46 = vpop.permute.xlu1 %931  ;;  %v1532_v15 = vadd.f32 2.7557319e-06, %v1468_v37  ;;  %v830_v48 = vadd.f32 %v766_v32, %v572_v43  ;;  %v3062_v44 = vsub.f32 1.0, %v2998_v38  ;;  %v10001_v58 = vmul.f32 %v2040_v26, %v9857_v24 }
 0x153   : > { %8887 = vset.pattern.permute.xlu2 %v15005_v47  ;;  %v1278_v12 = vsub.f32 %v1086_v7, %v1214_v11  ;;  %15120 = vst [vmem:[#allocation137_spill] sm:$0xff] %v9988_v59  ;;  %v1024_v18 = vmul.f32 %v9140_v61, %v932_v46  ;;  %4603 = vmatpush.msrb.mxu2 %v9988_v59  ;;  %v1786_v11 = vadd.f32 0.008333334, %v1722_v19 }
 0x154   : > { %979 = vperm.xlu2 %8887, %v370_v39   ;;  %v9996_v1 = vsub.f32 %v3255_v35, %v9988_v59  ;;  %v1025_v39 = vmul.f32 %v9144_v62, %v932_v46  ;;  %5326 = vmatpush.msra.mxu1 %v9988_v59  ;;  %15122 = vst [vmem:[#allocation139_spill] sm:$0xff] %v10001_v58  ;;  %v10003_v51 = vand.u32 4294901760, %v3062_v44 }
 0x155   : > { %v9992_v22 = vmul.f32 -3.1415927, %v1278_v12  ;;  %v1088_v7 = vadd.f32 %v1024_v18, %v830_v48  ;;  %v1596_v46 = vmul.f32 %v1532_v15, %v9969_v13  ;;  %v2936_v35 = vmul.f32 %v10001_v58, %v10001_v58  ;;  %v472_v15 = vpop.permute.xlu2 %471 }
 0x156   : > { %15121 = vst [vmem:[#allocation138_spill] sm:$0xff] %v9996_v1  ;;  %v10006_v9 = vand.u32 4294901760, %v9996_v1  ;;  %v10008_v37 = vadd.f32 %v1025_v39, %v831_v2  ;;  %5122 = vmatpush.msra.mxu0 %v9996_v1  ;;  %3730 = vmatmul.f32.gmra.mxu1 %v10003_v51  ;;  %v3429_v24 = vsub.f32 %v3062_v44, %v10003_v51  ;;  %v678_v44 = vpop.permute.xlu0 %677 }
 0x157   : > { %15123 = vst [vmem:[#allocation140_spill] sm:$0xff] %v10003_v51  ;;  %v10013_v43 = vmul.f32 %v9992_v22, %v9992_v22  ;;  %v1152_v2 = vadd.f32 0.5, %v1088_v7  ;;  %v1850_v38 = vmul.f32 %v1786_v11, %v9931_v6  ;;  %v1660_v19 = vadd.f32 -0.0001984127, %v1596_v46 }
 0x158   : > { %15124 = vst [vmem:[#allocation141_spill] sm:$0xff] %v10006_v9  ;;  %v4910_v32 = vsub.f32 %v9996_v1, %v10006_v9  ;;  %3921 = vmatmul.f32.gmra.mxu2 %v3429_v24  ;;  %v3430_v26 = vand.u32 4294901760, %v3429_v24  ;;  %v574_v58 = vmul.f32 %v9116_v53, %v472_v15  ;;  %v575_v1 = vmul.f32 %v9118_v54, %v472_v15 }
 0x159   : > { %15125 = vst [vmem:[#allocation142_spill] sm:$0xff] %v10008_v37  ;;  %v1470_v47 = vmul.f32 -2.5052108e-08, %v10013_v43  ;;  %v1216_v48 = vfloor.f32 %v1152_v2  ;;  %v1914_v41 = vadd.f32 -0.16666667, %v1850_v38  ;;  %v1724_v51 = vmul.f32 %v1660_v19, %v9969_v13 }
 0x15a   : > { %15126 = vst [vmem:[#allocation143_spill] sm:$0xff] %v10013_v43  ;;  %v10023_v12 = vand.u32 4294901760, %v4910_v32  ;;  %4128 = vmatmul.f32.gmra.mxu3 %v3430_v26  ;;  %v3431_v18 = vsub.f32 %v3429_v24, %v3430_v26  ;;  %v768_v32 = vmul.f32 %v9138_v60, %v678_v44  ;;  %v936_v37 = vpop.permute.xlu1 %935  ;;  %v769_v36 = vmul.f32 %v9127_v57, %v678_v44 }
 0x15b   : > { %v1534_v39 = vadd.f32 2.7557319e-06, %v1470_v47  ;;  %v1280_v5 = vsub.f32 %v1088_v7, %v1216_v48  ;;  %v1026_v47 = vmul.f32 %v9140_v61, %v936_v37  ;;  %v1978_v15 = vmul.f32 %v1914_v41, %v9931_v6  ;;  %v10234_v25 = vpop.f32.mrf.mxu2 }
 0x15c   : > { %983 = vperm.xlu2 %8887, %v371_v50   ;;  %15127 = vst [vmem:[#allocation144_spill] sm:$0xff] %v10023_v12  ;;  %4912 = vmatpush.msrb.mxu3 %v10023_v12  ;;  %v3000_v50 = vadd.f32 %v2936_v35, %v2936_v35  ;;  %v3432_v11 = vand.u32 4294901760, %v3431_v18  ;;  %v832_v35 = vadd.f32 %v768_v32, %v574_v58  ;;  %v1788_v38 = vadd.f32 0.008333334, %v1724_v51 }
 0x15d   : > { %v1598_v24 = vmul.f32 %v1534_v39, %v10013_v43  ;;  %v833_v26 = vadd.f32 %v769_v36, %v575_v1  ;;  %v1027_v7 = vmul.f32 %v9144_v62, %v936_v37  ;;  %v10041_v48 = vmul.f32 -3.1415927, %v1280_v5  ;;  %v477_v18 = vpop.permute.xlu2 %476  ;;  %15162 = vst [vmem:[#allocation179_spill] sm:$0xff] %v10234_v25 }
 0x15e   : > { %v3064_v46 = vsub.f32 1.0, %v3000_v50  ;;  %3433 = vmatmul.f32.gmra.mxu0 %v3432_v11  ;;  %v1090_v44 = vadd.f32 %v1026_v47, %v832_v35  ;;  %v2042_v58 = vadd.f32 1.0, %v1978_v15  ;;  %v1852_v41 = vmul.f32 %v1788_v38, %v9969_v13  ;;  %v3254_v11 = vld [vmem:[%s14259_s2 + $0xd0] sm:$0xff] }
 0x15f   : > { %v10043_v39 = vadd.f32 %v1027_v7, %v833_v26  ;;  %v1662_v36 = vadd.f32 -0.0001984127, %v1598_v24  ;;  %v10048_v32 = vmul.f32 %v10041_v48, %v10041_v48  ;;  %v10057_v47 = vand.u32 4294901760, %v3254_v11 }
 0x160   : > { %v10033_v2 = vand.u32 4294901760, %v3064_v46  ;;  %v1154_v1 = vadd.f32 0.5, %v1090_v44  ;;  %v10055_v24 = vmul.f32 %v2042_v58, %v9917_v29  ;;  %v1916_v35 = vadd.f32 -0.16666667, %v1852_v41 }
 0x161   : > { %15129 = vst [vmem:[#allocation146_spill] sm:$0xff] %v10043_v39  ;;  %v1472_v15 = vmul.f32 -2.5052108e-08, %v10048_v32  ;;  %4605 = vmatpush.msrb.mxu2 %v10057_v47  ;;  %5328 = vmatpush.msra.mxu1 %v10057_v47  ;;  %v576_v58 = vmul.f32 %v9116_v53, %v477_v18 }
 0x162   : > { %15128 = vst [vmem:[#allocation145_spill] sm:$0xff] %v10033_v2  ;;  %3734 = vmatmul.f32.gmra.mxu1 %v10033_v2  ;;  %v3437_v19 = vsub.f32 %v3064_v46, %v10033_v2  ;;  %v1218_v37 = vfloor.f32 %v1154_v1  ;;  %v1726_v46 = vmul.f32 %v1662_v36, %v10013_v43  ;;  %v682_v38 = vpop.permute.xlu1 %681  ;;  %v1980_v7 = vmul.f32 %v1916_v35, %v9969_v13 }
 0x163   : > { %15130 = vst [vmem:[#allocation147_spill] sm:$0xff] %v10048_v32  ;;  %v2938_v29 = vmul.f32 %v10055_v24, %v10055_v24  ;;  %v1536_v1 = vadd.f32 2.7557319e-06, %v1472_v15 }
 0x164   : > { %3926 = vmatmul.f32.gmra.mxu2 %v3437_v19  ;;  %v3438_v50 = vand.u32 4294901760, %v3437_v19  ;;  %15131 = vst [vmem:[#allocation148_spill] sm:$0xff] %v10055_v24  ;;  %v1282_v26 = vsub.f32 %v1090_v44, %v1218_v37  ;;  %v10068_v44 = vsub.f32 %v3254_v11, %v10057_v47  ;;  %v577_v37 = vmul.f32 %v9118_v54, %v477_v18 }
 0x165   : > { %15132 = vst [vmem:[#allocation149_spill] sm:$0xff] %v10057_v47  ;;  %v940_v36 = vpop.permute.xlu2 %939  ;;  %v2044_v24 = vadd.f32 1.0, %v1980_v7 }
 0x166   : > { %4134 = vmatmul.f32.gmra.mxu3 %v3438_v50  ;;  %v3439_v51 = vsub.f32 %v3437_v19, %v3438_v50  ;;  %v1790_v19 = vadd.f32 0.008333334, %v1726_v46  ;;  %v10063_v50 = vmul.f32 -3.1415927, %v1282_v26  ;;  %15133 = vst [vmem:[#allocation150_spill] sm:$0xff] %v10068_v44  ;;  %v1028_v41 = vmul.f32 %v9140_v61, %v940_v36  ;;  %5125 = vmatpush.msra.mxu0 %v10068_v44 }
 0x167   : > { %v10075_v46 = vand.u32 4294901760, %v10068_v44  ;;  %v1029_v11 = vmul.f32 %v9144_v62, %v940_v36  ;;  %v771_v26 = vmul.f32 %v9127_v57, %v682_v38  ;;  %v10095_v7 = vmul.f32 %v2044_v24, %v9956_v4 }
 0x168   : > { %v3440_v5 = vand.u32 4294901760, %v3439_v51  ;;  %v770_v51 = vmul.f32 %v9138_v60, %v682_v38  ;;  %v1854_v35 = vmul.f32 %v1790_v19, %v10013_v43  ;;  %v10083_v13 = vmul.f32 %v10063_v50, %v10063_v50 }
 0x169   : > { %15134 = vst [vmem:[#allocation151_spill] sm:$0xff] %v10075_v46  ;;  %v4916_v18 = vsub.f32 %v10068_v44, %v10075_v46  ;;  %v835_v12 = vadd.f32 %v771_v26, %v577_v37  ;;  %v2940_v4 = vmul.f32 %v10095_v7, %v10095_v7 }
 0x16a   : > { %3441 = vmatmul.f32.gmra.mxu0 %v3440_v5  ;;  %v3002_v5 = vadd.f32 %v2938_v29, %v2938_v29  ;;  %v834_v15 = vadd.f32 %v770_v51, %v576_v58  ;;  %15135 = vst [vmem:[#allocation152_spill] sm:$0xff] %v10083_v13  ;;  %v1600_v29 = vmul.f32 %v1536_v1, %v10048_v32  ;;  %v1918_v36 = vadd.f32 -0.16666667, %v1854_v35  ;;  %v686_v35 = vpop.permute.xlu1 %685 }
 0x16b   : > { %v10090_v19 = vand.u32 4294901760, %v4916_v18  ;;  %v10092_v38 = vadd.f32 %v1029_v11, %v835_v12  ;;  %15139 = vst [vmem:[#allocation156_spill] sm:$0xff] %v10095_v7  ;;  %v1474_v58 = vmul.f32 -2.5052108e-08, %v10083_v13 }
 0x16c   : > { %v3066_v6 = vsub.f32 1.0, %v3002_v5  ;;  %v1092_v2 = vadd.f32 %v1028_v41, %v834_v15  ;;  %v1664_v51 = vadd.f32 -0.0001984127, %v1600_v29  ;;  %v1982_v5 = vmul.f32 %v1918_v36, %v10013_v43  ;;  %v482_v15 = vpop.permute.xlu0 %481 }
 0x16d   : > { %15137 = vst [vmem:[#allocation154_spill] sm:$0xff] %v10090_v19  ;;  %4918 = vmatpush.msrb.mxu3 %v10090_v19  ;;  %v1538_v12 = vadd.f32 2.7557319e-06, %v1474_v58  ;;  %v944_v18 = vpop.permute.xlu2 %943  ;;  %v772_v29 = vmul.f32 %v9138_v60, %v686_v35 }
 0x16e   : > { %v10088_v39 = vand.u32 4294901760, %v3066_v6  ;;  %15138 = vst [vmem:[#allocation155_spill] sm:$0xff] %v10092_v38  ;;  %v1156_v41 = vadd.f32 0.5, %v1092_v2  ;;  %v1728_v24 = vmul.f32 %v1664_v51, %v10048_v32  ;;  %v2046_v19 = vadd.f32 1.0, %v1982_v5 }
 0x16f   : > { %v1602_v36 = vmul.f32 %v1538_v12, %v10083_v13 }
 0x170   : > { %15136 = vst [vmem:[#allocation153_spill] sm:$0xff] %v10088_v39  ;;  %3738 = vmatmul.f32.gmra.mxu1 %v10088_v39  ;;  %v3445_v1 = vsub.f32 %v3066_v6, %v10088_v39  ;;  %v1220_v26 = vfloor.f32 %v1156_v41  ;;  %v3004_v6 = vadd.f32 %v2940_v4, %v2940_v4  ;;  %v773_v39 = vmul.f32 %v9127_v57, %v686_v35 }
 0x171   : > { %v1792_v7 = vadd.f32 0.008333334, %v1728_v24  ;;  %v1030_v41 = vmul.f32 %v9140_v61, %v944_v18  ;;  %v10115_v35 = vmul.f32 %v2046_v19, %v9992_v22  ;;  %v1666_v12 = vadd.f32 -0.0001984127, %v1602_v36  ;;  %v3253_v22 = vld [vmem:[%s14259_s2 + $0xc8] sm:$0xff] }
 0x172   : > { %3931 = vmatmul.f32.gmra.mxu2 %v3445_v1  ;;  %v3446_v37 = vand.u32 4294901760, %v3445_v1  ;;  %v3068_v58 = vsub.f32 1.0, %v3004_v6  ;;  %v1284_v51 = vsub.f32 %v1092_v2, %v1220_v26 }
 0x173   : > { %15141 = vst [vmem:[#allocation158_spill] sm:$0xff] %v10115_v35  ;;  %v1856_v2 = vmul.f32 %v1792_v7, %v10048_v32  ;;  %v2942_v19 = vmul.f32 %v10115_v35, %v10115_v35 }
 0x174   : > { %4140 = vmatmul.f32.gmra.mxu3 %v3446_v37  ;;  %v3447_v11 = vsub.f32 %v3445_v1, %v3446_v37  ;;  %v578_v1 = vmul.f32 %v9116_v53, %v482_v15  ;;  %v579_v37 = vmul.f32 %v9118_v54, %v482_v15  ;;  %v10112_v4 = vand.u32 4294901760, %v3068_v58 }
 0x175   : > { %v10122_v24 = vmul.f32 -3.1415927, %v1284_v51  ;;  %v1920_v36 = vadd.f32 -0.16666667, %v1856_v2 }
 0x176   : > { %v3448_v44 = vand.u32 4294901760, %v3447_v11  ;;  %v1031_v11 = vmul.f32 %v9144_v62, %v944_v18  ;;  %15140 = vst [vmem:[#allocation157_spill] sm:$0xff] %v10112_v4  ;;  %v836_v43 = vadd.f32 %v772_v29, %v578_v1  ;;  %v837_v5 = vadd.f32 %v773_v39, %v579_v37  ;;  %v487_v39 = vpop.permute.xlu1 %486  ;;  %v690_v37 = vpop.permute.xlu2 %689 }
 0x177   : > { %v1730_v29 = vmul.f32 %v1666_v12, %v10083_v13  ;;  %v10132_v7 = vmul.f32 %v10122_v24, %v10122_v24  ;;  %v1984_v2 = vmul.f32 %v1920_v36, %v10048_v32 }
 0x178   : > { %3449 = vmatmul.f32.gmra.mxu0 %v3448_v44  ;;  %3742 = vmatmul.f32.gmra.mxu1 %v10112_v4  ;;  %v3453_v44 = vsub.f32 %v3068_v58, %v10112_v4  ;;  %v1094_v6 = vadd.f32 %v1030_v41, %v836_v43  ;;  %v10119_v15 = vadd.f32 %v1031_v11, %v837_v5  ;;  %v10134_v58 = vand.u32 4294901760, %v3253_v22 }
 0x179   : > { %15143 = vst [vmem:[#allocation160_spill] sm:$0xff] %v10132_v7  ;;  %v3006_v41 = vadd.f32 %v2942_v19, %v2942_v19  ;;  %v1794_v11 = vadd.f32 0.008333334, %v1730_v29  ;;  %v775_v5 = vmul.f32 %v9127_v57, %v690_v37 }
 0x17a   : > { %15142 = vst [vmem:[#allocation159_spill] sm:$0xff] %v10119_v15  ;;  %3936 = vmatmul.f32.gmra.mxu2 %v3453_v44  ;;  %v3454_v26 = vand.u32 4294901760, %v3453_v44  ;;  %v1158_v18 = vadd.f32 0.5, %v1094_v6  ;;  %v10139_v12 = vsub.f32 %v3253_v22, %v10134_v58  ;;  %5330 = vmatpush.msra.mxu1 %v10134_v58 }
 0x17b   : > { %15144 = vst [vmem:[#allocation161_spill] sm:$0xff] %v10134_v58  ;;  %4607 = vmatpush.msrb.mxu2 %v10134_v58  ;;  %v3070_v4 = vsub.f32 1.0, %v3006_v41  ;;  %v1858_v29 = vmul.f32 %v1794_v11, %v10083_v13  ;;  %v2048_v41 = vadd.f32 1.0, %v1984_v2 }
 0x17c   : > { %4146 = vmatmul.f32.gmra.mxu3 %v3454_v26  ;;  %v1222_v43 = vfloor.f32 %v1158_v18  ;;  %v3455_v51 = vsub.f32 %v3453_v44, %v3454_v26  ;;  %15145 = vst [vmem:[#allocation162_spill] sm:$0xff] %v10139_v12  ;;  %v1476_v18 = vmul.f32 -2.5052108e-08, %v10132_v7  ;;  %v580_v44 = vmul.f32 %v9116_v53, %v487_v39  ;;  %5128 = vmatpush.msra.mxu0 %v10139_v12 }
 0x17d   : > { %v581_v26 = vmul.f32 %v9118_v54, %v487_v39  ;;  %v10153_v19 = vand.u32 4294901760, %v3070_v4  ;;  %v948_v39 = vpop.permute.xlu0 %947  ;;  %v1922_v31 = vadd.f32 -0.16666667, %v1858_v29  ;;  %v10169_v2 = vmul.f32 %v2048_v41, %v10041_v48 }
 0x17e   : > { %v1286_v1 = vsub.f32 %v1094_v6, %v1222_v43  ;;  %v3456_v35 = vand.u32 4294901760, %v3455_v51  ;;  %v774_v6 = vmul.f32 %v9138_v60, %v690_v37  ;;  %v10146_v43 = vand.u32 4294901760, %v10139_v12  ;;  %v492_v51 = vpop.permute.xlu1 %491 }
 0x17f   : > { %15147 = vst [vmem:[#allocation164_spill] sm:$0xff] %v10153_v19  ;;  %v839_v37 = vadd.f32 %v775_v5, %v581_v26  ;;  %v3461_v32 = vsub.f32 %v3070_v4, %v10153_v19  ;;  %v1540_v15 = vadd.f32 2.7557319e-06, %v1476_v18  ;;  %v1032_v5 = vmul.f32 %v9140_v61, %v948_v39 }
 0x180   : > { %15146 = vst [vmem:[#allocation163_spill] sm:$0xff] %v10146_v43  ;;  %v10151_v22 = vmul.f32 -3.1415927, %v1286_v1  ;;  %3457 = vmatmul.f32.gmra.mxu0 %v3456_v35  ;;  %v4922_v36 = vsub.f32 %v10139_v12, %v10146_v43  ;;  %3746 = vmatmul.f32.gmra.mxu1 %v10153_v19  ;;  %v838_v1 = vadd.f32 %v774_v6, %v580_v44  ;;  %v694_v6 = vpop.permute.xlu2 %693 }
 0x181   : > { %v3462_v11 = vand.u32 4294901760, %v3461_v32  ;;  %15150 = vst [vmem:[#allocation167_spill] sm:$0xff] %v10169_v2  ;;  %v1033_v4 = vmul.f32 %v9144_v62, %v948_v39  ;;  %v1604_v18 = vmul.f32 %v1540_v15, %v10132_v7  ;;  %v1986_v29 = vmul.f32 %v1922_v31, %v10083_v13  ;;  %v3252_v31 = vld [vmem:[%s14259_s2 + $0xc0] sm:$0xff] }
 0x182   : > { %v10160_v38 = vand.u32 4294901760, %v4922_v36  ;;  %v10164_v35 = vmul.f32 %v10151_v22, %v10151_v22  ;;  %3941 = vmatmul.f32.gmra.mxu2 %v3461_v32  ;;  %v1096_v44 = vadd.f32 %v1032_v5, %v838_v1  ;;  %v2944_v48 = vmul.f32 %v10169_v2, %v10169_v2 }
 0x183   : > { %v3463_v26 = vsub.f32 %v3461_v32, %v3462_v11  ;;  %v10174_v12 = vadd.f32 %v1033_v4, %v839_v37  ;;  %v777_v41 = vmul.f32 %v9127_v57, %v694_v6  ;;  %v583_v39 = vmul.f32 %v9118_v54, %v492_v51 }
 0x184   : > { %15148 = vst [vmem:[#allocation165_spill] sm:$0xff] %v10160_v38  ;;  %4924 = vmatpush.msrb.mxu3 %v10160_v38  ;;  %v1478_v36 = vmul.f32 -2.5052108e-08, %v10164_v35  ;;  %v1160_v38 = vadd.f32 0.5, %v1096_v44  ;;  %v1668_v34 = vadd.f32 -0.0001984127, %v1604_v18  ;;  %v582_v32 = vmul.f32 %v9116_v53, %v492_v51 }
 0x185   : > { %15149 = vst [vmem:[#allocation166_spill] sm:$0xff] %v10164_v35  ;;  %4152 = vmatmul.f32.gmra.mxu3 %v3462_v11  ;;  %v3464_v19 = vand.u32 4294901760, %v3463_v26  ;;  %v841_v37 = vadd.f32 %v777_v41, %v583_v39  ;;  %v2050_v5 = vadd.f32 1.0, %v1986_v29  ;;  %v776_v4 = vmul.f32 %v9138_v60, %v694_v6 }
 0x186   : > { %15151 = vst [vmem:[#allocation168_spill] sm:$0xff] %v10174_v12  ;;  %v1224_v15 = vfloor.f32 %v1160_v38  ;;  %v952_v1 = vpop.permute.xlu1 %951  ;;  %v1542_v11 = vadd.f32 2.7557319e-06, %v1478_v36  ;;  %v10186_v2 = vand.u32 4294901760, %v3252_v31  ;;  %v3008_v13 = vadd.f32 %v2944_v48, %v2944_v48  ;;  %v10231_v12 = vpop.f32.mrf.mxu0 }
 0x187   : > { %v1034_v18 = vmul.f32 %v9140_v61, %v952_v1  ;;  %v1732_v38 = vmul.f32 %v1668_v34, %v10132_v7  ;;  %v840_v51 = vadd.f32 %v776_v4, %v582_v32  ;;  %v1035_v6 = vmul.f32 %v9144_v62, %v952_v1  ;;  %v10214_v32 = vpop.f32.mrf.mxu1  ;;  %15161 = vst [vmem:[#allocation178_spill] sm:$0xff] %v10231_v12 }
 0x188   : > { %3465 = vmatmul.f32.gmra.mxu0 %v3464_v19  ;;  %v1288_v26 = vsub.f32 %v1096_v44, %v1224_v15  ;;  %15152 = vst [vmem:[#allocation169_spill] sm:$0xff] %v10186_v2  ;;  %v1606_v36 = vmul.f32 %v1542_v11, %v10164_v35  ;;  %4609 = vmatpush.msrb.mxu2 %v10186_v2  ;;  %v3072_v41 = vsub.f32 1.0, %v3008_v13 }
 0x189   : > { %v10195_v29 = vsub.f32 %v3252_v31, %v10186_v2  ;;  %5332 = vmatpush.msra.mxu1 %v10186_v2  ;;  %v10200_v44 = vmul.f32 %v2050_v5, %v10063_v50  ;;  %v1098_v48 = vadd.f32 %v1034_v18, %v840_v51  ;;  %v10211_v13 = vadd.f32 %v1035_v6, %v841_v37  ;;  %v698_v6 = vpop.permute.xlu0 %697 }
 0x18a   : > { %v10190_v19 = vmul.f32 -3.1415927, %v1288_v26  ;;  %v10206_v39 = vand.u32 4294901760, %v3072_v41  ;;  %15159 = vst [vmem:[#allocation176_spill] sm:$0xff] %v10214_v32  ;;  %v1796_v11 = vadd.f32 0.008333334, %v1732_v38  ;;  %v497_v32 = vpop.permute.xlu2 %496 }
 0x18b   : > { %15153 = vst [vmem:[#allocation170_spill] sm:$0xff] %v10195_v29  ;;  %v10209_v15 = vand.u32 4294901760, %v10195_v29  ;;  %5131 = vmatpush.msra.mxu0 %v10195_v29  ;;  %v1162_v1 = vadd.f32 0.5, %v1098_v48  ;;  %v1670_v50 = vadd.f32 -0.0001984127, %v1606_v36  ;;  %v2946_v4 = vmul.f32 %v10200_v44, %v10200_v44 }
 0x18c   : > { %15154 = vst [vmem:[#allocation171_spill] sm:$0xff] %v10200_v44  ;;  %v10204_v34 = vmul.f32 %v10190_v19, %v10190_v19  ;;  %3750 = vmatmul.f32.gmra.mxu1 %v10206_v39  ;;  %v3469_v5 = vsub.f32 %v3072_v41, %v10206_v39  ;;  %v1860_v38 = vmul.f32 %v1796_v11, %v10132_v7 }
 0x18d   : > { %15156 = vst [vmem:[#allocation173_spill] sm:$0xff] %v10206_v39  ;;  %v4928_v31 = vsub.f32 %v10195_v29, %v10209_v15  ;;  %v1226_v51 = vfloor.f32 %v1162_v1  ;;  %v1734_v36 = vmul.f32 %v1670_v50, %v10164_v35  ;;  %v585_v41 = vmul.f32 %v9118_v54, %v497_v32 }
 0x18e   : > { %15155 = vst [vmem:[#allocation172_spill] sm:$0xff] %v10204_v34  ;;  %v1480_v37 = vmul.f32 -2.5052108e-08, %v10204_v34  ;;  %3946 = vmatmul.f32.gmra.mxu2 %v3469_v5  ;;  %v3470_v18 = vand.u32 4294901760, %v3469_v5  ;;  %v584_v39 = vmul.f32 %v9116_v53, %v497_v32  ;;  %v779_v11 = vmul.f32 %v9127_v57, %v698_v6  ;;  %v956_v50 = vpop.permute.xlu1 %955  ;;  %v10238_v32 = vpop.f32.mrf.mxu3 }
 0x18f   : > { %15157 = vst [vmem:[#allocation174_spill] sm:$0xff] %v10209_v15  ;;  %v10223_v26 = vand.u32 4294901760, %v4928_v31  ;;  %v3010_v31 = vadd.f32 %v2946_v4, %v2946_v4  ;;  %v1290_v1 = vsub.f32 %v1098_v48, %v1226_v51  ;;  %v1798_v21 = vadd.f32 0.008333334, %v1734_v36  ;;  %v10236_v17 = vpop.f32.mrf.mxu1 }
 0x190   : > { %15158 = vst [vmem:[#allocation175_spill] sm:$0xff] %v10211_v13  ;;  %4158 = vmatmul.f32.gmra.mxu3 %v3470_v18  ;;  %v3471_v29 = vsub.f32 %v3469_v5, %v3470_v18  ;;  %v1544_v44 = vadd.f32 2.7557319e-06, %v1480_v37  ;;  %v778_v13 = vmul.f32 %v9138_v60, %v698_v6  ;;  %v843_v5 = vadd.f32 %v779_v11, %v585_v41 }
 0x191   : > { %15160 = vst [vmem:[#allocation177_spill] sm:$0xff] %v10223_v26  ;;  %4930 = vmatpush.msrb.mxu3 %v10223_v26  ;;  %v1924_v26 = vadd.f32 -0.16666667, %v1860_v38  ;;  %v3074_v40 = vsub.f32 1.0, %v3010_v31  ;;  %v10244_v18 = vmul.f32 -3.1415927, %v1290_v1  ;;  %v1037_v51 = vmul.f32 %v9144_v62, %v956_v50 }
 0x192   : > { %v3472_v30 = vand.u32 4294901760, %v3471_v29  ;;  %15163 = vst [vmem:[#allocation180_spill] sm:$0xff] %v10236_v17  ;;  %v1608_v4 = vmul.f32 %v1544_v44, %v10204_v34  ;;  %v842_v48 = vadd.f32 %v778_v13, %v584_v39  ;;  %v1036_v29 = vmul.f32 %v9140_v61, %v956_v50  ;;  %v502_v31 = vpop.permute.xlu2 %501 }
 0x193   : > { %15164 = vst [vmem:[#allocation181_spill] sm:$0xff] %v10238_v32  ;;  %v10241_v37 = vand.u32 4294901760, %v3074_v40  ;;  %v1988_v6 = vmul.f32 %v1924_v26, %v10132_v7  ;;  %v1862_v38 = vmul.f32 %v1798_v21, %v10164_v35  ;;  %v10251_v41 = vadd.f32 %v1037_v51, %v843_v5  ;;  %v10257_v7 = vpop.f32.mrf.mxu0  ;;  %v10262_v5 = vpop.f32.mrf.mxu2 }
 0x194   : > { %3473 = vmatmul.f32.gmra.mxu0 %v3472_v30  ;;  %v1100_v36 = vadd.f32 %v1036_v29, %v842_v48  ;;  %v1672_v44 = vadd.f32 -0.0001984127, %v1608_v4  ;;  %v10255_v1 = vmul.f32 %v10244_v18, %v10244_v18  ;;  %15168 = vst [vmem:[#allocation185_spill] sm:$0xff] %v10257_v7 }
 0x195   : > { %15165 = vst [vmem:[#allocation182_spill] sm:$0xff] %v10241_v37  ;;  %3754 = vmatmul.f32.gmra.mxu1 %v10241_v37  ;;  %v3477_v30 = vsub.f32 %v3074_v40, %v10241_v37  ;;  %v2052_v11 = vadd.f32 1.0, %v1988_v6  ;;  %v1926_v26 = vadd.f32 -0.16666667, %v1862_v38  ;;  %v3251_v40 = vld [vmem:[%s14259_s2 + $0xb8] sm:$0xff] }
 0x196   : > { %15166 = vst [vmem:[#allocation183_spill] sm:$0xff] %v10251_v41  ;;  %v1164_v13 = vadd.f32 0.5, %v1100_v36  ;;  %v1736_v4 = vmul.f32 %v1672_v44, %v10204_v34  ;;  %v10265_v48 = vand.u32 4294901760, %v3251_v40  ;;  %v1482_v51 = vmul.f32 -2.5052108e-08, %v10255_v1 }
 0x197   : > { %3951 = vmatmul.f32.gmra.mxu2 %v3477_v30  ;;  %v3478_v39 = vand.u32 4294901760, %v3477_v30  ;;  %15167 = vst [vmem:[#allocation184_spill] sm:$0xff] %v10255_v1  ;;  %v10267_v29 = vpop.f32.mrf.mxu1 }
 0x198   : > { %v1228_v21 = vfloor.f32 %v1164_v13  ;;  %15169 = vst [vmem:[#allocation186_spill] sm:$0xff] %v10262_v5  ;;  %v10270_v13 = vpop.f32.mrf.mxu3  ;;  %4611 = vmatpush.msrb.mxu2 %v10265_v48  ;;  %v10278_v37 = vsub.f32 %v3251_v40, %v10265_v48  ;;  %5334 = vmatpush.msra.mxu1 %v10265_v48  ;;  %v1800_v44 = vadd.f32 0.008333334, %v1736_v4 }
 0x199   : > { %4164 = vmatmul.f32.gmra.mxu3 %v3478_v39  ;;  %v3479_v50 = vsub.f32 %v3477_v30, %v3478_v39  ;;  %15170 = vst [vmem:[#allocation187_spill] sm:$0xff] %v10265_v48  ;;  %v10273_v30 = vmul.f32 %v2052_v11, %v10122_v24  ;;  %v1990_v39 = vmul.f32 %v1926_v26, %v10164_v35 }
 0x19a   : > { %15171 = vst [vmem:[#allocation188_spill] sm:$0xff] %v10267_v29  ;;  %v1292_v6 = vsub.f32 %v1100_v36, %v1228_v21  ;;  %v702_v29 = vpop.permute.xlu1 %701  ;;  %5134 = vmatpush.msra.mxu0 %v10278_v37  ;;  %v1546_v36 = vadd.f32 2.7557319e-06, %v1482_v51  ;;  %v10285_v24 = vand.u32 4294901760, %v10278_v37  ;;  %v586_v26 = vmul.f32 %v9116_v53, %v502_v31 }
 0x19b   : > { %v3480_v38 = vand.u32 4294901760, %v3479_v50  ;;  %15172 = vst [vmem:[#allocation189_spill] sm:$0xff] %v10270_v13  ;;  %v2054_v11 = vadd.f32 1.0, %v1990_v39  ;;  %v960_v50 = vpop.permute.xlu2 %959  ;;  %v2948_v40 = vmul.f32 %v10273_v30, %v10273_v30  ;;  %v587_v35 = vmul.f32 %v9118_v54, %v502_v31  ;;  %v10298_v32 = vpop.f32.mrf.mxu0 }
 0x19c   : > { %15173 = vst [vmem:[#allocation190_spill] sm:$0xff] %v10273_v30  ;;  %v10282_v21 = vmul.f32 -3.1415927, %v1292_v6  ;;  %v4934_v4 = vsub.f32 %v10278_v37, %v10285_v24  ;;  %v780_v51 = vmul.f32 %v9138_v60, %v702_v29  ;;  %v1864_v6 = vmul.f32 %v1800_v44, %v10204_v34  ;;  %v10307_v7 = vpop.f32.mrf.mxu2 }
 0x19d   : > { %15174 = vst [vmem:[#allocation191_spill] sm:$0xff] %v10278_v37  ;;  %3481 = vmatmul.f32.gmra.mxu0 %v3480_v38  ;;  %v1038_v38 = vmul.f32 %v9140_v61, %v960_v50  ;;  %v1039_v13 = vmul.f32 %v9144_v62, %v960_v50  ;;  %v3012_v39 = vadd.f32 %v2948_v40, %v2948_v40 }
 0x19e   : > { %15175 = vst [vmem:[#allocation192_spill] sm:$0xff] %v10285_v24  ;;  %v781_v5 = vmul.f32 %v9127_v57, %v702_v29  ;;  %v1610_v30 = vmul.f32 %v1546_v36, %v10255_v1  ;;  %v10303_v31 = vmul.f32 %v10282_v21, %v10282_v21  ;;  %v10305_v37 = vand.u32 4294901760, %v4934_v4 }
 0x19f   : > { %15176 = vst [vmem:[#allocation193_spill] sm:$0xff] %v10298_v32  ;;  %v844_v17 = vadd.f32 %v780_v51, %v586_v26  ;;  %v3076_v25 = vsub.f32 1.0, %v3012_v39  ;;  %v10309_v12 = vpop.f32.mrf.mxu1  ;;  %v10315_v36 = vmul.f32 %v2054_v11, %v10151_v22  ;;  %v1928_v40 = vadd.f32 -0.16666667, %v1864_v6 }
 0x1a0   : > { %15177 = vst [vmem:[#allocation194_spill] sm:$0xff] %v10303_v31  ;;  %v845_v44 = vadd.f32 %v781_v5, %v587_v35  ;;  %4936 = vmatpush.msrb.mxu3 %v10305_v37  ;;  %v10312_v50 = vpop.f32.mrf.mxu3  ;;  %v1674_v26 = vadd.f32 -0.0001984127, %v1610_v30  ;;  %v1484_v51 = vmul.f32 -2.5052108e-08, %v10303_v31 }
 0x1a1   : > { %15178 = vst [vmem:[#allocation195_spill] sm:$0xff] %v10305_v37  ;;  %v1102_v29 = vadd.f32 %v1038_v38, %v844_v17  ;;  %v10317_v32 = vand.u32 4294901760, %v3076_v25  ;;  %v3250_v17 = vld [vmem:[%s14259_s2 + $0xb0] sm:$0xff]  ;;  %v1992_v22 = vmul.f32 %v1928_v40, %v10204_v34  ;;  %v507_v37 = vpop.permute.xlu0 %506 }
 0x1a2   : > { %15179 = vst [vmem:[#allocation196_spill] sm:$0xff] %v10307_v7  ;;  %v10319_v4 = vadd.f32 %v1039_v13, %v845_v44  ;;  %v2950_v13 = vmul.f32 %v10315_v36, %v10315_v36  ;;  %v706_v38 = vpop.permute.xlu1 %705  ;;  %v1738_v30 = vmul.f32 %v1674_v26, %v10255_v1  ;;  %v1548_v6 = vadd.f32 2.7557319e-06, %v1484_v51 }
 0x1a3   : > { %15180 = vst [vmem:[#allocation197_spill] sm:$0xff] %v10309_v12  ;;  %3758 = vmatmul.f32.gmra.mxu1 %v10317_v32  ;;  %v3485_v35 = vsub.f32 %v3076_v25, %v10317_v32  ;;  %v1166_v5 = vadd.f32 0.5, %v1102_v29  ;;  %v10331_v39 = vand.u32 4294901760, %v3250_v17  ;;  %v782_v40 = vmul.f32 %v9138_v60, %v706_v38  ;;  %v964_v26 = vpop.permute.xlu2 %963 }
 0x1a4   : > { %15181 = vst [vmem:[#allocation198_spill] sm:$0xff] %v10312_v50  ;;  %v3014_v44 = vadd.f32 %v2950_v13, %v2950_v13  ;;  %v2056_v34 = vadd.f32 1.0, %v1992_v22  ;;  %v783_v7 = vmul.f32 %v9127_v57, %v706_v38  ;;  %v1612_v13 = vmul.f32 %v1548_v6, %v10303_v31 }
 0x1a5   : > { %15182 = vst [vmem:[#allocation199_spill] sm:$0xff] %v10315_v36  ;;  %3956 = vmatmul.f32.gmra.mxu2 %v3485_v35  ;;  %v3486_v11 = vand.u32 4294901760, %v3485_v35  ;;  %v1230_v12 = vfloor.f32 %v1166_v5  ;;  %5336 = vmatpush.msra.mxu1 %v10331_v39  ;;  %v10338_v36 = vpop.f32.mrf.mxu2  ;;  %v588_v5 = vmul.f32 %v9116_v53, %v507_v37 }
 0x1a6   : > { %15183 = vst [vmem:[#allocation200_spill] sm:$0xff] %v10317_v32  ;;  %v10333_v32 = vpop.f32.mrf.mxu0  ;;  %4613 = vmatpush.msrb.mxu2 %v10331_v39  ;;  %v3078_v50 = vsub.f32 1.0, %v3014_v44  ;;  %v10352_v38 = vmul.f32 %v2056_v34, %v10190_v19 }
 0x1a7   : > { %15184 = vst [vmem:[#allocation201_spill] sm:$0xff] %v10319_v4  ;;  %4170 = vmatmul.f32.gmra.mxu3 %v3486_v11  ;;  %v3487_v25 = vsub.f32 %v3485_v35, %v3486_v11  ;;  %v10341_v35 = vpop.f32.mrf.mxu1  ;;  %v1802_v11 = vadd.f32 0.008333334, %v1738_v30  ;;  %v1294_v22 = vsub.f32 %v1102_v29, %v1230_v12  ;;  %v846_v44 = vadd.f32 %v782_v40, %v588_v5 }
 0x1a8   : > { %15185 = vst [vmem:[#allocation202_spill] sm:$0xff] %v10331_v39  ;;  %v10347_v4 = vand.u32 4294901760, %v3078_v50  ;;  %v1041_v30 = vmul.f32 %v9144_v62, %v964_v26  ;;  %v2952_v34 = vmul.f32 %v10352_v38, %v10352_v38 }
 0x1a9   : > { %15186 = vst [vmem:[#allocation203_spill] sm:$0xff] %v10333_v32  ;;  %v3488_v51 = vand.u32 4294901760, %v3487_v25  ;;  %v10345_v32 = vpop.f32.mrf.mxu3  ;;  %v1040_v25 = vmul.f32 %v9140_v61, %v964_v26  ;;  %v10360_v40 = vmul.f32 -3.1415927, %v1294_v22  ;;  %v10365_v26 = vsub.f32 %v3250_v17, %v10331_v39 }
 0x1aa   : > { %15187 = vst [vmem:[#allocation204_spill] sm:$0xff] %v10338_v36  ;;  %v589_v36 = vmul.f32 %v9118_v54, %v507_v37  ;;  %v3493_v6 = vsub.f32 %v3078_v50, %v10347_v4  ;;  %v512_v29 = vpop.permute.xlu1 %511 }
 0x1ab   : > { %15188 = vst [vmem:[#allocation205_spill] sm:$0xff] %v10341_v35  ;;  %3489 = vmatmul.f32.gmra.mxu0 %v3488_v51  ;;  %3762 = vmatmul.f32.gmra.mxu1 %v10347_v4  ;;  %v1866_v51 = vmul.f32 %v1802_v11, %v10255_v1  ;;  %v1104_v41 = vadd.f32 %v1040_v25, %v846_v44  ;;  %v10375_v5 = vand.u32 4294901760, %v10365_v26  ;;  %v710_v22 = vpop.permute.xlu2 %709 }
 0x1ac   : > { %15189 = vst [vmem:[#allocation206_spill] sm:$0xff] %v10345_v32  ;;  %v847_v35 = vadd.f32 %v783_v7, %v589_v36  ;;  %v1676_v32 = vadd.f32 -0.0001984127, %v1612_v13  ;;  %v3494_v37 = vand.u32 4294901760, %v3493_v6  ;;  %5137 = vmatpush.msra.mxu0 %v10365_v26  ;;  %v10380_v17 = vmul.f32 %v10360_v40, %v10360_v40 }
 0x1ad   : > { %15190 = vst [vmem:[#allocation207_spill] sm:$0xff] %v10347_v4  ;;  %3961 = vmatmul.f32.gmra.mxu2 %v3493_v6  ;;  %v1168_v19 = vadd.f32 0.5, %v1104_v41  ;;  %v1930_v36 = vadd.f32 -0.16666667, %v1866_v51  ;;  %v3016_v51 = vadd.f32 %v2952_v34, %v2952_v34  ;;  %v784_v4 = vmul.f32 %v9138_v60, %v710_v22 }
 0x1ae   : > { %15191 = vst [vmem:[#allocation208_spill] sm:$0xff] %v10352_v38  ;;  %v10358_v12 = vadd.f32 %v1041_v30, %v847_v35  ;;  %v10367_v7 = vpop.f32.mrf.mxu0  ;;  %v1740_v11 = vmul.f32 %v1676_v32, %v10303_v31  ;;  %v10372_v35 = vpop.f32.mrf.mxu2  ;;  %v3495_v25 = vsub.f32 %v3493_v6, %v3494_v37  ;;  %v4940_v32 = vsub.f32 %v10365_v26, %v10375_v5 }
 0x1af   : > { %4176 = vmatmul.f32.gmra.mxu3 %v3494_v37  ;;  %15193 = vst [vmem:[#allocation210_spill] sm:$0xff] %v10365_v26  ;;  %v10369_v50 = vpop.f32.mrf.mxu1  ;;  %v1232_v13 = vfloor.f32 %v1168_v19  ;;  %v1994_v19 = vmul.f32 %v1930_v36, %v10255_v1  ;;  %v3080_v6 = vsub.f32 1.0, %v3016_v51  ;;  %v1486_v37 = vmul.f32 -2.5052108e-08, %v10380_v17  ;;  %v968_v51 = vpop.permute.xlu0 %967 }
 0x1b0   : > { %15192 = vst [vmem:[#allocation209_spill] sm:$0xff] %v10358_v12  ;;  %v1804_v38 = vadd.f32 0.008333334, %v1740_v11  ;;  %v785_v12 = vmul.f32 %v9127_v57, %v710_v22  ;;  %v591_v11 = vmul.f32 %v9118_v54, %v512_v29  ;;  %v1042_v48 = vmul.f32 %v9140_v61, %v968_v51 }
 0x1b1   : > { %15194 = vst [vmem:[#allocation211_spill] sm:$0xff] %v10367_v7  ;;  %v10382_v44 = vpop.f32.mrf.mxu3  ;;  %v1296_v30 = vsub.f32 %v1104_v41, %v1232_v13  ;;  %v10390_v7 = vand.u32 4294901760, %v4940_v32  ;;  %v590_v41 = vmul.f32 %v9116_v53, %v512_v29  ;;  %v15201_v13 = vld [vmem:[#allocation31_spill] sm:$0xff]  ;;  %v10397_v36 = vand.u32 4294901760, %v3080_v6 }
 0x1b2   : > { %15195 = vst [vmem:[#allocation212_spill] sm:$0xff] %v10369_v50  ;;  %v3496_v50 = vand.u32 4294901760, %v3495_v25  ;;  %v1119_v34 = vadd.f32 0.5, %v15201_v13  ;;  %v517_v25 = vpop.permute.xlu1 %516  ;;  %v2058_v32 = vadd.f32 1.0, %v1994_v19  ;;  %v1868_v1 = vmul.f32 %v1804_v38, %v10303_v31 }
 0x1b3   : > { %15196 = vst [vmem:[#allocation213_spill] sm:$0xff] %v10372_v35  ;;  %v10388_v35 = vmul.f32 -3.1415927, %v1296_v30  ;;  %4942 = vmatpush.msrb.mxu3 %v10390_v7  ;;  %3766 = vmatmul.f32.gmra.mxu1 %v10397_v36  ;;  %v3501_v26 = vsub.f32 %v3080_v6, %v10397_v36  ;;  %v1550_v14 = vadd.f32 2.7557319e-06, %v1486_v37  ;;  %v714_v0 = vpop.permute.xlu2 %713  ;;  %v1043_v6 = vmul.f32 %v9144_v62, %v968_v51 }
 0x1b4   : > { %15197 = vst [vmem:[#allocation214_spill] sm:$0xff] %v10375_v5  ;;  %3497 = vmatmul.f32.gmra.mxu0 %v3496_v50 }
 0x1b5   : > { %15198 = vst [vmem:[#allocation215_spill] sm:$0xff] %v10380_v17  ;;  %v10404_v22 = vmul.f32 %v10388_v35, %v10388_v35  ;;  %3966 = vmatmul.f32.gmra.mxu2 %v3501_v26  ;;  %v3502_v39 = vand.u32 4294901760, %v3501_v26  ;;  %v1614_v37 = vmul.f32 %v1550_v14, %v10380_v17 }
 0x1b6   : > { %15199 = vst [vmem:[#allocation216_spill] sm:$0xff] %v10382_v44  ;;  %v10400_v30 = vpop.f32.mrf.mxu0  ;;  %v10406_v50 = vpop.f32.mrf.mxu2  ;;  %v849_v44 = vadd.f32 %v785_v12, %v591_v11 }
 0x1b7   : > { %15200 = vst [vmem:[#allocation217_spill] sm:$0xff] %v10390_v7  ;;  %v848_v7 = vadd.f32 %v784_v4, %v590_v41  ;;  %v10411_v29 = vpop.f32.mrf.mxu1  ;;  %v1488_v38 = vmul.f32 -2.5052108e-08, %v10404_v22  ;;  %v1932_v4 = vadd.f32 -0.16666667, %v1868_v1  ;;  %4182 = vmatmul.f32.gmra.mxu3 %v3502_v39  ;;  %v3503_v41 = vsub.f32 %v3501_v26, %v3502_v39 }
 0x1b8   : > { %15202 = vst [vmem:[#allocation31_spill] sm:$0xff] %v10397_v36  ;;  %v10423_v11 = vadd.f32 %v1043_v6, %v849_v44  ;;  %v593_v36 = vmul.f32 %v9118_v54, %v517_v25  ;;  %v3249_v44 = vld [vmem:[%s14259_s2 + $0xa8] sm:$0xff] }
 0x1b9   : > { %15203 = vst [vmem:[#allocation218_spill] sm:$0xff] %v10400_v30  ;;  %v1183_v30 = vfloor.f32 %v1119_v34  ;;  %v10413_v19 = vpop.f32.mrf.mxu3  ;;  %v1106_v12 = vadd.f32 %v1042_v48, %v848_v7  ;;  %v787_v34 = vmul.f32 %v9127_v57, %v714_v0  ;;  %v1552_v51 = vadd.f32 2.7557319e-06, %v1488_v38 }
 0x1ba   : > { %15204 = vst [vmem:[#allocation219_spill] sm:$0xff] %v10404_v22  ;;  %v1996_v48 = vmul.f32 %v1932_v4, %v10303_v31  ;;  %v972_v14 = vpop.permute.xlu1 %971  ;;  %v1678_v7 = vadd.f32 -0.0001984127, %v1614_v37 }
 0x1bb   : > { %15205 = vst [vmem:[#allocation220_spill] sm:$0xff] %v10406_v50  ;;  %v10417_v50 = vmul.f32 %v2058_v32, %v10244_v18  ;;  %v1170_v18 = vadd.f32 0.5, %v1106_v12  ;;  %v3504_v32 = vand.u32 4294901760, %v3503_v41  ;;  %v851_v1 = vadd.f32 %v787_v34, %v593_v36 }
 0x1bc   : > { %15206 = vst [vmem:[#allocation221_spill] sm:$0xff] %v10411_v29  ;;  %v1247_v29 = vsub.f32 %v15201_v13, %v1183_v30  ;;  %v592_v13 = vmul.f32 %v9116_v53, %v517_v25  ;;  %v10440_v36 = vand.u32 4294901760, %v3249_v44  ;;  %v1616_v4 = vmul.f32 %v1552_v51, %v10404_v22 }
 0x1bd   : > { %15207 = vst [vmem:[#allocation222_spill] sm:$0xff] %v10413_v19  ;;  %v2954_v19 = vmul.f32 %v10417_v50, %v10417_v50  ;;  %v1234_v39 = vfloor.f32 %v1170_v18  ;;  %3505 = vmatmul.f32.gmra.mxu0 %v3504_v32  ;;  %v786_v41 = vmul.f32 %v9138_v60, %v714_v0  ;;  %v1044_v37 = vmul.f32 %v9140_v61, %v972_v14 }
 0x1be   : > { %15208 = vst [vmem:[#allocation223_spill] sm:$0xff] %v10417_v50  ;;  %v10430_v26 = vpop.f32.mrf.mxu0  ;;  %v10436_v30 = vmul.f32 -3.1415927, %v1247_v29  ;;  %v10438_v6 = vpop.f32.mrf.mxu2  ;;  %v2060_v50 = vadd.f32 1.0, %v1996_v48  ;;  %4615 = vmatpush.msrb.mxu2 %v10440_v36  ;;  %v10453_v29 = vsub.f32 %v3249_v44, %v10440_v36  ;;  %5338 = vmatpush.msra.mxu1 %v10440_v36  ;;  %v1045_v51 = vmul.f32 %v9144_v62, %v972_v14 }
 0x1bf   : > { %15209 = vst [vmem:[#allocation224_spill] sm:$0xff] %v10423_v11  ;;  %v1298_v38 = vsub.f32 %v1106_v12, %v1234_v39  ;;  %v3018_v34 = vadd.f32 %v2954_v19, %v2954_v19  ;;  %v10445_v18 = vpop.f32.mrf.mxu1  ;;  %v1742_v12 = vmul.f32 %v1678_v7, %v10380_v17  ;;  %v850_v0 = vadd.f32 %v786_v41, %v592_v13 }
 0x1c0   : > { %15210 = vst [vmem:[#allocation225_spill] sm:$0xff] %v10430_v26  ;;  %v10460_v39 = vmul.f32 %v10436_v30, %v10436_v30  ;;  %5140 = vmatpush.msra.mxu0 %v10453_v29  ;;  %v1680_v44 = vadd.f32 -0.0001984127, %v1616_v4  ;;  %v10472_v13 = vadd.f32 %v1045_v51, %v851_v1  ;;  %v10475_v14 = vmul.f32 %v2060_v50, %v10282_v21  ;;  %v15222_v4 = vld [vmem:[#allocation38_spill] sm:$0xff] }
 0x1c1   : > { %15211 = vst [vmem:[#allocation226_spill] sm:$0xff] %v10438_v6  ;;  %v10447_v32 = vpop.f32.mrf.mxu3  ;;  %v10449_v25 = vmul.f32 -3.1415927, %v1298_v38  ;;  %v3082_v19 = vsub.f32 1.0, %v3018_v34  ;;  %v10467_v38 = vand.u32 4294901760, %v10453_v29  ;;  %v1108_v7 = vadd.f32 %v1044_v37, %v850_v0 }
 0x1c2   : > { %15212 = vst [vmem:[#allocation227_spill] sm:$0xff] %v10440_v36  ;;  %v1121_v26 = vadd.f32 0.5, %v15222_v4  ;;  %v1439_v1 = vmul.f32 -2.5052108e-08, %v10460_v39  ;;  %v1744_v50 = vmul.f32 %v1680_v44, %v10404_v22  ;;  %v718_v44 = vpop.permute.xlu0 %717 }
 0x1c3   : > { %15213 = vst [vmem:[#allocation228_spill] sm:$0xff] %v10445_v18  ;;  %v10464_v48 = vmul.f32 %v10449_v25, %v10449_v25  ;;  %v10470_v31 = vand.u32 4294901760, %v3082_v19  ;;  %v4946_v34 = vsub.f32 %v10453_v29, %v10467_v38  ;;  %v1806_v18 = vadd.f32 0.008333334, %v1742_v12 }
 0x1c4   : > { %15214 = vst [vmem:[#allocation229_spill] sm:$0xff] %v10447_v32  ;;  %v1172_v6 = vadd.f32 0.5, %v1108_v7  ;;  %v2956_v12 = vmul.f32 %v10475_v14, %v10475_v14  ;;  %v1808_v20 = vadd.f32 0.008333334, %v1744_v50 }
 0x1c5   : > { %15215 = vst [vmem:[#allocation230_spill] sm:$0xff] %v10453_v29  ;;  %v1490_v41 = vmul.f32 -2.5052108e-08, %v10464_v48  ;;  %3770 = vmatmul.f32.gmra.mxu1 %v10470_v31  ;;  %v3509_v32 = vsub.f32 %v3082_v19, %v10470_v31  ;;  %v10483_v37 = vand.u32 4294901760, %v4946_v34 }
 0x1c6   : > { %15216 = vst [vmem:[#allocation231_spill] sm:$0xff] %v10460_v39  ;;  %v10486_v21 = vpop.f32.mrf.mxu0  ;;  %v1236_v51 = vfloor.f32 %v1172_v6  ;;  %v10491_v29 = vpop.f32.mrf.mxu2 }
 0x1c7   : > { %15217 = vst [vmem:[#allocation232_spill] sm:$0xff] %v10464_v48  ;;  %v1554_v11 = vadd.f32 2.7557319e-06, %v1490_v41  ;;  %3971 = vmatmul.f32.gmra.mxu2 %v3509_v32  ;;  %v3510_v0 = vand.u32 4294901760, %v3509_v32  ;;  %v10493_v19 = vpop.f32.mrf.mxu1  ;;  %4948 = vmatpush.msrb.mxu3 %v10483_v37  ;;  %v1870_v41 = vmul.f32 %v1806_v18, %v10380_v17  ;;  %v788_v18 = vmul.f32 %v9138_v60, %v718_v44 }
 0x1c8   : > { %15218 = vst [vmem:[#allocation233_spill] sm:$0xff] %v10467_v38  ;;  %v3020_v38 = vadd.f32 %v2956_v12, %v2956_v12  ;;  %v15229_v12 = vld [vmem:[#allocation41_spill] sm:$0xff] }
 0x1c9   : > { %15219 = vst [vmem:[#allocation234_spill] sm:$0xff] %v10470_v31  ;;  %v1618_v34 = vmul.f32 %v1554_v11, %v10464_v48  ;;  %v522_v31 = vpop.permute.xlu2 %521  ;;  %4188 = vmatmul.f32.gmra.mxu3 %v3510_v0  ;;  %v10498_v36 = vpop.f32.mrf.mxu3  ;;  %v789_v11 = vmul.f32 %v9127_v57, %v718_v44  ;;  %v1934_v2 = vadd.f32 -0.16666667, %v1870_v41  ;;  %v1123_v44 = vadd.f32 0.5, %v15229_v12 }
 0x1ca   : > { %15220 = vst [vmem:[#allocation235_spill] sm:$0xff] %v10472_v13  ;;  %v1185_v13 = vfloor.f32 %v1121_v26  ;;  %v595_v6 = vmul.f32 %v9118_v54, %v522_v31 }
 0x1cb   : > { %15221 = vst [vmem:[#allocation236_spill] sm:$0xff] %v10475_v14  ;;  %v1503_v14 = vadd.f32 2.7557319e-06, %v1439_v1  ;;  %v3248_v1 = vld [vmem:[%s14259_s2 + $0xa0] sm:$0xff] }
 0x1cc   : > { %15223 = vst [vmem:[#allocation38_spill] sm:$0xff] %v10483_v37  ;;  %v594_v37 = vmul.f32 %v9116_v53, %v522_v31  ;;  %v3084_v31 = vsub.f32 1.0, %v3020_v38  ;;  %v853_v50 = vadd.f32 %v789_v11, %v595_v6  ;;  %v10524_v24 = vand.u32 4294901760, %v3248_v1 }
 0x1cd   : > { %15224 = vst [vmem:[#allocation237_spill] sm:$0xff] %v10486_v21  ;;  %v1300_v21 = vsub.f32 %v1108_v7, %v1236_v51  ;;  %v1682_v7 = vadd.f32 -0.0001984127, %v1618_v34  ;;  %v1872_v34 = vmul.f32 %v1808_v20, %v10404_v22 }
 0x1ce   : > { %15225 = vst [vmem:[#allocation238_spill] sm:$0xff] %v10491_v29  ;;  %v10516_v41 = vpop.f32.mrf.mxu0  ;;  %v10522_v5 = vand.u32 4294901760, %v3084_v31  ;;  %v852_v58 = vadd.f32 %v788_v18, %v594_v37  ;;  %4617 = vmatpush.msrb.mxu2 %v10524_v24  ;;  %v10536_v37 = vsub.f32 %v3248_v1, %v10524_v24  ;;  %5340 = vmatpush.msra.mxu1 %v10524_v24 }
 0x1cf   : > { %15226 = vst [vmem:[#allocation239_spill] sm:$0xff] %v10493_v19  ;;  %v10501_v29 = vmul.f32 -3.1415927, %v1300_v21  ;;  %v3511_v19 = vsub.f32 %v3509_v32, %v3510_v0  ;;  %v976_v21 = vpop.permute.xlu1 %975  ;;  %v1249_v32 = vsub.f32 %v15222_v4, %v1185_v13  ;;  %v1567_v0 = vmul.f32 %v1503_v14, %v10460_v39 }
 0x1d0   : > { %15227 = vst [vmem:[#allocation240_spill] sm:$0xff] %v10498_v36  ;;  %v1046_v38 = vmul.f32 %v9140_v61, %v976_v21  ;;  %v1998_v13 = vmul.f32 %v1934_v2, %v10380_v17  ;;  %v1746_v14 = vmul.f32 %v1682_v7, %v10464_v48  ;;  %v1047_v6 = vmul.f32 %v9144_v62, %v976_v21  ;;  %v10540_v2 = vpop.f32.mrf.mxu1 }
 0x1d1   : > { %v10508_v26 = vmul.f32 %v10501_v29, %v10501_v29  ;;  %v3512_v51 = vand.u32 4294901760, %v3511_v19  ;;  %15230 = vst [vmem:[#allocation41_spill] sm:$0xff] %v10516_v41  ;;  %v10520_v19 = vpop.f32.mrf.mxu2  ;;  %v10530_v20 = vpop.f32.mrf.mxu3  ;;  %3774 = vmatmul.f32.gmra.mxu1 %v10522_v5  ;;  %v3517_v11 = vsub.f32 %v3084_v31, %v10522_v5  ;;  %v10546_v31 = vand.u32 4294901760, %v10536_v37  ;;  %5143 = vmatpush.msra.mxu0 %v10536_v37 }
 0x1d2   : > { %15231 = vst [vmem:[#allocation242_spill] sm:$0xff] %v10520_v19  ;;  %v1110_v18 = vadd.f32 %v1046_v38, %v852_v58  ;;  %v10542_v7 = vadd.f32 %v1047_v6, %v853_v50  ;;  %v527_v21 = vpop.permute.xlu2 %526  ;;  %v1631_v1 = vadd.f32 -0.0001984127, %v1567_v0  ;;  %v1187_v58 = vfloor.f32 %v1123_v44 }
 0x1d3   : > { %15228 = vst [vmem:[#allocation241_spill] sm:$0xff] %v10508_v26  ;;  %v1492_v36 = vmul.f32 -2.5052108e-08, %v10508_v26  ;;  %3513 = vmatmul.f32.gmra.mxu0 %v3512_v51  ;;  %v10538_v51 = vmul.f32 -3.1415927, %v1249_v32  ;;  %3976 = vmatmul.f32.gmra.mxu2 %v3517_v11  ;;  %v3518_v17 = vand.u32 4294901760, %v3517_v11  ;;  %v4952_v50 = vsub.f32 %v10536_v37, %v10546_v31 }
 0x1d4   : > { %15232 = vst [vmem:[#allocation243_spill] sm:$0xff] %v10522_v5  ;;  %v2062_v38 = vadd.f32 1.0, %v1998_v13  ;;  %v1695_v44 = vmul.f32 %v1631_v1, %v10460_v39  ;;  %v1251_v13 = vsub.f32 %v15229_v12, %v1187_v58 }
 0x1d5   : > { %15233 = vst [vmem:[#allocation244_spill] sm:$0xff] %v10524_v24  ;;  %v1556_v4 = vadd.f32 2.7557319e-06, %v1492_v36  ;;  %v1936_v36 = vadd.f32 -0.16666667, %v1872_v34  ;;  %4194 = vmatmul.f32.gmra.mxu3 %v3518_v17  ;;  %v10554_v6 = vmul.f32 %v10538_v51, %v10538_v51  ;;  %v10557_v19 = vand.u32 4294901760, %v4952_v50 }
 0x1d6   : > { %15234 = vst [vmem:[#allocation245_spill] sm:$0xff] %v10530_v20  ;;  %v1174_v20 = vadd.f32 0.5, %v1110_v18  ;;  %v3519_v0 = vsub.f32 %v3517_v11, %v3518_v17 }
 0x1d7   : > { %15235 = vst [vmem:[#allocation246_spill] sm:$0xff] %v10536_v37  ;;  %v1620_v32 = vmul.f32 %v1556_v4, %v10508_v26  ;;  %v2000_v5 = vmul.f32 %v1936_v36, %v10404_v22  ;;  %v10564_v37 = vmul.f32 %v2062_v38, %v10360_v40  ;;  %4954 = vmatpush.msrb.mxu3 %v10557_v19  ;;  %v1441_v11 = vmul.f32 -2.5052108e-08, %v10554_v6  ;;  %v722_v58 = vpop.permute.xlu1 %721 }
 0x1d8   : > { %15236 = vst [vmem:[#allocation247_spill] sm:$0xff] %v10540_v2  ;;  %v1810_v2 = vadd.f32 0.008333334, %v1746_v14  ;;  %v1238_v34 = vfloor.f32 %v1174_v20  ;;  %v10561_v14 = vpop.f32.mrf.mxu0  ;;  %v10572_v17 = vpop.f32.mrf.mxu1  ;;  %v596_v38 = vmul.f32 %v9116_v53, %v527_v21 }
 0x1d9   : > { %15237 = vst [vmem:[#allocation248_spill] sm:$0xff] %v10542_v7  ;;  %v1684_v4 = vadd.f32 -0.0001984127, %v1620_v32  ;;  %v10566_v20 = vpop.f32.mrf.mxu2  ;;  %v2064_v12 = vadd.f32 1.0, %v2000_v5  ;;  %v10575_v1 = vpop.f32.mrf.mxu3  ;;  %v1759_v32 = vadd.f32 0.008333334, %v1695_v44  ;;  %v2958_v22 = vmul.f32 %v10564_v37, %v10564_v37 }
 0x1da   : > { %15238 = vst [vmem:[#allocation249_spill] sm:$0xff] %v10546_v31  ;;  %v1302_v41 = vsub.f32 %v1110_v18, %v1238_v34  ;;  %v1874_v7 = vmul.f32 %v1810_v2, %v10464_v48  ;;  %v3520_v18 = vand.u32 4294901760, %v3519_v0  ;;  %v10581_v2 = vmul.f32 -3.1415927, %v1251_v13  ;;  %v980_v0 = vpop.permute.xlu2 %979 }
 0x1db   : > { %15239 = vst [vmem:[#allocation250_spill] sm:$0xff] %v10554_v6  ;;  %v597_v34 = vmul.f32 %v9118_v54, %v527_v21  ;;  %v790_v44 = vmul.f32 %v9138_v60, %v722_v58  ;;  %v791_v13 = vmul.f32 %v9127_v57, %v722_v58  ;;  %v1823_v21 = vmul.f32 %v1759_v32, %v10460_v39  ;;  %v15252_v32 = vld [vmem:[#allocation49_spill] sm:$0xff] }
 0x1dc   : > { %15240 = vst [vmem:[#allocation251_spill] sm:$0xff] %v10557_v19  ;;  %v10570_v36 = vmul.f32 -3.1415927, %v1302_v41  ;;  %3521 = vmatmul.f32.gmra.mxu0 %v3520_v18  ;;  %v1748_v41 = vmul.f32 %v1684_v4, %v10508_v26  ;;  %v1938_v50 = vadd.f32 -0.16666667, %v1874_v7  ;;  %v1048_v19 = vmul.f32 %v9140_v61, %v980_v0 }
 0x1dd   : > { %15241 = vst [vmem:[#allocation252_spill] sm:$0xff] %v10561_v14  ;;  %v1049_v18 = vmul.f32 %v9144_v62, %v980_v0  ;;  %v10594_v4 = vmul.f32 %v2064_v12, %v10388_v35  ;;  %v854_v14 = vadd.f32 %v790_v44, %v596_v38  ;;  %v1505_v24 = vadd.f32 2.7557319e-06, %v1441_v11 }
 0x1de   : > { %15242 = vst [vmem:[#allocation253_spill] sm:$0xff] %v10564_v37  ;;  %v10579_v40 = vmul.f32 %v10570_v36, %v10570_v36  ;;  %v855_v37 = vadd.f32 %v791_v13, %v597_v34  ;;  %v10604_v58 = vmul.f32 %v10581_v2, %v10581_v2  ;;  %v2002_v35 = vmul.f32 %v1938_v50, %v10464_v48 }
 0x1df   : > { %15243 = vst [vmem:[#allocation254_spill] sm:$0xff] %v10566_v20  ;;  %v1812_v20 = vadd.f32 0.008333334, %v1748_v41  ;;  %v2960_v34 = vmul.f32 %v10594_v4, %v10594_v4  ;;  %v1569_v50 = vmul.f32 %v1505_v24, %v10554_v6 }
 0x1e0   : > { %15244 = vst [vmem:[#allocation255_spill] sm:$0xff] %v10572_v17  ;;  %v1494_v5 = vmul.f32 -2.5052108e-08, %v10579_v40  ;;  %v3022_v17 = vadd.f32 %v2958_v22, %v2958_v22  ;;  %v1112_v22 = vadd.f32 %v1048_v19, %v854_v14  ;;  %v10607_v12 = vadd.f32 %v1049_v18, %v855_v37  ;;  %v10616_v44 = vpop.f32.mrf.mxu1 }
 0x1e1   : > { %15245 = vst [vmem:[#allocation256_spill] sm:$0xff] %v10575_v1  ;;  %v10597_v1 = vpop.f32.mrf.mxu0  ;;  %v10599_v31 = vpop.f32.mrf.mxu2  ;;  %v1876_v13 = vmul.f32 %v1812_v20, %v10508_v26  ;;  %v1443_v18 = vmul.f32 -2.5052108e-08, %v10604_v58 }
 0x1e2   : > { %15246 = vst [vmem:[#allocation257_spill] sm:$0xff] %v10579_v40  ;;  %v1558_v7 = vadd.f32 2.7557319e-06, %v1494_v5  ;;  %v3086_v47 = vsub.f32 1.0, %v3022_v17  ;;  %v1125_v5 = vadd.f32 0.5, %v15252_v32  ;;  %v10610_v41 = vpop.f32.mrf.mxu3  ;;  %v1176_v14 = vadd.f32 0.5, %v1112_v22 }
 0x1e3   : > { %15247 = vst [vmem:[#allocation258_spill] sm:$0xff] %v10594_v4  ;;  %v1887_v17 = vadd.f32 -0.16666667, %v1823_v21  ;;  %v3247_v21 = vld [vmem:[%s14259_s2 + $0x98] sm:$0xff] }
 0x1e4   : > { %15248 = vst [vmem:[#allocation259_spill] sm:$0xff] %v10597_v1  ;;  %v1622_v0 = vmul.f32 %v1558_v7, %v10579_v40  ;;  %v10612_v11 = vand.u32 4294901760, %v3086_v47  ;;  %v2066_v7 = vadd.f32 1.0, %v2002_v35  ;;  %v1189_v4 = vfloor.f32 %v1125_v5 }
 0x1e5   : > { %15249 = vst [vmem:[#allocation260_spill] sm:$0xff] %v10599_v31  ;;  %v1240_v20 = vfloor.f32 %v1176_v14  ;;  %v726_v31 = vpop.permute.xlu1 %725  ;;  %v1633_v1 = vadd.f32 -0.0001984127, %v1569_v50 }
 0x1e6   : > { %15250 = vst [vmem:[#allocation261_spill] sm:$0xff] %v10604_v58  ;;  %v1686_v38 = vadd.f32 -0.0001984127, %v1622_v0  ;;  %3778 = vmatmul.f32.gmra.mxu1 %v10612_v11  ;;  %v3525_v37 = vsub.f32 %v3086_v47, %v10612_v11  ;;  %v3024_v0 = vadd.f32 %v2960_v34, %v2960_v34  ;;  %v10630_v47 = vand.u32 4294901760, %v3247_v21 }
 0x1e7   : > { %15251 = vst [vmem:[#allocation262_spill] sm:$0xff] %v10607_v12  ;;  %v1304_v34 = vsub.f32 %v1112_v22, %v1240_v20  ;;  %v1507_v12 = vadd.f32 2.7557319e-06, %v1443_v18  ;;  %v10634_v5 = vmul.f32 %v2066_v7, %v10449_v25  ;;  %v984_v7 = vpop.permute.xlu2 %983  ;;  %v793_v20 = vmul.f32 %v9127_v57, %v726_v31 }
 0x1e8   : > { %15253 = vst [vmem:[#allocation49_spill] sm:$0xff] %v10610_v41  ;;  %v1750_v19 = vmul.f32 %v1686_v38, %v10579_v40  ;;  %3981 = vmatmul.f32.gmra.mxu2 %v3525_v37  ;;  %v3526_v24 = vand.u32 4294901760, %v3525_v37  ;;  %v10628_v38 = vmul.f32 %v1887_v17, %v10460_v39  ;;  %v3088_v41 = vsub.f32 1.0, %v3024_v0  ;;  %5342 = vmatpush.msra.mxu1 %v10630_v47  ;;  %v10669_v57 = vpop.f32.mrf.mxu1 }
 0x1e9   : > { %15254 = vst [vmem:[#allocation263_spill] sm:$0xff] %v10612_v11  ;;  %4619 = vmatpush.msrb.mxu2 %v10630_v47  ;;  %v10642_v17 = vsub.f32 %v3247_v21, %v10630_v47  ;;  %v10646_v22 = vpop.f32.mrf.mxu2  ;;  %v10648_v50 = vmul.f32 -3.1415927, %v1304_v34 }
 0x1ea   : > { %15255 = vst [vmem:[#allocation264_spill] sm:$0xff] %v10616_v44  ;;  %v1814_v48 = vadd.f32 0.008333334, %v1750_v19  ;;  %v1940_v44 = vadd.f32 -0.16666667, %v1876_v13  ;;  %4200 = vmatmul.f32.gmra.mxu3 %v3526_v24  ;;  %v3527_v11 = vsub.f32 %v3525_v37, %v3526_v24  ;;  %v10636_v19 = vpop.f32.mrf.mxu0  ;;  %v10638_v14 = vand.u32 4294901760, %v3088_v41  ;;  %v532_v13 = vpop.permute.xlu0 %531 }
 0x1eb   : > { %15256 = vst [vmem:[#allocation265_spill] sm:$0xff] %v10630_v47  ;;  %v792_v37 = vmul.f32 %v9138_v60, %v726_v31  ;;  %v10654_v21 = vand.u32 4294901760, %v10642_v17  ;;  %5146 = vmatpush.msra.mxu0 %v10642_v17  ;;  %v10663_v60 = vmul.f32 %v10648_v50, %v10648_v50 }
 0x1ec   : > { %v1878_v35 = vmul.f32 %v1814_v48, %v10579_v40  ;;  %15257 = vst [vmem:[#allocation266_spill] sm:$0xff] %v10634_v5  ;;  %v1253_v48 = vsub.f32 %v15252_v32, %v1189_v4  ;;  %v3528_v25 = vand.u32 4294901760, %v3527_v11  ;;  %v2004_v18 = vmul.f32 %v1940_v44, %v10508_v26  ;;  %v10659_v32 = vpop.f32.mrf.mxu3 }
 0x1ed   : > { %15258 = vst [vmem:[#allocation267_spill] sm:$0xff] %v10636_v19  ;;  %v3533_v0 = vsub.f32 %v3088_v41, %v10638_v14  ;;  %v1127_v4 = vadd.f32 0.5, %v9444_v52  ;;  %v598_v41 = vmul.f32 %v9116_v53, %v532_v13  ;;  %v2962_v11 = vmul.f32 %v10634_v5, %v10634_v5 }
 0x1ee   : > { %15259 = vst [vmem:[#allocation268_spill] sm:$0xff] %v10638_v14  ;;  %v1942_v24 = vadd.f32 -0.16666667, %v1878_v35  ;;  %3529 = vmatmul.f32.gmra.mxu0 %v3528_v25  ;;  %3782 = vmatmul.f32.gmra.mxu1 %v10638_v14  ;;  %v4958_v31 = vsub.f32 %v10642_v17, %v10654_v21  ;;  %v599_v35 = vmul.f32 %v9118_v54, %v532_v13  ;;  %v10674_v34 = vmul.f32 -3.1415927, %v1253_v48 }
 0x1ef   : > { %15260 = vst [vmem:[#allocation269_spill] sm:$0xff] %v10642_v17  ;;  %v3534_v44 = vand.u32 4294901760, %v3533_v0  ;;  %v1496_v39 = vmul.f32 -2.5052108e-08, %v10663_v60  ;;  %v1050_v25 = vmul.f32 %v9140_v61, %v984_v7  ;;  %v856_v26 = vadd.f32 %v792_v37, %v598_v41 }
 0x1f0   : > { %15261 = vst [vmem:[#allocation270_spill] sm:$0xff] %v10646_v22  ;;  %3986 = vmatmul.f32.gmra.mxu2 %v3533_v0  ;;  %v2068_v53 = vadd.f32 1.0, %v2004_v18  ;;  %v10679_v5 = vand.u32 4294901760, %v4958_v31  ;;  %v1697_v22 = vmul.f32 %v1633_v1, %v10554_v6  ;;  %v2006_v17 = vmul.f32 %v1942_v24, %v10579_v40 }
 0x1f1   : > { %15262 = vst [vmem:[#allocation271_spill] sm:$0xff] %v10654_v21  ;;  %v1560_v19 = vadd.f32 2.7557319e-06, %v1496_v39  ;;  %v1114_v54 = vadd.f32 %v1050_v25, %v856_v26  ;;  %v1191_v13 = vfloor.f32 %v1127_v4  ;;  %v3535_v61 = vsub.f32 %v3533_v0, %v3534_v44  ;;  %v3246_v0 = vld [vmem:[%s14259_s2 + $0x90] sm:$0xff] }
 0x1f2   : > { %15263 = vst [vmem:[#allocation272_spill] sm:$0xff] %v10659_v32  ;;  %v1051_v32 = vmul.f32 %v9144_v62, %v984_v7  ;;  %4206 = vmatmul.f32.gmra.mxu3 %v3534_v44  ;;  %v3026_v37 = vadd.f32 %v2962_v11, %v2962_v11  ;;  %v1571_v18 = vmul.f32 %v1507_v12, %v10604_v58  ;;  %v1129_v7 = vadd.f32 0.5, %v9518_v33  ;;  %v10696_v26 = vpop.f32.mrf.mxu0 }
 0x1f3   : > { %15264 = vst [vmem:[#allocation273_spill] sm:$0xff] %v10663_v60  ;;  %4960 = vmatpush.msrb.mxu3 %v10679_v5  ;;  %v10689_v62 = vmul.f32 %v10674_v34, %v10674_v34  ;;  %v1624_v1 = vmul.f32 %v1560_v19, %v10663_v60  ;;  %v10694_v39 = vmul.f32 %v2068_v53, %v10501_v29  ;;  %v3536_v4 = vand.u32 4294901760, %v3535_v61 }
 0x1f4   : > { %15265 = vst [vmem:[#allocation274_spill] sm:$0xff] %v10669_v57  ;;  %v857_v57 = vadd.f32 %v793_v20, %v599_v35  ;;  %v1178_v20 = vadd.f32 0.5, %v1114_v54  ;;  %v2070_v12 = vadd.f32 1.0, %v2006_v17  ;;  %v3090_v41 = vsub.f32 1.0, %v3026_v37  ;;  %v10709_v35 = vpop.f32.mrf.mxu3 }
 0x1f5   : > { %15266 = vst [vmem:[#allocation275_spill] sm:$0xff] %v10679_v5  ;;  %v1688_v24 = vadd.f32 -0.0001984127, %v1624_v1  ;;  %v10704_v19 = vadd.f32 1.0, %v10628_v38  ;;  %v1761_v11 = vadd.f32 0.008333334, %v1697_v22  ;;  %v1255_v29 = vsub.f32 %v9444_v52, %v1191_v13 }
 0x1f6   : > { %v10684_v48 = vadd.f32 %v1051_v32, %v857_v57  ;;  %15268 = vst [vmem:[#allocation277_spill] sm:$0xff] %v10689_v62  ;;  %v10701_v32 = vpop.f32.mrf.mxu2  ;;  %v10707_v57 = vpop.f32.mrf.mxu1  ;;  %v1242_v31 = vfloor.f32 %v1178_v20  ;;  %3537 = vmatmul.f32.gmra.mxu0 %v3536_v4  ;;  %v1635_v44 = vadd.f32 -0.0001984127, %v1571_v18  ;;  %v10712_v17 = vand.u32 4294901760, %v3090_v41  ;;  %v15278_v20 = vld [vmem:[#allocation44_spill] sm:$0xff] }
 0x1f7   : > { %15269 = vst [vmem:[#allocation278_spill] sm:$0xff] %v10694_v39  ;;  %v1752_v25 = vmul.f32 %v1688_v24, %v10663_v60  ;;  %v10714_v53 = vand.u32 4294901760, %v3246_v0  ;;  %v1445_v61 = vmul.f32 -2.5052108e-08, %v10689_v62  ;;  %v1193_v38 = vfloor.f32 %v1129_v7 }
 0x1f8   : > { %15267 = vst [vmem:[#allocation276_spill] sm:$0xff] %v10684_v48  ;;  %v2964_v22 = vmul.f32 %v10694_v39, %v10694_v39  ;;  %v1306_v52 = vsub.f32 %v1114_v54, %v1242_v31  ;;  %v10720_v13 = vmul.f32 %v2070_v12, %v10570_v36  ;;  %3786 = vmatmul.f32.gmra.mxu1 %v10712_v17  ;;  %v10731_v24 = vmul.f32 -3.1415927, %v1255_v29 }
 0x1f9   : > { %15270 = vst [vmem:[#allocation279_spill] sm:$0xff] %v10696_v26  ;;  %v1816_v37 = vadd.f32 0.008333334, %v1752_v25  ;;  %v3541_v18 = vsub.f32 %v3090_v41, %v10712_v17  ;;  %4621 = vmatpush.msrb.mxu2 %v10714_v53  ;;  %v10726_v1 = vsub.f32 %v3246_v0, %v10714_v53  ;;  %v2909_v7 = vmul.f32 %v15278_v20, %v15278_v20 }
 0x1fa   : > { %15271 = vst [vmem:[#allocation280_spill] sm:$0xff] %v10701_v32  ;;  %v1825_v4 = vmul.f32 %v1761_v11, %v10554_v6  ;;  %v10733_v54 = vmul.f32 -3.1415927, %v1306_v52  ;;  %5344 = vmatpush.msra.mxu1 %v10714_v53  ;;  %v1699_v36 = vmul.f32 %v1635_v44, %v10604_v58  ;;  %v1509_v31 = vadd.f32 2.7557319e-06, %v1445_v61  ;;  %v10743_v29 = vpop.f32.mrf.mxu0 }
 0x1fb   : > { %15272 = vst [vmem:[#allocation281_spill] sm:$0xff] %v10707_v57  ;;  %v1880_v12 = vmul.f32 %v1816_v37, %v10663_v60  ;;  %3991 = vmatmul.f32.gmra.mxu2 %v3541_v18  ;;  %v3542_v41 = vand.u32 4294901760, %v3541_v18  ;;  %v10739_v0 = vand.u32 4294901760, %v10726_v1  ;;  %5149 = vmatpush.msra.mxu0 %v10726_v1  ;;  %v1257_v11 = vsub.f32 %v9518_v33, %v1193_v38 }
 0x1fc   : > { %15273 = vst [vmem:[#allocation282_spill] sm:$0xff] %v10709_v35  ;;  %v10747_v25 = vmul.f32 %v10733_v54, %v10733_v54  ;;  %v3028_v52 = vadd.f32 %v2964_v22, %v2964_v22  ;;  %v2966_v44 = vmul.f32 %v10720_v13, %v10720_v13  ;;  %v10755_v40 = vadd.f32 -0.16666667, %v1825_v4 }
 0x1fd   : > { %15274 = vst [vmem:[#allocation283_spill] sm:$0xff] %v10712_v17  ;;  %v1944_v37 = vadd.f32 -0.16666667, %v1880_v12  ;;  %4212 = vmatmul.f32.gmra.mxu3 %v3542_v41  ;;  %v3543_v39 = vsub.f32 %v3541_v18, %v3542_v41  ;;  %v4964_v61 = vsub.f32 %v10726_v1, %v10739_v0  ;;  %v10759_v33 = vmul.f32 %v10731_v24, %v10731_v24  ;;  %v3245_v12 = vld [vmem:[%s14259_s2 + $0x88] sm:$0xff]  ;;  %v10767_v18 = vpop.f32.mrf.mxu3 }
 0x1fe   : > { %15275 = vst [vmem:[#allocation284_spill] sm:$0xff] %v10714_v53  ;;  %v10751_v20 = vpop.f32.mrf.mxu2  ;;  %v1131_v38 = vadd.f32 0.5, %v9554_v56  ;;  %v1498_v22 = vmul.f32 -2.5052108e-08, %v10747_v25  ;;  %v3092_v4 = vsub.f32 1.0, %v3028_v52 }
 0x1ff   : > { %15276 = vst [vmem:[#allocation285_spill] sm:$0xff] %v10720_v13  ;;  %v2008_v13 = vmul.f32 %v1944_v37, %v10663_v60  ;;  %v3544_v41 = vand.u32 4294901760, %v3543_v39  ;;  %v1763_v5 = vadd.f32 0.008333334, %v1699_v36  ;;  %v10772_v57 = vmul.f32 -3.1415927, %v1257_v11 }
 0x200   : > { %15277 = vst [vmem:[#allocation286_spill] sm:$0xff] %v10726_v1  ;;  %v10769_v1 = vand.u32 4294901760, %v4964_v61  ;;  %v1562_v35 = vadd.f32 2.7557319e-06, %v1498_v22  ;;  %v10777_v26 = vand.u32 4294901760, %v3092_v4  ;;  %v3030_v37 = vadd.f32 %v2966_v44, %v2966_v44 }
 0x201   : > { %15279 = vst [vmem:[#allocation44_spill] sm:$0xff] %v10739_v0  ;;  %v2072_v32 = vadd.f32 1.0, %v2008_v13  ;;  %3545 = vmatmul.f32.gmra.mxu0 %v3544_v41  ;;  %v10779_v60 = vand.u32 4294901760, %v3245_v12  ;;  %v10781_v39 = vadd.f32 %v2909_v7, %v2909_v7  ;;  %v1447_v36 = vmul.f32 -2.5052108e-08, %v10759_v33 }
 0x202   : > { %15280 = vst [vmem:[#allocation287_spill] sm:$0xff] %v10743_v29  ;;  %v10774_v29 = vpop.f32.mrf.mxu1  ;;  %4966 = vmatpush.msrb.mxu3 %v10769_v1  ;;  %v1195_v52 = vfloor.f32 %v1131_v38  ;;  %3790 = vmatmul.f32.gmra.mxu1 %v10777_v26  ;;  %v3549_v13 = vsub.f32 %v3092_v4, %v10777_v26  ;;  %v3094_v61 = vsub.f32 1.0, %v3030_v37  ;;  %v1827_v7 = vmul.f32 %v1763_v5, %v10604_v58  ;;  %v3244_v5 = vld [vmem:[%s14259_s2 + $0x80] sm:$0xff] }
 0x203   : > { %15281 = vst [vmem:[#allocation288_spill] sm:$0xff] %v10747_v25  ;;  %v10786_v11 = vmul.f32 %v2072_v32, %v10648_v50  ;;  %4623 = vmatpush.msrb.mxu2 %v10779_v60  ;;  %v10792_v44 = vsub.f32 %v3245_v12, %v10779_v60  ;;  %v10797_v38 = vmul.f32 %v10772_v57, %v10772_v57  ;;  %v1133_v37 = vadd.f32 0.5, %v9615_v42 }
 0x204   : > { %15282 = vst [vmem:[#allocation289_spill] sm:$0xff] %v10751_v20  ;;  %v1573_v20 = vmul.f32 %v1509_v31, %v10689_v62  ;;  %v1626_v31 = vmul.f32 %v1562_v35, %v10747_v25  ;;  %5346 = vmatpush.msra.mxu1 %v10779_v60  ;;  %3996 = vmatmul.f32.gmra.mxu2 %v3549_v13  ;;  %v3550_v50 = vand.u32 4294901760, %v3549_v13  ;;  %v10800_v32 = vand.u32 4294901760, %v3094_v61 }
 0x205   : > { %15283 = vst [vmem:[#allocation290_spill] sm:$0xff] %v10759_v33  ;;  %v10803_v41 = vand.u32 4294901760, %v10792_v44  ;;  %v2968_v12 = vmul.f32 %v10786_v11, %v10786_v11  ;;  %5152 = vmatpush.msra.mxu0 %v10792_v44  ;;  %v1259_v4 = vsub.f32 %v9554_v56, %v1195_v52  ;;  %v1449_v56 = vmul.f32 -2.5052108e-08, %v10797_v38 }
 0x206   : > { %15284 = vst [vmem:[#allocation291_spill] sm:$0xff] %v10767_v18  ;;  %v1637_v22 = vadd.f32 -0.0001984127, %v1573_v20  ;;  %v1690_v35 = vadd.f32 -0.0001984127, %v1626_v31  ;;  %4218 = vmatmul.f32.gmra.mxu3 %v3550_v50  ;;  %v3551_v18 = vsub.f32 %v3549_v13, %v3550_v50  ;;  %v10833_v50 = vmul.f32 %v10704_v19, %v10436_v30 }
 0x207   : > { %15285 = vst [vmem:[#allocation292_spill] sm:$0xff] %v10769_v1  ;;  %v1511_v20 = vadd.f32 2.7557319e-06, %v1447_v36  ;;  %v10814_v1 = vpop.f32.mrf.mxu0  ;;  %v3032_v17 = vadd.f32 %v2968_v12, %v2968_v12  ;;  %v1197_v12 = vfloor.f32 %v1133_v37  ;;  %v1953_v19 = vmul.f32 %v10755_v40, %v10554_v6 }
 0x208   : > { %15286 = vst [vmem:[#allocation293_spill] sm:$0xff] %v10774_v29  ;;  %v1754_v31 = vmul.f32 %v1690_v35, %v10747_v25  ;;  %v10816_v29 = vpop.f32.mrf.mxu2  ;;  %v1701_v36 = vmul.f32 %v1637_v22, %v10689_v62  ;;  %v10825_v35 = vand.u32 4294901760, %v3244_v5  ;;  %v1135_v40 = vadd.f32 0.5, %v9645_v55 }
 0x209   : > { %15287 = vst [vmem:[#allocation294_spill] sm:$0xff] %v10777_v26  ;;  %v4970_v26 = vsub.f32 %v10792_v44, %v10803_v41 }
 0x20a   : > { %15288 = vst [vmem:[#allocation295_spill] sm:$0xff] %v10779_v60  ;;  %v1818_v52 = vadd.f32 0.008333334, %v1754_v31  ;;  %v10823_v14 = vpop.f32.mrf.mxu1  ;;  %4625 = vmatpush.msrb.mxu2 %v10825_v35  ;;  %v10838_v31 = vsub.f32 %v3244_v5, %v10825_v35  ;;  %3794 = vmatmul.f32.gmra.mxu1 %v10800_v32 }
 0x20b   : > { %15289 = vst [vmem:[#allocation296_spill] sm:$0xff] %v10786_v11  ;;  %v3557_v11 = vsub.f32 %v3094_v61, %v10800_v32  ;;  %v10829_v48 = vand.u32 4294901760, %v4970_v26  ;;  %v3096_v61 = vsub.f32 1.0, %v3032_v17  ;;  %5348 = vmatpush.msra.mxu1 %v10825_v35 }
 0x20c   : > { %15290 = vst [vmem:[#allocation297_spill] sm:$0xff] %v10792_v44  ;;  %v1882_v22 = vmul.f32 %v1818_v52, %v10747_v25  ;;  %v1575_v44 = vmul.f32 %v1511_v20, %v10759_v33  ;;  %v10851_v5 = vand.u32 4294901760, %v10838_v31  ;;  %5545 = vmatpush.msra.mxu2 %v9749_v27  ;;  %v1891_v20 = vadd.f32 -0.16666667, %v1827_v7  ;;  %5155 = vmatpush.msra.mxu0 %v10838_v31 }
 0x20d   : > { %15291 = vst [vmem:[#allocation298_spill] sm:$0xff] %v10797_v38  ;;  %v3558_v13 = vand.u32 4294901760, %v3557_v11  ;;  %v10844_v17 = vand.u32 4294901760, %v3096_v61  ;;  %4972 = vmatpush.msrb.mxu3 %v10829_v48  ;;  %4001 = vmatmul.f32.gmra.mxu2 %v3557_v11  ;;  %v1261_v52 = vsub.f32 %v9615_v42, %v1197_v12  ;;  %v1199_v27 = vfloor.f32 %v1135_v40 }
 0x20e   : > { %15292 = vst [vmem:[#allocation299_spill] sm:$0xff] %v10803_v41  ;;  %v4976_v6 = vsub.f32 %v10838_v31, %v10851_v5  ;;  %5549 = vmatpush.msra.mxu2 %v9814_v63  ;;  %v1639_v7 = vadd.f32 -0.0001984127, %v1575_v44  ;;  %v1955_v44 = vmul.f32 %v1891_v20, %v10604_v58 }
 0x20f   : > { %15293 = vst [vmem:[#allocation300_spill] sm:$0xff] %v10814_v1  ;;  %v10827_v1 = vpop.f32.mrf.mxu3  ;;  %v3559_v26 = vsub.f32 %v3557_v11, %v3558_v13  ;;  %v3565_v37 = vsub.f32 %v3096_v61, %v10844_v17  ;;  %v10859_v30 = vpop.f32.mrf.mxu0  ;;  %4224 = vmatmul.f32.gmra.mxu3 %v3558_v13  ;;  %v2017_v61 = vadd.f32 1.0, %v1953_v19 }
 0x210   : > { %15294 = vst [vmem:[#allocation301_spill] sm:$0xff] %v10816_v29  ;;  %v3552_v29 = vand.u32 4294901760, %v3551_v18  ;;  %v1946_v18 = vadd.f32 -0.16666667, %v1882_v22  ;;  %5553 = vmatpush.msra.mxu2 %v9883_v23  ;;  %v1703_v20 = vmul.f32 %v1639_v7, %v10759_v33  ;;  %v2019_v7 = vadd.f32 1.0, %v1955_v44 }
 0x211   : > { %15295 = vst [vmem:[#allocation302_spill] sm:$0xff] %v10823_v14  ;;  %v10841_v14 = vmul.f32 -3.1415927, %v1259_v4  ;;  %v1513_v4 = vadd.f32 2.7557319e-06, %v1449_v56  ;;  %v3560_v42 = vand.u32 4294901760, %v3559_v26 }
 0x212   : > { %15296 = vst [vmem:[#allocation303_spill] sm:$0xff] %v10825_v35  ;;  %3553 = vmatmul.f32.gmra.mxu0 %v3552_v29  ;;  %v1765_v29 = vadd.f32 0.008333334, %v1701_v36  ;;  %v2010_v22 = vmul.f32 %v1946_v18, %v10747_v25  ;;  %v10868_v36 = vpop.f32.mrf.mxu2  ;;  %v3566_v56 = vand.u32 4294901760, %v3565_v37  ;;  %v10871_v18 = vand.u32 4294901760, %v4976_v6  ;;  %v10886_v6 = vpop.f32.mrf.mxu1  ;;  %5557 = vmatpush.msra.mxu2 %v9951_v3 }
 0x213   : > { %15297 = vst [vmem:[#allocation304_spill] sm:$0xff] %v10829_v48  ;;  %v10866_v11 = vmul.f32 %v10841_v14, %v10841_v14  ;;  %v2911_v25 = vmul.f32 %v10833_v50, %v10833_v50  ;;  %v10881_v26 = vmul.f32 -3.1415927, %v1261_v52  ;;  %3798 = vmatmul.f32.gmra.mxu1 %v10844_v17  ;;  %v15304_v52 = vsub.f32 1.0, %v10781_v39 }
 0x214   : > { %15298 = vst [vmem:[#allocation305_spill] sm:$0xff] %v10833_v50  ;;  %v2074_v12 = vadd.f32 1.0, %v2010_v22  ;;  %v1829_v13 = vmul.f32 %v1765_v29, %v10689_v62  ;;  %4978 = vmatpush.msrb.mxu3 %v10871_v18  ;;  %v3567_v29 = vsub.f32 %v3565_v37, %v3566_v56  ;;  %5561 = vmatpush.msra.mxu2 %v10006_v9 }
 0x215   : > { %15299 = vst [vmem:[#allocation306_spill] sm:$0xff] %v10838_v31  ;;  %v1577_v31 = vmul.f32 %v1513_v4, %v10797_v38  ;;  %v1451_v4 = vmul.f32 -2.5052108e-08, %v10866_v11  ;;  %v10895_v40 = vand.u32 4294901760, %v15304_v52  ;;  %4006 = vmatmul.f32.gmra.mxu2 %v3565_v37  ;;  %v10905_v58 = vmul.f32 %v10881_v26, %v10881_v26 }
 0x216   : > { %15300 = vst [vmem:[#allocation307_spill] sm:$0xff] %v10851_v5  ;;  %v10884_v19 = vmul.f32 %v2074_v12, %v10733_v54  ;;  %v10898_v54 = vmul.f32 %v2017_v61, %v10538_v51  ;;  %5736 = vmatpush.msra.mxu3 %v9727_v45  ;;  %v2975_v12 = vadd.f32 %v2911_v25, %v2911_v25  ;;  %v1767_v51 = vadd.f32 0.008333334, %v1703_v20 }
 0x217   : > { %15301 = vst [vmem:[#allocation308_spill] sm:$0xff] %v10866_v11  ;;  %v10878_v63 = vpop.f32.mrf.mxu3  ;;  %v1641_v50 = vadd.f32 -0.0001984127, %v1577_v31  ;;  %v1263_v52 = vsub.f32 %v9645_v55, %v1199_v27  ;;  %v1515_v61 = vadd.f32 2.7557319e-06, %v1451_v4  ;;  %4230 = vmatmul.f32.gmra.mxu3 %v3566_v56  ;;  %v3568_v25 = vand.u32 4294901760, %v3567_v29  ;;  %v10913_v37 = vpop.f32.mrf.mxu0  ;;  %5565 = vmatpush.msra.mxu2 %v10075_v46 }
 0x218   : > { %15302 = vst [vmem:[#allocation309_spill] sm:$0xff] %v10871_v18  ;;  %v2970_v22 = vmul.f32 %v10884_v19, %v10884_v19  ;;  %5738 = vmatpush.msra.mxu3 %v9778_v8  ;;  %v2913_v31 = vmul.f32 %v10898_v54, %v10898_v54  ;;  %v15307_v55 = vsub.f32 1.0, %v10781_v39  ;;  %v10923_v20 = vmul.f32 %v2019_v7, %v10581_v2  ;;  %v15542_v8 = vld [vmem:[#allocation248_spill] sm:$0xff] }
 0x219   : > { %15303 = vst [vmem:[#allocation310_spill] sm:$0xff] %v10884_v19  ;;  %v1137_v19 = vadd.f32 0.5, %v9681_v49  ;;  %v1705_v56 = vmul.f32 %v1641_v50, %v10797_v38  ;;  %v1453_v29 = vmul.f32 -2.5052108e-08, %v10905_v58  ;;  %5569 = vmatpush.msra.mxu2 %v10146_v43  ;;  %v1579_v2 = vmul.f32 %v1515_v61, %v10866_v11 }
 0x21a   : > { %3561 = vmatmul.f32.gmra.mxu0 %v3560_v42  ;;  %15305 = vst [vmem:[#allocation311_spill] sm:$0xff] %v10898_v54  ;;  %v1893_v42 = vadd.f32 -0.16666667, %v1829_v13  ;;  %v3034_v3 = vadd.f32 %v2970_v22, %v2970_v22  ;;  %v10918_v27 = vsub.f32 %v15307_v55, %v10895_v40  ;;  %v3039_v13 = vsub.f32 1.0, %v2975_v12  ;;  %5740 = vmatpush.msra.mxu3 %v9859_v16  ;;  %v10926_v4 = vpop.f32.mrf.mxu2 }
 0x21b   : > { %15306 = vst [vmem:[#allocation312_spill] sm:$0xff] %v10905_v58  ;;  %v1831_v12 = vmul.f32 %v1767_v51, %v10759_v33  ;;  %v1201_v7 = vfloor.f32 %v1137_v19  ;;  %v10940_v55 = vadd.f32 %v2913_v31, %v2913_v31  ;;  %v2915_v19 = vmul.f32 %v10923_v20, %v10923_v20  ;;  %5573 = vmatpush.msra.mxu2 %v10209_v15 }
 0x21c   : > { %v3098_v44 = vsub.f32 1.0, %v3034_v3  ;;  %15308 = vst [vmem:[#allocation313_spill] sm:$0xff] %v10923_v20  ;;  %v10929_v3 = vmul.f32 -3.1415927, %v1263_v52  ;;  %5742 = vmatpush.msra.mxu3 %v9936_v28  ;;  %v1957_v39 = vmul.f32 %v1893_v42, %v10689_v62  ;;  %v10942_v52 = vpop.f32.mrf.mxu1  ;;  %v10947_v46 = vand.u32 4294901760, %v3039_v13  ;;  %v15312_v20 = vld [vmem:[#allocation192_spill] sm:$0xff] }
 0x21d   : > { %v1769_v42 = vadd.f32 0.008333334, %v1705_v56  ;;  %v1517_v51 = vadd.f32 2.7557319e-06, %v1453_v29  ;;  %v1895_v62 = vadd.f32 -0.16666667, %v1831_v12  ;;  %v1265_v23 = vsub.f32 %v9681_v49, %v1201_v7  ;;  %5577 = vmatpush.msra.mxu2 %v15312_v20 }
 0x21e   : > { %v10931_v22 = vand.u32 4294901760, %v3098_v44  ;;  %15309 = vst [vmem:[#allocation314_spill] sm:$0xff] %v10947_v46  ;;  %5744 = vmatpush.msra.mxu3 %v9988_v59  ;;  %v10955_v61 = vmul.f32 %v10929_v3, %v10929_v3  ;;  %v2021_v43 = vadd.f32 1.0, %v1957_v39  ;;  %v1643_v9 = vadd.f32 -0.0001984127, %v1579_v2  ;;  %v15315_v39 = vld [vmem:[#allocation161_spill] sm:$0xff] }
 0x21f   : > { %v10938_v50 = vpop.f32.mrf.mxu3  ;;  %v15313_v29 = vand.u32 4294901760, %v10918_v27  ;;  %v10965_v18 = vsub.f32 %v3039_v13, %v10947_v46  ;;  %v3041_v48 = vsub.f32 1.0, %v10940_v55  ;;  %v15316_v12 = vld [vmem:[#allocation214_spill] sm:$0xff]  ;;  %v1581_v49 = vmul.f32 %v1517_v51, %v10905_v58  ;;  %v10973_v7 = vpop.f32.mrf.mxu0  ;;  %v15320_v51 = vld [vmem:[#allocation233_spill] sm:$0xff] }
 0x220   : > { %3802 = vmatmul.f32.gmra.mxu1 %v10931_v22  ;;  %v3573_v54 = vsub.f32 %v3098_v44, %v10931_v22  ;;  %15310 = vst [vmem:[#allocation315_spill] sm:$0xff] %v10955_v61  ;;  %v15311_v44 = vld [vmem:[#allocation149_spill] sm:$0xff]  ;;  %5581 = vmatpush.msra.mxu2 %v15316_v12  ;;  %v1455_v2 = vmul.f32 -2.5052108e-08, %v10955_v61  ;;  %v10978_v13 = vmul.f32 %v2021_v43, %v10674_v34 }
 0x221   : > { %5746 = vmatpush.msra.mxu3 %v15311_v44  ;;  %v4629_v15 = vsub.f32 %v10918_v27, %v15313_v29  ;;  %15314 = vst [vmem:[#allocation316_spill] sm:$0xff] %v10965_v18  ;;  %v1833_v44 = vmul.f32 %v1769_v42, %v10797_v38  ;;  %v10975_v29 = vadd.f32 %v2915_v19, %v2915_v19  ;;  %v10981_v42 = vmul.f32 -3.1415927, %v1265_v23  ;;  %v15319_v12 = vld [vmem:[#allocation169_spill] sm:$0xff]  ;;  %v15322_v19 = vld [vmem:[#allocation79_spill] sm:$0xff] }
 0x222   : > { %3569 = vmatmul.f32.gmra.mxu0 %v3568_v25  ;;  %v1139_v25 = vadd.f32 0.5, %v9716_v10  ;;  %4011 = vmatmul.f32.gmra.mxu2 %v3573_v54  ;;  %v3574_v31 = vand.u32 4294901760, %v3573_v54  ;;  %15317 = vst [vmem:[#allocation317_spill] sm:$0xff] %v10978_v13  ;;  %v1707_v55 = vmul.f32 %v1643_v9, %v10866_v11  ;;  %v10983_v20 = vpop.f32.mrf.mxu2  ;;  %v10992_v34 = vand.u32 4294901760, %v3041_v48  ;;  %v15325_v9 = vld [vmem:[#allocation187_spill] sm:$0xff]  ;;  %v15326_v59 = vld [vmem:[#allocation249_spill] sm:$0xff] }
 0x223   : > { %5748 = vmatpush.msra.mxu3 %v15315_v39  ;;  %15318 = vst [vmem:[#allocation318_spill] sm:$0xff] %v10983_v20  ;;  %5585 = vmatpush.msra.mxu2 %v15320_v51  ;;  %v1645_v51 = vadd.f32 -0.0001984127, %v1581_v49  ;;  %v1519_v28 = vadd.f32 2.7557319e-06, %v1455_v2 }
 0x224   : > { %4236 = vmatmul.f32.gmra.mxu3 %v3574_v31  ;;  %v3575_v56 = vsub.f32 %v3573_v54, %v3574_v31  ;;  %v1203_v54 = vfloor.f32 %v1139_v25  ;;  %v1959_v25 = vmul.f32 %v1895_v62, %v10759_v33  ;;  %v10988_v39 = vpop.f32.mrf.mxu1  ;;  %15323 = vst [vmem:[#allocation79_spill] sm:$0xff] %v10992_v34  ;;  %v1771_v43 = vadd.f32 0.008333334, %v1707_v55  ;;  %v15333_v55 = vld [vmem:[#allocation15_spill] sm:$0xff] }
 0x225   : > { %5750 = vmatpush.msra.mxu3 %v15319_v12  ;;  %15321 = vst [vmem:[#allocation319_spill] sm:$0xff] %v10988_v39  ;;  %5589 = vmatpush.msra.mxu2 %v15326_v59  ;;  %v1897_v12 = vadd.f32 -0.16666667, %v1833_v44  ;;  %v11004_v33 = vmul.f32 %v10981_v42, %v10981_v42  ;;  %v15329_v39 = vld [vmem:[#allocation104_spill] sm:$0xff]  ;;  %v11014_v2 = vsub.f32 %v3041_v48, %v10992_v34  ;;  %v15336_v48 = vld [vmem:[#allocation18_spill] sm:$0xff] }
 0x226   : > { %v3576_v31 = vand.u32 4294901760, %v3575_v56  ;;  %v4630_v56 = vand.u32 4294901760, %v4629_v15  ;;  %v1267_v62 = vsub.f32 %v9716_v10, %v1203_v54  ;;  %v2917_v15 = vmul.f32 %v10978_v13, %v10978_v13 }
 0x227   : > { %v10994_v23 = vpop.f32.mrf.mxu3  ;;  %5752 = vmatpush.msra.mxu3 %v15325_v9  ;;  %v1141_v9 = vadd.f32 0.5, %v15329_v39  ;;  %5593 = vmatpush.msra.mxu2 %v10654_v21  ;;  %v2023_v44 = vadd.f32 1.0, %v1959_v25  ;;  %v15331_v10 = vand.u32 4294901760, %v10965_v18  ;;  %15332 = vst [vmem:[#allocation104_spill] sm:$0xff] %v11014_v2  ;;  %v3043_v54 = vsub.f32 1.0, %v10975_v29 }
 0x228   : > { %4466 = vmatmul.f32.vlgmr.msrb.gmra.mxu1 %v15322_v19  ;;  %15324 = vst [vmem:[#allocation320_spill] sm:$0xff] %v10994_v23  ;;  %v15330_v23 = vld [vmem:[#allocation202_spill] sm:$0xff]  ;;  %v1709_v25 = vmul.f32 %v1645_v51, %v10905_v58  ;;  %v1583_v13 = vmul.f32 %v1519_v28, %v10955_v61  ;;  %v11023_v21 = vmul.f32 -3.1415927, %v1267_v62  ;;  %v11028_v59 = vadd.f32 %v2917_v15, %v2917_v15  ;;  %v15340_v51 = vld [vmem:[#allocation84_spill] sm:$0xff] }
 0x229   : > { %5754 = vmatpush.msra.mxu3 %v15330_v23  ;;  %v4637_v49 = vsub.f32 %v10965_v18, %v15331_v10  ;;  %5597 = vmatpush.msra.mxu2 %v10739_v0  ;;  %v11025_v10 = vpop.f32.mrf.mxu0  ;;  %v1835_v29 = vmul.f32 %v1771_v43, %v10866_v11  ;;  %v11037_v28 = vmul.f32 %v2023_v44, %v10731_v24  ;;  %v11042_v43 = vand.u32 4294901760, %v3043_v54  ;;  %v15345_v44 = vld [vmem:[#allocation2_spill] sm:$0xff]  ;;  %v15346_v23 = vld [vmem:[#allocation108_spill] sm:$0xff] }
 0x22a   : > { %3577 = vmatmul.f32.gmra.mxu0 %v3576_v31  ;;  %4631 = vmatmul.f32.vlgmr.msrb.gmra.mxu2 %v4630_v56  ;;  %v15327_v31 = vld [vmem:[#allocation8_spill] sm:$0xff]  ;;  %v15334_v56 = vld [vmem:[#allocation227_spill] sm:$0xff]  ;;  %15335 = vst [vmem:[#allocation15_spill] sm:$0xff] %v11025_v10  ;;  %v11032_v0 = vpop.f32.mrf.mxu2  ;;  %v11050_v24 = vmul.f32 %v11023_v21, %v11023_v21  ;;  %v15382_v10 = vld [vmem:[#allocation122_spill] sm:$0xff] }
 0x22b   : > { %6287 = vmatpush.msrb.mxu1 %v15327_v31  ;;  %15328 = vst [vmem:[#allocation8_spill] sm:$0xff] %v11004_v33  ;;  %5756 = vmatpush.msra.mxu3 %v15334_v56  ;;  %v1961_v31 = vmul.f32 %v1897_v12, %v10797_v38  ;;  %v1205_v56 = vfloor.f32 %v1141_v9  ;;  %v15338_v12 = vld [vmem:[#allocation244_spill] sm:$0xff]  ;;  %v4638_v62 = vand.u32 4294901760, %v4637_v49  ;;  %v1773_v38 = vadd.f32 0.008333334, %v1709_v25 }
 0x22c   : > { %4980 = vmatmul.f32.vlgmr.msrb.gmra.mxu3 %v10895_v40  ;;  %15337 = vst [vmem:[#allocation18_spill] sm:$0xff] %v11032_v0  ;;  %5601 = vmatpush.msra.mxu2 %v10803_v41  ;;  %v1647_v41 = vadd.f32 -0.0001984127, %v1583_v13  ;;  %v1899_v49 = vadd.f32 -0.16666667, %v1835_v29  ;;  %v15348_v13 = vand.u32 4294901760, %v11014_v2 }
 0x22d   : > { %6293 = vmatpush.msrb.mxu1 %v15333_v55  ;;  %v1457_v55 = vmul.f32 -2.5052108e-08, %v11004_v33  ;;  %5758 = vmatpush.msra.mxu3 %v15338_v12  ;;  %15339 = vst [vmem:[#allocation321_spill] sm:$0xff] %v11037_v28  ;;  %v2025_v9 = vadd.f32 1.0, %v1961_v31  ;;  %v1269_v12 = vsub.f32 %v15329_v39, %v1205_v56  ;;  %v15347_v31 = vld [vmem:[#allocation3_spill] sm:$0xff]  ;;  %v3045_v29 = vsub.f32 1.0, %v11028_v59 }
 0x22e   : > { %15341 = vst [vmem:[#allocation84_spill] sm:$0xff] %v11042_v43  ;;  %5605 = vmatpush.msra.mxu2 %v10851_v5  ;;  %v4645_v25 = vsub.f32 %v11014_v2, %v15348_v13  ;;  %v2919_v39 = vmul.f32 %v11037_v28, %v11037_v28  ;;  %v15350_v56 = vld [vmem:[#allocation5_spill] sm:$0xff]  ;;  %v1837_v5 = vmul.f32 %v1773_v38, %v10905_v58  ;;  %v15354_v59 = vld [vmem:[#allocation20_spill] sm:$0xff] }
 0x22f   : > { %6299 = vmatpush.msrb.mxu1 %v15336_v48  ;;  %v11044_v48 = vpop.f32.mrf.mxu3  ;;  %5760 = vmatpush.msra.mxu3 %v10630_v47  ;;  %15343 = vst [vmem:[#allocation323_spill] sm:$0xff] %v11050_v24  ;;  %v1521_v15 = vadd.f32 2.7557319e-06, %v1457_v55  ;;  %v1143_v47 = vadd.f32 0.5, %v15346_v23  ;;  %v15351_v55 = vld [vmem:[#allocation6_spill] sm:$0xff]  ;;  %v1711_v13 = vmul.f32 %v1647_v41, %v10955_v61  ;;  %v1963_v28 = vmul.f32 %v1899_v49, %v10866_v11 }
 0x230   : > { %4470 = vmatmul.f32.gmra.mxu1 %v15340_v51  ;;  %15342 = vst [vmem:[#allocation322_spill] sm:$0xff] %v11044_v48  ;;  %6509 = vmatpush.msrb.mxu2 %v15347_v31  ;;  %v11073_v31 = vmul.f32 %v2025_v9, %v10772_v57  ;;  %v15355_v57 = vld [vmem:[#allocation10_spill] sm:$0xff]  ;;  %v4646_v9 = vand.u32 4294901760, %v4645_v25  ;;  %v11091_v48 = vand.u32 4294901760, %v3045_v29  ;;  %v11093_v49 = vadd.f32 %v2919_v39, %v2919_v39  ;;  %v15363_v25 = vld [vmem:[#allocation11_spill] sm:$0xff] }
 0x231   : > { %5762 = vmatpush.msra.mxu3 %v10714_v53  ;;  %v15353_v53 = vld [vmem:[#allocation7_spill] sm:$0xff]  ;;  %6305 = vmatpush.msrb.mxu1 %v15354_v59  ;;  %v11086_v38 = vpop.f32.mrf.mxu0  ;;  %v15357_v41 = vld [vmem:[#allocation86_spill] sm:$0xff]  ;;  %v1901_v11 = vadd.f32 -0.16666667, %v1837_v5  ;;  %v2027_v59 = vadd.f32 1.0, %v1963_v28  ;;  %v15366_v5 = vld [vmem:[#allocation17_spill] sm:$0xff] }
 0x232   : > { %4305 = vmatmul.f32.vlgmr.msrb.gmra.mxu0 %v15322_v19  ;;  %v11052_v19 = vpop.f32.mrf.mxu1  ;;  %4639 = vmatmul.f32.gmra.mxu2 %v4638_v62  ;;  %v11064_v62 = vsub.f32 %v3043_v54, %v11042_v43  ;;  %15352 = vst [vmem:[#allocation108_spill] sm:$0xff] %v11073_v31  ;;  %v1459_v54 = vmul.f32 -2.5052108e-08, %v11050_v24  ;;  %v11117_v28 = vsub.f32 %v3045_v29, %v11091_v48  ;;  %v15371_v29 = vld [vmem:[#allocation23_spill] sm:$0xff] }
 0x233   : > { %15344 = vst [vmem:[#allocation324_spill] sm:$0xff] %v11052_v19  ;;  %5994 = vmatpush.msrb.mxu0 %v15345_v44  ;;  %5764 = vmatpush.msra.mxu3 %v10779_v60  ;;  %v1585_v19 = vmul.f32 %v1521_v15, %v11004_v33  ;;  %v11082_v60 = vmul.f32 -3.1415927, %v1269_v12  ;;  %v15359_v12 = vld [vmem:[#allocation116_spill] sm:$0xff] }
 0x234   : > { %4984 = vmatmul.f32.gmra.mxu3 %v10947_v46  ;;  %15349 = vst [vmem:[#allocation2_spill] sm:$0xff] %v11064_v62  ;;  %6512 = vmatpush.msrb.mxu2 %v15351_v55  ;;  %v1207_v55 = vfloor.f32 %v1143_v47  ;;  %v1145_v15 = vadd.f32 0.5, %v15359_v12  ;;  %v11096_v47 = vpop.f32.mrf.mxu2  ;;  %v15402_v46 = vld [vmem:[#allocation39_spill] sm:$0xff] }
 0x235   : > { %5996 = vmatpush.msrb.mxu0 %v15350_v56  ;;  %5766 = vmatpush.msra.mxu3 %v10825_v35  ;;  %15356 = vst [vmem:[#allocation3_spill] sm:$0xff] %v11086_v38  ;;  %v1775_v35 = vadd.f32 0.008333334, %v1711_v13  ;;  %v1649_v2 = vadd.f32 -0.0001984127, %v1585_v19  ;;  %v11105_v39 = vmul.f32 %v11082_v60, %v11082_v60  ;;  %v15367_v13 = vand.u32 4294901760, %v11064_v62 }
 0x236   : > { %6515 = vmatpush.msrb.mxu2 %v15355_v57  ;;  %15358 = vst [vmem:[#allocation5_spill] sm:$0xff] %v11091_v48  ;;  %v15361_v57 = vld [vmem:[#allocation13_spill] sm:$0xff]  ;;  %v3047_v19 = vsub.f32 1.0, %v11093_v49  ;;  %v11131_v49 = vmul.f32 %v2027_v59, %v10841_v14 }
 0x237   : > { %5998 = vmatpush.msrb.mxu0 %v15353_v53  ;;  %15360 = vst [vmem:[#allocation6_spill] sm:$0xff] %v11096_v47  ;;  %6717 = vmatpush.msrb.mxu3 %v15345_v44  ;;  %v1271_v47 = vsub.f32 %v15346_v23, %v1207_v55  ;;  %v11108_v0 = vpop.f32.mrf.mxu3  ;;  %v2921_v23 = vmul.f32 %v11073_v31, %v11073_v31  ;;  %v15369_v55 = vld [vmem:[#allocation14_spill] sm:$0xff] }
 0x238   : > { %4474 = vmatmul.f32.gmra.mxu1 %v15357_v41  ;;  %6518 = vmatpush.msrb.mxu2 %v15361_v57  ;;  %15364 = vst [vmem:[#allocation10_spill] sm:$0xff] %v11105_v39  ;;  %v15370_v57 = vld [vmem:[#allocation22_spill] sm:$0xff]  ;;  %v1713_v31 = vmul.f32 %v1649_v2, %v11004_v33  ;;  %v11144_v59 = vand.u32 4294901760, %v3047_v19 }
 0x239   : > { %6000 = vmatpush.msrb.mxu0 %v15363_v25  ;;  %15365 = vst [vmem:[#allocation86_spill] sm:$0xff] %v11108_v0  ;;  %6719 = vmatpush.msrb.mxu3 %v15350_v56  ;;  %v15372_v0 = vld [vmem:[#allocation21_spill] sm:$0xff]  ;;  %v11146_v2 = vadd.f32 %v2921_v23, %v2921_v23 }
 0x23a   : > { %4309 = vmatmul.f32.gmra.mxu0 %v15340_v51  ;;  %v1523_v51 = vadd.f32 2.7557319e-06, %v1459_v54  ;;  %v11100_v38 = vpop.f32.mrf.mxu1  ;;  %4647 = vmatmul.f32.gmra.mxu2 %v4646_v9  ;;  %v4653_v54 = vsub.f32 %v11064_v62, %v15367_v13  ;;  %15368 = vst [vmem:[#allocation116_spill] sm:$0xff] %v11117_v28  ;;  %v1209_v9 = vfloor.f32 %v1145_v15  ;;  %v1461_v15 = vmul.f32 -2.5052108e-08, %v11105_v39 }
 0x23b   : > { %15362 = vst [vmem:[#allocation20_spill] sm:$0xff] %v11100_v38  ;;  %6521 = vmatpush.msrb.mxu2 %v15366_v5  ;;  %6002 = vmatpush.msrb.mxu0 %v15369_v55  ;;  %v1965_v5 = vmul.f32 %v1901_v11, %v10905_v58  ;;  %v1839_v38 = vmul.f32 %v1775_v35, %v10955_v61  ;;  %v11135_v62 = vmul.f32 -3.1415927, %v1271_v47  ;;  %v15374_v11 = vld [vmem:[#allocation26_spill] sm:$0xff]  ;;  %v11139_v35 = vpop.f32.mrf.mxu0 }
 0x23c   : > { %4988 = vmatmul.f32.gmra.mxu3 %v10992_v34  ;;  %6311 = vmatpush.msrb.mxu1 %v15370_v57  ;;  %v1587_v13 = vmul.f32 %v1523_v51, %v11050_v24  ;;  %15373 = vst [vmem:[#allocation13_spill] sm:$0xff] %v11131_v49  ;;  %v15376_v51 = vld [vmem:[#allocation88_spill] sm:$0xff]  ;;  %v4654_v57 = vand.u32 4294901760, %v4653_v54  ;;  %v1273_v47 = vsub.f32 %v15359_v12, %v1209_v9  ;;  %v15380_v34 = vld [vmem:[#allocation25_spill] sm:$0xff]  ;;  %v1777_v54 = vadd.f32 0.008333334, %v1713_v31 }
 0x23d   : > { %6721 = vmatpush.msrb.mxu3 %v15353_v53  ;;  %6524 = vmatpush.msrb.mxu2 %v15371_v29  ;;  %15375 = vst [vmem:[#allocation17_spill] sm:$0xff] %v11139_v35  ;;  %v11149_v29 = vpop.f32.mrf.mxu2  ;;  %v2029_v58 = vadd.f32 1.0, %v1965_v5  ;;  %v1903_v35 = vadd.f32 -0.16666667, %v1839_v38  ;;  %v1525_v14 = vadd.f32 2.7557319e-06, %v1461_v15  ;;  %v11156_v23 = vmul.f32 %v11135_v62, %v11135_v62 }
 0x23e   : > { %6004 = vmatpush.msrb.mxu0 %v15372_v0  ;;  %6317 = vmatpush.msrb.mxu1 %v15374_v11  ;;  %15377 = vst [vmem:[#allocation22_spill] sm:$0xff] %v11144_v59  ;;  %v15379_v11 = vld [vmem:[#allocation27_spill] sm:$0xff]  ;;  %v1147_v12 = vadd.f32 0.5, %v15382_v10  ;;  %v15386_v38 = vand.u32 4294901760, %v11117_v28  ;;  %v3049_v15 = vsub.f32 1.0, %v11146_v2 }
 0x23f   : > { %6723 = vmatpush.msrb.mxu3 %v15363_v25  ;;  %15378 = vst [vmem:[#allocation23_spill] sm:$0xff] %v11149_v29  ;;  %6527 = vmatpush.msrb.mxu2 %v15379_v11  ;;  %v11159_v9 = vpop.f32.mrf.mxu3  ;;  %v15384_v29 = vld [vmem:[#allocation34_spill] sm:$0xff]  ;;  %v15392_v2 = vld [vmem:[#allocation35_spill] sm:$0xff] }
 0x240   : > { %4478 = vmatmul.f32.gmra.mxu1 %v15376_v51  ;;  %6006 = vmatpush.msrb.mxu0 %v15380_v34  ;;  %15381 = vst [vmem:[#allocation26_spill] sm:$0xff] %v11156_v23  ;;  %v4661_v31 = vsub.f32 %v11117_v28, %v15386_v38  ;;  %v15388_v11 = vld [vmem:[#allocation30_spill] sm:$0xff]  ;;  %v1967_v38 = vmul.f32 %v1903_v35, %v10955_v61  ;;  %v15391_v28 = vld [vmem:[#allocation37_spill] sm:$0xff]  ;;  %v11195_v35 = vand.u32 4294901760, %v3049_v15 }
 0x241   : > { %6725 = vmatpush.msrb.mxu3 %v15369_v55  ;;  %15383 = vst [vmem:[#allocation88_spill] sm:$0xff] %v11159_v9  ;;  %6323 = vmatpush.msrb.mxu1 %v15384_v29  ;;  %v11176_v9 = vmul.f32 -3.1415927, %v1273_v47  ;;  %v15389_v29 = vld [vmem:[#allocation28_spill] sm:$0xff]  ;;  %v1589_v47 = vmul.f32 %v1525_v14, %v11105_v39 }
 0x242   : > { %4313 = vmatmul.f32.gmra.mxu0 %v15357_v41  ;;  %v1651_v41 = vadd.f32 -0.0001984127, %v1587_v13  ;;  %4655 = vmatmul.f32.gmra.mxu2 %v4654_v57  ;;  %v11163_v5 = vpop.f32.mrf.mxu1  ;;  %v11170_v13 = vsub.f32 %v3047_v19, %v11144_v59  ;;  %v2923_v57 = vmul.f32 %v11131_v49, %v11131_v49  ;;  %v1841_v49 = vmul.f32 %v1777_v54, %v11004_v33  ;;  %v15397_v54 = vld [vmem:[#allocation127_spill] sm:$0xff] }
 0x243   : > { %6727 = vmatpush.msrb.mxu3 %v15372_v0  ;;  %15385 = vst [vmem:[#allocation27_spill] sm:$0xff] %v11163_v5  ;;  %6530 = vmatpush.msrb.mxu2 %v15388_v11  ;;  %v11181_v5 = vmul.f32 %v2029_v58, %v10881_v26  ;;  %v1463_v11 = vmul.f32 -2.5052108e-08, %v11156_v23  ;;  %v15394_v58 = vld [vmem:[#allocation89_spill] sm:$0xff]  ;;  %v4662_v26 = vand.u32 4294901760, %v4661_v31  ;;  %v11201_v14 = vmul.f32 %v11176_v9, %v11176_v9  ;;  %v11208_v61 = vpop.f32.mrf.mxu0 }
 0x244   : > { %4992 = vmatmul.f32.gmra.mxu3 %v11042_v43  ;;  %15387 = vst [vmem:[#allocation122_spill] sm:$0xff] %v11170_v13  ;;  %6008 = vmatpush.msrb.mxu0 %v15389_v29  ;;  %v1715_v19 = vmul.f32 %v1651_v41, %v11050_v24  ;;  %v1211_v43 = vfloor.f32 %v1147_v12  ;;  %v11197_v41 = vadd.f32 %v2923_v57, %v2923_v57  ;;  %v1149_v12 = vadd.f32 0.5, %v15397_v54 }
 0x245   : > { %6729 = vmatpush.msrb.mxu3 %v15380_v34  ;;  %15390 = vst [vmem:[#allocation34_spill] sm:$0xff] %v11181_v5  ;;  %6329 = vmatpush.msrb.mxu1 %v15391_v28  ;;  %v15393_v34 = vld [vmem:[#allocation32_spill] sm:$0xff]  ;;  %v2031_v57 = vadd.f32 1.0, %v1967_v38  ;;  %v1527_v0 = vadd.f32 2.7557319e-06, %v1463_v11  ;;  %v11212_v25 = vpop.f32.mrf.mxu2  ;;  %v15407_v11 = vld [vmem:[#allocation53_spill] sm:$0xff] }
 0x246   : > { %6533 = vmatpush.msrb.mxu2 %v15392_v2  ;;  %6010 = vmatpush.msrb.mxu0 %v15393_v34  ;;  %15395 = vst [vmem:[#allocation30_spill] sm:$0xff] %v11195_v35  ;;  %v15398_v2 = vld [vmem:[#allocation47_spill] sm:$0xff]  ;;  %v1779_v31 = vadd.f32 0.008333334, %v1715_v19  ;;  %v15400_v28 = vld [vmem:[#allocation36_spill] sm:$0xff]  ;;  %v1275_v55 = vsub.f32 %v15382_v10, %v1211_v43  ;;  %v15403_v19 = vand.u32 4294901760, %v11170_v13  ;;  %v1213_v43 = vfloor.f32 %v1149_v12 }
 0x247   : > { %6731 = vmatpush.msrb.mxu3 %v15389_v29  ;;  %15396 = vst [vmem:[#allocation37_spill] sm:$0xff] %v11201_v14  ;;  %6335 = vmatpush.msrb.mxu1 %v15398_v2  ;;  %v1653_v29 = vadd.f32 -0.0001984127, %v1589_v47  ;;  %v1905_v2 = vadd.f32 -0.16666667, %v1841_v49  ;;  %v3051_v38 = vsub.f32 1.0, %v11197_v41  ;;  %v11238_v41 = vmul.f32 %v2031_v57, %v10929_v3 }
 0x248   : > { %4482 = vmatmul.f32.gmra.mxu1 %v15394_v58  ;;  %15399 = vst [vmem:[#allocation35_spill] sm:$0xff] %v11208_v61  ;;  %6012 = vmatpush.msrb.mxu0 %v15400_v28  ;;  %v15405_v47 = vld [vmem:[#allocation52_spill] sm:$0xff]  ;;  %v1465_v10 = vmul.f32 -2.5052108e-08, %v11201_v14  ;;  %v15408_v49 = vld [vmem:[#allocation50_spill] sm:$0xff] }
 0x249   : > { %6733 = vmatpush.msrb.mxu3 %v15393_v34  ;;  %15401 = vst [vmem:[#allocation89_spill] sm:$0xff] %v11212_v25  ;;  %6536 = vmatpush.msrb.mxu2 %v15402_v46  ;;  %v11226_v46 = vpop.f32.mrf.mxu3  ;;  %v1717_v12 = vmul.f32 %v1653_v29, %v11105_v39  ;;  %v11250_v57 = vand.u32 4294901760, %v3051_v38  ;;  %v15417_v61 = vld [vmem:[#allocation136_spill] sm:$0xff] }
 0x24a   : > { %4317 = vmatmul.f32.gmra.mxu0 %v15376_v51  ;;  %v2925_v51 = vmul.f32 %v11181_v5, %v11181_v5  ;;  %4663 = vmatmul.f32.gmra.mxu2 %v4662_v26  ;;  %v4669_v26 = vsub.f32 %v11170_v13, %v15403_v19  ;;  %v11221_v5 = vsub.f32 %v3049_v15, %v11195_v35  ;;  %v11233_v13 = vpop.f32.mrf.mxu1  ;;  %v15410_v15 = vld [vmem:[#allocation64_spill] sm:$0xff]  ;;  %v1529_v29 = vadd.f32 2.7557319e-06, %v1465_v10 }
 0x24b   : > { %6735 = vmatpush.msrb.mxu3 %v15400_v28  ;;  %6341 = vmatpush.msrb.mxu1 %v15405_v47  ;;  %15406 = vst [vmem:[#allocation47_spill] sm:$0xff] %v11226_v46  ;;  %v1843_v19 = vmul.f32 %v1779_v31, %v11050_v24  ;;  %v1591_v47 = vmul.f32 %v1527_v0, %v11156_v23  ;;  %v15412_v46 = vld [vmem:[#allocation57_spill] sm:$0xff] }
 0x24c   : > { %4996 = vmatmul.f32.gmra.mxu3 %v11091_v48  ;;  %15404 = vst [vmem:[#allocation127_spill] sm:$0xff] %v11221_v5  ;;  %6539 = vmatpush.msrb.mxu2 %v15407_v11  ;;  %v11230_v25 = vadd.f32 %v2925_v51, %v2925_v51  ;;  %v11242_v11 = vmul.f32 -3.1415927, %v1275_v55  ;;  %v15413_v51 = vld [vmem:[#allocation54_spill] sm:$0xff]  ;;  %v1969_v31 = vmul.f32 %v1905_v2, %v11004_v33  ;;  %v15416_v55 = vld [vmem:[#allocation67_spill] sm:$0xff]  ;;  %v1151_v48 = vadd.f32 0.5, %v15417_v61 }
 0x24d   : > { %6014 = vmatpush.msrb.mxu0 %v15408_v49  ;;  %15409 = vst [vmem:[#allocation39_spill] sm:$0xff] %v11233_v13  ;;  %6737 = vmatpush.msrb.mxu3 %v15408_v49  ;;  %v15414_v13 = vld [vmem:[#allocation94_spill] sm:$0xff]  ;;  %v1277_v0 = vsub.f32 %v15397_v54, %v1213_v43  ;;  %v15418_v2 = vld [vmem:[#allocation56_spill] sm:$0xff]  ;;  %v1655_v3 = vadd.f32 -0.0001984127, %v1591_v47 }
 0x24e   : > { %6347 = vmatpush.msrb.mxu1 %v15410_v15  ;;  %15411 = vst [vmem:[#allocation52_spill] sm:$0xff] %v11238_v41  ;;  %6542 = vmatpush.msrb.mxu2 %v15412_v46  ;;  %v4670_v15 = vand.u32 4294901760, %v4669_v26  ;;  %v1907_v46 = vadd.f32 -0.16666667, %v1843_v19  ;;  %v1781_v26 = vadd.f32 0.008333334, %v1717_v12  ;;  %v11261_v10 = vmul.f32 %v11242_v11, %v11242_v11  ;;  %v11265_v19 = vpop.f32.mrf.mxu0 }
 0x24f   : > { %6016 = vmatpush.msrb.mxu0 %v15413_v51  ;;  %15415 = vst [vmem:[#allocation53_spill] sm:$0xff] %v11250_v57  ;;  %6739 = vmatpush.msrb.mxu3 %v15413_v51  ;;  %v15420_v54 = vld [vmem:[#allocation60_spill] sm:$0xff]  ;;  %v2033_v43 = vadd.f32 1.0, %v1969_v31  ;;  %v11272_v12 = vsub.f32 %v3051_v38, %v11250_v57  ;;  %v3053_v47 = vsub.f32 1.0, %v11230_v25  ;;  %v11277_v33 = vmul.f32 -3.1415927, %v1277_v0  ;;  %v11279_v31 = vpop.f32.mrf.mxu2 }
 0x250   : > { %4486 = vmatmul.f32.gmra.mxu1 %v15414_v13  ;;  %15419 = vst [vmem:[#allocation64_spill] sm:$0xff] %v11261_v10  ;;  %6545 = vmatpush.msrb.mxu2 %v15420_v54  ;;  %v1593_v54 = vmul.f32 %v1529_v29, %v11201_v14  ;;  %v15429_v25 = vld [vmem:[#allocation69_spill] sm:$0xff]  ;;  %v1719_v29 = vmul.f32 %v1655_v3, %v11156_v23  ;;  %v1467_v0 = vmul.f32 -2.5052108e-08, %v11261_v10 }
 0x251   : > { %6353 = vmatpush.msrb.mxu1 %v15416_v55  ;;  %6018 = vmatpush.msrb.mxu0 %v15418_v2  ;;  %15421 = vst [vmem:[#allocation57_spill] sm:$0xff] %v11265_v19  ;;  %v15426_v19 = vld [vmem:[#allocation62_spill] sm:$0xff] }
 0x252   : > { %4321 = vmatmul.f32.gmra.mxu0 %v15394_v58  ;;  %4671 = vmatmul.f32.gmra.mxu2 %v4670_v15  ;;  %v2927_v58 = vmul.f32 %v11238_v41, %v11238_v41  ;;  %v15422_v15 = vand.u32 4294901760, %v11221_v5  ;;  %15423 = vst [vmem:[#allocation94_spill] sm:$0xff] %v11272_v12  ;;  %v15424_v41 = vld [vmem:[#allocation68_spill] sm:$0xff]  ;;  %v1657_v3 = vadd.f32 -0.0001984127, %v1593_v54  ;;  %v15440_v54 = vld [vmem:[#allocation75_spill] sm:$0xff] }
 0x253   : > { %6741 = vmatpush.msrb.mxu3 %v15418_v2  ;;  %6359 = vmatpush.msrb.mxu1 %v15424_v41  ;;  %15425 = vst [vmem:[#allocation67_spill] sm:$0xff] %v11279_v31  ;;  %v1971_v2 = vmul.f32 %v1907_v46, %v11050_v24  ;;  %v1845_v41 = vmul.f32 %v1781_v26, %v11105_v39  ;;  %v15431_v31 = vld [vmem:[#allocation71_spill] sm:$0xff]  ;;  %v15432_v46 = vld [vmem:[#allocation70_spill] sm:$0xff]  ;;  %v11303_v24 = vand.u32 4294901760, %v3053_v47  ;;  %v1531_v51 = vadd.f32 2.7557319e-06, %v1467_v0 }
 0x254   : > { %5000 = vmatmul.f32.gmra.mxu3 %v11144_v59  ;;  %v4677_v55 = vsub.f32 %v11221_v5, %v15422_v15  ;;  %6548 = vmatpush.msrb.mxu2 %v15426_v19  ;;  %v15427_v59 = vld [vmem:[#allocation58_spill] sm:$0xff]  ;;  %v1215_v15 = vfloor.f32 %v1151_v48  ;;  %v11284_v5 = vpop.f32.mrf.mxu1  ;;  %v11288_v38 = vadd.f32 %v2927_v58, %v2927_v58  ;;  %v11293_v19 = vpop.f32.mrf.mxu3  ;;  %v11298_v48 = vmul.f32 %v2033_v43, %v10981_v42 }
 0x255   : > { %6020 = vmatpush.msrb.mxu0 %v15427_v59  ;;  %15428 = vst [vmem:[#allocation136_spill] sm:$0xff] %v11284_v5  ;;  %6743 = vmatpush.msrb.mxu3 %v15427_v59  ;;  %v11307_v5 = vmul.f32 %v11277_v33, %v11277_v33  ;;  %v2035_v42 = vadd.f32 1.0, %v1971_v2  ;;  %v1909_v26 = vadd.f32 -0.16666667, %v1845_v41  ;;  %v1783_v59 = vadd.f32 0.008333334, %v1719_v29 }
 0x256   : > { %6365 = vmatpush.msrb.mxu1 %v15429_v25  ;;  %15430 = vst [vmem:[#allocation60_spill] sm:$0xff] %v11293_v19  ;;  %6551 = vmatpush.msrb.mxu2 %v15431_v31  ;;  %v15434_v25 = vld [vmem:[#allocation95_spill] sm:$0xff]  ;;  %v4678_v58 = vand.u32 4294901760, %v4677_v55  ;;  %v15437_v31 = vld [vmem:[#allocation77_spill] sm:$0xff]  ;;  %v1279_v43 = vsub.f32 %v15417_v61, %v1215_v15  ;;  %v15439_v55 = vld [vmem:[#allocation74_spill] sm:$0xff]  ;;  %v11316_v49 = vpop.f32.mrf.mxu0  ;;  %v15442_v2 = vand.u32 4294901760, %v11272_v12  ;;  %v11323_v15 = vsub.f32 %v3053_v47, %v11303_v24 }
 0x257   : > { %6022 = vmatpush.msrb.mxu0 %v15432_v46  ;;  %15433 = vst [vmem:[#allocation68_spill] sm:$0xff] %v11298_v48  ;;  %6745 = vmatpush.msrb.mxu3 %v15432_v46  ;;  %v2929_v41 = vmul.f32 %v11298_v48, %v11298_v48  ;;  %v15444_v29 = vld [vmem:[#allocation80_spill] sm:$0xff]  ;;  %v1721_v0 = vmul.f32 %v1657_v3, %v11201_v14  ;;  %v15449_v3 = vld [vmem:[#allocation98_spill] sm:$0xff] }
 0x258   : > { %4490 = vmatmul.f32.gmra.mxu1 %v15434_v25  ;;  %15435 = vst [vmem:[#allocation62_spill] sm:$0xff] %v11303_v24  ;;  %6554 = vmatpush.msrb.mxu2 %v15440_v54  ;;  %v4685_v61 = vsub.f32 %v11272_v12, %v15442_v2  ;;  %v11331_v54 = vpop.f32.mrf.mxu2  ;;  %v11336_v2 = vmul.f32 %v2035_v42, %v11023_v21 }
 0x259   : > { %15436 = vst [vmem:[#allocation69_spill] sm:$0xff] %v11307_v5  ;;  %6371 = vmatpush.msrb.mxu1 %v15437_v31  ;;  %6024 = vmatpush.msrb.mxu0 %v15439_v55  ;;  %v1469_v31 = vmul.f32 -2.5052108e-08, %v11307_v5  ;;  %v1973_v47 = vmul.f32 %v1909_v26, %v11105_v39  ;;  %v1595_v48 = vmul.f32 %v1531_v51, %v11261_v10  ;;  %v1785_v42 = vadd.f32 0.008333334, %v1721_v0  ;;  %v15452_v39 = vld [vmem:[#allocation146_spill] sm:$0xff] }
 0x25a   : > { %4325 = vmatmul.f32.gmra.mxu0 %v15414_v13  ;;  %v15438_v13 = vld [vmem:[#allocation142_spill] sm:$0xff]  ;;  %4679 = vmatmul.f32.gmra.mxu2 %v4678_v58  ;;  %15441 = vst [vmem:[#allocation71_spill] sm:$0xff] %v11316_v49  ;;  %v3055_v58 = vsub.f32 1.0, %v11288_v38  ;;  %v11333_v49 = vmul.f32 -3.1415927, %v1279_v43  ;;  %v1847_v38 = vmul.f32 %v1783_v59, %v11156_v23  ;;  %v4686_v43 = vand.u32 4294901760, %v4685_v61 }
 0x25b   : > { %v1153_v19 = vadd.f32 0.5, %v15438_v13  ;;  %6747 = vmatpush.msrb.mxu3 %v15439_v55  ;;  %15443 = vst [vmem:[#allocation95_spill] sm:$0xff] %v11323_v15  ;;  %6377 = vmatpush.msrb.mxu1 %v15444_v29  ;;  %v2993_v21 = vadd.f32 %v2929_v41, %v2929_v41  ;;  %v1533_v26 = vadd.f32 2.7557319e-06, %v1469_v31  ;;  %v1659_v55 = vadd.f32 -0.0001984127, %v1595_v48 }
 0x25c   : > { %5004 = vmatmul.f32.gmra.mxu3 %v11195_v35  ;;  %15445 = vst [vmem:[#allocation77_spill] sm:$0xff] %v11331_v54  ;;  %v11341_v12 = vpop.f32.mrf.mxu3  ;;  %v11343_v29 = vpop.f32.mrf.mxu1  ;;  %v11348_v54 = vand.u32 4294901760, %v3055_v58  ;;  %v11352_v59 = vmul.f32 %v11333_v49, %v11333_v49  ;;  %v2931_v31 = vmul.f32 %v11336_v2, %v11336_v2 }
 0x25d   : > { %v1217_v35 = vfloor.f32 %v1153_v19  ;;  %15446 = vst [vmem:[#allocation142_spill] sm:$0xff] %v11336_v2  ;;  %v14679_v19 = vand.u32 4294901760, %v11323_v15  ;;  %v3057_v0 = vsub.f32 1.0, %v2993_v21  ;;  %v1723_v21 = vmul.f32 %v1659_v55, %v11261_v10 }
 0x25e   : > { %15447 = vst [vmem:[#allocation75_spill] sm:$0xff] %v11341_v12  ;;  %v1911_v12 = vadd.f32 -0.16666667, %v1847_v38  ;;  %v11361_v41 = vsub.f32 %v3055_v58, %v11348_v54 }
 0x25f   : > { %15448 = vst [vmem:[#allocation80_spill] sm:$0xff] %v11343_v29  ;;  %v1281_v51 = vsub.f32 %v15438_v13, %v1217_v35  ;;  %v1155_v29 = vadd.f32 0.5, %v15452_v39  ;;  %v4693_v61 = vsub.f32 %v11323_v15, %v14679_v19  ;;  %v1849_v35 = vmul.f32 %v1785_v42, %v11201_v14  ;;  %v15458_v42 = vld [vmem:[#allocation107_spill] sm:$0xff] }
 0x260   : > { %4494 = vmatmul.f32.gmra.mxu1 %v15449_v3  ;;  %15450 = vst [vmem:[#allocation98_spill] sm:$0xff] %v11348_v54  ;;  %v1597_v13 = vmul.f32 %v1533_v26, %v11307_v5  ;;  %v1975_v58 = vmul.f32 %v1911_v12, %v11156_v23  ;;  %v11377_v15 = vpop.f32.mrf.mxu2 }
 0x261   : > { %15451 = vst [vmem:[#allocation325_spill] sm:$0xff] %v11352_v59  ;;  %v11368_v48 = vmul.f32 -3.1415927, %v1281_v51  ;;  %v1219_v38 = vfloor.f32 %v1155_v29  ;;  %v4694_v26 = vand.u32 4294901760, %v4693_v61  ;;  %v11384_v51 = vand.u32 4294901760, %v3057_v0  ;;  %v15462_v61 = vld [vmem:[#allocation155_spill] sm:$0xff] }
 0x262   : > { %4329 = vmatmul.f32.gmra.mxu0 %v15434_v25  ;;  %4687 = vmatmul.f32.gmra.mxu2 %v4686_v43  ;;  %v2037_v25 = vadd.f32 1.0, %v1973_v47  ;;  %15453 = vst [vmem:[#allocation146_spill] sm:$0xff] %v11361_v41  ;;  %v1471_v47 = vmul.f32 -2.5052108e-08, %v11352_v59  ;;  %v11370_v43 = vpop.f32.mrf.mxu0 }
 0x263   : > { %15454 = vst [vmem:[#allocation326_spill] sm:$0xff] %v11370_v43  ;;  %v2995_v43 = vadd.f32 %v2931_v31, %v2931_v31  ;;  %v11390_v55 = vmul.f32 %v11368_v48, %v11368_v48  ;;  %v1283_v23 = vsub.f32 %v15452_v39, %v1219_v38  ;;  %v15463_v31 = vand.u32 4294901760, %v11361_v41 }
 0x264   : > { %5008 = vmatmul.f32.gmra.mxu3 %v11250_v57  ;;  %v11373_v19 = vmul.f32 %v2037_v25, %v11082_v60  ;;  %15456 = vst [vmem:[#allocation328_spill] sm:$0xff] %v11377_v15  ;;  %v11379_v2 = vpop.f32.mrf.mxu1  ;;  %v1913_v60 = vadd.f32 -0.16666667, %v1849_v35  ;;  %v1661_v25 = vadd.f32 -0.0001984127, %v1597_v13  ;;  %v11386_v57 = vpop.f32.mrf.mxu3  ;;  %v1157_v15 = vadd.f32 0.5, %v15462_v61 }
 0x265   : > { %15457 = vst [vmem:[#allocation329_spill] sm:$0xff] %v11379_v2  ;;  %v1535_v12 = vadd.f32 2.7557319e-06, %v1471_v47  ;;  %v1787_v2 = vadd.f32 0.008333334, %v1723_v21  ;;  %v4701_v35 = vsub.f32 %v11361_v41, %v15463_v31  ;;  %v11401_v13 = vsub.f32 %v3057_v0, %v11384_v51 }
 0x266   : > { %15455 = vst [vmem:[#allocation327_spill] sm:$0xff] %v11373_v19  ;;  %v2933_v29 = vmul.f32 %v11373_v19, %v11373_v19  ;;  %v3059_v47 = vsub.f32 1.0, %v2995_v43  ;;  %v1977_v39 = vmul.f32 %v1913_v60, %v11201_v14  ;;  %v1725_v38 = vmul.f32 %v1661_v25, %v11307_v5  ;;  %v15468_v60 = vld [vmem:[#allocation114_spill] sm:$0xff] }
 0x267   : > { %15459 = vst [vmem:[#allocation107_spill] sm:$0xff] %v11384_v51  ;;  %v1473_v21 = vmul.f32 -2.5052108e-08, %v11390_v55  ;;  %v1851_v31 = vmul.f32 %v1787_v2, %v11261_v10  ;;  %v1221_v0 = vfloor.f32 %v1157_v15  ;;  %v4702_v25 = vand.u32 4294901760, %v4701_v35 }
 0x268   : > { %4498 = vmatmul.f32.gmra.mxu1 %v15458_v42  ;;  %15460 = vst [vmem:[#allocation330_spill] sm:$0xff] %v11386_v57  ;;  %v2997_v43 = vadd.f32 %v2933_v29, %v2933_v29  ;;  %v2041_v14 = vadd.f32 1.0, %v1977_v39  ;;  %v15473_v39 = vand.u32 4294901760, %v11401_v13 }
 0x269   : > { %15461 = vst [vmem:[#allocation331_spill] sm:$0xff] %v11390_v55  ;;  %v1915_v29 = vadd.f32 -0.16666667, %v1851_v31  ;;  %v1285_v35 = vsub.f32 %v15462_v61, %v1221_v0 }
 0x26a   : > { %4333 = vmatmul.f32.gmra.mxu0 %v15449_v3  ;;  %4695 = vmatmul.f32.gmra.mxu2 %v4694_v26  ;;  %v2039_v3 = vadd.f32 1.0, %v1975_v58  ;;  %15464 = vst [vmem:[#allocation155_spill] sm:$0xff] %v11401_v13  ;;  %v1599_v58 = vmul.f32 %v1535_v12, %v11352_v59  ;;  %v11407_v26 = vmul.f32 -3.1415927, %v1283_v23  ;;  %v11420_v23 = vand.u32 4294901760, %v3059_v47  ;;  %v15472_v12 = vld [vmem:[#allocation159_spill] sm:$0xff] }
 0x26b   : > { %v11409_v19 = vpop.f32.mrf.mxu0  ;;  %v11415_v41 = vpop.f32.mrf.mxu2  ;;  %v11447_v46 = vmul.f32 -3.1415927, %v1285_v35 }
 0x26c   : > { %5012 = vmatmul.f32.gmra.mxu3 %v11303_v24  ;;  %15465 = vst [vmem:[#allocation332_spill] sm:$0xff] %v11409_v19  ;;  %v11412_v57 = vmul.f32 %v2039_v3, %v11135_v62  ;;  %v1789_v19 = vadd.f32 0.008333334, %v1725_v38  ;;  %v1663_v62 = vadd.f32 -0.0001984127, %v1599_v58  ;;  %v11426_v15 = vmul.f32 %v11407_v26, %v11407_v26  ;;  %v3783_v2 = vpop.f32.mrf.mxu1 }
 0x26d   : > { %15467 = vst [vmem:[#allocation334_spill] sm:$0xff] %v11415_v41  ;;  %v11422_v24 = vpop.f32.mrf.mxu3  ;;  %v1537_v3 = vadd.f32 2.7557319e-06, %v1473_v21  ;;  %v1159_v41 = vadd.f32 0.5, %v15472_v12  ;;  %v4709_v38 = vsub.f32 %v11401_v13, %v15473_v39  ;;  %v11437_v58 = vsub.f32 %v3059_v47, %v11420_v23 }
 0x26e   : > { %15466 = vst [vmem:[#allocation333_spill] sm:$0xff] %v11412_v57  ;;  %v3061_v21 = vsub.f32 1.0, %v2997_v43  ;;  %v1727_v31 = vmul.f32 %v1663_v62, %v11352_v59  ;;  %v1475_v0 = vmul.f32 -2.5052108e-08, %v11426_v15 }
 0x26f   : > { %15469 = vst [vmem:[#allocation114_spill] sm:$0xff] %v11420_v23  ;;  %v1601_v61 = vmul.f32 %v1537_v3, %v11390_v55  ;;  %v1223_v39 = vfloor.f32 %v1159_v41 }
 0x270   : > { %4502 = vmatmul.f32.gmra.mxu1 %v15468_v60  ;;  %15470 = vst [vmem:[#allocation335_spill] sm:$0xff] %v11422_v24  ;;  %v11452_v43 = vand.u32 4294901760, %v3061_v21 }
 0x271   : > { %15471 = vst [vmem:[#allocation336_spill] sm:$0xff] %v11426_v15  ;;  %v1665_v35 = vadd.f32 -0.0001984127, %v1601_v61 }
 0x272   : > { %4337 = vmatmul.f32.gmra.mxu0 %v15458_v42  ;;  %4703 = vmatmul.f32.gmra.mxu2 %v4702_v25  ;;  %v2935_v42 = vmul.f32 %v11412_v57, %v11412_v57  ;;  %15474 = vst [vmem:[#allocation159_spill] sm:$0xff] %v11437_v58  ;;  %v11440_v25 = vmul.f32 %v2041_v14, %v11176_v9  ;;  %v15476_v9 = vld [vmem:[#allocation119_spill] sm:$0xff]  ;;  %v4710_v14 = vand.u32 4294901760, %v4709_v38 }
 0x273   : > { %v1853_v57 = vmul.f32 %v1789_v19, %v11307_v5  ;;  %v3538_v47 = vpop.f32.mrf.mxu0  ;;  %15477 = vst [vmem:[#allocation119_spill] sm:$0xff] %v11452_v43  ;;  %v1287_v38 = vsub.f32 %v15472_v12, %v1223_v39 }
 0x274   : > { %5016 = vmatmul.f32.gmra.mxu3 %v11348_v54  ;;  %15475 = vst [vmem:[#allocation337_spill] sm:$0xff] %v11440_v25  ;;  %v2999_v24 = vadd.f32 %v2935_v42, %v2935_v42  ;;  %v1979_v54 = vmul.f32 %v1915_v29, %v11261_v10  ;;  %v3784_v13 = vadd.f32 %v3783_v2, %v3538_v47  ;;  %v3987_v42 = vpop.f32.mrf.mxu2  ;;  %v1791_v29 = vadd.f32 0.008333334, %v1727_v31  ;;  %v15479_v47 = vld [vmem:[#allocation168_spill] sm:$0xff] }
 0x275   : > { %v2937_v62 = vmul.f32 %v11440_v25, %v11440_v25  ;;  %v1917_v3 = vadd.f32 -0.16666667, %v1853_v57  ;;  %v1539_v10 = vadd.f32 2.7557319e-06, %v1475_v0  ;;  %v1161_v19 = vadd.f32 0.5, %v15479_v47  ;;  %v4207_v28 = vpop.f32.mrf.mxu3  ;;  %v3787_v34 = vpop.f32.mrf.mxu1 }
 0x276   : > { %v3988_v41 = vadd.f32 %v3987_v42, %v3784_v13  ;;  %v2043_v2 = vadd.f32 1.0, %v1979_v54  ;;  %v15481_v57 = vand.u32 4294901760, %v11437_v58  ;;  %v11469_v54 = vsub.f32 %v3061_v21, %v11452_v43 }
 0x277   : > { %v3063_v31 = vsub.f32 1.0, %v2999_v24  ;;  %v1981_v61 = vmul.f32 %v1917_v3, %v11307_v5  ;;  %v1855_v12 = vmul.f32 %v1791_v29, %v11352_v59  ;;  %v1729_v0 = vmul.f32 %v1665_v35, %v11390_v55  ;;  %v15484_v24 = vld [vmem:[#allocation126_spill] sm:$0xff] }
 0x278   : > { %4506 = vmatmul.f32.gmra.mxu1 %v15476_v9  ;;  %v11462_v18 = vadd.f32 %v4207_v28, %v3988_v41  ;;  %v4717_v13 = vsub.f32 %v11437_v58, %v15481_v57  ;;  %15482 = vst [vmem:[#allocation339_spill] sm:$0xff] %v11469_v54  ;;  %v1603_v39 = vmul.f32 %v1539_v10, %v11426_v15  ;;  %v11476_v42 = vmul.f32 -3.1415927, %v1287_v38  ;;  %v15486_v10 = vld [vmem:[#allocation175_spill] sm:$0xff] }
 0x279   : > { %v3001_v28 = vadd.f32 %v2937_v62, %v2937_v62  ;;  %v1225_v41 = vfloor.f32 %v1161_v19  ;;  %v11479_v57 = vmul.f32 %v2043_v2, %v11242_v11  ;;  %v11484_v29 = vand.u32 4294901760, %v3063_v31 }
 0x27a   : > { %4341 = vmatmul.f32.gmra.mxu0 %v15468_v60  ;;  %4711 = vmatmul.f32.gmra.mxu2 %v4710_v14  ;;  %v11458_v60 = vmul.f32 %v11447_v46, %v11447_v46  ;;  %15480 = vst [vmem:[#allocation168_spill] sm:$0xff] %v11462_v18  ;;  %v4718_v21 = vand.u32 4294901760, %v4717_v13  ;;  %v2045_v35 = vadd.f32 1.0, %v1981_v61  ;;  %v1163_v62 = vadd.f32 0.5, %v15486_v10 }
 0x27b   : > { %15483 = vst [vmem:[#allocation340_spill] sm:$0xff] %v11479_v57  ;;  %v1919_v25 = vadd.f32 -0.16666667, %v1855_v12  ;;  %v1793_v5 = vadd.f32 0.008333334, %v1729_v0  ;;  %v11489_v11 = vmul.f32 %v11476_v42, %v11476_v42  ;;  %v15488_v61 = vand.u32 4294901760, %v11469_v54 }
 0x27c   : > { %15478 = vst [vmem:[#allocation338_spill] sm:$0xff] %v11458_v60  ;;  %5020 = vmatmul.f32.gmra.mxu3 %v11384_v51  ;;  %v1477_v14 = vmul.f32 -2.5052108e-08, %v11458_v60  ;;  %v1667_v38 = vadd.f32 -0.0001984127, %v1603_v39  ;;  %v11497_v0 = vsub.f32 %v3063_v31, %v11484_v29  ;;  %v3065_v39 = vsub.f32 1.0, %v3001_v28 }
 0x27d   : > { %15485 = vst [vmem:[#allocation126_spill] sm:$0xff] %v11484_v29  ;;  %v4725_v12 = vsub.f32 %v11469_v54, %v15488_v61  ;;  %v1479_v31 = vmul.f32 -2.5052108e-08, %v11489_v11 }
 0x27e   : > { %v3546_v58 = vpop.f32.mrf.mxu0  ;;  %v1541_v19 = vadd.f32 2.7557319e-06, %v1477_v14  ;;  %15487 = vst [vmem:[#allocation175_spill] sm:$0xff] %v11489_v11  ;;  %v3992_v13 = vpop.f32.mrf.mxu2  ;;  %v2939_v14 = vmul.f32 %v11479_v57, %v11479_v57 }
 0x27f   : > { %v3788_v2 = vadd.f32 %v3787_v34, %v3546_v58  ;;  %v3791_v3 = vpop.f32.mrf.mxu1  ;;  %15489 = vst [vmem:[#allocation341_spill] sm:$0xff] %v11497_v0  ;;  %v1983_v34 = vmul.f32 %v1919_v25, %v11352_v59  ;;  %v1857_v58 = vmul.f32 %v1793_v5, %v11390_v55  ;;  %v14720_v25 = vand.u32 4294901760, %v11497_v0 }
 0x280   : > { %4510 = vmatmul.f32.gmra.mxu1 %v15484_v24  ;;  %v1605_v61 = vmul.f32 %v1541_v19, %v11458_v60  ;;  %v3003_v5 = vadd.f32 %v2939_v14, %v2939_v14 }
 0x281   : > { %v3993_v18 = vadd.f32 %v3992_v13, %v3788_v2  ;;  %v15494_v2 = vld [vmem:[#allocation183_spill] sm:$0xff]  ;;  %v2047_v13 = vadd.f32 1.0, %v1983_v34  ;;  %v1921_v57 = vadd.f32 -0.16666667, %v1857_v58 }
 0x282   : > { %4345 = vmatmul.f32.gmra.mxu0 %v15476_v9  ;;  %4719 = vmatmul.f32.gmra.mxu2 %v4718_v21  ;;  %v1289_v9 = vsub.f32 %v15479_v47, %v1225_v41  ;;  %v1227_v21 = vfloor.f32 %v1163_v62  ;;  %v11502_v47 = vmul.f32 %v2045_v35, %v11277_v33  ;;  %v1731_v41 = vmul.f32 %v1667_v38, %v11426_v15  ;;  %v15492_v62 = vld [vmem:[#allocation129_spill] sm:$0xff] }
 0x283   : > { %v4726_v33 = vand.u32 4294901760, %v4725_v12  ;;  %v11516_v35 = vand.u32 4294901760, %v3065_v39  ;;  %v1165_v19 = vadd.f32 0.5, %v15494_v2 }
 0x284   : > { %5024 = vmatmul.f32.gmra.mxu3 %v11420_v23  ;;  %15490 = vst [vmem:[#allocation342_spill] sm:$0xff] %v11502_v47  ;;  %v4213_v23 = vpop.f32.mrf.mxu3  ;;  %v11509_v28 = vmul.f32 -3.1415927, %v1289_v9  ;;  %v1291_v38 = vsub.f32 %v15486_v10, %v1227_v21  ;;  %v1795_v9 = vadd.f32 0.008333334, %v1731_v41  ;;  %v4733_v10 = vsub.f32 %v11497_v0, %v14720_v25 }
 0x285   : > { %v11511_v54 = vadd.f32 %v4213_v23, %v3993_v18  ;;  %15493 = vst [vmem:[#allocation129_spill] sm:$0xff] %v11516_v35  ;;  %v1669_v18 = vadd.f32 -0.0001984127, %v1605_v61  ;;  %v1543_v23 = vadd.f32 2.7557319e-06, %v1479_v31  ;;  %v11529_v14 = vsub.f32 %v3065_v39, %v11516_v35 }
 0x286   : > { %v3067_v21 = vsub.f32 1.0, %v3003_v5  ;;  %v2941_v34 = vmul.f32 %v11502_v47, %v11502_v47  ;;  %v11533_v58 = vmul.f32 -3.1415927, %v1291_v38  ;;  %v1229_v41 = vfloor.f32 %v1165_v19  ;;  %v15498_v38 = vld [vmem:[#allocation140_spill] sm:$0xff] }
 0x287   : > { %15491 = vst [vmem:[#allocation343_spill] sm:$0xff] %v11511_v54  ;;  %v3795_v59 = vpop.f32.mrf.mxu1  ;;  %v3997_v31 = vpop.f32.mrf.mxu2  ;;  %v1859_v54 = vmul.f32 %v1795_v9, %v11426_v15  ;;  %v1733_v39 = vmul.f32 %v1669_v18, %v11458_v60  ;;  %v1607_v5 = vmul.f32 %v1543_v23, %v11489_v11  ;;  %v15503_v20 = vand.u32 4294901760, %v11529_v14 }
 0x288   : > { %4514 = vmatmul.f32.gmra.mxu1 %v15492_v62  ;;  %15496 = vst [vmem:[#allocation344_spill] sm:$0xff] %v11529_v14  ;;  %v11546_v19 = vand.u32 4294901760, %v3067_v21  ;;  %v1293_v9 = vsub.f32 %v15494_v2, %v1229_v41 }
 0x28a   : > { %4349 = vmatmul.f32.gmra.mxu0 %v15484_v24  ;;  %4727 = vmatmul.f32.gmra.mxu2 %v4726_v33  ;;  %v11522_v24 = vmul.f32 %v11509_v28, %v11509_v28  ;;  %v11536_v33 = vmul.f32 %v2047_v13, %v11333_v49  ;;  %15499 = vst [vmem:[#allocation140_spill] sm:$0xff] %v11546_v19 }
 0x28b   : > { %v11550_v13 = vmul.f32 %v11533_v58, %v11533_v58 }
 0x28c   : > { %15495 = vst [vmem:[#allocation183_spill] sm:$0xff] %v11522_v24  ;;  %5028 = vmatmul.f32.gmra.mxu3 %v11452_v43  ;;  %v1985_v43 = vmul.f32 %v1921_v57, %v11390_v55  ;;  %v4219_v25 = vpop.f32.mrf.mxu3  ;;  %v1481_v0 = vmul.f32 -2.5052108e-08, %v11522_v24  ;;  %v3005_v57 = vadd.f32 %v2941_v34, %v2941_v34  ;;  %v2943_v23 = vmul.f32 %v11536_v33, %v11536_v33 }
 0x28d   : > { %15497 = vst [vmem:[#allocation345_spill] sm:$0xff] %v11536_v33  ;;  %v1797_v55 = vadd.f32 0.008333334, %v1733_v39 }
 0x28e   : > { %15500 = vst [vmem:[#allocation346_spill] sm:$0xff] %v11550_v13  ;;  %v3069_v2 = vsub.f32 1.0, %v3005_v57 }
 0x28f   : > { %v3554_v12 = vpop.f32.mrf.mxu0 }
 0x290   : > { %v3792_v61 = vadd.f32 %v3791_v3, %v3554_v12  ;;  %4518 = vmatmul.f32.gmra.mxu1 %v15498_v38  ;;  %v4734_v3 = vand.u32 4294901760, %v4733_v10  ;;  %v1923_v12 = vadd.f32 -0.16666667, %v1859_v54  ;;  %v1671_v10 = vadd.f32 -0.0001984127, %v1607_v5  ;;  %v3799_v51 = vpop.f32.mrf.mxu1  ;;  %v4002_v41 = vpop.f32.mrf.mxu2 }
 0x291   : > { %v11566_v54 = vmul.f32 -3.1415927, %v1293_v9  ;;  %v11568_v5 = vadd.f32 %v2943_v23, %v2943_v23 }
 0x292   : > { %v3998_v47 = vadd.f32 %v3997_v31, %v3792_v61  ;;  %4353 = vmatmul.f32.gmra.mxu0 %v15492_v62  ;;  %v2049_v62 = vadd.f32 1.0, %v1985_v43  ;;  %4735 = vmatmul.f32.gmra.mxu2 %v4734_v3  ;;  %v1545_v61 = vadd.f32 2.7557319e-06, %v1481_v0  ;;  %v15502_v31 = vld [vmem:[#allocation201_spill] sm:$0xff]  ;;  %v1483_v43 = vmul.f32 -2.5052108e-08, %v11550_v13 }
 0x293   : > { %v1167_v49 = vadd.f32 0.5, %v15502_v31  ;;  %v1987_v3 = vmul.f32 %v1923_v12, %v11426_v15  ;;  %v11584_v12 = vmul.f32 %v11566_v54, %v11566_v54 }
 0x294   : > { %v11553_v18 = vadd.f32 %v4219_v25, %v3998_v47  ;;  %5032 = vmatmul.f32.gmra.mxu3 %v11484_v29  ;;  %v4741_v47 = vsub.f32 %v11529_v14, %v15503_v20  ;;  %v11563_v25 = vsub.f32 %v3067_v21, %v11546_v19  ;;  %v11571_v39 = vmul.f32 %v2049_v62, %v11368_v48  ;;  %v4225_v33 = vpop.f32.mrf.mxu3 }
 0x295   : > { %v1735_v20 = vmul.f32 %v1671_v10, %v11489_v11  ;;  %v1609_v21 = vmul.f32 %v1545_v61, %v11522_v24  ;;  %v1231_v14 = vfloor.f32 %v1167_v49  ;;  %v1861_v29 = vmul.f32 %v1797_v55, %v11458_v60  ;;  %15508 = vst [vmem:[#allocation349_spill] sm:$0xff] %v11584_v12  ;;  %v15510_v61 = vld [vmem:[#allocation209_spill] sm:$0xff] }
 0x296   : > { %15501 = vst [vmem:[#allocation347_spill] sm:$0xff] %v11553_v18  ;;  %v4742_v9 = vand.u32 4294901760, %v4741_v47  ;;  %v14738_v23 = vand.u32 4294901760, %v11563_v25  ;;  %v11580_v48 = vand.u32 4294901760, %v3069_v2  ;;  %v1547_v62 = vadd.f32 2.7557319e-06, %v1483_v43 }
 0x297   : > { %v3562_v34 = vpop.f32.mrf.mxu0  ;;  %15504 = vst [vmem:[#allocation201_spill] sm:$0xff] %v11563_v25  ;;  %v2945_v49 = vmul.f32 %v11571_v39, %v11571_v39  ;;  %v2051_v55 = vadd.f32 1.0, %v1987_v3  ;;  %v1673_v47 = vadd.f32 -0.0001984127, %v1609_v21  ;;  %v3071_v3 = vsub.f32 1.0, %v11568_v5 }
 0x298   : > { %v3796_v0 = vadd.f32 %v3795_v59, %v3562_v34  ;;  %15505 = vst [vmem:[#allocation348_spill] sm:$0xff] %v11571_v39  ;;  %v15506_v59 = vld [vmem:[#allocation145_spill] sm:$0xff]  ;;  %v1799_v34 = vadd.f32 0.008333334, %v1735_v20  ;;  %v1611_v39 = vmul.f32 %v1547_v62, %v11550_v13  ;;  %v1485_v20 = vmul.f32 -2.5052108e-08, %v11584_v12 }
 0x299   : > { %4522 = vmatmul.f32.gmra.mxu1 %v15506_v59  ;;  %15507 = vst [vmem:[#allocation145_spill] sm:$0xff] %v11580_v48 }
 0x29a   : > { %v4003_v57 = vadd.f32 %v4002_v41, %v3796_v0  ;;  %4357 = vmatmul.f32.gmra.mxu0 %v15498_v38  ;;  %v1169_v38 = vadd.f32 0.5, %v15510_v61  ;;  %4743 = vmatmul.f32.gmra.mxu2 %v4742_v9  ;;  %v1295_v0 = vsub.f32 %v15502_v31, %v1231_v14  ;;  %v1925_v41 = vadd.f32 -0.16666667, %v1861_v29  ;;  %v4007_v14 = vpop.f32.mrf.mxu2 }
 0x29b   : > { %v11602_v29 = vadd.f32 %v2945_v49, %v2945_v49  ;;  %v11605_v31 = vmul.f32 %v2051_v55, %v11407_v26  ;;  %v11615_v26 = vand.u32 4294901760, %v3071_v3  ;;  %v15515_v55 = vld [vmem:[#allocation178_spill] sm:$0xff]  ;;  %v1549_v18 = vadd.f32 2.7557319e-06, %v1485_v20 }
 0x29c   : > { %v11586_v10 = vadd.f32 %v4225_v33, %v4003_v57  ;;  %5036 = vmatmul.f32.gmra.mxu3 %v11516_v35  ;;  %v4749_v33 = vsub.f32 %v11563_v25, %v14738_v23  ;;  %v11597_v57 = vsub.f32 %v3069_v2, %v11580_v48  ;;  %v1233_v15 = vfloor.f32 %v1169_v38  ;;  %v4231_v35 = vpop.f32.mrf.mxu3  ;;  %v15516_v38 = vld [vmem:[#allocation176_spill] sm:$0xff] }
 0x29d   : > { %v3803_v9 = vpop.f32.mrf.mxu1  ;;  %15512 = vst [vmem:[#allocation351_spill] sm:$0xff] %v11605_v31  ;;  %v1863_v23 = vmul.f32 %v1799_v34, %v11489_v11  ;;  %v1737_v2 = vmul.f32 %v1673_v47, %v11522_v24  ;;  %v11609_v25 = vmul.f32 -3.1415927, %v1295_v0  ;;  %v1989_v62 = vmul.f32 %v1925_v41, %v11458_v60 }
 0x29e   : > { %15509 = vst [vmem:[#allocation350_spill] sm:$0xff] %v11586_v10  ;;  %v4750_v49 = vand.u32 4294901760, %v4749_v33  ;;  %v3680_v10 = vadd.f32 %v15516_v38, %v15515_v55  ;;  %v1675_v34 = vadd.f32 -0.0001984127, %v1611_v39  ;;  %v2947_v0 = vmul.f32 %v11605_v31, %v11605_v31 }
 0x29f   : > { %v3570_v43 = vpop.f32.mrf.mxu0  ;;  %15511 = vst [vmem:[#allocation209_spill] sm:$0xff] %v11597_v57  ;;  %v1297_v41 = vsub.f32 %v15510_v61, %v1233_v15  ;;  %v1927_v33 = vadd.f32 -0.16666667, %v1863_v23  ;;  %v3073_v55 = vsub.f32 1.0, %v11602_v29  ;;  %v2053_v39 = vadd.f32 1.0, %v1989_v62  ;;  %v15522_v61 = vld [vmem:[#allocation179_spill] sm:$0xff] }
 0x2a0   : > { %v3800_v21 = vadd.f32 %v3799_v51, %v3570_v43  ;;  %v15513_v51 = vld [vmem:[#allocation153_spill] sm:$0xff]  ;;  %v11627_v43 = vmul.f32 %v11609_v25, %v11609_v25  ;;  %v11635_v15 = vsub.f32 %v3071_v3, %v11615_v26  ;;  %v1739_v23 = vmul.f32 %v1675_v34, %v11550_v13 }
 0x2a1   : > { %4526 = vmatmul.f32.gmra.mxu1 %v15513_v51  ;;  %15514 = vst [vmem:[#allocation153_spill] sm:$0xff] %v11615_v26  ;;  %v11640_v31 = vadd.f32 %v2947_v0, %v2947_v0  ;;  %v11642_v29 = vmul.f32 -3.1415927, %v1297_v41  ;;  %v15525_v0 = vld [vmem:[#allocation157_spill] sm:$0xff] }
 0x2a2   : > { %v4008_v5 = vadd.f32 %v4007_v14, %v3800_v21  ;;  %4361 = vmatmul.f32.gmra.mxu0 %v15506_v59  ;;  %v15518_v59 = vld [vmem:[#allocation224_spill] sm:$0xff]  ;;  %4751 = vmatmul.f32.gmra.mxu2 %v4750_v49  ;;  %v1801_v14 = vadd.f32 0.008333334, %v1737_v2  ;;  %15519 = vst [vmem:[#allocation176_spill] sm:$0xff] %v11627_v43  ;;  %v1613_v2 = vmul.f32 %v1549_v18, %v11584_v12 }
 0x2a3   : > { %v1171_v21 = vadd.f32 0.5, %v15518_v59  ;;  %15521 = vst [vmem:[#allocation224_spill] sm:$0xff] %v11635_v15  ;;  %v11650_v18 = vmul.f32 %v2053_v39, %v11447_v46  ;;  %v15529_v39 = vld [vmem:[#allocation235_spill] sm:$0xff] }
 0x2a4   : > { %v11619_v47 = vadd.f32 %v4231_v35, %v4008_v5  ;;  %5040 = vmatmul.f32.gmra.mxu3 %v11546_v19  ;;  %v15520_v35 = vand.u32 4294901760, %v11597_v57  ;;  %v3858_v5 = vadd.f32 %v15522_v61, %v3680_v10  ;;  %v1865_v3 = vmul.f32 %v1801_v14, %v11522_v24 }
 0x2a5   : > { %v4012_v38 = vpop.f32.mrf.mxu2  ;;  %v1235_v62 = vfloor.f32 %v1171_v21  ;;  %v4467_v19 = vpop.f32.mrf.mxu1  ;;  %v11647_v61 = vand.u32 4294901760, %v3073_v55  ;;  %15524 = vst [vmem:[#allocation352_spill] sm:$0xff] %v11650_v18  ;;  %v15526_v21 = vld [vmem:[#allocation185_spill] sm:$0xff]  ;;  %v1803_v14 = vadd.f32 0.008333334, %v1739_v23 }
 0x2a6   : > { %15517 = vst [vmem:[#allocation178_spill] sm:$0xff] %v11619_v47  ;;  %v4757_v20 = vsub.f32 %v11597_v57, %v15520_v35  ;;  %v1991_v35 = vmul.f32 %v1927_v33, %v11489_v11  ;;  %v1487_v57 = vmul.f32 -2.5052108e-08, %v11627_v43  ;;  %v15527_v33 = vld [vmem:[#allocation180_spill] sm:$0xff]  ;;  %v1677_v11 = vadd.f32 -0.0001984127, %v1613_v2 }
 0x2a7   : > { %v3578_v49 = vpop.f32.mrf.mxu0  ;;  %v4237_v10 = vpop.f32.mrf.mxu3  ;;  %15523 = vst [vmem:[#allocation179_spill] sm:$0xff] %v11647_v61  ;;  %v11659_v47 = vmul.f32 %v11642_v29, %v11642_v29  ;;  %v1299_v46 = vsub.f32 %v15518_v59, %v1235_v62  ;;  %v15533_v2 = vand.u32 4294901760, %v11635_v15  ;;  %v3075_v59 = vsub.f32 1.0, %v11640_v31 }
 0x2a8   : > { %v3804_v60 = vadd.f32 %v3803_v9, %v3578_v49  ;;  %v4758_v41 = vand.u32 4294901760, %v4757_v20  ;;  %v3684_v49 = vadd.f32 %v15527_v33, %v15526_v21  ;;  %v1929_v20 = vadd.f32 -0.16666667, %v1865_v3  ;;  %v15532_v21 = vld [vmem:[#allocation181_spill] sm:$0xff] }
 0x2a9   : > { %4530 = vmatmul.f32.gmra.mxu1 %v15525_v0  ;;  %15528 = vst [vmem:[#allocation157_spill] sm:$0xff] %v11659_v47  ;;  %v1551_v16 = vadd.f32 2.7557319e-06, %v1487_v57  ;;  %v11666_v9 = vsub.f32 %v3073_v55, %v11647_v61  ;;  %v4052_v23 = vadd.f32 %v15532_v21, %v3858_v5  ;;  %v4765_v33 = vsub.f32 %v11635_v15, %v15533_v2  ;;  %v15536_v15 = vld [vmem:[#allocation164_spill] sm:$0xff] }
 0x2aa   : > { %v4013_v34 = vadd.f32 %v4012_v38, %v3804_v60  ;;  %4365 = vmatmul.f32.gmra.mxu0 %v15513_v51  ;;  %v1173_v60 = vadd.f32 0.5, %v15529_v39  ;;  %4759 = vmatmul.f32.gmra.mxu2 %v4758_v41  ;;  %v2055_v51 = vadd.f32 1.0, %v1991_v35  ;;  %v2949_v62 = vmul.f32 %v11650_v18, %v11650_v18 }
 0x2ab   : > { %15531 = vst [vmem:[#allocation180_spill] sm:$0xff] %v11666_v9  ;;  %v1867_v57 = vmul.f32 %v1803_v14, %v11550_v13  ;;  %v1741_v55 = vmul.f32 %v1677_v11, %v11584_v12  ;;  %v1489_v5 = vmul.f32 -2.5052108e-08, %v11659_v47  ;;  %v11680_v41 = vmul.f32 -3.1415927, %v1299_v46 }
 0x2ac   : > { %v11663_v38 = vadd.f32 %v4237_v10, %v4013_v34  ;;  %5044 = vmatmul.f32.gmra.mxu3 %v11580_v48  ;;  %v15534_v10 = vld [vmem:[#allocation186_spill] sm:$0xff]  ;;  %v1237_v21 = vfloor.f32 %v1173_v60  ;;  %v11683_v31 = vmul.f32 %v2055_v51, %v11476_v42  ;;  %v1993_v18 = vmul.f32 %v1929_v20, %v11522_v24  ;;  %v15539_v42 = vld [vmem:[#allocation193_spill] sm:$0xff]  ;;  %v15540_v51 = vld [vmem:[#allocation188_spill] sm:$0xff] }
 0x2ad   : > { %v3863_v35 = vadd.f32 %v15534_v10, %v3684_v49  ;;  %v4632_v34 = vpop.f32.mrf.mxu2  ;;  %v4471_v2 = vpop.f32.mrf.mxu1  ;;  %v1615_v49 = vmul.f32 %v1551_v16, %v11627_v43  ;;  %v4766_v46 = vand.u32 4294901760, %v4765_v33  ;;  %v3013_v60 = vadd.f32 %v2949_v62, %v2949_v62 }
 0x2ae   : > { %15530 = vst [vmem:[#allocation185_spill] sm:$0xff] %v11663_v38  ;;  %v11690_v38 = vand.u32 4294901760, %v3075_v59  ;;  %v3688_v53 = vadd.f32 %v15540_v51, %v15539_v42  ;;  %v1931_v20 = vadd.f32 -0.16666667, %v1867_v57  ;;  %v1805_v24 = vadd.f32 0.008333334, %v1741_v55 }
 0x2af   : > { %v4306_v3 = vpop.f32.mrf.mxu0  ;;  %15535 = vst [vmem:[#allocation235_spill] sm:$0xff] %v11683_v31  ;;  %v4981_v10 = vpop.f32.mrf.mxu3  ;;  %v1553_v16 = vadd.f32 2.7557319e-06, %v1489_v5  ;;  %v11697_v14 = vmul.f32 %v11680_v41, %v11680_v41  ;;  %v1679_v33 = vadd.f32 -0.0001984127, %v1615_v49  ;;  %v1175_v62 = vadd.f32 0.5, %v15542_v8 }
 0x2b0   : > { %v4307_v48 = vadd.f32 %v4306_v3, %v4052_v23  ;;  %15537 = vst [vmem:[#allocation181_spill] sm:$0xff] %v11690_v38  ;;  %v15538_v23 = vld [vmem:[#allocation189_spill] sm:$0xff]  ;;  %v11708_v57 = vsub.f32 %v3075_v59, %v11690_v38  ;;  %v3077_v55 = vsub.f32 1.0, %v3013_v60  ;;  %v1995_v5 = vmul.f32 %v1931_v20, %v11550_v13 }
 0x2b1   : > { %4534 = vmatmul.f32.gmra.mxu1 %v15536_v15  ;;  %v4058_v3 = vadd.f32 %v15538_v23, %v3863_v35  ;;  %15541 = vst [vmem:[#allocation186_spill] sm:$0xff] %v11697_v14  ;;  %v15543_v35 = vand.u32 4294901760, %v11666_v9 }
 0x2b2   : > { %v4468_v11 = vadd.f32 %v4467_v19, %v4307_v48  ;;  %4369 = vmatmul.f32.gmra.mxu0 %v15525_v0  ;;  %v1301_v19 = vsub.f32 %v15529_v39, %v1237_v21  ;;  %4767 = vmatmul.f32.gmra.mxu2 %v4766_v46  ;;  %v2057_v0 = vadd.f32 1.0, %v1993_v18  ;;  %15545 = vst [vmem:[#allocation189_spill] sm:$0xff] %v11708_v57  ;;  %v1491_v46 = vmul.f32 -2.5052108e-08, %v11697_v14 }
 0x2b3   : > { %v4773_v23 = vsub.f32 %v11666_v9, %v15543_v35  ;;  %v2951_v39 = vmul.f32 %v11683_v31, %v11683_v31  ;;  %v1869_v21 = vmul.f32 %v1805_v24, %v11584_v12  ;;  %v1743_v35 = vmul.f32 %v1679_v33, %v11627_v43  ;;  %v15548_v24 = vld [vmem:[#allocation173_spill] sm:$0xff]  ;;  %v15551_v9 = vld [vmem:[#allocation203_spill] sm:$0xff] }
 0x2b4   : > { %v4633_v48 = vadd.f32 %v4632_v34, %v4468_v11  ;;  %5048 = vmatmul.f32.gmra.mxu3 %v11615_v26  ;;  %v15546_v34 = vld [vmem:[#allocation196_spill] sm:$0xff]  ;;  %v11717_v51 = vmul.f32 -3.1415927, %v1301_v19  ;;  %v11720_v60 = vmul.f32 %v2057_v0, %v11509_v28  ;;  %v11726_v13 = vand.u32 4294901760, %v3077_v55  ;;  %v15552_v28 = vld [vmem:[#allocation197_spill] sm:$0xff] }
 0x2b5   : > { %v3868_v18 = vadd.f32 %v15546_v34, %v3688_v53  ;;  %v4640_v11 = vpop.f32.mrf.mxu2  ;;  %v1239_v53 = vfloor.f32 %v1175_v62  ;;  %v4774_v20 = vand.u32 4294901760, %v4773_v23  ;;  %v3015_v19 = vadd.f32 %v2951_v39, %v2951_v39 }
 0x2b6   : > { %v11704_v42 = vadd.f32 %v4981_v10, %v4633_v48  ;;  %v1617_v10 = vmul.f32 %v1553_v16, %v11659_v47  ;;  %v4475_v48 = vpop.f32.mrf.mxu1  ;;  %15547 = vst [vmem:[#allocation193_spill] sm:$0xff] %v11720_v60  ;;  %v3692_v0 = vadd.f32 %v15552_v28, %v15551_v9  ;;  %v2059_v26 = vadd.f32 1.0, %v1995_v5 }
 0x2b7   : > { %v4310_v49 = vpop.f32.mrf.mxu0  ;;  %v4985_v34 = vpop.f32.mrf.mxu3  ;;  %15549 = vst [vmem:[#allocation188_spill] sm:$0xff] %v11726_v13  ;;  %v1933_v33 = vadd.f32 -0.16666667, %v1869_v21  ;;  %v2953_v23 = vmul.f32 %v11720_v60, %v11720_v60  ;;  %v1303_v39 = vsub.f32 %v15542_v8, %v1239_v53  ;;  %v15556_v9 = vand.u32 4294901760, %v11708_v57 }
 0x2b8   : > { %15544 = vst [vmem:[#allocation164_spill] sm:$0xff] %v11704_v42  ;;  %v4311_v59 = vadd.f32 %v4310_v49, %v4058_v3  ;;  %v15550_v3 = vld [vmem:[#allocation198_spill] sm:$0xff]  ;;  %v1681_v62 = vadd.f32 -0.0001984127, %v1617_v10  ;;  %v1555_v42 = vadd.f32 2.7557319e-06, %v1491_v46  ;;  %v11746_v21 = vsub.f32 %v3077_v55, %v11726_v13 }
 0x2b9   : > { %4538 = vmatmul.f32.gmra.mxu1 %v15548_v24  ;;  %v4064_v49 = vadd.f32 %v15550_v3, %v3868_v18  ;;  %v15554_v18 = vld [vmem:[#allocation262_spill] sm:$0xff]  ;;  %v4781_v5 = vsub.f32 %v11708_v57, %v15556_v9  ;;  %v11750_v46 = vmul.f32 %v2059_v26, %v11533_v58  ;;  %v1997_v8 = vmul.f32 %v1933_v33, %v11584_v12  ;;  %v15563_v12 = vld [vmem:[#allocation205_spill] sm:$0xff] }
 0x2ba   : > { %v4472_v31 = vadd.f32 %v4471_v2, %v4311_v59  ;;  %4373 = vmatmul.f32.gmra.mxu0 %v15536_v15  ;;  %v11733_v2 = vmul.f32 %v11717_v51, %v11717_v51  ;;  %4775 = vmatmul.f32.gmra.mxu2 %v4774_v20  ;;  %v1807_v59 = vadd.f32 0.008333334, %v1743_v35  ;;  %v1177_v3 = vadd.f32 0.5, %v15554_v18  ;;  %15557 = vst [vmem:[#allocation173_spill] sm:$0xff] %v11746_v21  ;;  %v15560_v33 = vld [vmem:[#allocation182_spill] sm:$0xff] }
 0x2bb   : > { %15559 = vst [vmem:[#allocation198_spill] sm:$0xff] %v11750_v46  ;;  %v1619_v20 = vmul.f32 %v1555_v42, %v11697_v14  ;;  %v11756_v55 = vadd.f32 %v2953_v23, %v2953_v23  ;;  %v15562_v23 = vld [vmem:[#allocation211_spill] sm:$0xff] }
 0x2bc   : > { %15553 = vst [vmem:[#allocation248_spill] sm:$0xff] %v11733_v2  ;;  %v4641_v15 = vadd.f32 %v4640_v11, %v4472_v31  ;;  %5052 = vmatmul.f32.gmra.mxu3 %v11647_v61  ;;  %v3079_v31 = vsub.f32 1.0, %v3015_v19  ;;  %v15558_v11 = vld [vmem:[#allocation204_spill] sm:$0xff]  ;;  %v1493_v28 = vmul.f32 -2.5052108e-08, %v11733_v2  ;;  %v1871_v19 = vmul.f32 %v1807_v59, %v11627_v43 }
 0x2bd   : > { %v3873_v10 = vadd.f32 %v15558_v11, %v3692_v0  ;;  %v4648_v53 = vpop.f32.mrf.mxu2  ;;  %v11759_v0 = vmul.f32 -3.1415927, %v1303_v39  ;;  %v1241_v58 = vfloor.f32 %v1177_v3  ;;  %v3696_v57 = vadd.f32 %v15563_v12, %v15562_v23 }
 0x2be   : > { %v11739_v16 = vadd.f32 %v4985_v34, %v4641_v15  ;;  %v1745_v34 = vmul.f32 %v1681_v62, %v11659_v47  ;;  %v4479_v9 = vpop.f32.mrf.mxu1  ;;  %v4782_v62 = vand.u32 4294901760, %v4781_v5  ;;  %v11764_v60 = vand.u32 4294901760, %v3079_v31 }
 0x2bf   : > { %v4314_v35 = vpop.f32.mrf.mxu0  ;;  %v4989_v26 = vpop.f32.mrf.mxu3  ;;  %v2955_v59 = vmul.f32 %v11750_v46, %v11750_v46  ;;  %v2061_v39 = vadd.f32 1.0, %v1997_v8  ;;  %v1935_v61 = vadd.f32 -0.16666667, %v1871_v19  ;;  %v11773_v5 = vmul.f32 %v11759_v0, %v11759_v0 }
 0x2c0   : > { %15555 = vst [vmem:[#allocation196_spill] sm:$0xff] %v11739_v16  ;;  %v4315_v15 = vadd.f32 %v4314_v35, %v4064_v49  ;;  %v15561_v49 = vld [vmem:[#allocation206_spill] sm:$0xff]  ;;  %v1809_v3 = vadd.f32 0.008333334, %v1745_v34  ;;  %v1305_v42 = vsub.f32 %v15554_v18, %v1241_v58  ;;  %v15566_v12 = vand.u32 4294901760, %v11746_v21 }
 0x2c1   : > { %4542 = vmatmul.f32.gmra.mxu1 %v15560_v33  ;;  %v4070_v35 = vadd.f32 %v15561_v49, %v3873_v10  ;;  %15564 = vst [vmem:[#allocation203_spill] sm:$0xff] %v11773_v5  ;;  %v15565_v10 = vld [vmem:[#allocation276_spill] sm:$0xff]  ;;  %v3081_v34 = vsub.f32 1.0, %v11756_v55  ;;  %v11788_v19 = vadd.f32 %v2955_v59, %v2955_v59  ;;  %v11791_v18 = vmul.f32 %v2061_v39, %v11566_v54 }
 0x2c2   : > { %v4476_v11 = vadd.f32 %v4475_v48, %v4315_v15  ;;  %4377 = vmatmul.f32.gmra.mxu0 %v15548_v24  ;;  %v1683_v48 = vadd.f32 -0.0001984127, %v1619_v20  ;;  %v1557_v15 = vadd.f32 2.7557319e-06, %v1493_v28  ;;  %4783 = vmatmul.f32.gmra.mxu2 %v4782_v62  ;;  %v1179_v49 = vadd.f32 0.5, %v15565_v10  ;;  %v15568_v20 = vld [vmem:[#allocation213_spill] sm:$0xff] }
 0x2c3   : > { %v4789_v8 = vsub.f32 %v11746_v21, %v15566_v12  ;;  %v3878_v28 = vadd.f32 %v15568_v20, %v3696_v57  ;;  %15569 = vst [vmem:[#allocation262_spill] sm:$0xff] %v11791_v18  ;;  %v1999_v12 = vmul.f32 %v1935_v61, %v11627_v43  ;;  %v1495_v55 = vmul.f32 -2.5052108e-08, %v11773_v5  ;;  %v15570_v39 = vld [vmem:[#allocation200_spill] sm:$0xff] }
 0x2c4   : > { %v4649_v24 = vadd.f32 %v4648_v53, %v4476_v11  ;;  %5056 = vmatmul.f32.gmra.mxu3 %v11690_v38  ;;  %v11784_v53 = vsub.f32 %v3079_v31, %v11764_v60  ;;  %v1873_v11 = vmul.f32 %v1809_v3, %v11659_v47  ;;  %v1747_v62 = vmul.f32 %v1683_v48, %v11697_v14  ;;  %v15573_v61 = vld [vmem:[#allocation212_spill] sm:$0xff] }
 0x2c5   : > { %v1621_v23 = vmul.f32 %v1557_v15, %v11733_v2  ;;  %v11798_v57 = vmul.f32 -3.1415927, %v1305_v42  ;;  %v1243_v59 = vfloor.f32 %v1179_v49  ;;  %v4790_v3 = vand.u32 4294901760, %v4789_v8 }
 0x2c6   : > { %v11777_v16 = vadd.f32 %v4989_v26, %v4649_v24  ;;  %15567 = vst [vmem:[#allocation197_spill] sm:$0xff] %v11784_v53  ;;  %v4656_v26 = vpop.f32.mrf.mxu2  ;;  %v4483_v31 = vpop.f32.mrf.mxu1  ;;  %v11803_v46 = vand.u32 4294901760, %v3081_v34  ;;  %v2957_v42 = vmul.f32 %v11791_v18, %v11791_v18  ;;  %v1937_v49 = vadd.f32 -0.16666667, %v1873_v11  ;;  %v15583_v18 = vld [vmem:[#allocation221_spill] sm:$0xff] }
 0x2c7   : > { %v4318_v58 = vpop.f32.mrf.mxu0  ;;  %v4993_v20 = vpop.f32.mrf.mxu3  ;;  %v1811_v21 = vadd.f32 0.008333334, %v1747_v62  ;;  %v11812_v8 = vmul.f32 %v11798_v57, %v11798_v57  ;;  %v1307_v48 = vsub.f32 %v15565_v10, %v1243_v59  ;;  %v15576_v11 = vand.u32 4294901760, %v11784_v53 }
 0x2c8   : > { %v4319_v24 = vadd.f32 %v4318_v58, %v4070_v35  ;;  %v15571_v35 = vld [vmem:[#allocation216_spill] sm:$0xff]  ;;  %v15572_v58 = vld [vmem:[#allocation218_spill] sm:$0xff] }
 0x2c9   : > { %4546 = vmatmul.f32.gmra.mxu1 %v15570_v39  ;;  %v4076_v15 = vadd.f32 %v15571_v35, %v3878_v28  ;;  %v3700_v43 = vadd.f32 %v15573_v61, %v15572_v58  ;;  %15574 = vst [vmem:[#allocation204_spill] sm:$0xff] %v11812_v8  ;;  %v3083_v28 = vsub.f32 1.0, %v11788_v19  ;;  %v2063_v35 = vadd.f32 1.0, %v1999_v12 }
 0x2ca   : > { %v4480_v54 = vadd.f32 %v4479_v9, %v4319_v24  ;;  %4381 = vmatmul.f32.gmra.mxu0 %v15560_v33  ;;  %v1685_v9 = vadd.f32 -0.0001984127, %v1621_v23  ;;  %4791 = vmatmul.f32.gmra.mxu2 %v4790_v3  ;;  %v1559_v33 = vadd.f32 2.7557319e-06, %v1495_v55  ;;  %v4797_v62 = vsub.f32 %v11784_v53, %v15576_v11  ;;  %v15578_v23 = vld [vmem:[#allocation220_spill] sm:$0xff] }
 0x2cb   : > { %v3883_v55 = vadd.f32 %v15578_v23, %v3700_v43  ;;  %v2001_v19 = vmul.f32 %v1937_v49, %v11659_v47  ;;  %v1875_v12 = vmul.f32 %v1811_v21, %v11697_v14  ;;  %v11835_v43 = vand.u32 4294901760, %v3083_v28  ;;  %v15580_v21 = vld [vmem:[#allocation207_spill] sm:$0xff] }
 0x2cc   : > { %v4657_v24 = vadd.f32 %v4656_v26, %v4480_v54  ;;  %5060 = vmatmul.f32.gmra.mxu3 %v11726_v13  ;;  %v11823_v26 = vsub.f32 %v3081_v34, %v11803_v46  ;;  %v11826_v54 = vadd.f32 %v2957_v42, %v2957_v42  ;;  %v1749_v59 = vmul.f32 %v1685_v9, %v11733_v2  ;;  %v15581_v9 = vld [vmem:[#allocation222_spill] sm:$0xff] }
 0x2cd   : > { %v1623_v61 = vmul.f32 %v1559_v33, %v11773_v5  ;;  %v11833_v34 = vmul.f32 -3.1415927, %v1307_v48  ;;  %v11838_v42 = vmul.f32 %v2063_v35, %v11609_v25  ;;  %v4798_v49 = vand.u32 4294901760, %v4797_v62 }
 0x2ce   : > { %v11816_v38 = vadd.f32 %v4993_v20, %v4657_v24  ;;  %15577 = vst [vmem:[#allocation206_spill] sm:$0xff] %v11823_v26  ;;  %v4664_v10 = vpop.f32.mrf.mxu2  ;;  %v4487_v58 = vpop.f32.mrf.mxu1  ;;  %v1497_v24 = vmul.f32 -2.5052108e-08, %v11812_v8  ;;  %v4082_v33 = vadd.f32 %v15581_v9, %v3883_v55  ;;  %v2065_v47 = vadd.f32 1.0, %v2001_v19  ;;  %v15585_v19 = vld [vmem:[#allocation226_spill] sm:$0xff] }
 0x2cf   : > { %v4322_v3 = vpop.f32.mrf.mxu0  ;;  %v4997_v11 = vpop.f32.mrf.mxu3  ;;  %15579 = vst [vmem:[#allocation211_spill] sm:$0xff] %v11838_v42  ;;  %v1939_v53 = vadd.f32 -0.16666667, %v1875_v12  ;;  %v1813_v13 = vadd.f32 0.008333334, %v1749_v59  ;;  %v3085_v55 = vsub.f32 1.0, %v11826_v54 }
 0x2d0   : > { %15575 = vst [vmem:[#allocation182_spill] sm:$0xff] %v11816_v38  ;;  %v4323_v20 = vadd.f32 %v4322_v3, %v4076_v15  ;;  %v14790_v15 = vand.u32 4294901760, %v11823_v26  ;;  %v15582_v3 = vld [vmem:[#allocation225_spill] sm:$0xff]  ;;  %v1687_v25 = vadd.f32 -0.0001984127, %v1623_v61 }
 0x2d1   : > { %4550 = vmatmul.f32.gmra.mxu1 %v15580_v21  ;;  %v3704_v48 = vadd.f32 %v15583_v18, %v15582_v3  ;;  %v1561_v35 = vadd.f32 2.7557319e-06, %v1497_v24  ;;  %v1877_v61 = vmul.f32 %v1813_v13, %v11733_v2 }
 0x2d2   : > { %v4484_v23 = vadd.f32 %v4483_v31, %v4323_v20  ;;  %4385 = vmatmul.f32.gmra.mxu0 %v15570_v39  ;;  %4799 = vmatmul.f32.gmra.mxu2 %v4798_v49  ;;  %v11848_v31 = vmul.f32 %v11833_v34, %v11833_v34  ;;  %v11851_v39 = vsub.f32 %v3083_v28, %v11835_v43 }
 0x2d3   : > { %v4805_v18 = vsub.f32 %v11823_v26, %v14790_v15  ;;  %v3888_v12 = vadd.f32 %v15585_v19, %v3704_v48  ;;  %v11864_v28 = vmul.f32 %v2065_v47, %v11642_v29  ;;  %v1625_v54 = vmul.f32 %v1561_v35, %v11812_v8  ;;  %v15587_v47 = vld [vmem:[#allocation31_spill] sm:$0xff] }
 0x2d4   : > { %v4665_v38 = vadd.f32 %v4664_v10, %v4484_v23  ;;  %15584 = vst [vmem:[#allocation205_spill] sm:$0xff] %v11848_v31  ;;  %5064 = vmatmul.f32.gmra.mxu3 %v11764_v60  ;;  %v2959_v10 = vmul.f32 %v11838_v42, %v11838_v42  ;;  %v1751_v23 = vmul.f32 %v1687_v25, %v11773_v5  ;;  %v1499_v49 = vmul.f32 -2.5052108e-08, %v11848_v31  ;;  %v15590_v25 = vld [vmem:[#allocation228_spill] sm:$0xff] }
 0x2d5   : > { %15586 = vst [vmem:[#allocation276_spill] sm:$0xff] %v11864_v28  ;;  %v4806_v29 = vand.u32 4294901760, %v4805_v18  ;;  %v1941_v42 = vadd.f32 -0.16666667, %v1877_v61  ;;  %v1689_v3 = vadd.f32 -0.0001984127, %v1625_v54 }
 0x2d6   : > { %v11853_v62 = vadd.f32 %v4997_v11, %v4665_v38  ;;  %v4672_v20 = vpop.f32.mrf.mxu2  ;;  %v2003_v38 = vmul.f32 %v1939_v53, %v11697_v14  ;;  %v4491_v11 = vpop.f32.mrf.mxu1  ;;  %v11874_v53 = vand.u32 4294901760, %v3085_v55  ;;  %v3023_v13 = vadd.f32 %v2959_v10, %v2959_v10 }
 0x2d7   : > { %v4326_v59 = vpop.f32.mrf.mxu0  ;;  %v5001_v9 = vpop.f32.mrf.mxu3  ;;  %v1815_v26 = vadd.f32 0.008333334, %v1751_v23  ;;  %v15592_v23 = vld [vmem:[#allocation238_spill] sm:$0xff] }
 0x2d8   : > { %v4327_v24 = vadd.f32 %v4326_v59, %v4082_v33  ;;  %v15588_v33 = vld [vmem:[#allocation229_spill] sm:$0xff]  ;;  %v2067_v35 = vadd.f32 1.0, %v2003_v38  ;;  %v11886_v10 = vsub.f32 %v3085_v55, %v11874_v53  ;;  %v2961_v38 = vmul.f32 %v11864_v28, %v11864_v28 }
 0x2d9   : > { %4554 = vmatmul.f32.gmra.mxu1 %v15587_v47  ;;  %v4088_v19 = vadd.f32 %v15588_v33, %v3888_v12  ;;  %v15589_v59 = vld [vmem:[#allocation237_spill] sm:$0xff]  ;;  %v3087_v12 = vsub.f32 1.0, %v3023_v13  ;;  %v1753_v55 = vmul.f32 %v1689_v3, %v11812_v8 }
 0x2da   : > { %v4488_v48 = vadd.f32 %v4487_v58, %v4327_v24  ;;  %4389 = vmatmul.f32.gmra.mxu0 %v15580_v21  ;;  %v3708_v15 = vadd.f32 %v15590_v25, %v15589_v59  ;;  %4807 = vmatmul.f32.gmra.mxu2 %v4806_v29  ;;  %v1563_v58 = vadd.f32 2.7557319e-06, %v1499_v49  ;;  %v15591_v21 = vand.u32 4294901760, %v11851_v39 }
 0x2db   : > { %v11892_v49 = vmul.f32 %v2067_v35, %v11680_v41  ;;  %v1879_v29 = vmul.f32 %v1815_v26, %v11773_v5  ;;  %v14797_v41 = vand.u32 4294901760, %v11886_v10  ;;  %v15596_v35 = vld [vmem:[#allocation239_spill] sm:$0xff] }
 0x2dc   : > { %v4673_v14 = vadd.f32 %v4672_v20, %v4488_v48  ;;  %v4813_v24 = vsub.f32 %v11851_v39, %v15591_v21  ;;  %5068 = vmatmul.f32.gmra.mxu3 %v11803_v46  ;;  %v3893_v54 = vadd.f32 %v15592_v23, %v3708_v15  ;;  %v2005_v48 = vmul.f32 %v1941_v42, %v11733_v2  ;;  %v15594_v21 = vld [vmem:[#allocation234_spill] sm:$0xff] }
 0x2dd   : > { %15593 = vst [vmem:[#allocation213_spill] sm:$0xff] %v11892_v49  ;;  %v1627_v13 = vmul.f32 %v1563_v58, %v11848_v31  ;;  %v11901_v15 = vand.u32 4294901760, %v3087_v12  ;;  %v3025_v42 = vadd.f32 %v2961_v38, %v2961_v38  ;;  %v2963_v26 = vmul.f32 %v11892_v49, %v11892_v49 }
 0x2de   : > { %v11882_v18 = vadd.f32 %v5001_v9, %v4673_v14  ;;  %v4680_v61 = vpop.f32.mrf.mxu2  ;;  %v4495_v9 = vpop.f32.mrf.mxu1  ;;  %v4814_v59 = vand.u32 4294901760, %v4813_v24  ;;  %v2069_v3 = vadd.f32 1.0, %v2005_v48  ;;  %v15597_v24 = vld [vmem:[#allocation240_spill] sm:$0xff]  ;;  %v1943_v23 = vadd.f32 -0.16666667, %v1879_v29 }
 0x2df   : > { %v4330_v20 = vpop.f32.mrf.mxu0  ;;  %v5005_v33 = vpop.f32.mrf.mxu3  ;;  %v4821_v38 = vsub.f32 %v11886_v10, %v14797_v41 }
 0x2e0   : > { %v4331_v14 = vadd.f32 %v4330_v20, %v4088_v19  ;;  %v15595_v19 = vld [vmem:[#allocation41_spill] sm:$0xff] }
 0x2e1   : > { %4558 = vmatmul.f32.gmra.mxu1 %v15594_v21  ;;  %v3712_v20 = vadd.f32 %v15596_v35, %v15595_v19  ;;  %v11915_v19 = vsub.f32 %v3087_v12, %v11901_v15  ;;  %v3089_v35 = vsub.f32 1.0, %v3025_v42  ;;  %v15600_v42 = vld [vmem:[#allocation243_spill] sm:$0xff]  ;;  %v4822_v49 = vand.u32 4294901760, %v4821_v38 }
 0x2e2   : > { %v4492_v25 = vadd.f32 %v4491_v11, %v4331_v14  ;;  %4393 = vmatmul.f32.gmra.mxu0 %v15587_v47  ;;  %4815 = vmatmul.f32.gmra.mxu2 %v4814_v59  ;;  %v4094_v11 = vadd.f32 %v15597_v24, %v3893_v54  ;;  %v1817_v47 = vadd.f32 0.008333334, %v1753_v55  ;;  %v1691_v14 = vadd.f32 -0.0001984127, %v1627_v13  ;;  %v15598_v59 = vld [vmem:[#allocation242_spill] sm:$0xff] }
 0x2e3   : > { %v3027_v54 = vadd.f32 %v2963_v26, %v2963_v26  ;;  %v11919_v13 = vmul.f32 %v2069_v3, %v11717_v51  ;;  %v11927_v26 = vand.u32 4294901760, %v3089_v35  ;;  %v15602_v3 = vld [vmem:[#allocation252_spill] sm:$0xff] }
 0x2e4   : > { %v4681_v58 = vadd.f32 %v4680_v61, %v4492_v25  ;;  %5072 = vmatmul.f32.gmra.mxu3 %v11835_v43  ;;  %v3898_v25 = vadd.f32 %v15598_v59, %v3712_v20  ;;  %v1755_v24 = vmul.f32 %v1691_v14, %v11848_v31  ;;  %v14800_v20 = vand.u32 4294901760, %v11915_v19 }
 0x2e5   : > { %15599 = vst [vmem:[#allocation200_spill] sm:$0xff] %v11919_v13 }
 0x2e6   : > { %v11908_v28 = vadd.f32 %v5005_v33, %v4681_v58  ;;  %v4688_v61 = vpop.f32.mrf.mxu2  ;;  %v4499_v55 = vpop.f32.mrf.mxu1  ;;  %v2007_v33 = vmul.f32 %v1943_v23, %v11773_v5  ;;  %v1881_v58 = vmul.f32 %v1817_v47, %v11812_v8  ;;  %v2965_v47 = vmul.f32 %v11919_v13, %v11919_v13 }
 0x2e7   : > { %v4334_v48 = vpop.f32.mrf.mxu0  ;;  %v5009_v41 = vpop.f32.mrf.mxu3  ;;  %v4829_v38 = vsub.f32 %v11915_v19, %v14800_v20 }
 0x2e8   : > { %v4335_v29 = vadd.f32 %v4334_v48, %v4094_v11  ;;  %v15601_v11 = vld [vmem:[#allocation245_spill] sm:$0xff]  ;;  %v15603_v48 = vld [vmem:[#allocation247_spill] sm:$0xff]  ;;  %v1945_v14 = vadd.f32 -0.16666667, %v1881_v58  ;;  %v3029_v58 = vadd.f32 %v2965_v47, %v2965_v47 }
 0x2e9   : > { %4562 = vmatmul.f32.gmra.mxu1 %v15600_v42  ;;  %v4100_v51 = vadd.f32 %v15601_v11, %v3898_v25  ;;  %v3716_v23 = vadd.f32 %v15603_v48, %v15602_v3  ;;  %v11941_v25 = vsub.f32 %v3089_v35, %v11927_v26  ;;  %v3091_v11 = vsub.f32 1.0, %v3027_v54  ;;  %v15606_v35 = vld [vmem:[#allocation263_spill] sm:$0xff] }
 0x2ea   : > { %v4496_v12 = vadd.f32 %v4495_v9, %v4335_v29  ;;  %4397 = vmatmul.f32.gmra.mxu0 %v15594_v21  ;;  %4823 = vmatmul.f32.gmra.mxu2 %v4822_v49  ;;  %v2071_v9 = vadd.f32 1.0, %v2007_v33  ;;  %v1819_v21 = vadd.f32 0.008333334, %v1755_v24  ;;  %v2009_v24 = vmul.f32 %v1945_v14, %v11812_v8 }
 0x2eb   : > { %v4830_v54 = vand.u32 4294901760, %v4829_v38  ;;  %v14804_v5 = vand.u32 4294901760, %v11941_v25 }
 0x2ec   : > { %v4689_v59 = vadd.f32 %v4688_v61, %v4496_v12  ;;  %5076 = vmatmul.f32.gmra.mxu3 %v11874_v53  ;;  %v15604_v12 = vld [vmem:[#allocation254_spill] sm:$0xff] }
 0x2ed   : > { %v3903_v3 = vadd.f32 %v15604_v12, %v3716_v23  ;;  %v11952_v23 = vand.u32 4294901760, %v3091_v11  ;;  %v3093_v12 = vsub.f32 1.0, %v3029_v58  ;;  %v4837_v38 = vsub.f32 %v11941_v25, %v14804_v5 }
 0x2ee   : > { %v11934_v29 = vadd.f32 %v5009_v41, %v4689_v59  ;;  %v4696_v49 = vpop.f32.mrf.mxu2  ;;  %v4503_v33 = vpop.f32.mrf.mxu1  ;;  %v11945_v41 = vmul.f32 %v2071_v9, %v11759_v0  ;;  %v1883_v59 = vmul.f32 %v1819_v21, %v11848_v31  ;;  %v15609_v0 = vld [vmem:[#allocation259_spill] sm:$0xff] }
 0x2ef   : > { %v4338_v61 = vpop.f32.mrf.mxu0  ;;  %v5013_v13 = vpop.f32.mrf.mxu3  ;;  %15607 = vst [vmem:[#allocation218_spill] sm:$0xff] %v11952_v23  ;;  %v15610_v9 = vld [vmem:[#allocation255_spill] sm:$0xff]  ;;  %v4838_v5 = vand.u32 4294901760, %v4837_v38 }
 0x2f0   : > { %v4339_v48 = vadd.f32 %v4338_v61, %v4100_v51  ;;  %15605 = vst [vmem:[#allocation216_spill] sm:$0xff] %v11945_v41  ;;  %v15608_v51 = vld [vmem:[#allocation256_spill] sm:$0xff]  ;;  %v3720_v14 = vadd.f32 %v15610_v9, %v15609_v0  ;;  %v2967_v21 = vmul.f32 %v11945_v41, %v11945_v41 }
 0x2f1   : > { %4566 = vmatmul.f32.gmra.mxu1 %v15606_v35  ;;  %v4106_v47 = vadd.f32 %v15608_v51, %v3903_v3  ;;  %v15611_v0 = vld [vmem:[#allocation260_spill] sm:$0xff] }
 0x2f2   : > { %v4500_v20 = vadd.f32 %v4499_v55, %v4339_v48  ;;  %4401 = vmatmul.f32.gmra.mxu0 %v15600_v42  ;;  %4831 = vmatmul.f32.gmra.mxu2 %v4830_v54  ;;  %v1947_v55 = vadd.f32 -0.16666667, %v1883_v59  ;;  %v2073_v42 = vadd.f32 1.0, %v2009_v24  ;;  %v3908_v9 = vadd.f32 %v15611_v0, %v3720_v14  ;;  %v15614_v14 = vld [vmem:[#allocation49_spill] sm:$0xff]  ;;  %v15615_v0 = vld [vmem:[#allocation267_spill] sm:$0xff] }
 0x2f3   : > { %v3031_v59 = vadd.f32 %v2967_v21, %v2967_v21  ;;  %v11970_v24 = vand.u32 4294901760, %v3093_v12 }
 0x2f4   : > { %v4697_v61 = vadd.f32 %v4696_v49, %v4500_v20  ;;  %5080 = vmatmul.f32.gmra.mxu3 %v11901_v15  ;;  %v11966_v20 = vsub.f32 %v3091_v11, %v11952_v23  ;;  %v2011_v58 = vmul.f32 %v1947_v55, %v11848_v31  ;;  %v15613_v11 = vld [vmem:[#allocation268_spill] sm:$0xff]  ;;  %v4112_v21 = vadd.f32 %v15614_v14, %v3908_v9  ;;  %v15620_v14 = vld [vmem:[#allocation283_spill] sm:$0xff] }
 0x2f5   : > { %v15616_v55 = vld [vmem:[#allocation264_spill] sm:$0xff]  ;;  %v11982_v2 = vsub.f32 %v3093_v12, %v11970_v24 }
 0x2f6   : > { %v11959_v48 = vadd.f32 %v5013_v13, %v4697_v61  ;;  %v4704_v3 = vpop.f32.mrf.mxu2  ;;  %v4507_v51 = vpop.f32.mrf.mxu1  ;;  %v11973_v61 = vmul.f32 %v2073_v42, %v11798_v57  ;;  %v3724_v31 = vadd.f32 %v15616_v55, %v15615_v0  ;;  %v2075_v8 = vadd.f32 1.0, %v2011_v58 }
 0x2f7   : > { %v4342_v49 = vpop.f32.mrf.mxu0  ;;  %v5017_v13 = vpop.f32.mrf.mxu3  ;;  %15617 = vst [vmem:[#allocation220_spill] sm:$0xff] %v11982_v2 }
 0x2f8   : > { %v4343_v54 = vadd.f32 %v4342_v49, %v4106_v47  ;;  %15612 = vst [vmem:[#allocation212_spill] sm:$0xff] %v11973_v61  ;;  %v14811_v47 = vand.u32 4294901760, %v11966_v20  ;;  %v11994_v12 = vmul.f32 %v2075_v8, %v11833_v34 }
 0x2f9   : > { %4570 = vmatmul.f32.gmra.mxu1 %v15613_v11 }
 0x2fa   : > { %v4504_v41 = vadd.f32 %v4503_v33, %v4343_v54  ;;  %4405 = vmatmul.f32.gmra.mxu0 %v15606_v35  ;;  %4839 = vmatmul.f32.gmra.mxu2 %v4838_v5  ;;  %v4845_v33 = vsub.f32 %v11966_v20, %v14811_v47  ;;  %v3095_v35 = vsub.f32 1.0, %v3031_v59  ;;  %v2969_v5 = vmul.f32 %v11973_v61, %v11973_v61  ;;  %v15618_v54 = vld [vmem:[#allocation270_spill] sm:$0xff] }
 0x2fb   : > { %v3913_v9 = vadd.f32 %v15618_v54, %v3724_v31  ;;  %15619 = vst [vmem:[#allocation207_spill] sm:$0xff] %v11994_v12  ;;  %v15622_v31 = vld [vmem:[#allocation279_spill] sm:$0xff]  ;;  %v15623_v54 = vld [vmem:[#allocation274_spill] sm:$0xff] }
 0x2fc   : > { %v4705_v49 = vadd.f32 %v4704_v3, %v4504_v41  ;;  %5084 = vmatmul.f32.gmra.mxu3 %v11927_v26  ;;  %v4846_v59 = vand.u32 4294901760, %v4845_v33  ;;  %v11999_v0 = vand.u32 4294901760, %v3095_v35  ;;  %v3033_v55 = vadd.f32 %v2969_v5, %v2969_v5 }
 0x2fd   : > { %v3728_v8 = vadd.f32 %v15623_v54, %v15622_v31 }
 0x2fe   : > { %v11984_v57 = vadd.f32 %v5017_v13, %v4705_v49  ;;  %v4712_v42 = vpop.f32.mrf.mxu2  ;;  %v4511_v3 = vpop.f32.mrf.mxu1  ;;  %v14812_v13 = vand.u32 4294901760, %v11982_v2  ;;  %v12013_v33 = vsub.f32 %v3095_v35, %v11999_v0  ;;  %v3097_v5 = vsub.f32 1.0, %v3033_v55  ;;  %v15627_v55 = vld [vmem:[#allocation282_spill] sm:$0xff] }
 0x2ff   : > { %v4346_v41 = vpop.f32.mrf.mxu0  ;;  %v5021_v58 = vpop.f32.mrf.mxu3 }
 0x300   : > { %v4347_v38 = vadd.f32 %v4346_v41, %v4112_v21  ;;  %v15621_v21 = vld [vmem:[#allocation272_spill] sm:$0xff]  ;;  %v4853_v34 = vsub.f32 %v11982_v2, %v14812_v13  ;;  %15624 = vst [vmem:[#allocation222_spill] sm:$0xff] %v12013_v33 }
 0x301   : > { %4574 = vmatmul.f32.gmra.mxu1 %v15620_v14  ;;  %v4118_v41 = vadd.f32 %v15621_v21, %v3913_v9 }
 0x302   : > { %v4508_v49 = vadd.f32 %v4507_v51, %v4347_v38  ;;  %4409 = vmatmul.f32.gmra.mxu0 %v15613_v11  ;;  %4847 = vmatmul.f32.gmra.mxu2 %v4846_v59  ;;  %v2971_v51 = vmul.f32 %v11994_v12, %v11994_v12  ;;  %v15625_v59 = vld [vmem:[#allocation280_spill] sm:$0xff]  ;;  %v4854_v54 = vand.u32 4294901760, %v4853_v34  ;;  %v15626_v12 = vld [vmem:[#allocation294_spill] sm:$0xff] }
 0x303   : > { %v3918_v21 = vadd.f32 %v15625_v59, %v3728_v8  ;;  %v15630_v59 = vld [vmem:[#allocation289_spill] sm:$0xff] }
 0x304   : > { %v4713_v47 = vadd.f32 %v4712_v42, %v4508_v49  ;;  %5088 = vmatmul.f32.gmra.mxu3 %v11952_v23  ;;  %v3035_v35 = vadd.f32 %v2971_v51, %v2971_v51 }
 0x305   : > { %v4124_v2 = vadd.f32 %v15627_v55, %v3918_v21 }
 0x306   : > { %v12009_v11 = vadd.f32 %v5021_v58, %v4713_v47  ;;  %v4720_v38 = vpop.f32.mrf.mxu2  ;;  %v4515_v49 = vpop.f32.mrf.mxu1  ;;  %v14819_v47 = vand.u32 4294901760, %v12013_v33  ;;  %v12019_v58 = vand.u32 4294901760, %v3097_v5  ;;  %v3099_v34 = vsub.f32 1.0, %v3035_v35  ;;  %v15631_v35 = vld [vmem:[#allocation291_spill] sm:$0xff] }
 0x307   : > { %v4350_v42 = vpop.f32.mrf.mxu0  ;;  %v5025_v31 = vpop.f32.mrf.mxu3 }
 0x308   : > { %v4351_v9 = vadd.f32 %v4350_v42, %v4118_v41  ;;  %v15628_v41 = vld [vmem:[#allocation287_spill] sm:$0xff]  ;;  %v15629_v42 = vld [vmem:[#allocation281_spill] sm:$0xff] }
 0x309   : > { %4578 = vmatmul.f32.gmra.mxu1 %v15626_v12  ;;  %v3732_v23 = vadd.f32 %v15629_v42, %v15628_v41  ;;  %v12037_v41 = vand.u32 4294901760, %v3099_v34 }
 0x30a   : > { %v4512_v13 = vadd.f32 %v4511_v3, %v4351_v9  ;;  %4413 = vmatmul.f32.gmra.mxu0 %v15620_v14  ;;  %4855 = vmatmul.f32.gmra.mxu2 %v4854_v54  ;;  %v4861_v3 = vsub.f32 %v12013_v33, %v14819_v47  ;;  %v12031_v14 = vsub.f32 %v3097_v5, %v12019_v58  ;;  %v15632_v47 = vld [vmem:[#allocation300_spill] sm:$0xff] }
 0x30b   : > { %v3923_v21 = vadd.f32 %v15630_v59, %v3732_v23 }
 0x30c   : > { %v4721_v61 = vadd.f32 %v4720_v38, %v4512_v13  ;;  %5092 = vmatmul.f32.gmra.mxu3 %v11970_v24 }
 0x30d   : > { %v4130_v42 = vadd.f32 %v15631_v35, %v3923_v21  ;;  %v15634_v21 = vld [vmem:[#allocation301_spill] sm:$0xff]  ;;  %v15635_v35 = vld [vmem:[#allocation302_spill] sm:$0xff] }
 0x30e   : > { %v12024_v8 = vadd.f32 %v5025_v31, %v4721_v61  ;;  %v4728_v13 = vpop.f32.mrf.mxu2  ;;  %v4519_v9 = vpop.f32.mrf.mxu1  ;;  %v4862_v61 = vand.u32 4294901760, %v4861_v3  ;;  %v14823_v31 = vand.u32 4294901760, %v12031_v14 }
 0x30f   : > { %v4354_v51 = vpop.f32.mrf.mxu0  ;;  %v5029_v54 = vpop.f32.mrf.mxu3 }
 0x310   : > { %v4355_v38 = vadd.f32 %v4354_v51, %v4124_v2  ;;  %v15633_v2 = vld [vmem:[#allocation293_spill] sm:$0xff]  ;;  %v4869_v23 = vsub.f32 %v12031_v14, %v14823_v31 }
 0x311   : > { %4582 = vmatmul.f32.gmra.mxu1 %v10800_v32  ;;  %v3736_v51 = vadd.f32 %v15633_v2, %v15632_v47  ;;  %v3740_v2 = vadd.f32 %v15635_v35, %v10859_v30 }
 0x312   : > { %v4516_v55 = vadd.f32 %v4515_v49, %v4355_v38  ;;  %4417 = vmatmul.f32.gmra.mxu0 %v15626_v12  ;;  %4863 = vmatmul.f32.gmra.mxu2 %v4862_v61  ;;  %v12049_v12 = vsub.f32 %v3099_v34, %v12037_v41  ;;  %v4870_v47 = vand.u32 4294901760, %v4869_v23 }
 0x314   : > { %v4729_v5 = vadd.f32 %v4728_v13, %v4516_v55  ;;  %5096 = vmatmul.f32.gmra.mxu3 %v11999_v0  ;;  %v3928_v55 = vadd.f32 %v15634_v21, %v3736_v51 }
 0x316   : > { %v12042_v33 = vadd.f32 %v5029_v54, %v4729_v5  ;;  %v4736_v3 = vpop.f32.mrf.mxu2  ;;  %v4523_v38 = vpop.f32.mrf.mxu1  ;;  %v14822_v54 = vand.u32 4294901760, %v12049_v12  ;;  %v4136_v34 = vadd.f32 %v10827_v1, %v3928_v55  ;;  %v3744_v55 = vadd.f32 %v10886_v6, %v10913_v37 }
 0x317   : > { %v4358_v49 = vpop.f32.mrf.mxu0  ;;  %v5033_v59 = vpop.f32.mrf.mxu3  ;;  %v3748_v37 = vadd.f32 %v10942_v52, %v10973_v7  ;;  %v15642_v52 = vld [vmem:[#allocation318_spill] sm:$0xff] }
 0x318   : > { %v4359_v13 = vadd.f32 %v4358_v49, %v4130_v42 }
 0x319   : > { %4586 = vmatmul.f32.gmra.mxu1 %v10844_v17  ;;  %v3943_v7 = vadd.f32 %v15642_v52, %v3748_v37 }
 0x31a   : > { %v4520_v61 = vadd.f32 %v4519_v9, %v4359_v13  ;;  %4421 = vmatmul.f32.gmra.mxu0 %v10800_v32  ;;  %4871 = vmatmul.f32.gmra.mxu2 %v4870_v47  ;;  %v4877_v32 = vsub.f32 %v12049_v12, %v14822_v54  ;;  %v15704_v54 = vld [vmem:[#allocation5_spill] sm:$0xff] }
 0x31c   : > { %v4737_v5 = vadd.f32 %v4736_v3, %v4520_v61  ;;  %5100 = vmatmul.f32.gmra.mxu3 %v12019_v58  ;;  %v3933_v3 = vadd.f32 %v10868_v36, %v3740_v2  ;;  %v4878_v1 = vand.u32 4294901760, %v4877_v32  ;;  %v15636_v2 = vand.u32 4294901760, %v10918_v27 }
 0x31e   : > { %v12058_v42 = vadd.f32 %v5033_v59, %v4737_v5  ;;  %v4744_v51 = vpop.f32.mrf.mxu2  ;;  %v4527_v49 = vpop.f32.mrf.mxu1  ;;  %v4142_v59 = vadd.f32 %v10878_v63, %v3933_v3 }
 0x31f   : > { %v4362_v9 = vpop.f32.mrf.mxu0  ;;  %v5037_v13 = vpop.f32.mrf.mxu3 }
 0x320   : > { %v4363_v23 = vadd.f32 %v4362_v9, %v4136_v34  ;;  %v15637_v9 = vld [vmem:[#allocation103_spill] sm:$0xff] }
 0x321   : > { %4590 = vmatmul.f32.gmra.mxu1 %v10931_v22 }
 0x322   : > { %v4524_v21 = vadd.f32 %v4523_v38, %v4363_v23  ;;  %4425 = vmatmul.f32.gmra.mxu0 %v10844_v17  ;;  %4879 = vmatmul.f32.gmra.mxu2 %v4878_v1  ;;  %v3938_v17 = vadd.f32 %v10926_v4, %v3744_v55  ;;  %v15645_v1 = vld [vmem:[#allocation4_spill] sm:$0xff]  ;;  %v15647_v55 = vld [vmem:[#allocation314_spill] sm:$0xff] }
 0x324   : > { %v4745_v30 = vadd.f32 %v4744_v51, %v4524_v21  ;;  %5104 = vmatmul.f32.gmra.mxu3 %v12037_v41  ;;  %v4148_v6 = vadd.f32 %v10938_v50, %v3938_v17  ;;  %v15641_v50 = vld [vmem:[#allocation117_spill] sm:$0xff]  ;;  %v15652_v17 = vld [vmem:[#allocation15_spill] sm:$0xff] }
 0x326   : > { %v12070_v61 = vadd.f32 %v5037_v13, %v4745_v30  ;;  %v4752_v5 = vpop.f32.mrf.mxu2  ;;  %v4531_v38 = vpop.f32.mrf.mxu1  ;;  %v15640_v13 = vld [vmem:[#allocation113_spill] sm:$0xff]  ;;  %v15646_v30 = vld [vmem:[#allocation124_spill] sm:$0xff] }
 0x327   : > { %v4366_v47 = vpop.f32.mrf.mxu0  ;;  %v5041_v34 = vpop.f32.mrf.mxu3 }
 0x328   : > { %v4367_v36 = vadd.f32 %v4366_v47, %v4142_v59  ;;  %v15648_v47 = vld [vmem:[#allocation11_spill] sm:$0xff] }
 0x329   : > { %5352 = vmatmul.f32.vlgmr.msra.gmra.mxu1 %v15636_v2 }
 0x32a   : > { %v4528_v35 = vadd.f32 %v4527_v49, %v4367_v36  ;;  %4429 = vmatmul.f32.gmra.mxu0 %v10931_v22  ;;  %7135 = vmatpush.msra.mxu1 %v15345_v44  ;;  %v15638_v44 = vld [vmem:[#allocation105_spill] sm:$0xff]  ;;  %v15639_v49 = vld [vmem:[#allocation7_spill] sm:$0xff]  ;;  %v15650_v36 = vld [vmem:[#allocation130_spill] sm:$0xff] }
 0x32b   : > { %5607 = vmatmul.f32.vlgmr.msra.gmra.mxu2 %v10895_v40 }
 0x32c   : > { %v4753_v63 = vadd.f32 %v4752_v5, %v4528_v35  ;;  %7296 = vmatpush.msra.mxu2 %v9727_v45  ;;  %7137 = vmatpush.msra.mxu1 %v15350_v56  ;;  %v15649_v5 = vld [vmem:[#allocation9_spill] sm:$0xff] }
 0x32d   : > { %5768 = vmatmul.f32.vlgmr.msra.gmra.mxu3 %v10895_v40  ;;  %v15643_v40 = vld [vmem:[#allocation316_spill] sm:$0xff] }
 0x32e   : > { %v12084_v4 = vadd.f32 %v5041_v34, %v4753_v63  ;;  %v4760_v32 = vpop.f32.mrf.mxu2  ;;  %7589 = vmatpush.msra.mxu3 %v15637_v9  ;;  %7298 = vmatpush.msra.mxu2 %v15638_v44  ;;  %v4535_v23 = vpop.f32.mrf.mxu1  ;;  %v15644_v21 = vand.u32 4294901760, %v15643_v40  ;;  %v15651_v34 = vld [vmem:[#allocation320_spill] sm:$0xff]  ;;  %v15654_v63 = vld [vmem:[#allocation14_spill] sm:$0xff] }
 0x32f   : > { %v4370_v22 = vpop.f32.mrf.mxu0  ;;  %7139 = vmatpush.msra.mxu1 %v15639_v49  ;;  %v5045_v56 = vpop.f32.mrf.mxu3  ;;  %v15657_v49 = vld [vmem:[#allocation137_spill] sm:$0xff] }
 0x330   : > { %v4371_v51 = vadd.f32 %v4370_v22, %v4148_v6  ;;  %7595 = vmatpush.msra.mxu3 %v15640_v13  ;;  %7300 = vmatpush.msra.mxu2 %v15641_v50  ;;  %v15655_v22 = vld [vmem:[#allocation12_spill] sm:$0xff]  ;;  %v15658_v13 = vld [vmem:[#allocation21_spill] sm:$0xff] }
 0x331   : > { %5358 = vmatmul.f32.gmra.mxu1 %v15644_v21 }
 0x332   : > { %v4532_v3 = vadd.f32 %v4531_v38, %v4371_v51  ;;  %5158 = vmatmul.f32.vlgmr.msra.gmra.mxu0 %v10918_v27  ;;  %7601 = vmatpush.msra.mxu3 %v15646_v30  ;;  %v4154_v38 = vadd.f32 %v15651_v34, %v3943_v7  ;;  %v15653_v27 = vld [vmem:[#allocation319_spill] sm:$0xff]  ;;  %v15659_v7 = vld [vmem:[#allocation16_spill] sm:$0xff] }
 0x333   : > { %6944 = vmatpush.msra.mxu0 %v15645_v1  ;;  %5611 = vmatmul.f32.gmra.mxu2 %v15647_v55  ;;  %v3752_v35 = vadd.f32 %v15653_v27, %v15652_v17  ;;  %v15662_v30 = vld [vmem:[#allocation104_spill] sm:$0xff]  ;;  %v15666_v34 = vld [vmem:[#allocation79_spill] sm:$0xff]  ;;  %v15669_v27 = vld [vmem:[#allocation161_spill] sm:$0xff] }
 0x334   : > { %v4761_v59 = vadd.f32 %v4760_v32, %v4532_v3  ;;  %7141 = vmatpush.msra.mxu1 %v15648_v47  ;;  %7302 = vmatpush.msra.mxu2 %v15650_v36  ;;  %v15656_v32 = vld [vmem:[#allocation134_spill] sm:$0xff]  ;;  %v15665_v47 = vld [vmem:[#allocation149_spill] sm:$0xff]  ;;  %v15668_v17 = vld [vmem:[#allocation24_spill] sm:$0xff] }
 0x335   : > { %6948 = vmatpush.msra.mxu0 %v15649_v5  ;;  %5772 = vmatmul.f32.gmra.mxu3 %v15647_v55  ;;  %v15661_v3 = vld [vmem:[#allocation18_spill] sm:$0xff]  ;;  %v15664_v55 = vld [vmem:[#allocation19_spill] sm:$0xff] }
 0x336   : > { %v12105_v2 = vadd.f32 %v5045_v56, %v4761_v59  ;;  %7143 = vmatpush.msra.mxu1 %v15654_v63  ;;  %v4768_v37 = vpop.f32.mrf.mxu2  ;;  %7607 = vmatpush.msra.mxu3 %v15656_v32  ;;  %v4539_v51 = vpop.f32.mrf.mxu1  ;;  %v15660_v56 = vld [vmem:[#allocation144_spill] sm:$0xff]  ;;  %v3948_v21 = vadd.f32 %v15661_v3, %v3752_v35  ;;  %v15663_v59 = vand.u32 4294901760, %v15662_v30  ;;  %v15670_v35 = vld [vmem:[#allocation322_spill] sm:$0xff]  ;;  %v15671_v63 = vld [vmem:[#allocation3_spill] sm:$0xff] }
 0x337   : > { %v4374_v6 = vpop.f32.mrf.mxu0  ;;  %6952 = vmatpush.msra.mxu0 %v15655_v22  ;;  %7304 = vmatpush.msra.mxu2 %v15657_v49  ;;  %v5049_v52 = vpop.f32.mrf.mxu3  ;;  %v15673_v32 = vld [vmem:[#allocation25_spill] sm:$0xff] }
 0x338   : > { %v4375_v9 = vadd.f32 %v4374_v6, %v4154_v38  ;;  %7145 = vmatpush.msra.mxu1 %v15658_v13  ;;  %7613 = vmatpush.msra.mxu3 %v15660_v56  ;;  %v15667_v38 = vld [vmem:[#allocation154_spill] sm:$0xff]  ;;  %v15674_v13 = vld [vmem:[#allocation29_spill] sm:$0xff] }
 0x339   : > { %6956 = vmatpush.msra.mxu0 %v15659_v7  ;;  %5364 = vmatmul.f32.gmra.mxu1 %v15663_v59  ;;  %v15675_v7 = vld [vmem:[#allocation165_spill] sm:$0xff] }
 0x33a   : > { %v4536_v1 = vadd.f32 %v4535_v23, %v4375_v9  ;;  %5163 = vmatmul.f32.gmra.mxu0 %v15643_v40  ;;  %7306 = vmatpush.msra.mxu2 %v15665_v47  ;;  %v4160_v23 = vadd.f32 %v15670_v35, %v3948_v21  ;;  %v15672_v40 = vld [vmem:[#allocation324_spill] sm:$0xff] }
 0x33b   : > { %6960 = vmatpush.msra.mxu0 %v15664_v55  ;;  %5615 = vmatmul.f32.gmra.mxu2 %v15666_v34  ;;  %v3756_v6 = vadd.f32 %v15672_v40, %v15671_v63  ;;  %v15677_v21 = vld [vmem:[#allocation28_spill] sm:$0xff]  ;;  %v15678_v55 = vld [vmem:[#allocation33_spill] sm:$0xff]  ;;  %v15683_v63 = vld [vmem:[#allocation187_spill] sm:$0xff] }
 0x33c   : > { %v4769_v5 = vadd.f32 %v4768_v37, %v4536_v1  ;;  %7619 = vmatpush.msra.mxu3 %v15667_v38  ;;  %7308 = vmatpush.msra.mxu2 %v15669_v27  ;;  %v15676_v1 = vld [vmem:[#allocation169_spill] sm:$0xff] }
 0x33d   : > { %6964 = vmatpush.msra.mxu0 %v15668_v17  ;;  %5776 = vmatmul.f32.gmra.mxu3 %v15666_v34  ;;  %v15681_v17 = vld [vmem:[#allocation2_spill] sm:$0xff] }
 0x33e   : > { %v12128_v22 = vadd.f32 %v5049_v52, %v4769_v5  ;;  %7147 = vmatpush.msra.mxu1 %v15673_v32  ;;  %v4776_v9 = vpop.f32.mrf.mxu2  ;;  %7625 = vmatpush.msra.mxu3 %v15675_v7  ;;  %v4543_v3 = vpop.f32.mrf.mxu1  ;;  %v15679_v52 = vld [vmem:[#allocation177_spill] sm:$0xff]  ;;  %v15680_v5 = vld [vmem:[#allocation6_spill] sm:$0xff]  ;;  %v15682_v35 = vand.u32 4294901760, %v15681_v17  ;;  %v15685_v32 = vld [vmem:[#allocation84_spill] sm:$0xff] }
 0x33f   : > { %v4378_v37 = vpop.f32.mrf.mxu0  ;;  %6968 = vmatpush.msra.mxu0 %v15674_v13  ;;  %7310 = vmatpush.msra.mxu2 %v15676_v1  ;;  %v5053_v59 = vpop.f32.mrf.mxu3  ;;  %v3953_v34 = vadd.f32 %v15680_v5, %v3756_v6  ;;  %v15687_v13 = vld [vmem:[#allocation32_spill] sm:$0xff]  ;;  %v15688_v7 = vld [vmem:[#allocation202_spill] sm:$0xff] }
 0x340   : > { %v4379_v56 = vadd.f32 %v4378_v37, %v4160_v23  ;;  %7149 = vmatpush.msra.mxu1 %v15677_v21  ;;  %7631 = vmatpush.msra.mxu3 %v15679_v52  ;;  %v15684_v23 = vld [vmem:[#allocation43_spill] sm:$0xff]  ;;  %v15689_v6 = vld [vmem:[#allocation86_spill] sm:$0xff]  ;;  %v15692_v52 = vld [vmem:[#allocation48_spill] sm:$0xff] }
 0x341   : > { %6972 = vmatpush.msra.mxu0 %v15678_v55  ;;  %5370 = vmatmul.f32.gmra.mxu1 %v15682_v35  ;;  %v15686_v37 = vld [vmem:[#allocation195_spill] sm:$0xff]  ;;  %v15694_v35 = vld [vmem:[#allocation36_spill] sm:$0xff] }
 0x342   : > { %v4540_v38 = vadd.f32 %v4539_v51, %v4379_v56  ;;  %5168 = vmatmul.f32.gmra.mxu0 %v15662_v30  ;;  %7312 = vmatpush.msra.mxu2 %v15683_v63  ;;  %v4166_v51 = vadd.f32 %v15689_v6, %v3953_v34  ;;  %v15690_v56 = vld [vmem:[#allocation17_spill] sm:$0xff]  ;;  %v15691_v30 = vld [vmem:[#allocation20_spill] sm:$0xff]  ;;  %v15696_v34 = vld [vmem:[#allocation55_spill] sm:$0xff] }
 0x343   : > { %6976 = vmatpush.msra.mxu0 %v15684_v23  ;;  %5619 = vmatmul.f32.gmra.mxu2 %v15685_v32  ;;  %v3760_v21 = vadd.f32 %v15691_v30, %v15690_v56  ;;  %v15697_v56 = vld [vmem:[#allocation38_spill] sm:$0xff] }
 0x344   : > { %v4777_v40 = vadd.f32 %v4776_v9, %v4540_v38  ;;  %7637 = vmatpush.msra.mxu3 %v15686_v37  ;;  %7151 = vmatpush.msra.mxu1 %v15687_v13  ;;  %v15693_v38 = vld [vmem:[#allocation217_spill] sm:$0xff]  ;;  %v15695_v13 = vld [vmem:[#allocation227_spill] sm:$0xff] }
 0x345   : > { %7314 = vmatpush.msra.mxu2 %v15688_v7  ;;  %5780 = vmatmul.f32.gmra.mxu3 %v15685_v32 }
 0x346   : > { %v12151_v55 = vadd.f32 %v5053_v59, %v4777_v40  ;;  %6980 = vmatpush.msra.mxu0 %v15692_v52  ;;  %v4784_v5 = vpop.f32.mrf.mxu2  ;;  %7643 = vmatpush.msra.mxu3 %v15693_v38  ;;  %v4547_v37 = vpop.f32.mrf.mxu1  ;;  %v15698_v59 = vld [vmem:[#allocation50_spill] sm:$0xff]  ;;  %v15699_v40 = vld [vmem:[#allocation23_spill] sm:$0xff]  ;;  %v15700_v52 = vld [vmem:[#allocation116_spill] sm:$0xff] }
 0x347   : > { %v4382_v9 = vpop.f32.mrf.mxu0  ;;  %7153 = vmatpush.msra.mxu1 %v15694_v35  ;;  %7316 = vmatpush.msra.mxu2 %v15695_v13  ;;  %v5057_v6 = vpop.f32.mrf.mxu3  ;;  %v3958_v32 = vadd.f32 %v15699_v40, %v3760_v21  ;;  %v15701_v38 = vand.u32 4294901760, %v15700_v52  ;;  %v15702_v35 = vld [vmem:[#allocation244_spill] sm:$0xff] }
 0x348   : > { %v4383_v23 = vadd.f32 %v4382_v9, %v4166_v51  ;;  %6984 = vmatpush.msra.mxu0 %v15696_v34  ;;  %7649 = vmatpush.msra.mxu3 %v15697_v56  ;;  %v15703_v51 = vld [vmem:[#allocation61_spill] sm:$0xff]  ;;  %v15705_v34 = vld [vmem:[#allocation251_spill] sm:$0xff]  ;;  %v15706_v56 = vld [vmem:[#allocation54_spill] sm:$0xff] }
 0x349   : > { %7155 = vmatpush.msra.mxu1 %v15698_v59  ;;  %7318 = vmatpush.msra.mxu2 %v15702_v35  ;;  %v15707_v59 = vld [vmem:[#allocation265_spill] sm:$0xff]  ;;  %v15708_v21 = vld [vmem:[#allocation88_spill] sm:$0xff] }
 0x34a   : > { %v4544_v30 = vadd.f32 %v4543_v3, %v4383_v23  ;;  %5173 = vmatmul.f32.gmra.mxu0 %v15681_v17  ;;  %5376 = vmatmul.f32.gmra.mxu1 %v15701_v38  ;;  %v4172_v3 = vadd.f32 %v15708_v21, %v3958_v32  ;;  %v15709_v23 = vld [vmem:[#allocation35_spill] sm:$0xff]  ;;  %v15712_v38 = vld [vmem:[#allocation65_spill] sm:$0xff]  ;;  %v15716_v32 = vld [vmem:[#allocation66_spill] sm:$0xff] }
 0x34b   : > { %6988 = vmatpush.msra.mxu0 %v15703_v51  ;;  %5623 = vmatmul.f32.gmra.mxu2 %v15704_v54  ;;  %v15710_v17 = vld [vmem:[#allocation27_spill] sm:$0xff] }
 0x34c   : > { %v4785_v9 = vadd.f32 %v4784_v5, %v4544_v30  ;;  %7655 = vmatpush.msra.mxu3 %v15705_v34  ;;  %7157 = vmatpush.msra.mxu1 %v15706_v56  ;;  %v3764_v40 = vadd.f32 %v15710_v17, %v15709_v23  ;;  %v15713_v51 = vld [vmem:[#allocation275_spill] sm:$0xff]  ;;  %v15714_v34 = vld [vmem:[#allocation56_spill] sm:$0xff] }
 0x34d   : > { %7320 = vmatpush.msra.mxu2 %v15707_v59  ;;  %5784 = vmatmul.f32.gmra.mxu3 %v15704_v54  ;;  %v15715_v59 = vld [vmem:[#allocation284_spill] sm:$0xff]  ;;  %v15719_v54 = vld [vmem:[#allocation89_spill] sm:$0xff] }
 0x34e   : > { %v12174_v31 = vadd.f32 %v5057_v6, %v4785_v9  ;;  %6992 = vmatpush.msra.mxu0 %v15712_v38  ;;  %v4792_v30 = vpop.f32.mrf.mxu2  ;;  %7661 = vmatpush.msra.mxu3 %v15713_v51  ;;  %v4551_v35 = vpop.f32.mrf.mxu1  ;;  %v15717_v23 = vld [vmem:[#allocation292_spill] sm:$0xff]  ;;  %v15718_v6 = vld [vmem:[#allocation58_spill] sm:$0xff]  ;;  %v3963_v9 = vadd.f32 %v15719_v54, %v3764_v40  ;;  %v15728_v40 = vld [vmem:[#allocation47_spill] sm:$0xff] }
 0x34f   : > { %v4386_v5 = vpop.f32.mrf.mxu0  ;;  %7159 = vmatpush.msra.mxu1 %v15714_v34  ;;  %7322 = vmatpush.msra.mxu2 %v15715_v59  ;;  %v5061_v21 = vpop.f32.mrf.mxu3  ;;  %v15720_v38 = vld [vmem:[#allocation122_spill] sm:$0xff]  ;;  %v15722_v34 = vld [vmem:[#allocation295_spill] sm:$0xff] }
 0x350   : > { %15711 = vst [vmem:[#allocation225_spill] sm:$0xff] %v12174_v31  ;;  %v4387_v56 = vadd.f32 %v4386_v5, %v4172_v3  ;;  %6996 = vmatpush.msra.mxu0 %v15716_v32  ;;  %7667 = vmatpush.msra.mxu3 %v15717_v23  ;;  %v15721_v51 = vand.u32 4294901760, %v15720_v38  ;;  %v15723_v3 = vld [vmem:[#allocation73_spill] sm:$0xff]  ;;  %v15724_v59 = vld [vmem:[#allocation22_spill] sm:$0xff]  ;;  %v15725_v32 = vld [vmem:[#allocation304_spill] sm:$0xff] }
 0x351   : > { %7161 = vmatpush.msra.mxu1 %v15718_v6  ;;  %7324 = vmatpush.msra.mxu2 %v15722_v34  ;;  %v15726_v23 = vld [vmem:[#allocation70_spill] sm:$0xff]  ;;  %v15727_v6 = vld [vmem:[#allocation303_spill] sm:$0xff] }
 0x352   : > { %v4548_v17 = vadd.f32 %v4547_v37, %v4387_v56  ;;  %5178 = vmatmul.f32.gmra.mxu0 %v15700_v52  ;;  %5382 = vmatmul.f32.gmra.mxu1 %v15721_v51  ;;  %v4178_v37 = vadd.f32 %v15728_v40, %v3963_v9  ;;  %v15729_v56 = vld [vmem:[#allocation57_spill] sm:$0xff]  ;;  %v15730_v52 = vld [vmem:[#allocation39_spill] sm:$0xff]  ;;  %v15732_v51 = vld [vmem:[#allocation78_spill] sm:$0xff] }
 0x353   : > { %7000 = vmatpush.msra.mxu0 %v15723_v3  ;;  %5627 = vmatmul.f32.gmra.mxu2 %v15724_v59  ;;  %v3768_v54 = vadd.f32 %v15730_v52, %v15729_v56  ;;  %v15733_v3 = vld [vmem:[#allocation309_spill] sm:$0xff]  ;;  %v15735_v31 = vld [vmem:[#allocation67_spill] sm:$0xff]  ;;  %v15738_v56 = vld [vmem:[#allocation30_spill] sm:$0xff] }
 0x354   : > { %v4793_v5 = vadd.f32 %v4792_v30, %v4548_v17  ;;  %7673 = vmatpush.msra.mxu3 %v15725_v32  ;;  %7163 = vmatpush.msra.mxu1 %v15726_v23  ;;  %v15734_v32 = vld [vmem:[#allocation74_spill] sm:$0xff]  ;;  %v15739_v52 = vld [vmem:[#allocation60_spill] sm:$0xff] }
 0x355   : > { %7326 = vmatpush.msra.mxu2 %v15727_v6  ;;  %5788 = vmatmul.f32.gmra.mxu3 %v15724_v59  ;;  %v3968_v9 = vadd.f32 %v15735_v31, %v3768_v54 }
 0x356   : > { %v12197_v13 = vadd.f32 %v5061_v21, %v4793_v5  ;;  %7004 = vmatpush.msra.mxu0 %v15732_v51  ;;  %v4800_v17 = vpop.f32.mrf.mxu2  ;;  %7679 = vmatpush.msra.mxu3 %v15733_v3  ;;  %v4555_v34 = vpop.f32.mrf.mxu1  ;;  %v15736_v21 = vld [vmem:[#allocation127_spill] sm:$0xff]  ;;  %v15741_v3 = vld [vmem:[#allocation136_spill] sm:$0xff] }
 0x357   : > { %v4390_v30 = vpop.f32.mrf.mxu0  ;;  %7165 = vmatpush.msra.mxu1 %v15734_v32  ;;  %v5065_v6 = vpop.f32.mrf.mxu3  ;;  %v15737_v5 = vand.u32 4294901760, %v15736_v21  ;;  %v4184_v51 = vadd.f32 %v15739_v52, %v3968_v9  ;;  %v15746_v52 = vld [vmem:[#allocation53_spill] sm:$0xff] }
 0x358   : > { %15731 = vst [vmem:[#allocation221_spill] sm:$0xff] %v12197_v13  ;;  %v4391_v23 = vadd.f32 %v4390_v30, %v4178_v37  ;;  %v15740_v13 = vld [vmem:[#allocation71_spill] sm:$0xff]  ;;  %v15743_v30 = vld [vmem:[#allocation77_spill] sm:$0xff] }
 0x359   : > { %v3772_v7 = vadd.f32 %v15741_v3, %v15740_v13  ;;  %v15747_v13 = vld [vmem:[#allocation75_spill] sm:$0xff] }
 0x35a   : > { %v4552_v40 = vadd.f32 %v4551_v35, %v4391_v23  ;;  %5183 = vmatmul.f32.gmra.mxu0 %v15720_v38  ;;  %5388 = vmatmul.f32.gmra.mxu1 %v15737_v5 }
 0x35b   : > { %5631 = vmatmul.f32.gmra.mxu2 %v15738_v56  ;;  %v3973_v23 = vadd.f32 %v15743_v30, %v3772_v7 }
 0x35c   : > { %v4801_v59 = vadd.f32 %v4800_v17, %v4552_v40  ;;  %v15744_v17 = vld [vmem:[#allocation94_spill] sm:$0xff] }
 0x35d   : > { %5792 = vmatmul.f32.gmra.mxu3 %v15738_v56  ;;  %v15745_v40 = vand.u32 4294901760, %v15744_v17  ;;  %v15749_v56 = vld [vmem:[#allocation80_spill] sm:$0xff] }
 0x35e   : > { %v12211_v32 = vadd.f32 %v5065_v6, %v4801_v59  ;;  %v4808_v31 = vpop.f32.mrf.mxu2  ;;  %v4559_v54 = vpop.f32.mrf.mxu1  ;;  %v4190_v6 = vadd.f32 %v15747_v13, %v3973_v23  ;;  %v15748_v59 = vld [vmem:[#allocation326_spill] sm:$0xff] }
 0x35f   : > { %v4394_v37 = vpop.f32.mrf.mxu0  ;;  %v5069_v38 = vpop.f32.mrf.mxu3  ;;  %v3776_v3 = vadd.f32 %v15749_v56, %v15748_v59  ;;  %v15754_v13 = vld [vmem:[#allocation62_spill] sm:$0xff]  ;;  %v15756_v59 = vld [vmem:[#allocation332_spill] sm:$0xff] }
 0x360   : > { %15742 = vst [vmem:[#allocation226_spill] sm:$0xff] %v12211_v32  ;;  %v4395_v35 = vadd.f32 %v4394_v37, %v4184_v51 }
 0x362   : > { %v4556_v5 = vadd.f32 %v4555_v34, %v4395_v35  ;;  %5188 = vmatmul.f32.gmra.mxu0 %v15736_v21  ;;  %5394 = vmatmul.f32.gmra.mxu1 %v15745_v40  ;;  %v15751_v35 = vld [vmem:[#allocation328_spill] sm:$0xff] }
 0x363   : > { %5635 = vmatmul.f32.gmra.mxu2 %v15746_v52  ;;  %v3978_v30 = vadd.f32 %v15751_v35, %v3776_v3 }
 0x364   : > { %v4809_v9 = vadd.f32 %v4808_v31, %v4556_v5  ;;  %v15752_v31 = vld [vmem:[#allocation95_spill] sm:$0xff] }
 0x365   : > { %5796 = vmatmul.f32.gmra.mxu3 %v15746_v52  ;;  %v15753_v5 = vand.u32 4294901760, %v15752_v31  ;;  %v15757_v52 = vld [vmem:[#allocation329_spill] sm:$0xff] }
 0x366   : > { %v12222_v32 = vadd.f32 %v5069_v38, %v4809_v9  ;;  %v4816_v7 = vpop.f32.mrf.mxu2  ;;  %v4563_v37 = vpop.f32.mrf.mxu1  ;;  %v15755_v38 = vld [vmem:[#allocation330_spill] sm:$0xff]  ;;  %v3780_v56 = vadd.f32 %v15757_v52, %v15756_v59 }
 0x367   : > { %v4398_v51 = vpop.f32.mrf.mxu0  ;;  %v5073_v21 = vpop.f32.mrf.mxu3  ;;  %v4196_v9 = vadd.f32 %v15755_v38, %v3978_v30  ;;  %v15761_v38 = vld [vmem:[#allocation98_spill] sm:$0xff] }
 0x368   : > { %15750 = vst [vmem:[#allocation31_spill] sm:$0xff] %v12222_v32  ;;  %v4399_v34 = vadd.f32 %v4398_v51, %v4190_v6 }
 0x36a   : > { %v4560_v40 = vadd.f32 %v4559_v54, %v4399_v34  ;;  %5193 = vmatmul.f32.gmra.mxu0 %v15744_v17  ;;  %5400 = vmatmul.f32.gmra.mxu1 %v15753_v5  ;;  %v15758_v34 = vld [vmem:[#allocation334_spill] sm:$0xff] }
 0x36b   : > { %5639 = vmatmul.f32.gmra.mxu2 %v15754_v13  ;;  %v3983_v35 = vadd.f32 %v15758_v34, %v3780_v56  ;;  %v15765_v34 = vld [vmem:[#allocation107_spill] sm:$0xff] }
 0x36c   : > { %v4817_v23 = vadd.f32 %v4816_v7, %v4560_v40  ;;  %v15759_v7 = vld [vmem:[#allocation146_spill] sm:$0xff] }
 0x36d   : > { %5800 = vmatmul.f32.gmra.mxu3 %v15754_v13  ;;  %v15760_v40 = vand.u32 4294901760, %v15759_v7 }
 0x36e   : > { %v12233_v32 = vadd.f32 %v5073_v21, %v4817_v23  ;;  %v4824_v3 = vpop.f32.mrf.mxu2  ;;  %v4567_v51 = vpop.f32.mrf.mxu1  ;;  %v15762_v21 = vld [vmem:[#allocation335_spill] sm:$0xff] }
 0x36f   : > { %v4402_v6 = vpop.f32.mrf.mxu0  ;;  %v5077_v17 = vpop.f32.mrf.mxu3  ;;  %v4202_v23 = vadd.f32 %v15762_v21, %v3983_v35 }
 0x370   : > { %v4403_v54 = vadd.f32 %v4402_v6, %v4196_v9 }
 0x372   : > { %v4564_v5 = vadd.f32 %v4563_v37, %v4403_v54  ;;  %5198 = vmatmul.f32.gmra.mxu0 %v15752_v31  ;;  %5406 = vmatmul.f32.gmra.mxu1 %v15760_v40  ;;  %v15763_v31 = vld [vmem:[#allocation155_spill] sm:$0xff]  ;;  %v15766_v40 = vld [vmem:[#allocation168_spill] sm:$0xff] }
 0x373   : > { %5643 = vmatmul.f32.gmra.mxu2 %v15761_v38  ;;  %v15764_v54 = vand.u32 4294901760, %v15763_v31 }
 0x374   : > { %v4825_v30 = vadd.f32 %v4824_v3, %v4564_v5 }
 0x375   : > { %5804 = vmatmul.f32.gmra.mxu3 %v15761_v38 }
 0x376   : > { %v12242_v59 = vadd.f32 %v5077_v17, %v4825_v30  ;;  %v4832_v9 = vpop.f32.mrf.mxu2  ;;  %v4571_v6 = vpop.f32.mrf.mxu1 }
 0x377   : > { %v4406_v13 = vpop.f32.mrf.mxu0  ;;  %v5081_v56 = vpop.f32.mrf.mxu3 }
 0x378   : > { %v4407_v52 = vadd.f32 %v4406_v13, %v4202_v23 }
 0x37a   : > { %v4568_v37 = vadd.f32 %v4567_v51, %v4407_v52  ;;  %5203 = vmatmul.f32.gmra.mxu0 %v15759_v7  ;;  %5412 = vmatmul.f32.gmra.mxu1 %v15764_v54  ;;  %v15767_v51 = vld [vmem:[#allocation159_spill] sm:$0xff] }
 0x37b   : > { %5647 = vmatmul.f32.gmra.mxu2 %v15765_v34  ;;  %v15768_v7 = vand.u32 4294901760, %v15767_v51  ;;  %v15771_v54 = vld [vmem:[#allocation343_spill] sm:$0xff] }
 0x37c   : > { %v4833_v3 = vadd.f32 %v4832_v9, %v4568_v37  ;;  %v15769_v9 = vld [vmem:[#allocation114_spill] sm:$0xff] }
 0x37d   : > { %5808 = vmatmul.f32.gmra.mxu3 %v15765_v34 }
 0x37e   : > { %v12249_v5 = vadd.f32 %v5081_v56, %v4833_v3  ;;  %v4840_v35 = vpop.f32.mrf.mxu2  ;;  %v4575_v38 = vpop.f32.mrf.mxu1 }
 0x37f   : > { %v4410_v17 = vpop.f32.mrf.mxu0  ;;  %v5085_v21 = vpop.f32.mrf.mxu3 }
 0x380   : > { %v4411_v30 = vadd.f32 %v4410_v17, %v15766_v40 }
 0x382   : > { %v4572_v23 = vadd.f32 %v4571_v6, %v4411_v30  ;;  %5208 = vmatmul.f32.gmra.mxu0 %v15763_v31  ;;  %5418 = vmatmul.f32.gmra.mxu1 %v15768_v7  ;;  %v15772_v31 = vld [vmem:[#allocation339_spill] sm:$0xff] }
 0x383   : > { %5651 = vmatmul.f32.gmra.mxu2 %v15769_v9  ;;  %v15773_v40 = vand.u32 4294901760, %v15772_v31  ;;  %v15774_v30 = vld [vmem:[#allocation119_spill] sm:$0xff] }
 0x384   : > { %v4841_v13 = vadd.f32 %v4840_v35, %v4572_v23 }
 0x385   : > { %5812 = vmatmul.f32.gmra.mxu3 %v15769_v9 }
 0x386   : > { %v12257_v52 = vadd.f32 %v5085_v21, %v4841_v13  ;;  %v4848_v37 = vpop.f32.mrf.mxu2  ;;  %v4579_v34 = vpop.f32.mrf.mxu1  ;;  %v15775_v13 = vld [vmem:[#allocation347_spill] sm:$0xff] }
 0x387   : > { %v4414_v56 = vpop.f32.mrf.mxu0  ;;  %v5089_v17 = vpop.f32.mrf.mxu3 }
 0x388   : > { %15770 = vst [vmem:[#allocation229_spill] sm:$0xff] %v12257_v52  ;;  %v4415_v3 = vadd.f32 %v4414_v56, %v15771_v54 }
 0x38a   : > { %v4576_v6 = vadd.f32 %v4575_v38, %v4415_v3  ;;  %5213 = vmatmul.f32.gmra.mxu0 %v15767_v51  ;;  %5424 = vmatmul.f32.gmra.mxu1 %v15773_v40  ;;  %v15776_v38 = vld [vmem:[#allocation341_spill] sm:$0xff]  ;;  %v15778_v3 = vld [vmem:[#allocation126_spill] sm:$0xff] }
 0x38b   : > { %5655 = vmatmul.f32.gmra.mxu2 %v15774_v30  ;;  %v15777_v51 = vand.u32 4294901760, %v15776_v38 }
 0x38c   : > { %v4849_v35 = vadd.f32 %v4848_v37, %v4576_v6 }
 0x38d   : > { %5816 = vmatmul.f32.gmra.mxu3 %v15774_v30 }
 0x38e   : > { %v12265_v21 = vadd.f32 %v5089_v17, %v4849_v35  ;;  %v4856_v7 = vpop.f32.mrf.mxu2  ;;  %v4583_v56 = vpop.f32.mrf.mxu1 }
 0x38f   : > { %v4418_v23 = vpop.f32.mrf.mxu0  ;;  %v5093_v54 = vpop.f32.mrf.mxu3 }
 0x390   : > { %v4419_v9 = vadd.f32 %v4418_v23, %v15775_v13 }
 0x392   : > { %v4580_v52 = vadd.f32 %v4579_v34, %v4419_v9  ;;  %5218 = vmatmul.f32.gmra.mxu0 %v15772_v31  ;;  %5430 = vmatmul.f32.gmra.mxu1 %v15777_v51  ;;  %v14824_v34 = vmov 0.0   ;;  %v15780_v31 = vld [vmem:[#allocation350_spill] sm:$0xff] }
 0x393   : > { %5659 = vmatmul.f32.gmra.mxu2 %v15778_v3  ;;  %276 = vst.msk [vmem:[%s12276_s29] sm:$0xff] %vm275_vm0, %v14824_v34 }
 0x394   : > { %v4857_v37 = vadd.f32 %v4856_v7, %v4580_v52  ;;  %277 = vst.msk [vmem:[%s12276_s29 + $0x8] sm:$0xff] %vm275_vm0, %v14824_v34  ;;  %v15781_v7 = vld [vmem:[#allocation344_spill] sm:$0xff] }
 0x395   : > { %5820 = vmatmul.f32.gmra.mxu3 %v15778_v3  ;;  %278 = vst.msk [vmem:[%s12276_s29 + $0x10] sm:$0xff] %vm275_vm0, %v14824_v34  ;;  %v15782_v13 = vand.u32 4294901760, %v15781_v7 }
 0x396   : > { %v12282_v17 = vadd.f32 %v5093_v54, %v4857_v37  ;;  %v4864_v52 = vpop.f32.mrf.mxu2  ;;  %v4587_v35 = vpop.f32.mrf.mxu1  ;;  %279 = vst.msk [vmem:[%s12276_s29 + $0x18] sm:$0xff] %vm275_vm0, %v14824_v34  ;;  %v15783_v54 = vld [vmem:[#allocation129_spill] sm:$0xff]  ;;  %v15785_v37 = vld [vmem:[#allocation178_spill] sm:$0xff] }
 0x397   : > { %v4422_v6 = vpop.f32.mrf.mxu0  ;;  %v5097_v30 = vpop.f32.mrf.mxu3  ;;  %280 = vst.msk [vmem:[%s12276_s29 + $0x20] sm:$0xff] %vm275_vm0, %v14824_v34 }
 0x398   : > { %15779 = vst [vmem:[#allocation237_spill] sm:$0xff] %v12282_v17  ;;  %v4423_v40 = vadd.f32 %v4422_v6, %v15780_v31 }
 0x399   : > { %281 = vst.msk [vmem:[%s12276_s29 + $0x28] sm:$0xff] %vm275_vm0, %v14824_v34 }
 0x39a   : > { %v4584_v23 = vadd.f32 %v4583_v56, %v4423_v40  ;;  %5223 = vmatmul.f32.gmra.mxu0 %v15776_v38  ;;  %5436 = vmatmul.f32.gmra.mxu1 %v15782_v13  ;;  %282 = vst.msk [vmem:[%s12276_s29 + $0x30] sm:$0xff] %vm275_vm0, %v14824_v34  ;;  %v15786_v40 = vld [vmem:[#allocation201_spill] sm:$0xff]  ;;  %v15788_v13 = vld [vmem:[#allocation140_spill] sm:$0xff] }
 0x39b   : > { %5663 = vmatmul.f32.gmra.mxu2 %v15783_v54  ;;  %283 = vst.msk [vmem:[%s12276_s29 + $0x38] sm:$0xff] %vm275_vm0, %v14824_v34 }
 0x39c   : > { %v4865_v9 = vadd.f32 %v4864_v52, %v4584_v23  ;;  %284 = vst.msk [vmem:[%s12276_s29 + $0x40] sm:$0xff] %vm275_vm0, %v14824_v34 }
 0x39d   : > { %5824 = vmatmul.f32.gmra.mxu3 %v15783_v54  ;;  %285 = vst.msk [vmem:[%s12276_s29 + $0x48] sm:$0xff] %vm275_vm0, %v14824_v34  ;;  %v15790_v54 = vld [vmem:[#allocation185_spill] sm:$0xff] }
 0x39e   : > { %v12314_v56 = vadd.f32 %v5097_v30, %v4865_v9  ;;  %v4872_v51 = vpop.f32.mrf.mxu2  ;;  %286 = vst.msk [vmem:[%s12276_s29 + $0x50] sm:$0xff] %vm275_vm0, %v14824_v34  ;;  %v4591_v6 = vpop.f32.mrf.mxu1  ;;  %v15787_v30 = vand.u32 4294901760, %v15786_v40 }
 0x39f   : > { %v4426_v38 = vpop.f32.mrf.mxu0  ;;  %287 = vst.msk [vmem:[%s12276_s29 + $0x58] sm:$0xff] %vm275_vm0, %v14824_v34  ;;  %v5101_v52 = vpop.f32.mrf.mxu3 }
 0x3a0   : > { %15784 = vst [vmem:[#allocation228_spill] sm:$0xff] %v12314_v56  ;;  %v4427_v3 = vadd.f32 %v4426_v38, %v15785_v37 }
 0x3a1   : > { %288 = vst.msk [vmem:[%s12276_s29 + $0x60] sm:$0xff] %vm275_vm0, %v14824_v34 }
 0x3a2   : > { %v4588_v31 = vadd.f32 %v4587_v35, %v4427_v3  ;;  %5228 = vmatmul.f32.gmra.mxu0 %v15781_v7  ;;  %5442 = vmatmul.f32.gmra.mxu1 %v15787_v30  ;;  %289 = vst.msk [vmem:[%s12276_s29 + $0x68] sm:$0xff] %vm275_vm0, %v14824_v34 }
 0x3a3   : > { %290 = vst.msk [vmem:[%s12276_s29 + $0x70] sm:$0xff] %vm275_vm0, %v14824_v34  ;;  %5667 = vmatmul.f32.gmra.mxu2 %v15788_v13 }
 0x3a4   : > { %v4873_v23 = vadd.f32 %v4872_v51, %v4588_v31  ;;  %291 = vst.msk [vmem:[%s12276_s29 + $0x78] sm:$0xff] %vm275_vm0, %v14824_v34 }
 0x3a5   : > { %292 = vst.msk [vmem:[%s12276_s29 + $0x80] sm:$0xff] %vm275_vm0, %v14824_v34  ;;  %5828 = vmatmul.f32.gmra.mxu3 %v15788_v13 }
 0x3a6   : > { %v12346_v35 = vadd.f32 %v5101_v52, %v4873_v23  ;;  %293 = vst.msk [vmem:[%s12276_s29 + $0x88] sm:$0xff] %vm275_vm0, %v14824_v34  ;;  %v4880_v9 = vpop.f32.mrf.mxu2  ;;  %v5353_v51 = vpop.f32.mrf.mxu1  ;;  %v15791_v52 = vld [vmem:[#allocation209_spill] sm:$0xff] }
 0x3a7   : > { %v4430_v7 = vpop.f32.mrf.mxu0  ;;  %294 = vst.msk [vmem:[%s12276_s29 + $0x90] sm:$0xff] %vm275_vm0, %v14824_v34  ;;  %v5105_v37 = vpop.f32.mrf.mxu3  ;;  %v15792_v31 = vand.u32 4294901760, %v15791_v52  ;;  %v15793_v23 = vld [vmem:[#allocation145_spill] sm:$0xff] }
 0x3a8   : > { %15789 = vst [vmem:[#allocation238_spill] sm:$0xff] %v12346_v35  ;;  %v4431_v38 = vadd.f32 %v4430_v7, %v15790_v54  ;;  %v15795_v7 = vld [vmem:[#allocation164_spill] sm:$0xff] }
 0x3a9   : > { %295 = vst.msk [vmem:[%s12276_s29 + $0x98] sm:$0xff] %vm275_vm0, %v14824_v34 }
 0x3aa   : > { %296 = vst.msk [vmem:[%s12276_s29 + $0xa0] sm:$0xff] %vm275_vm0, %v14824_v34  ;;  %v4592_v3 = vadd.f32 %v4591_v6, %v4431_v38  ;;  %5233 = vmatmul.f32.gmra.mxu0 %v15786_v40  ;;  %5448 = vmatmul.f32.gmra.mxu1 %v15792_v31 }
 0x3ab   : > { %297 = vst.msk [vmem:[%s12276_s29 + $0xa8] sm:$0xff] %vm275_vm0, %v14824_v34  ;;  %5671 = vmatmul.f32.gmra.mxu2 %v15793_v23 }
 0x3ac   : > { %298 = vst.msk [vmem:[%s12276_s29 + $0xb0] sm:$0xff] %vm275_vm0, %v14824_v34  ;;  %v4881_v30 = vadd.f32 %v4880_v9, %v4592_v3  ;;  %v15796_v3 = vld [vmem:[#allocation224_spill] sm:$0xff] }
 0x3ad   : > { %299 = vst.msk [vmem:[%s12276_s29 + $0xb8] sm:$0xff] %vm275_vm0, %v14824_v34  ;;  %5832 = vmatmul.f32.gmra.mxu3 %v15793_v23  ;;  %v15797_v31 = vand.u32 4294901760, %v15796_v3  ;;  %v15798_v23 = vld [vmem:[#allocation153_spill] sm:$0xff] }
 0x3ae   : > { %300 = vst.msk [vmem:[%s12276_s29 + $0xc0] sm:$0xff] %vm275_vm0, %v14824_v34  ;;  %v12378_v6 = vadd.f32 %v5105_v37, %v4881_v30  ;;  %v5608_v13 = vpop.f32.mrf.mxu2  ;;  %v5359_v54 = vpop.f32.mrf.mxu1 }
 0x3af   : > { %301 = vst.msk [vmem:[%s12276_s29 + $0xc8] sm:$0xff] %vm275_vm0, %v14824_v34  ;;  %v5159_v40 = vpop.f32.mrf.mxu0 }
 0x3b0   : > { %15794 = vst [vmem:[#allocation234_spill] sm:$0xff] %v12378_v6  ;;  %v5160_v9 = vadd.f32 %v5159_v40, %v15795_v7  ;;  %v5769_v38 = vpop.f32.mrf.mxu3  ;;  %v15799_v6 = vld [vmem:[#allocation196_spill] sm:$0xff] }
 0x3b1   : > { %302 = vst.msk [vmem:[%s12276_s29 + $0xd0] sm:$0xff] %vm275_vm0, %v14824_v34 }
 0x3b2   : > { %303 = vst.msk [vmem:[%s12276_s29 + $0xd8] sm:$0xff] %vm275_vm0, %v14824_v34  ;;  %v5354_v37 = vadd.f32 %v5353_v51, %v5160_v9  ;;  %5238 = vmatmul.f32.gmra.mxu0 %v15791_v52  ;;  %5454 = vmatmul.f32.gmra.mxu1 %v15797_v31  ;;  %v3260_v51 = vld [vmem:[%s12276_s29] sm:$0xff] }
 0x3b3   : > { %304 = vst.msk [vmem:[%s12276_s29 + $0xe0] sm:$0xff] %vm275_vm0, %v14824_v34  ;;  %5675 = vmatmul.f32.gmra.mxu2 %v15798_v23 }
 0x3b4   : > { %305 = vst.msk [vmem:[%s12276_s29 + $0xe8] sm:$0xff] %vm275_vm0, %v14824_v34  ;;  %v5609_v30 = vadd.f32 %v5608_v13, %v5354_v37  ;;  %v15800_v37 = vld [vmem:[#allocation180_spill] sm:$0xff] }
 0x3b5   : > { %306 = vst.msk [vmem:[%s12276_s29 + $0xf0] sm:$0xff] %vm275_vm0, %v14824_v34  ;;  %5836 = vmatmul.f32.gmra.mxu3 %v15798_v23 }
 0x3b6   : > { %307 = vst.msk [vmem:[%s12276_s29 + $0xf8] sm:$0xff] %vm275_vm0, %v14824_v34  ;;  %v5770_v40 = vadd.f32 %v5769_v38, %v5609_v30  ;;  %v5612_v9 = vpop.f32.mrf.mxu2  ;;  %v5365_v31 = vpop.f32.mrf.mxu1  ;;  %v15801_v34 = vand.u32 4294901760, %v15800_v37  ;;  %v15802_v38 = vld [vmem:[#allocation179_spill] sm:$0xff] }
 0x3b7   : > { %v5164_v7 = vpop.f32.mrf.mxu0  ;;  %v3261_v30 = vld [vmem:[%s12276_s29 + $0x8] sm:$0xff] }
 0x3b8   : > { %v5896_v52 = vadd.f32 %v5770_v40, %v3260_v51  ;;  %v5165_v35 = vadd.f32 %v5164_v7, %v15799_v6  ;;  %v5773_v56 = vpop.f32.mrf.mxu3 }
 0x3ba   : > { %5929 = vst.msk [vmem:[%s12276_s29] sm:$0xff] %vm275_vm0, %v5896_v52  ;;  %v5360_v13 = vadd.f32 %v5359_v54, %v5165_v35  ;;  %5243 = vmatmul.f32.gmra.mxu0 %v15796_v3  ;;  %5460 = vmatmul.f32.gmra.mxu1 %v15801_v34  ;;  %v15803_v34 = vld [vmem:[#allocation189_spill] sm:$0xff] }
 0x3bb   : > { %5679 = vmatmul.f32.gmra.mxu2 %v15802_v38  ;;  %v15804_v3 = vand.u32 4294901760, %v15803_v34 }
 0x3bc   : > { %v5613_v17 = vadd.f32 %v5612_v9, %v5360_v13 }
 0x3bd   : > { %5840 = vmatmul.f32.gmra.mxu3 %v15802_v38 }
 0x3be   : > { %v5774_v23 = vadd.f32 %v5773_v56, %v5613_v17  ;;  %v5616_v51 = vpop.f32.mrf.mxu2  ;;  %v5371_v52 = vpop.f32.mrf.mxu1  ;;  %v15805_v17 = vld [vmem:[#allocation181_spill] sm:$0xff]  ;;  %v3262_v56 = vld [vmem:[%s12276_s29 + $0x10] sm:$0xff] }
 0x3bf   : > { %v5169_v6 = vpop.f32.mrf.mxu0 }
 0x3c0   : > { %v5897_v40 = vadd.f32 %v5774_v23, %v3261_v30  ;;  %v5170_v7 = vadd.f32 %v5169_v6, %v11777_v16  ;;  %v5777_v35 = vpop.f32.mrf.mxu3  ;;  %v15806_v23 = vld [vmem:[#allocation182_spill] sm:$0xff] }
 0x3c2   : > { %5930 = vst.msk [vmem:[%s12276_s29 + $0x8] sm:$0xff] %vm275_vm0, %v5897_v40  ;;  %v5366_v54 = vadd.f32 %v5365_v31, %v5170_v7  ;;  %5248 = vmatmul.f32.gmra.mxu0 %v15800_v37  ;;  %5466 = vmatmul.f32.gmra.mxu1 %v15804_v3  ;;  %v3263_v3 = vld [vmem:[%s12276_s29 + $0x18] sm:$0xff] }
 0x3c3   : > { %5683 = vmatmul.f32.gmra.mxu2 %v15805_v17 }
 0x3c4   : > { %v5617_v9 = vadd.f32 %v5616_v51, %v5366_v54  ;;  %v15807_v51 = vld [vmem:[#allocation173_spill] sm:$0xff] }
 0x3c5   : > { %5844 = vmatmul.f32.gmra.mxu3 %v15805_v17  ;;  %v15808_v7 = vand.u32 4294901760, %v15807_v51 }
 0x3c6   : > { %v5778_v13 = vadd.f32 %v5777_v35, %v5617_v9  ;;  %v5620_v38 = vpop.f32.mrf.mxu2  ;;  %v15809_v35 = vld [vmem:[#allocation188_spill] sm:$0xff] }
 0x3c7   : > { %v5174_v16 = vpop.f32.mrf.mxu0  ;;  %v5377_v40 = vpop.f32.mrf.mxu1 }
 0x3c8   : > { %v5898_v30 = vadd.f32 %v5778_v13, %v3262_v56  ;;  %v5175_v6 = vadd.f32 %v5174_v16, %v15806_v23  ;;  %v5781_v31 = vpop.f32.mrf.mxu3 }
 0x3ca   : > { %5931 = vst.msk [vmem:[%s12276_s29 + $0x10] sm:$0xff] %vm275_vm0, %v5898_v30  ;;  %v5372_v37 = vadd.f32 %v5371_v52, %v5175_v6  ;;  %5253 = vmatmul.f32.gmra.mxu0 %v15803_v34  ;;  %5472 = vmatmul.f32.gmra.mxu1 %v15808_v7 }
 0x3cb   : > { %5687 = vmatmul.f32.gmra.mxu2 %v15809_v35 }
 0x3cc   : > { %v5621_v54 = vadd.f32 %v5620_v38, %v5372_v37  ;;  %v15810_v38 = vld [vmem:[#allocation197_spill] sm:$0xff] }
 0x3cd   : > { %5848 = vmatmul.f32.gmra.mxu3 %v15809_v35  ;;  %v15811_v23 = vand.u32 4294901760, %v15810_v38 }
 0x3ce   : > { %v5782_v9 = vadd.f32 %v5781_v31, %v5621_v54  ;;  %v5624_v56 = vpop.f32.mrf.mxu2  ;;  %v3264_v31 = vld [vmem:[%s12276_s29 + $0x20] sm:$0xff] }
 0x3cf   : > { %v5179_v17 = vpop.f32.mrf.mxu0  ;;  %v5383_v30 = vpop.f32.mrf.mxu1 }
 0x3d0   : > { %v5899_v13 = vadd.f32 %v5782_v9, %v3263_v3  ;;  %v5180_v16 = vadd.f32 %v5179_v17, %v11853_v62  ;;  %v5785_v52 = vpop.f32.mrf.mxu3  ;;  %v15812_v9 = vld [vmem:[#allocation206_spill] sm:$0xff] }
 0x3d1   : > { %v15813_v17 = vand.u32 4294901760, %v15812_v9 }
 0x3d2   : > { %5932 = vst.msk [vmem:[%s12276_s29 + $0x18] sm:$0xff] %vm275_vm0, %v5899_v13  ;;  %v5378_v34 = vadd.f32 %v5377_v40, %v5180_v16  ;;  %5258 = vmatmul.f32.gmra.mxu0 %v15807_v51  ;;  %5478 = vmatmul.f32.gmra.mxu1 %v15811_v23 }
 0x3d3   : > { %5691 = vmatmul.f32.gmra.mxu2 %v11764_v60 }
 0x3d4   : > { %v5625_v6 = vadd.f32 %v5624_v56, %v5378_v34 }
 0x3d5   : > { %5852 = vmatmul.f32.gmra.mxu3 %v11764_v60  ;;  %v3265_v60 = vld [vmem:[%s12276_s29 + $0x28] sm:$0xff] }
 0x3d6   : > { %v5786_v37 = vadd.f32 %v5785_v52, %v5625_v6  ;;  %v5628_v7 = vpop.f32.mrf.mxu2  ;;  %v15814_v6 = vand.u32 4294901760, %v11851_v39 }
 0x3d7   : > { %v5184_v62 = vpop.f32.mrf.mxu0  ;;  %v5389_v3 = vpop.f32.mrf.mxu1 }
 0x3d8   : > { %v5900_v54 = vadd.f32 %v5786_v37, %v3264_v31  ;;  %v5185_v35 = vadd.f32 %v5184_v62, %v11882_v18  ;;  %v5789_v40 = vpop.f32.mrf.mxu3 }
 0x3da   : > { %5933 = vst.msk [vmem:[%s12276_s29 + $0x20] sm:$0xff] %vm275_vm0, %v5900_v54  ;;  %v5384_v51 = vadd.f32 %v5383_v30, %v5185_v35  ;;  %5263 = vmatmul.f32.gmra.mxu0 %v15810_v38  ;;  %5484 = vmatmul.f32.gmra.mxu1 %v15813_v17 }
 0x3db   : > { %5695 = vmatmul.f32.gmra.mxu2 %v11803_v46 }
 0x3dc   : > { %v5629_v56 = vadd.f32 %v5628_v7, %v5384_v51  ;;  %v15815_v51 = vand.u32 4294901760, %v11886_v10 }
 0x3dd   : > { %5856 = vmatmul.f32.gmra.mxu3 %v11803_v46  ;;  %v3266_v46 = vld [vmem:[%s12276_s29 + $0x30] sm:$0xff] }
 0x3de   : > { %v5790_v13 = vadd.f32 %v5789_v40, %v5629_v56  ;;  %v5632_v16 = vpop.f32.mrf.mxu2  ;;  %v3267_v56 = vld [vmem:[%s12276_s29 + $0x38] sm:$0xff] }
 0x3df   : > { %v5189_v18 = vpop.f32.mrf.mxu0  ;;  %v5395_v23 = vpop.f32.mrf.mxu1 }
 0x3e0   : > { %v5901_v52 = vadd.f32 %v5790_v13, %v3265_v60  ;;  %v5190_v34 = vadd.f32 %v5189_v18, %v11908_v28  ;;  %v5793_v30 = vpop.f32.mrf.mxu3 }
 0x3e2   : > { %5934 = vst.msk [vmem:[%s12276_s29 + $0x28] sm:$0xff] %vm275_vm0, %v5901_v52  ;;  %v5390_v38 = vadd.f32 %v5389_v3, %v5190_v34  ;;  %5268 = vmatmul.f32.gmra.mxu0 %v15812_v9  ;;  %5490 = vmatmul.f32.gmra.mxu1 %v15814_v6 }
 0x3e3   : > { %5699 = vmatmul.f32.gmra.mxu2 %v11835_v43 }
 0x3e4   : > { %v5633_v31 = vadd.f32 %v5632_v16, %v5390_v38  ;;  %v15818_v38 = vld [vmem:[#allocation42_spill] sm:$0xff] }
 0x3e5   : > { %5860 = vmatmul.f32.gmra.mxu3 %v11835_v43  ;;  %v15816_v43 = vld [vmem:[#allocation40_spill] sm:$0xff] }
 0x3e6   : > { %v5794_v37 = vadd.f32 %v5793_v30, %v5633_v31  ;;  %v5636_v62 = vpop.f32.mrf.mxu2  ;;  %v2140_v17 = vmul.f32 2.0876758e-09, %v15816_v43  ;;  %v15817_v30 = vand.u32 4294901760, %v11915_v19 }
 0x3e7   : > { %v5194_v28 = vpop.f32.mrf.mxu0  ;;  %v5401_v35 = vpop.f32.mrf.mxu1 }
 0x3e8   : > { %v5902_v7 = vadd.f32 %v5794_v37, %v3266_v46  ;;  %v5195_v54 = vadd.f32 %v5194_v28, %v11934_v29  ;;  %v5797_v3 = vpop.f32.mrf.mxu3 }
 0x3ea   : > { %5935 = vst.msk [vmem:[%s12276_s29 + $0x30] sm:$0xff] %vm275_vm0, %v5902_v7  ;;  %v5396_v40 = vadd.f32 %v5395_v23, %v5195_v54  ;;  %5273 = vmatmul.f32.gmra.mxu0 %v11851_v39  ;;  %5496 = vmatmul.f32.gmra.mxu1 %v15815_v51  ;;  %v2204_v39 = vadd.f32 -2.755732e-07, %v2140_v17  ;;  %v15819_v51 = vand.u32 4294901760, %v11941_v25 }
 0x3eb   : > { %5703 = vmatmul.f32.gmra.mxu2 %v11874_v53 }
 0x3ec   : > { %v5637_v9 = vadd.f32 %v5636_v62, %v5396_v40  ;;  %v2268_v31 = vmul.f32 %v2204_v39, %v15816_v43 }
 0x3ed   : > { %5864 = vmatmul.f32.gmra.mxu3 %v11874_v53  ;;  %v2142_v53 = vmul.f32 2.0876758e-09, %v15818_v38 }
 0x3ee   : > { %v5798_v60 = vadd.f32 %v5797_v3, %v5637_v9  ;;  %v5640_v13 = vpop.f32.mrf.mxu2 }
 0x3ef   : > { %v5199_v29 = vpop.f32.mrf.mxu0  ;;  %v5407_v52 = vpop.f32.mrf.mxu1  ;;  %v2206_v62 = vadd.f32 -2.755732e-07, %v2142_v53 }
 0x3f0   : > { %v5903_v18 = vadd.f32 %v5798_v60, %v3267_v56  ;;  %v5200_v16 = vadd.f32 %v5199_v29, %v11959_v48  ;;  %v5801_v34 = vpop.f32.mrf.mxu3  ;;  %v3268_v48 = vld [vmem:[%s12276_s29 + $0x40] sm:$0xff]  ;;  %v3269_v60 = vld [vmem:[%s12276_s29 + $0x48] sm:$0xff] }
 0x3f2   : > { %5936 = vst.msk [vmem:[%s12276_s29 + $0x38] sm:$0xff] %vm275_vm0, %v5903_v18  ;;  %v5402_v23 = vadd.f32 %v5401_v35, %v5200_v16  ;;  %5278 = vmatmul.f32.gmra.mxu0 %v11886_v10  ;;  %5502 = vmatmul.f32.gmra.mxu1 %v15817_v30  ;;  %v2332_v35 = vadd.f32 2.4801588e-05, %v2268_v31  ;;  %v15822_v31 = vld [vmem:[#allocation51_spill] sm:$0xff] }
 0x3f3   : > { %5707 = vmatmul.f32.gmra.mxu2 %v11901_v15 }
 0x3f4   : > { %v5641_v6 = vadd.f32 %v5640_v13, %v5402_v23  ;;  %v2396_v17 = vmul.f32 %v2332_v35, %v15816_v43 }
 0x3f5   : > { %5868 = vmatmul.f32.gmra.mxu3 %v11901_v15  ;;  %v2270_v15 = vmul.f32 %v2206_v62, %v15818_v38  ;;  %v3270_v62 = vld [vmem:[%s12276_s29 + $0x50] sm:$0xff] }
 0x3f6   : > { %v5802_v46 = vadd.f32 %v5801_v34, %v5641_v6  ;;  %v5644_v28 = vpop.f32.mrf.mxu2  ;;  %v2460_v34 = vadd.f32 -0.0013888889, %v2396_v17  ;;  %v15821_v6 = vand.u32 4294901760, %v11966_v20 }
 0x3f7   : > { %v5204_v37 = vpop.f32.mrf.mxu0  ;;  %v5413_v54 = vpop.f32.mrf.mxu1 }
 0x3f8   : > { %v5904_v10 = vadd.f32 %v5802_v46, %v3268_v48  ;;  %v5205_v7 = vadd.f32 %v5204_v37, %v11984_v57  ;;  %v5805_v3 = vpop.f32.mrf.mxu3  ;;  %v15820_v57 = vld [vmem:[#allocation45_spill] sm:$0xff]  ;;  %v2146_v48 = vmul.f32 2.0876758e-09, %v15822_v31  ;;  %v15823_v37 = vld [vmem:[#allocation218_spill] sm:$0xff] }
 0x3f9   : > { %v2144_v56 = vmul.f32 2.0876758e-09, %v15820_v57 }
 0x3fa   : > { %5937 = vst.msk [vmem:[%s12276_s29 + $0x40] sm:$0xff] %vm275_vm0, %v5904_v10  ;;  %v5408_v40 = vadd.f32 %v5407_v52, %v5205_v7  ;;  %5283 = vmatmul.f32.gmra.mxu0 %v11915_v19  ;;  %5508 = vmatmul.f32.gmra.mxu1 %v15819_v51  ;;  %v2334_v19 = vadd.f32 2.4801588e-05, %v2270_v15  ;;  %v2210_v35 = vadd.f32 -2.755732e-07, %v2146_v48 }
 0x3fb   : > { %5711 = vmatmul.f32.gmra.mxu2 %v11927_v26  ;;  %v2208_v23 = vadd.f32 -2.755732e-07, %v2144_v56 }
 0x3fc   : > { %v5645_v9 = vadd.f32 %v5644_v28, %v5408_v40 }
 0x3fd   : > { %5872 = vmatmul.f32.gmra.mxu3 %v11927_v26  ;;  %v2398_v26 = vmul.f32 %v2334_v19, %v15818_v38  ;;  %v2272_v28 = vmul.f32 %v2208_v23, %v15820_v57  ;;  %v15826_v19 = vld [vmem:[#allocation63_spill] sm:$0xff] }
 0x3fe   : > { %v5806_v29 = vadd.f32 %v5805_v3, %v5645_v9  ;;  %v5648_v18 = vpop.f32.mrf.mxu2 }
 0x3ff   : > { %v5209_v13 = vpop.f32.mrf.mxu0  ;;  %v5419_v39 = vpop.f32.mrf.mxu1  ;;  %v2336_v9 = vadd.f32 2.4801588e-05, %v2272_v28 }
 0x400   : > { %v5905_v16 = vadd.f32 %v5806_v29, %v3269_v60  ;;  %v5210_v52 = vadd.f32 %v5209_v13, %v12009_v11  ;;  %v5809_v30 = vpop.f32.mrf.mxu3  ;;  %v2524_v11 = vmul.f32 %v2460_v34, %v15816_v43  ;;  %v15824_v60 = vld [vmem:[#allocation220_spill] sm:$0xff] }
 0x401   : > { %v15825_v29 = vand.u32 4294901760, %v15824_v60  ;;  %v2400_v34 = vmul.f32 %v2336_v9, %v15820_v57 }
 0x402   : > { %5938 = vst.msk [vmem:[%s12276_s29 + $0x48] sm:$0xff] %vm275_vm0, %v5905_v16  ;;  %v5414_v53 = vadd.f32 %v5413_v54, %v5210_v52  ;;  %5288 = vmatmul.f32.gmra.mxu0 %v11941_v25  ;;  %5514 = vmatmul.f32.gmra.mxu1 %v15821_v6  ;;  %v2462_v54 = vadd.f32 -0.0013888889, %v2398_v26  ;;  %v2588_v15 = vadd.f32 0.041666668, %v2524_v11 }
 0x403   : > { %5715 = vmatmul.f32.gmra.mxu2 %v15823_v37  ;;  %v2148_v16 = vmul.f32 2.0876758e-09, %v15826_v19  ;;  %v2464_v28 = vadd.f32 -0.0013888889, %v2400_v34 }
 0x404   : > { %v5649_v46 = vadd.f32 %v5648_v18, %v5414_v53  ;;  %v2526_v13 = vmul.f32 %v2462_v54, %v15818_v38  ;;  %v2274_v18 = vmul.f32 %v2210_v35, %v15822_v31  ;;  %v2652_v52 = vmul.f32 %v2588_v15, %v15816_v43 }
 0x405   : > { %5876 = vmatmul.f32.gmra.mxu3 %v15823_v37  ;;  %v2212_v26 = vadd.f32 -2.755732e-07, %v2148_v16  ;;  %v2528_v9 = vmul.f32 %v2464_v28, %v15820_v57 }
 0x406   : > { %v5810_v10 = vadd.f32 %v5809_v30, %v5649_v46  ;;  %v5652_v7 = vpop.f32.mrf.mxu2  ;;  %v2590_v53 = vadd.f32 0.041666668, %v2526_v13  ;;  %v2338_v6 = vadd.f32 2.4801588e-05, %v2274_v18  ;;  %v2716_v11 = vadd.f32 -0.5, %v2652_v52 }
 0x407   : > { %v5214_v25 = vpop.f32.mrf.mxu0  ;;  %v5425_v51 = vpop.f32.mrf.mxu1 }
 0x408   : > { %v5906_v3 = vadd.f32 %v5810_v10, %v3270_v62  ;;  %v5215_v40 = vadd.f32 %v5214_v25, %v12024_v8  ;;  %v5813_v17 = vpop.f32.mrf.mxu3  ;;  %v15827_v10 = vld [vmem:[#allocation76_spill] sm:$0xff]  ;;  %v2654_v35 = vmul.f32 %v2590_v53, %v15818_v38  ;;  %v2780_v15 = vmul.f32 %v2716_v11, %v15816_v43 }
 0x409   : > { %v2150_v25 = vmul.f32 2.0876758e-09, %v15827_v10 }
 0x40a   : > { %5939 = vst.msk [vmem:[%s12276_s29 + $0x50] sm:$0xff] %vm275_vm0, %v5906_v3  ;;  %v5420_v56 = vadd.f32 %v5419_v39, %v5215_v40  ;;  %5293 = vmatmul.f32.gmra.mxu0 %v11966_v20  ;;  %5520 = vmatmul.f32.gmra.mxu1 %v15825_v29  ;;  %v3271_v39 = vld [vmem:[%s12276_s29 + $0x58] sm:$0xff]  ;;  %v2402_v3 = vmul.f32 %v2338_v6, %v15822_v31  ;;  %v2718_v16 = vadd.f32 -0.5, %v2654_v35  ;;  %v15831_v6 = vld [vmem:[#allocation83_spill] sm:$0xff] }
 0x40b   : > { %5719 = vmatmul.f32.gmra.mxu2 %v11970_v24 }
 0x40c   : > { %v5653_v8 = vadd.f32 %v5652_v7, %v5420_v56 }
 0x40d   : > { %5880 = vmatmul.f32.gmra.mxu3 %v11970_v24  ;;  %v15828_v24 = vld [vmem:[#allocation222_spill] sm:$0xff] }
 0x40e   : > { %v5814_v23 = vadd.f32 %v5813_v17, %v5653_v8  ;;  %v5656_v30 = vpop.f32.mrf.mxu2  ;;  %v15829_v54 = vand.u32 4294901760, %v15828_v24  ;;  %v3272_v17 = vld [vmem:[%s12276_s29 + $0x60] sm:$0xff]  ;;  %v2466_v8 = vadd.f32 -0.0013888889, %v2402_v3 }
 0x40f   : > { %v5219_v20 = vpop.f32.mrf.mxu0  ;;  %v5431_v37 = vpop.f32.mrf.mxu1 }
 0x410   : > { %v5907_v48 = vadd.f32 %v5814_v23, %v3271_v39  ;;  %v5220_v46 = vadd.f32 %v5219_v20, %v12042_v33  ;;  %v5817_v62 = vpop.f32.mrf.mxu3  ;;  %v2276_v33 = vmul.f32 %v2212_v26, %v15826_v19  ;;  %v2844_v23 = vadd.f32 1.0, %v2780_v15 }
 0x411   : > { %v2592_v20 = vadd.f32 0.041666668, %v2528_v9 }
 0x412   : > { %5940 = vst.msk [vmem:[%s12276_s29 + $0x58] sm:$0xff] %vm275_vm0, %v5907_v48  ;;  %v5426_v7 = vadd.f32 %v5425_v51, %v5220_v46  ;;  %5298 = vmatmul.f32.gmra.mxu0 %v15824_v60  ;;  %5526 = vmatmul.f32.gmra.mxu1 %v15829_v54  ;;  %v2214_v51 = vadd.f32 -2.755732e-07, %v2150_v25  ;;  %v15830_v60 = vld [vmem:[#allocation72_spill] sm:$0xff]  ;;  %v2340_v52 = vadd.f32 2.4801588e-05, %v2276_v33  ;;  %v2782_v46 = vmul.f32 %v2718_v16, %v15818_v38 }
 0x413   : > { %5723 = vmatmul.f32.gmra.mxu2 %v11999_v0  ;;  %v3100_v29 = vadd.f32 %v15830_v60, %v15830_v60  ;;  %v15832_v48 = vand.u32 4294901760, %v12031_v14  ;;  %v2656_v25 = vmul.f32 %v2592_v20, %v15820_v57  ;;  %v15833_v33 = vld [vmem:[#allocation81_spill] sm:$0xff] }
 0x414   : > { %v5657_v40 = vadd.f32 %v5656_v30, %v5426_v7  ;;  %v2278_v53 = vmul.f32 %v2214_v51, %v15827_v10  ;;  %v2404_v11 = vmul.f32 %v2340_v52, %v15826_v19  ;;  %v3273_v7 = vld [vmem:[%s12276_s29 + $0x68] sm:$0xff]  ;;  %v2846_v38 = vadd.f32 1.0, %v2782_v46  ;;  %v15836_v46 = vld [vmem:[#allocation82_spill] sm:$0xff] }
 0x415   : > { %5884 = vmatmul.f32.gmra.mxu3 %v11999_v0  ;;  %v2152_v0 = vmul.f32 2.0876758e-09, %v15831_v6  ;;  %v15835_v52 = vld [vmem:[#allocation87_spill] sm:$0xff] }
 0x416   : > { %v5818_v56 = vadd.f32 %v5817_v62, %v5657_v40  ;;  %v5660_v18 = vpop.f32.mrf.mxu2  ;;  %v3164_v62 = vmul.f32 %v3100_v29, %v2844_v23  ;;  %v2342_v54 = vadd.f32 2.4801588e-05, %v2278_v53  ;;  %v3102_v40 = vadd.f32 %v15833_v33, %v15833_v33 }
 0x417   : > { %v5224_v13 = vpop.f32.mrf.mxu0  ;;  %v5437_v43 = vpop.f32.mrf.mxu1  ;;  %v2468_v9 = vadd.f32 -0.0013888889, %v2404_v11  ;;  %v2720_v29 = vadd.f32 -0.5, %v2656_v25 }
 0x418   : > { %v5908_v34 = vadd.f32 %v5818_v56, %v3272_v17  ;;  %v5225_v39 = vadd.f32 %v5224_v13, %v12058_v42  ;;  %v5821_v30 = vpop.f32.mrf.mxu3  ;;  %v2530_v42 = vmul.f32 %v2466_v8, %v15822_v31  ;;  %v12558_v60 = vand.u32 4294901760, %v3164_v62 }
 0x419   : > { %v15834_v8 = vand.u32 4294901760, %v12049_v12  ;;  %v2532_v23 = vmul.f32 %v2468_v9, %v15826_v19  ;;  %v2784_v53 = vmul.f32 %v2720_v29, %v15820_v57 }
 0x41a   : > { %5941 = vst.msk [vmem:[%s12276_s29 + $0x60] sm:$0xff] %vm275_vm0, %v5908_v34  ;;  %v5432_v26 = vadd.f32 %v5431_v37, %v5225_v39  ;;  %5303 = vmatmul.f32.gmra.mxu0 %v15828_v24  ;;  %5532 = vmatmul.f32.gmra.mxu1 %v15832_v48  ;;  %v2216_v37 = vadd.f32 -2.755732e-07, %v2152_v0  ;;  %v2594_v15 = vadd.f32 0.041666668, %v2530_v42  ;;  %v3166_v34 = vmul.f32 %v3102_v40, %v2846_v38 }
 0x41b   : > { %5727 = vmatmul.f32.gmra.mxu2 %v12019_v58  ;;  %v3104_v42 = vadd.f32 %v15836_v46, %v15836_v46 }
 0x41c   : > { %v5661_v28 = vadd.f32 %v5660_v18, %v5432_v26  ;;  %v2406_v18 = vmul.f32 %v2342_v54, %v15827_v10  ;;  %v2658_v39 = vmul.f32 %v2594_v15, %v15822_v31  ;;  %v12577_v25 = vand.u32 4294901760, %v3166_v34  ;;  %v15837_v15 = vld [vmem:[#allocation90_spill] sm:$0xff] }
 0x41d   : > { %5888 = vmatmul.f32.gmra.mxu3 %v12019_v58  ;;  %v2280_v58 = vmul.f32 %v2216_v37, %v15831_v6  ;;  %v2596_v54 = vadd.f32 0.041666668, %v2532_v23 }
 0x41e   : > { %v5822_v35 = vadd.f32 %v5821_v30, %v5661_v28  ;;  %v5664_v3 = vpop.f32.mrf.mxu2  ;;  %v6026_v30 = vsub.f32 %v3164_v62, %v12558_v60  ;;  %v2470_v0 = vadd.f32 -0.0013888889, %v2406_v18  ;;  %v6034_v9 = vsub.f32 %v3166_v34, %v12577_v25  ;;  %v3275_v18 = vld [vmem:[%s12276_s29 + $0x78] sm:$0xff] }
 0x41f   : > { %v5229_v24 = vpop.f32.mrf.mxu0  ;;  %v5443_v56 = vpop.f32.mrf.mxu1 }
 0x420   : > { %v5909_v17 = vadd.f32 %v5822_v35, %v3273_v7  ;;  %v5230_v51 = vadd.f32 %v5229_v24, %v12070_v61  ;;  %v5825_v13 = vpop.f32.mrf.mxu3  ;;  %v2154_v61 = vmul.f32 2.0876758e-09, %v15835_v52  ;;  %v2722_v7 = vadd.f32 -0.5, %v2658_v39 }
 0x421   : > { %v6027_v35 = vand.u32 4294901760, %v6026_v30  ;;  %v2848_v24 = vadd.f32 1.0, %v2784_v53  ;;  %v6035_v53 = vand.u32 4294901760, %v6034_v9 }
 0x422   : > { %5942 = vst.msk [vmem:[%s12276_s29 + $0x68] sm:$0xff] %vm275_vm0, %v5909_v17  ;;  %v5438_v16 = vadd.f32 %v5437_v43, %v5230_v51  ;;  %5308 = vmatmul.f32.gmra.mxu0 %v12031_v14  ;;  %5538 = vmatmul.f32.gmra.mxu1 %v15834_v8  ;;  %v3274_v43 = vld [vmem:[%s12276_s29 + $0x70] sm:$0xff]  ;;  %v2344_v14 = vadd.f32 2.4801588e-05, %v2280_v58  ;;  %v2218_v48 = vadd.f32 -2.755732e-07, %v2154_v61  ;;  %v2786_v17 = vmul.f32 %v2722_v7, %v15822_v31 }
 0x423   : > { %5731 = vmatmul.f32.gmra.mxu2 %v12037_v41  ;;  %v2660_v51 = vmul.f32 %v2596_v54, %v15826_v19  ;;  %v15839_v31 = vld [vmem:[#allocation85_spill] sm:$0xff] }
 0x424   : > { %v5665_v20 = vadd.f32 %v5664_v3, %v5438_v16  ;;  %v2408_v38 = vmul.f32 %v2344_v14, %v15831_v6  ;;  %v2282_v40 = vmul.f32 %v2218_v48, %v15835_v52  ;;  %v15838_v16 = vld [vmem:[#allocation101_spill] sm:$0xff]  ;;  %v3106_v39 = vadd.f32 %v15839_v31, %v15839_v31 }
 0x425   : > { %5892 = vmatmul.f32.gmra.mxu3 %v12037_v41  ;;  %v2534_v41 = vmul.f32 %v2470_v0, %v15827_v10  ;;  %v15840_v0 = vld [vmem:[#allocation111_spill] sm:$0xff]  ;;  %v15841_v54 = vld [vmem:[#allocation121_spill] sm:$0xff] }
 0x426   : > { %v5826_v26 = vadd.f32 %v5825_v13, %v5665_v20  ;;  %v5668_v28 = vpop.f32.mrf.mxu2  ;;  %v6028_v13 = vsub.f32 %v6026_v30, %v6027_v35  ;;  %v2472_v58 = vadd.f32 -0.0013888889, %v2408_v38  ;;  %v2346_v61 = vadd.f32 2.4801588e-05, %v2282_v40 }
 0x427   : > { %v5234_v11 = vpop.f32.mrf.mxu0  ;;  %v5449_v37 = vpop.f32.mrf.mxu1 }
 0x428   : > { %v5910_v62 = vadd.f32 %v5826_v26, %v3274_v43  ;;  %v5235_v57 = vadd.f32 %v5234_v11, %v12084_v4  ;;  %v5829_v3 = vpop.f32.mrf.mxu3  ;;  %v2156_v4 = vmul.f32 2.0876758e-09, %v15837_v15  ;;  %v2724_v43 = vadd.f32 -0.5, %v2660_v51  ;;  %v15845_v51 = vld [vmem:[#allocation132_spill] sm:$0xff] }
 0x429   : > { %v6029_v46 = vand.u32 4294901760, %v6028_v13  ;;  %v2536_v7 = vmul.f32 %v2472_v58, %v15831_v6 }
 0x42a   : > { %5943 = vst.msk [vmem:[%s12276_s29 + $0x70] sm:$0xff] %vm275_vm0, %v5910_v62  ;;  %v5444_v33 = vadd.f32 %v5443_v56, %v5235_v57  ;;  %5313 = vmatmul.f32.gmra.mxu0 %v12049_v12  ;;  %6379 = vmatmul.f32.vlgmr.msrb.gmra.mxu1 %v12558_v60  ;;  %v3168_v56 = vmul.f32 %v3104_v42, %v2848_v24  ;;  %v2598_v12 = vadd.f32 0.041666668, %v2534_v41  ;;  %v2220_v34 = vadd.f32 -2.755732e-07, %v2156_v4  ;;  %v15842_v24 = vld [vmem:[#allocation93_spill] sm:$0xff] }
 0x42b   : > { %8019 = vmatpush.msrb.mxu1 %v9727_v45  ;;  %6557 = vmatmul.f32.vlgmr.msrb.gmra.mxu2 %v6026_v30  ;;  %v2850_v30 = vadd.f32 1.0, %v2786_v17  ;;  %v6036_v57 = vsub.f32 %v6034_v9, %v6035_v53  ;;  %v15843_v41 = vld [vmem:[#allocation99_spill] sm:$0xff]  ;;  %v2600_v4 = vadd.f32 0.041666668, %v2536_v7  ;;  %v15844_v17 = vld [vmem:[#allocation110_spill] sm:$0xff] }
 0x42c   : > { %v5669_v29 = vadd.f32 %v5668_v28, %v5444_v33  ;;  %8246 = vmatpush.msrb.mxu2 %v15838_v16  ;;  %v12600_v42 = vand.u32 4294901760, %v3168_v56  ;;  %v2662_v28 = vmul.f32 %v2598_v12, %v15827_v10  ;;  %v2284_v62 = vmul.f32 %v2220_v34, %v15837_v15  ;;  %v3276_v33 = vld [vmem:[%s12276_s29 + $0x80] sm:$0xff] }
 0x42d   : > { %8021 = vmatpush.msrb.mxu1 %v15638_v44  ;;  %6751 = vmatmul.f32.vlgmr.msrb.gmra.mxu3 %v6027_v35  ;;  %v3170_v35 = vmul.f32 %v3106_v39, %v2850_v30  ;;  %v6037_v12 = vand.u32 4294901760, %v6036_v57 }
 0x42e   : > { %v5830_v8 = vadd.f32 %v5829_v3, %v5669_v29  ;;  %v5672_v20 = vpop.f32.mrf.mxu2  ;;  %8437 = vmatpush.msrb.mxu3 %v9727_v45  ;;  %8250 = vmatpush.msrb.mxu2 %v15840_v0  ;;  %v2158_v3 = vmul.f32 2.0876758e-09, %v15842_v24  ;;  %v6042_v38 = vsub.f32 %v3168_v56, %v12600_v42  ;;  %v2726_v40 = vadd.f32 -0.5, %v2662_v28  ;;  %v15849_v0 = vld [vmem:[#allocation131_spill] sm:$0xff]  ;;  %v15851_v28 = vld [vmem:[#allocation138_spill] sm:$0xff] }
 0x42f   : > { %v5239_v23 = vpop.f32.mrf.mxu0  ;;  %v5455_v48 = vpop.f32.mrf.mxu1  ;;  %8023 = vmatpush.msrb.mxu1 %v15641_v50  ;;  %v12624_v58 = vand.u32 4294901760, %v3170_v35 }
 0x430   : > { %v5911_v14 = vadd.f32 %v5830_v8, %v3275_v18  ;;  %v5240_v26 = vadd.f32 %v5239_v23, %v12105_v2  ;;  %v5833_v11 = vpop.f32.mrf.mxu3  ;;  %8439 = vmatpush.msrb.mxu3 %v15638_v44  ;;  %8254 = vmatpush.msrb.mxu2 %v15841_v54  ;;  %v2410_v2 = vmul.f32 %v2346_v61, %v15835_v52  ;;  %v2348_v18 = vadd.f32 2.4801588e-05, %v2284_v62  ;;  %v15847_v8 = vld [vmem:[#allocation120_spill] sm:$0xff]  ;;  %v15853_v62 = vld [vmem:[#allocation91_spill] sm:$0xff] }
 0x431   : > { %8025 = vmatpush.msrb.mxu1 %v15650_v36  ;;  %v2222_v16 = vadd.f32 -2.755732e-07, %v2158_v3  ;;  %v6043_v39 = vand.u32 4294901760, %v6042_v38  ;;  %v2790_v30 = vmul.f32 %v2726_v40, %v15827_v10  ;;  %v3110_v57 = vadd.f32 %v15853_v62, %v15853_v62  ;;  %v15854_v3 = vld [vmem:[#allocation150_spill] sm:$0xff] }
 0x432   : > { %5944 = vst.msk [vmem:[%s12276_s29 + $0x78] sm:$0xff] %vm275_vm0, %v5911_v14  ;;  %v5450_v45 = vadd.f32 %v5449_v37, %v5240_v26  ;;  %6030 = vmatmul.f32.vlgmr.msrb.gmra.mxu0 %v6029_v46  ;;  %6383 = vmatmul.f32.gmra.mxu1 %v12577_v25  ;;  %v2788_v37 = vmul.f32 %v2724_v43, %v15826_v19  ;;  %v2474_v13 = vadd.f32 -0.0013888889, %v2410_v2  ;;  %v15850_v46 = vld [vmem:[#allocation96_spill] sm:$0xff]  ;;  %v15865_v62 = vld [vmem:[#allocation202_spill] sm:$0xff] }
 0x433   : > { %7811 = vmatpush.msrb.mxu0 %v15843_v41  ;;  %8441 = vmatpush.msrb.mxu3 %v15641_v50  ;;  %v15846_v50 = vld [vmem:[#allocation59_spill] sm:$0xff]  ;;  %v2664_v43 = vmul.f32 %v2600_v4, %v15831_v6  ;;  %v2412_v14 = vmul.f32 %v2348_v18, %v15837_v15  ;;  %v12641_v26 = vsub.f32 %v3170_v35, %v12624_v58  ;;  %v2854_v2 = vadd.f32 1.0, %v2790_v30 }
 0x434   : > { %v5673_v44 = vadd.f32 %v5672_v20, %v5450_v45  ;;  %6562 = vmatmul.f32.gmra.mxu2 %v6034_v9  ;;  %8027 = vmatpush.msrb.mxu1 %v15657_v49  ;;  %v3108_v9 = vadd.f32 %v15846_v50, %v15846_v50  ;;  %v2852_v23 = vadd.f32 1.0, %v2788_v37  ;;  %v15848_v20 = vld [vmem:[#allocation141_spill] sm:$0xff]  ;;  %v2286_v10 = vmul.f32 %v2222_v16, %v15842_v24  ;;  %v3277_v45 = vld [vmem:[%s12276_s29 + $0x88] sm:$0xff] }
 0x435   : > { %7814 = vmatpush.msrb.mxu0 %v15844_v17  ;;  %8258 = vmatpush.msrb.mxu2 %v15845_v51  ;;  %v2728_v35 = vadd.f32 -0.5, %v2664_v43  ;;  %v15855_v41 = vld [vmem:[#allocation163_spill] sm:$0xff]  ;;  %v15856_v51 = vld [vmem:[#allocation162_spill] sm:$0xff]  ;;  %v3278_v43 = vld [vmem:[%s12276_s29 + $0x90] sm:$0xff] }
 0x436   : > { %v5834_v29 = vadd.f32 %v5833_v11, %v5673_v44  ;;  %6757 = vmatmul.f32.gmra.mxu3 %v6035_v53  ;;  %v5676_v19 = vpop.f32.mrf.mxu2  ;;  %8029 = vmatpush.msrb.mxu1 %v15665_v47  ;;  %v2160_v11 = vmul.f32 2.0876758e-09, %v15850_v46  ;;  %v3172_v54 = vmul.f32 %v3108_v9, %v2852_v23  ;;  %v2350_v4 = vadd.f32 2.4801588e-05, %v2286_v10  ;;  %v15863_v10 = vld [vmem:[#allocation214_spill] sm:$0xff] }
 0x437   : > { %v5244_v56 = vpop.f32.mrf.mxu0  ;;  %7817 = vmatpush.msrb.mxu0 %v15847_v8  ;;  %8443 = vmatpush.msrb.mxu3 %v15650_v36  ;;  %v5461_v31 = vpop.f32.mrf.mxu1  ;;  %v2792_v16 = vmul.f32 %v2728_v35, %v15831_v6  ;;  %v15858_v8 = vld [vmem:[#allocation170_spill] sm:$0xff]  ;;  %v15859_v6 = vld [vmem:[#allocation100_spill] sm:$0xff] }
 0x438   : > { %v5912_v61 = vadd.f32 %v5834_v29, %v3276_v33  ;;  %v5245_v34 = vadd.f32 %v5244_v56, %v12128_v22  ;;  %8262 = vmatpush.msrb.mxu2 %v15848_v20  ;;  %v5837_v53 = vpop.f32.mrf.mxu3  ;;  %v2538_v22 = vmul.f32 %v2474_v13, %v15835_v52  ;;  %v2476_v33 = vadd.f32 -0.0013888889, %v2412_v14  ;;  %8031 = vmatpush.msrb.mxu1 %v15669_v27  ;;  %v15857_v56 = vld [vmem:[#allocation174_spill] sm:$0xff]  ;;  %v15860_v20 = vld [vmem:[#allocation192_spill] sm:$0xff] }
 0x439   : > { %7820 = vmatpush.msrb.mxu0 %v15849_v0  ;;  %8445 = vmatpush.msrb.mxu3 %v15657_v49  ;;  %v15852_v49 = vld [vmem:[#allocation151_spill] sm:$0xff]  ;;  %v2224_v17 = vadd.f32 -2.755732e-07, %v2160_v11  ;;  %v12658_v9 = vand.u32 4294901760, %v3172_v54  ;;  %v2162_v23 = vmul.f32 2.0876758e-09, %v15859_v6 }
 0x43a   : > { %5945 = vst.msk [vmem:[%s12276_s29 + $0x80] sm:$0xff] %vm275_vm0, %v5912_v61  ;;  %v5456_v36 = vadd.f32 %v5455_v48, %v5245_v34  ;;  %6038 = vmatmul.f32.gmra.mxu0 %v6037_v12  ;;  %6387 = vmatmul.f32.gmra.mxu1 %v12600_v42  ;;  %v6044_v48 = vsub.f32 %v6042_v38, %v6043_v39  ;;  %v2602_v37 = vadd.f32 0.041666668, %v2538_v22  ;;  %v15862_v22 = vld [vmem:[#allocation92_spill] sm:$0xff] }
 0x43b   : > { %7823 = vmatpush.msrb.mxu0 %v15851_v28  ;;  %8266 = vmatpush.msrb.mxu2 %v15852_v49  ;;  %v3174_v12 = vmul.f32 %v3110_v57, %v2854_v2  ;;  %v2540_v61 = vmul.f32 %v2476_v33, %v15837_v15  ;;  %v2414_v34 = vmul.f32 %v2350_v4, %v15842_v24  ;;  %v2226_v2 = vadd.f32 -2.755732e-07, %v2162_v23  ;;  %v15868_v33 = vld [vmem:[#allocation230_spill] sm:$0xff]  ;;  %v15869_v4 = vld [vmem:[#allocation227_spill] sm:$0xff] }
 0x43c   : > { %v5677_v7 = vadd.f32 %v5676_v19, %v5456_v36  ;;  %6567 = vmatmul.f32.gmra.mxu2 %v6042_v38  ;;  %8447 = vmatpush.msrb.mxu3 %v15665_v47  ;;  %v6051_v47 = vand.u32 4294901760, %v12641_v26  ;;  %v6045_v50 = vand.u32 4294901760, %v6044_v48  ;;  %v6058_v30 = vsub.f32 %v3172_v54, %v12658_v9 }
 0x43d   : > { %7826 = vmatpush.msrb.mxu0 %v15854_v3  ;;  %8270 = vmatpush.msrb.mxu2 %v15855_v41  ;;  %v12680_v0 = vand.u32 4294901760, %v3174_v12  ;;  %v2856_v36 = vadd.f32 1.0, %v2792_v16  ;;  %v3112_v14 = vadd.f32 %v15862_v22, %v15862_v22  ;;  %v2604_v49 = vadd.f32 0.041666668, %v2540_v61 }
 0x43e   : > { %v5838_v44 = vadd.f32 %v5837_v53, %v5677_v7  ;;  %6763 = vmatmul.f32.gmra.mxu3 %v6043_v39  ;;  %v5680_v40 = vpop.f32.mrf.mxu2  ;;  %8033 = vmatpush.msrb.mxu1 %v15676_v1  ;;  %v2288_v39 = vmul.f32 %v2224_v17, %v15850_v46  ;;  %v2478_v54 = vadd.f32 -0.0013888889, %v2414_v34 }
 0x43f   : > { %v5249_v38 = vpop.f32.mrf.mxu0  ;;  %7829 = vmatpush.msrb.mxu0 %v15856_v51  ;;  %8449 = vmatpush.msrb.mxu3 %v15669_v27  ;;  %v5467_v18 = vpop.f32.mrf.mxu1 }
 0x440   : > { %v5913_v29 = vadd.f32 %v5838_v44, %v3277_v45  ;;  %v5250_v13 = vadd.f32 %v5249_v38, %v12151_v55  ;;  %8274 = vmatpush.msrb.mxu2 %v15857_v56  ;;  %v5841_v19 = vpop.f32.mrf.mxu3  ;;  %v2666_v55 = vmul.f32 %v2602_v37, %v15835_v52  ;;  %8035 = vmatpush.msrb.mxu1 %v15683_v63  ;;  %v2352_v45 = vadd.f32 2.4801588e-05, %v2288_v39  ;;  %v15867_v37 = vld [vmem:[#allocation233_spill] sm:$0xff]  ;;  %v15874_v39 = vld [vmem:[#allocation271_spill] sm:$0xff] }
 0x441   : > { %7832 = vmatpush.msrb.mxu0 %v15858_v8  ;;  %8451 = vmatpush.msrb.mxu3 %v15676_v1  ;;  %v15861_v1 = vld [vmem:[#allocation191_spill] sm:$0xff]  ;;  %v6059_v44 = vand.u32 4294901760, %v6058_v30  ;;  %v2290_v56 = vmul.f32 %v2226_v2, %v15859_v6  ;;  %v15872_v8 = vld [vmem:[#allocation109_spill] sm:$0xff]  ;;  %v15880_v2 = vld [vmem:[#allocation286_spill] sm:$0xff] }
 0x442   : > { %5946 = vst.msk [vmem:[%s12276_s29 + $0x88] sm:$0xff] %vm275_vm0, %v5913_v29  ;;  %v5462_v27 = vadd.f32 %v5461_v31, %v5250_v13  ;;  %6046 = vmatmul.f32.gmra.mxu0 %v6045_v50  ;;  %6391 = vmatmul.f32.gmra.mxu1 %v12624_v58  ;;  %v6052_v31 = vsub.f32 %v12641_v26, %v6051_v47  ;;  %v2730_v28 = vadd.f32 -0.5, %v2666_v55  ;;  %v15873_v55 = vld [vmem:[#allocation244_spill] sm:$0xff] }
 0x443   : > { %8278 = vmatpush.msrb.mxu2 %v15860_v20  ;;  %7835 = vmatpush.msrb.mxu0 %v15861_v1  ;;  %v2668_v29 = vmul.f32 %v2604_v49, %v15837_v15  ;;  %v2542_v13 = vmul.f32 %v2478_v54, %v15842_v24  ;;  %v2416_v50 = vmul.f32 %v2352_v45, %v15850_v46  ;;  %v15875_v1 = vld [vmem:[#allocation97_spill] sm:$0xff]  ;;  %v15879_v45 = vld [vmem:[#allocation44_spill] sm:$0xff] }
 0x444   : > { %v5681_v53 = vadd.f32 %v5680_v40, %v5462_v27  ;;  %6572 = vmatmul.f32.gmra.mxu2 %v12641_v26  ;;  %8453 = vmatpush.msrb.mxu3 %v15683_v63  ;;  %v15864_v26 = vld [vmem:[#allocation210_spill] sm:$0xff]  ;;  %v15866_v63 = vld [vmem:[#allocation225_spill] sm:$0xff]  ;;  %v6053_v41 = vand.u32 4294901760, %v6052_v31  ;;  %v12693_v40 = vsub.f32 %v3174_v12, %v12680_v0  ;;  %v2794_v51 = vmul.f32 %v2730_v28, %v15835_v52 }
 0x445   : > { %8282 = vmatpush.msrb.mxu2 %v15863_v10  ;;  %7838 = vmatpush.msrb.mxu0 %v15864_v26  ;;  %v15871_v12 = vld [vmem:[#allocation246_spill] sm:$0xff]  ;;  %v2164_v27 = vmul.f32 2.0876758e-09, %v15872_v8  ;;  %v3279_v52 = vld [vmem:[%s12276_s29 + $0x98] sm:$0xff]  ;;  %v2732_v31 = vadd.f32 -0.5, %v2668_v29  ;;  %v15884_v29 = vld [vmem:[#allocation112_spill] sm:$0xff] }
 0x446   : > { %v5842_v11 = vadd.f32 %v5841_v19, %v5681_v53  ;;  %6769 = vmatmul.f32.gmra.mxu3 %v6051_v47  ;;  %v5684_v48 = vpop.f32.mrf.mxu2  ;;  %8037 = vmatpush.msrb.mxu1 %v15865_v62  ;;  %v3176_v47 = vmul.f32 %v3112_v14, %v2856_v36  ;;  %v15870_v19 = vld [vmem:[#allocation249_spill] sm:$0xff]  ;;  %v6067_v61 = vand.u32 4294901760, %v12693_v40  ;;  %v2858_v20 = vadd.f32 1.0, %v2794_v51 }
 0x447   : > { %v5254_v7 = vpop.f32.mrf.mxu0  ;;  %8455 = vmatpush.msrb.mxu3 %v15865_v62  ;;  %v5473_v3 = vpop.f32.mrf.mxu1  ;;  %8286 = vmatpush.msrb.mxu2 %v15867_v37  ;;  %v3114_v53 = vadd.f32 %v15875_v1, %v15875_v1  ;;  %v2606_v22 = vadd.f32 0.041666668, %v2542_v13  ;;  %v2480_v14 = vadd.f32 -0.0013888889, %v2416_v50  ;;  %v2354_v10 = vadd.f32 2.4801588e-05, %v2290_v56 }
 0x448   : > { %v5914_v57 = vadd.f32 %v5842_v11, %v3278_v43  ;;  %v5255_v35 = vadd.f32 %v5254_v7, %v15866_v63  ;;  %7841 = vmatpush.msrb.mxu0 %v15868_v33  ;;  %v5845_v38 = vpop.f32.mrf.mxu3  ;;  %8039 = vmatpush.msrb.mxu1 %v15869_v4  ;;  %v12711_v34 = vand.u32 4294901760, %v3176_v47  ;;  %v15877_v11 = vld [vmem:[#allocation265_spill] sm:$0xff]  ;;  %v2228_v54 = vadd.f32 -2.755732e-07, %v2164_v27  ;;  %v15885_v50 = vld [vmem:[#allocation295_spill] sm:$0xff] }
 0x449   : > { %8457 = vmatpush.msrb.mxu3 %v15869_v4  ;;  %8290 = vmatpush.msrb.mxu2 %v15870_v19  ;;  %v15878_v49 = vld [vmem:[#allocation221_spill] sm:$0xff]  ;;  %v2796_v37 = vmul.f32 %v2732_v31, %v15837_v15  ;;  %v2670_v33 = vmul.f32 %v2606_v22, %v15842_v24  ;;  %v15882_v4 = vld [vmem:[#allocation299_spill] sm:$0xff]  ;;  %v2166_v13 = vmul.f32 2.0876758e-09, %v15884_v29  ;;  %v15886_v15 = vld [vmem:[#allocation102_spill] sm:$0xff] }
 0x44a   : > { %5947 = vst.msk [vmem:[%s12276_s29 + $0x90] sm:$0xff] %vm275_vm0, %v5914_v57  ;;  %v5468_v17 = vadd.f32 %v5467_v18, %v5255_v35  ;;  %6054 = vmatmul.f32.gmra.mxu0 %v6053_v41  ;;  %6395 = vmatmul.f32.gmra.mxu1 %v12658_v9  ;;  %v6060_v18 = vsub.f32 %v6058_v30, %v6059_v44  ;;  %v15881_v35 = vld [vmem:[#allocation284_spill] sm:$0xff]  ;;  %v3280_v19 = vld [vmem:[%s12276_s29 + $0xa0] sm:$0xff]  ;;  %v15889_v31 = vld [vmem:[#allocation303_spill] sm:$0xff] }
 0x44b   : > { %7844 = vmatpush.msrb.mxu0 %v15871_v12  ;;  %8459 = vmatpush.msrb.mxu3 %v15873_v55  ;;  %v6068_v57 = vsub.f32 %v12693_v40, %v6067_v61  ;;  %v6074_v63 = vsub.f32 %v3176_v47, %v12711_v34  ;;  %v2418_v47 = vmul.f32 %v2354_v10, %v15859_v6  ;;  %v15887_v12 = vld [vmem:[#allocation307_spill] sm:$0xff] }
 0x44c   : > { %v5685_v16 = vadd.f32 %v5684_v48, %v5468_v17  ;;  %6577 = vmatmul.f32.gmra.mxu2 %v6058_v30  ;;  %8041 = vmatpush.msrb.mxu1 %v15873_v55  ;;  %v15876_v30 = vld [vmem:[#allocation269_spill] sm:$0xff]  ;;  %v6061_v48 = vand.u32 4294901760, %v6060_v18  ;;  %v3116_v56 = vadd.f32 %v15886_v15, %v15886_v15  ;;  %v15888_v55 = vld [vmem:[#allocation306_spill] sm:$0xff]  ;;  %v15893_v15 = vld [vmem:[#allocation31_spill] sm:$0xff] }
 0x44d   : > { %8294 = vmatpush.msrb.mxu2 %v15874_v39  ;;  %7847 = vmatpush.msrb.mxu0 %v15876_v30  ;;  %v15883_v17 = vld [vmem:[#allocation297_spill] sm:$0xff]  ;;  %v6069_v18 = vand.u32 4294901760, %v6068_v57 }
 0x44e   : > { %v5846_v23 = vadd.f32 %v5845_v38, %v5685_v16  ;;  %6775 = vmatmul.f32.gmra.mxu3 %v6059_v44  ;;  %v5688_v36 = vpop.f32.mrf.mxu2  ;;  %8043 = vmatpush.msrb.mxu1 %v15877_v11  ;;  %v3178_v44 = vmul.f32 %v3114_v53, %v2858_v20  ;;  %v2544_v38 = vmul.f32 %v2480_v14, %v15850_v46  ;;  %v2734_v20 = vadd.f32 -0.5, %v2670_v33  ;;  %v15892_v33 = vld [vmem:[#allocation106_spill] sm:$0xff] }
 0x44f   : > { %v5259_v43 = vpop.f32.mrf.mxu0  ;;  %8461 = vmatpush.msrb.mxu3 %v15877_v11  ;;  %v5479_v7 = vpop.f32.mrf.mxu1  ;;  %8298 = vmatpush.msrb.mxu2 %v15879_v45  ;;  %v2482_v53 = vadd.f32 -0.0013888889, %v2418_v47  ;;  %v2230_v14 = vadd.f32 -2.755732e-07, %v2166_v13  ;;  %v15891_v11 = vld [vmem:[#allocation118_spill] sm:$0xff] }
 0x450   : > { %v5915_v28 = vadd.f32 %v5846_v23, %v3279_v52  ;;  %v5260_v26 = vadd.f32 %v5259_v43, %v15878_v49  ;;  %7850 = vmatpush.msrb.mxu0 %v15880_v2  ;;  %v5849_v62 = vpop.f32.mrf.mxu3  ;;  %8045 = vmatpush.msrb.mxu1 %v15881_v35  ;;  %v12745_v27 = vand.u32 4294901760, %v3178_v44  ;;  %v6075_v23 = vand.u32 4294901760, %v6074_v63  ;;  %v15890_v43 = vld [vmem:[#allocation226_spill] sm:$0xff] }
 0x451   : > { %8463 = vmatpush.msrb.mxu3 %v15881_v35  ;;  %8302 = vmatpush.msrb.mxu2 %v15882_v4  ;;  %v2608_v1 = vadd.f32 0.041666668, %v2544_v38  ;;  %v2798_v45 = vmul.f32 %v2734_v20, %v15842_v24  ;;  %v3118_v38 = vadd.f32 %v15892_v33, %v15892_v33 }
 0x452   : > { %5948 = vst.msk [vmem:[%s12276_s29 + $0x98] sm:$0xff] %vm275_vm0, %v5915_v28  ;;  %v5474_v41 = vadd.f32 %v5473_v3, %v5260_v26  ;;  %6062 = vmatmul.f32.gmra.mxu0 %v6061_v48  ;;  %6399 = vmatmul.f32.gmra.mxu1 %v12680_v0  ;;  %v2292_v3 = vmul.f32 %v2228_v54, %v15872_v8  ;;  %v2168_v28 = vmul.f32 2.0876758e-09, %v15891_v11 }
 0x453   : > { %7853 = vmatpush.msrb.mxu0 %v15883_v17  ;;  %8465 = vmatpush.msrb.mxu3 %v15885_v50  ;;  %v6082_v26 = vsub.f32 %v3178_v44, %v12745_v27  ;;  %v6076_v54 = vsub.f32 %v6074_v63, %v6075_v23  ;;  %v2672_v2 = vmul.f32 %v2608_v1, %v15850_v46 }
 0x454   : > { %v5689_v51 = vadd.f32 %v5688_v36, %v5474_v41  ;;  %6582 = vmatmul.f32.gmra.mxu2 %v12693_v40  ;;  %8047 = vmatpush.msrb.mxu1 %v15885_v50  ;;  %v2860_v40 = vadd.f32 1.0, %v2796_v37  ;;  %v2356_v22 = vadd.f32 2.4801588e-05, %v2292_v3  ;;  %v2294_v41 = vmul.f32 %v2230_v14, %v15884_v29 }
 0x455   : > { %8306 = vmatpush.msrb.mxu2 %v15887_v12  ;;  %7856 = vmatpush.msrb.mxu0 %v15888_v55  ;;  %v2232_v37 = vadd.f32 -2.755732e-07, %v2168_v28  ;;  %v6083_v47 = vand.u32 4294901760, %v6082_v26  ;;  %v2862_v3 = vadd.f32 1.0, %v2798_v45  ;;  %v15894_v55 = vld [vmem:[#allocation128_spill] sm:$0xff] }
 0x456   : > { %v5850_v16 = vadd.f32 %v5849_v62, %v5689_v51  ;;  %6781 = vmatmul.f32.gmra.mxu3 %v6067_v61  ;;  %v5692_v39 = vpop.f32.mrf.mxu2  ;;  %8049 = vmatpush.msrb.mxu1 %v15889_v31  ;;  %v3180_v48 = vmul.f32 %v3116_v56, %v2860_v40  ;;  %v2546_v62 = vmul.f32 %v2482_v53, %v15859_v6  ;;  %v6077_v51 = vand.u32 4294901760, %v6076_v54 }
 0x457   : > { %v5264_v52 = vpop.f32.mrf.mxu0  ;;  %8467 = vmatpush.msrb.mxu3 %v15889_v31  ;;  %v5485_v36 = vpop.f32.mrf.mxu1  ;;  %v2420_v35 = vmul.f32 %v2356_v22, %v15872_v8  ;;  %v2296_v40 = vmul.f32 %v2232_v37, %v15891_v11  ;;  %v3182_v1 = vmul.f32 %v3118_v38, %v2862_v3  ;;  %v3282_v22 = vld [vmem:[%s12276_s29 + $0xb0] sm:$0xff] }
 0x458   : > { %v5916_v30 = vadd.f32 %v5850_v16, %v3280_v19  ;;  %v5265_v61 = vadd.f32 %v5264_v52, %v15890_v43  ;;  %v5853_v10 = vpop.f32.mrf.mxu3  ;;  %v12764_v24 = vand.u32 4294901760, %v3180_v48  ;;  %v2610_v13 = vadd.f32 0.041666668, %v2546_v62 }
 0x459   : > { %v2484_v12 = vadd.f32 -0.0013888889, %v2420_v35  ;;  %v2358_v16 = vadd.f32 2.4801588e-05, %v2294_v41  ;;  %v2170_v52 = vmul.f32 2.0876758e-09, %v15894_v55 }
 0x45a   : > { %5949 = vst.msk [vmem:[%s12276_s29 + $0xa0] sm:$0xff] %vm275_vm0, %v5916_v30  ;;  %v5480_v49 = vadd.f32 %v5479_v7, %v5265_v61  ;;  %6070 = vmatmul.f32.gmra.mxu0 %v6069_v18  ;;  %6403 = vmatmul.f32.gmra.mxu1 %v12711_v34  ;;  %v3281_v7 = vld [vmem:[%s12276_s29 + $0xa8] sm:$0xff]  ;;  %v6090_v20 = vsub.f32 %v3180_v48, %v12764_v24  ;;  %v2360_v14 = vadd.f32 2.4801588e-05, %v2296_v40  ;;  %v12778_v45 = vand.u32 4294901760, %v3182_v1 }
 0x45b   : > { %v2674_v31 = vmul.f32 %v2610_v13, %v15859_v6  ;;  %v2548_v43 = vmul.f32 %v2484_v12, %v15872_v8  ;;  %v2422_v61 = vmul.f32 %v2358_v16, %v15884_v29 }
 0x45c   : > { %v5693_v57 = vadd.f32 %v5692_v39, %v5480_v49  ;;  %6587 = vmatmul.f32.gmra.mxu2 %v6074_v63  ;;  %v2736_v63 = vadd.f32 -0.5, %v2672_v2  ;;  %v6091_v49 = vand.u32 4294901760, %v6090_v20  ;;  %v15895_v2 = vld [vmem:[#allocation115_spill] sm:$0xff]  ;;  %v2424_v38 = vmul.f32 %v2360_v14, %v15891_v11 }
 0x45d   : > { %v2738_v62 = vadd.f32 -0.5, %v2674_v31  ;;  %v2486_v37 = vadd.f32 -0.0013888889, %v2422_v61 }
 0x45e   : > { %v5854_v44 = vadd.f32 %v5853_v10, %v5693_v57  ;;  %6787 = vmatmul.f32.gmra.mxu3 %v6075_v23  ;;  %v5696_v17 = vpop.f32.mrf.mxu2  ;;  %v6084_v23 = vsub.f32 %v6082_v26, %v6083_v47  ;;  %v2800_v53 = vmul.f32 %v2736_v63, %v15850_v46  ;;  %v2488_v12 = vadd.f32 -0.0013888889, %v2424_v38 }
 0x45f   : > { %v5269_v4 = vpop.f32.mrf.mxu0  ;;  %v5491_v19 = vpop.f32.mrf.mxu1  ;;  %v2802_v63 = vmul.f32 %v2738_v62, %v15859_v6 }
 0x460   : > { %v5917_v50 = vadd.f32 %v5854_v44, %v3281_v7  ;;  %v5270_v56 = vadd.f32 %v5269_v4, %v15893_v15  ;;  %v5857_v18 = vpop.f32.mrf.mxu3  ;;  %v6085_v28 = vand.u32 4294901760, %v6084_v23  ;;  %v2864_v46 = vadd.f32 1.0, %v2800_v53  ;;  %v15897_v53 = vld [vmem:[#allocation123_spill] sm:$0xff] }
 0x461   : > { %v2612_v7 = vadd.f32 0.041666668, %v2548_v43  ;;  %v6092_v4 = vsub.f32 %v6090_v20, %v6091_v49  ;;  %v2550_v15 = vmul.f32 %v2486_v37, %v15884_v29  ;;  %v2866_v6 = vadd.f32 1.0, %v2802_v63 }
 0x462   : > { %5950 = vst.msk [vmem:[%s12276_s29 + $0xa8] sm:$0xff] %vm275_vm0, %v5917_v50  ;;  %v5486_v39 = vadd.f32 %v5485_v36, %v5270_v56  ;;  %6078 = vmatmul.f32.gmra.mxu0 %v6077_v51  ;;  %6407 = vmatmul.f32.gmra.mxu1 %v12745_v27  ;;  %v2234_v36 = vadd.f32 -2.755732e-07, %v2170_v52  ;;  %v3283_v56 = vld [vmem:[%s12276_s29 + $0xb8] sm:$0xff] }
 0x463   : > { %v2676_v50 = vmul.f32 %v2612_v7, %v15872_v8 }
 0x464   : > { %v5697_v30 = vadd.f32 %v5696_v17, %v5486_v39  ;;  %6592 = vmatmul.f32.gmra.mxu2 %v6082_v26  ;;  %v3120_v26 = vadd.f32 %v15895_v2, %v15895_v2  ;;  %v2298_v44 = vmul.f32 %v2234_v36, %v15894_v55  ;;  %v15896_v17 = vld [vmem:[#allocation135_spill] sm:$0xff]  ;;  %v2552_v36 = vmul.f32 %v2488_v12, %v15891_v11 }
 0x465   : > { %v2172_v51 = vmul.f32 2.0876758e-09, %v15896_v17  ;;  %v2740_v61 = vadd.f32 -0.5, %v2676_v50 }
 0x466   : > { %v5858_v10 = vadd.f32 %v5857_v18, %v5697_v30  ;;  %6793 = vmatmul.f32.gmra.mxu3 %v6083_v47  ;;  %v5700_v54 = vpop.f32.mrf.mxu2  ;;  %v3184_v3 = vmul.f32 %v3120_v26, %v2864_v46  ;;  %v6093_v18 = vand.u32 4294901760, %v6092_v4  ;;  %v2616_v7 = vadd.f32 0.041666668, %v2552_v36 }
 0x467   : > { %v5274_v48 = vpop.f32.mrf.mxu0  ;;  %v5497_v41 = vpop.f32.mrf.mxu1  ;;  %v2236_v40 = vadd.f32 -2.755732e-07, %v2172_v51  ;;  %v2804_v62 = vmul.f32 %v2740_v61, %v15872_v8 }
 0x468   : > { %v5918_v57 = vadd.f32 %v5858_v10, %v3282_v22  ;;  %v5275_v35 = vadd.f32 %v5274_v48, %v12233_v32  ;;  %v5861_v33 = vpop.f32.mrf.mxu3  ;;  %v6098_v32 = vsub.f32 %v3182_v1, %v12778_v45  ;;  %v12794_v1 = vand.u32 4294901760, %v3184_v3  ;;  %v15898_v48 = vld [vmem:[#allocation143_spill] sm:$0xff] }
 0x469   : > { %v2614_v22 = vadd.f32 0.041666668, %v2550_v15  ;;  %v2868_v15 = vadd.f32 1.0, %v2804_v62  ;;  %v15902_v62 = vld [vmem:[#allocation229_spill] sm:$0xff] }
 0x46a   : > { %5951 = vst.msk [vmem:[%s12276_s29 + $0xb0] sm:$0xff] %vm275_vm0, %v5918_v57  ;;  %v5492_v47 = vadd.f32 %v5491_v19, %v5275_v35  ;;  %6086 = vmatmul.f32.gmra.mxu0 %v6085_v28  ;;  %6411 = vmatmul.f32.gmra.mxu1 %v12764_v24  ;;  %v2362_v19 = vadd.f32 2.4801588e-05, %v2298_v44  ;;  %v6099_v23 = vand.u32 4294901760, %v6098_v32  ;;  %v6106_v46 = vsub.f32 %v3184_v3, %v12794_v1  ;;  %v3284_v35 = vld [vmem:[%s12276_s29 + $0xc0] sm:$0xff]  ;;  %v15899_v44 = vld [vmem:[#allocation125_spill] sm:$0xff] }
 0x46b   : > { %v2678_v57 = vmul.f32 %v2614_v22, %v15884_v29 }
 0x46c   : > { %v5701_v13 = vadd.f32 %v5700_v54, %v5492_v47  ;;  %6597 = vmatmul.f32.gmra.mxu2 %v6090_v20  ;;  %v3122_v20 = vadd.f32 %v15897_v53, %v15897_v53  ;;  %v2426_v10 = vmul.f32 %v2362_v19, %v15894_v55  ;;  %v2174_v54 = vmul.f32 2.0876758e-09, %v15898_v48 }
 0x46d   : > { %v3124_v47 = vadd.f32 %v15899_v44, %v15899_v44  ;;  %v6107_v63 = vand.u32 4294901760, %v6106_v46  ;;  %v2680_v19 = vmul.f32 %v2616_v7, %v15891_v11 }
 0x46e   : > { %v5862_v16 = vadd.f32 %v5861_v33, %v5701_v13  ;;  %6799 = vmatmul.f32.gmra.mxu3 %v6091_v49  ;;  %v5704_v39 = vpop.f32.mrf.mxu2  ;;  %v2300_v49 = vmul.f32 %v2236_v40, %v15896_v17  ;;  %v3186_v2 = vmul.f32 %v3122_v20, %v2866_v6  ;;  %v2238_v38 = vadd.f32 -2.755732e-07, %v2174_v54 }
 0x46f   : > { %v5279_v52 = vpop.f32.mrf.mxu0  ;;  %v5503_v43 = vpop.f32.mrf.mxu1  ;;  %v3188_v20 = vmul.f32 %v3124_v47, %v2868_v15  ;;  %v2744_v61 = vadd.f32 -0.5, %v2680_v19  ;;  %v15904_v15 = vld [vmem:[#allocation139_spill] sm:$0xff] }
 0x470   : > { %v5919_v31 = vadd.f32 %v5862_v16, %v3283_v56  ;;  %v5280_v30 = vadd.f32 %v5279_v52, %v12242_v59  ;;  %v5865_v14 = vpop.f32.mrf.mxu3  ;;  %v6100_v59 = vsub.f32 %v6098_v32, %v6099_v23  ;;  %v2364_v33 = vadd.f32 2.4801588e-05, %v2300_v49 }
 0x471   : > { %v2742_v56 = vadd.f32 -0.5, %v2678_v57  ;;  %v2302_v52 = vmul.f32 %v2238_v38, %v15898_v48 }
 0x472   : > { %5952 = vst.msk [vmem:[%s12276_s29 + $0xb8] sm:$0xff] %vm275_vm0, %v5919_v31  ;;  %v5498_v28 = vadd.f32 %v5497_v41, %v5280_v30  ;;  %6094 = vmatmul.f32.gmra.mxu0 %v6093_v18  ;;  %6415 = vmatmul.f32.gmra.mxu1 %v12778_v45  ;;  %v2490_v41 = vadd.f32 -0.0013888889, %v2426_v10  ;;  %v6101_v3 = vand.u32 4294901760, %v6100_v59  ;;  %v2428_v40 = vmul.f32 %v2364_v33, %v15896_v17  ;;  %v3285_v30 = vld [vmem:[%s12276_s29 + $0xc8] sm:$0xff]  ;;  %v15901_v10 = vld [vmem:[#allocation133_spill] sm:$0xff] }
 0x473   : > { %v2806_v31 = vmul.f32 %v2742_v56, %v15884_v29  ;;  %v2366_v36 = vadd.f32 2.4801588e-05, %v2302_v52  ;;  %v3286_v56 = vld [vmem:[%s12276_s29 + $0xd0] sm:$0xff] }
 0x474   : > { %v5705_v26 = vadd.f32 %v5704_v39, %v5498_v28  ;;  %6602 = vmatmul.f32.gmra.mxu2 %v6098_v32  ;;  %v12812_v32 = vand.u32 4294901760, %v3186_v2  ;;  %v2554_v16 = vmul.f32 %v2490_v41, %v15894_v55  ;;  %v3126_v28 = vadd.f32 %v15901_v10, %v15901_v10 }
 0x475   : > { %v2870_v7 = vadd.f32 1.0, %v2806_v31  ;;  %v2430_v47 = vmul.f32 %v2366_v36, %v15898_v48 }
 0x476   : > { %v5866_v37 = vadd.f32 %v5865_v14, %v5705_v26  ;;  %6805 = vmatmul.f32.gmra.mxu3 %v6099_v23  ;;  %v5708_v51 = vpop.f32.mrf.mxu2  ;;  %v6114_v39 = vsub.f32 %v3186_v2, %v12812_v32  ;;  %v15900_v23 = vld [vmem:[#allocation147_spill] sm:$0xff]  ;;  %v2492_v14 = vadd.f32 -0.0013888889, %v2428_v40 }
 0x477   : > { %v5284_v4 = vpop.f32.mrf.mxu0  ;;  %v5509_v50 = vpop.f32.mrf.mxu1  ;;  %v2176_v6 = vmul.f32 2.0876758e-09, %v15900_v23  ;;  %v2494_v40 = vadd.f32 -0.0013888889, %v2430_v47 }
 0x478   : > { %v5920_v8 = vadd.f32 %v5866_v37, %v3284_v35  ;;  %v5285_v13 = vadd.f32 %v5284_v4, %v12249_v5  ;;  %v5869_v12 = vpop.f32.mrf.mxu3  ;;  %v6108_v5 = vsub.f32 %v6106_v46, %v6107_v63  ;;  %v6115_v2 = vand.u32 4294901760, %v6114_v39 }
 0x479   : > { %v2240_v26 = vadd.f32 -2.755732e-07, %v2176_v6  ;;  %v12829_v35 = vand.u32 4294901760, %v3188_v20  ;;  %v2808_v37 = vmul.f32 %v2744_v61, %v15891_v11  ;;  %v2556_v44 = vmul.f32 %v2492_v14, %v15896_v17 }
 0x47a   : > { %5953 = vst.msk [vmem:[%s12276_s29 + $0xc0] sm:$0xff] %vm275_vm0, %v5920_v8  ;;  %v5504_v18 = vadd.f32 %v5503_v43, %v5285_v13  ;;  %6102 = vmatmul.f32.gmra.mxu0 %v6101_v3  ;;  %6419 = vmatmul.f32.gmra.mxu1 %v12794_v1  ;;  %v2618_v43 = vadd.f32 0.041666668, %v2554_v16  ;;  %v6109_v59 = vand.u32 4294901760, %v6108_v5  ;;  %v6116_v4 = vsub.f32 %v6114_v39, %v6115_v2  ;;  %v15903_v3 = vld [vmem:[#allocation152_spill] sm:$0xff] }
 0x47b   : > { %v6122_v11 = vsub.f32 %v3188_v20, %v12829_v35  ;;  %v3190_v13 = vmul.f32 %v3126_v28, %v2870_v7  ;;  %v15906_v7 = vld [vmem:[#allocation148_spill] sm:$0xff] }
 0x47c   : > { %v5709_v53 = vadd.f32 %v5708_v51, %v5504_v18  ;;  %6607 = vmatmul.f32.gmra.mxu2 %v6106_v46  ;;  %v2682_v33 = vmul.f32 %v2618_v43, %v15894_v55  ;;  %v2304_v51 = vmul.f32 %v2240_v26, %v15900_v23  ;;  %v2620_v18 = vadd.f32 0.041666668, %v2556_v44 }
 0x47d   : > { %v6117_v6 = vand.u32 4294901760, %v6116_v4  ;;  %v6123_v61 = vand.u32 4294901760, %v6122_v11  ;;  %v12845_v43 = vand.u32 4294901760, %v3190_v13 }
 0x47e   : > { %v5870_v22 = vadd.f32 %v5869_v12, %v5709_v53  ;;  %6811 = vmatmul.f32.gmra.mxu3 %v6107_v63  ;;  %v5712_v54 = vpop.f32.mrf.mxu2  ;;  %v2178_v63 = vmul.f32 2.0876758e-09, %v15903_v3  ;;  %v2872_v12 = vadd.f32 1.0, %v2808_v37  ;;  %v2746_v19 = vadd.f32 -0.5, %v2682_v33 }
 0x47f   : > { %v5289_v49 = vpop.f32.mrf.mxu0  ;;  %v5515_v29 = vpop.f32.mrf.mxu1  ;;  %v2368_v53 = vadd.f32 2.4801588e-05, %v2304_v51  ;;  %v2684_v28 = vmul.f32 %v2620_v18, %v15896_v17 }
 0x480   : > { %v5921_v46 = vadd.f32 %v5870_v22, %v3285_v30  ;;  %v5290_v57 = vadd.f32 %v5289_v49, %v15902_v62  ;;  %v5873_v41 = vpop.f32.mrf.mxu3  ;;  %v2242_v31 = vadd.f32 -2.755732e-07, %v2178_v63  ;;  %v2810_v36 = vmul.f32 %v2746_v19, %v15894_v55  ;;  %v3287_v62 = vld [vmem:[%s12276_s29 + $0xd8] sm:$0xff] }
 0x481   : > { %v2558_v49 = vmul.f32 %v2494_v40, %v15898_v48  ;;  %v6130_v55 = vsub.f32 %v3190_v13, %v12845_v43  ;;  %v2748_v33 = vadd.f32 -0.5, %v2684_v28 }
 0x482   : > { %5954 = vst.msk [vmem:[%s12276_s29 + $0xc8] sm:$0xff] %vm275_vm0, %v5921_v46  ;;  %v5510_v38 = vadd.f32 %v5509_v50, %v5290_v57  ;;  %6110 = vmatmul.f32.gmra.mxu0 %v6109_v59  ;;  %6423 = vmatmul.f32.gmra.mxu1 %v12812_v32  ;;  %v3128_v50 = vadd.f32 %v15904_v15, %v15904_v15  ;;  %v15905_v59 = vld [vmem:[#allocation160_spill] sm:$0xff] }
 0x483   : > { %v6124_v46 = vsub.f32 %v6122_v11, %v6123_v61  ;;  %v2812_v40 = vmul.f32 %v2748_v33, %v15896_v17 }
 0x484   : > { %v5713_v8 = vadd.f32 %v5712_v54, %v5510_v38  ;;  %6612 = vmatmul.f32.gmra.mxu2 %v6114_v39  ;;  %v3192_v14 = vmul.f32 %v3128_v50, %v2872_v12  ;;  %v2306_v54 = vmul.f32 %v2242_v31, %v15903_v3  ;;  %v2622_v38 = vadd.f32 0.041666668, %v2558_v49 }
 0x485   : > { %v6125_v50 = vand.u32 4294901760, %v6124_v46  ;;  %v2876_v17 = vadd.f32 1.0, %v2812_v40  ;;  %v3289_v40 = vld [vmem:[%s12276_s29 + $0xe8] sm:$0xff] }
 0x486   : > { %v5874_v16 = vadd.f32 %v5873_v41, %v5713_v8  ;;  %6817 = vmatmul.f32.gmra.mxu3 %v6115_v2  ;;  %v5716_v5 = vpop.f32.mrf.mxu2  ;;  %v2180_v2 = vmul.f32 2.0876758e-09, %v15905_v59  ;;  %v12858_v57 = vand.u32 4294901760, %v3192_v14  ;;  %v3130_v41 = vadd.f32 %v15906_v7, %v15906_v7 }
 0x487   : > { %v5294_v52 = vpop.f32.mrf.mxu0  ;;  %v5521_v30 = vpop.f32.mrf.mxu1  ;;  %v2370_v51 = vadd.f32 2.4801588e-05, %v2306_v54 }
 0x488   : > { %v5922_v39 = vadd.f32 %v5874_v16, %v3286_v56  ;;  %v5295_v20 = vadd.f32 %v5294_v52, %v12265_v21  ;;  %v5877_v22 = vpop.f32.mrf.mxu3  ;;  %v2432_v21 = vmul.f32 %v2368_v53, %v15900_v23  ;;  %v2244_v63 = vadd.f32 -2.755732e-07, %v2180_v2 }
 0x489   : > { %v6131_v56 = vand.u32 4294901760, %v6130_v55  ;;  %v6138_v19 = vsub.f32 %v3192_v14, %v12858_v57  ;;  %v2686_v52 = vmul.f32 %v2622_v38, %v15898_v48 }
 0x48a   : > { %5955 = vst.msk [vmem:[%s12276_s29 + $0xd0] sm:$0xff] %vm275_vm0, %v5922_v39  ;;  %v5516_v10 = vadd.f32 %v5515_v29, %v5295_v20  ;;  %6118 = vmatmul.f32.gmra.mxu0 %v6117_v6  ;;  %6427 = vmatmul.f32.gmra.mxu1 %v12829_v35  ;;  %v2874_v29 = vadd.f32 1.0, %v2810_v36  ;;  %v2496_v4 = vadd.f32 -0.0013888889, %v2432_v21  ;;  %v2434_v6 = vmul.f32 %v2370_v51, %v15903_v3  ;;  %v15908_v20 = vld [vmem:[#allocation166_spill] sm:$0xff] }
 0x48b   : > { %v2308_v53 = vmul.f32 %v2244_v63, %v15905_v59  ;;  %v6132_v39 = vsub.f32 %v6130_v55, %v6131_v56  ;;  %v2750_v49 = vadd.f32 -0.5, %v2686_v52 }
 0x48c   : > { %v5717_v26 = vadd.f32 %v5716_v5, %v5516_v10  ;;  %6617 = vmatmul.f32.gmra.mxu2 %v6122_v11  ;;  %v15907_v11 = vld [vmem:[#allocation237_spill] sm:$0xff]  ;;  %v3194_v16 = vmul.f32 %v3130_v41, %v2874_v29  ;;  %v2560_v5 = vmul.f32 %v2496_v4, %v15900_v23  ;;  %v15909_v10 = vld [vmem:[#allocation156_spill] sm:$0xff] }
 0x48d   : > { %v3132_v28 = vadd.f32 %v15909_v10, %v15909_v10  ;;  %v2372_v46 = vadd.f32 2.4801588e-05, %v2308_v53  ;;  %v6133_v41 = vand.u32 4294901760, %v6132_v39  ;;  %v2814_v51 = vmul.f32 %v2750_v49, %v15898_v48 }
 0x48e   : > { %v5878_v37 = vadd.f32 %v5877_v22, %v5717_v26  ;;  %6823 = vmatmul.f32.gmra.mxu3 %v6123_v61  ;;  %v5720_v47 = vpop.f32.mrf.mxu2  ;;  %v2182_v61 = vmul.f32 2.0876758e-09, %v15908_v20  ;;  %v3288_v22 = vld [vmem:[%s12276_s29 + $0xe0] sm:$0xff]  ;;  %v12874_v14 = vand.u32 4294901760, %v3194_v16  ;;  %v2624_v2 = vadd.f32 0.041666668, %v2560_v5 }
 0x48f   : > { %v5299_v44 = vpop.f32.mrf.mxu0  ;;  %v5527_v15 = vpop.f32.mrf.mxu1  ;;  %v2498_v26 = vadd.f32 -0.0013888889, %v2434_v6  ;;  %v3196_v4 = vmul.f32 %v3132_v28, %v2876_v17 }
 0x490   : > { %v5923_v8 = vadd.f32 %v5878_v37, %v3287_v62  ;;  %v5300_v13 = vadd.f32 %v5299_v44, %v15907_v11  ;;  %v5881_v12 = vpop.f32.mrf.mxu3  ;;  %v15910_v62 = vld [vmem:[#allocation228_spill] sm:$0xff]  ;;  %v2246_v37 = vadd.f32 -2.755732e-07, %v2182_v61  ;;  %v2688_v63 = vmul.f32 %v2624_v2, %v15900_v23 }
 0x491   : > { %v2436_v11 = vmul.f32 %v2372_v46, %v15905_v59  ;;  %v12892_v5 = vand.u32 4294901760, %v3196_v4 }
 0x492   : > { %5956 = vst.msk [vmem:[%s12276_s29 + $0xd8] sm:$0xff] %vm275_vm0, %v5923_v8  ;;  %v5522_v18 = vadd.f32 %v5521_v30, %v5300_v13  ;;  %6126 = vmatmul.f32.gmra.mxu0 %v6125_v50  ;;  %6431 = vmatmul.f32.gmra.mxu1 %v12845_v43  ;;  %v6139_v30 = vand.u32 4294901760, %v6138_v19  ;;  %v2562_v8 = vmul.f32 %v2498_v26, %v15903_v3  ;;  %v2752_v39 = vadd.f32 -0.5, %v2688_v63 }
 0x493   : > { %v2310_v50 = vmul.f32 %v2246_v37, %v15908_v20  ;;  %v2500_v61 = vadd.f32 -0.0013888889, %v2436_v11  ;;  %v6154_v46 = vsub.f32 %v3196_v4, %v12892_v5 }
 0x494   : > { %v5721_v31 = vadd.f32 %v5720_v47, %v5522_v18  ;;  %6622 = vmatmul.f32.gmra.mxu2 %v6130_v55  ;;  %v6140_v38 = vsub.f32 %v6138_v19, %v6139_v30  ;;  %v6146_v47 = vsub.f32 %v3194_v16, %v12874_v14 }
 0x495   : > { %v2374_v28 = vadd.f32 2.4801588e-05, %v2310_v50 }
 0x496   : > { %v5882_v36 = vadd.f32 %v5881_v12, %v5721_v31  ;;  %6829 = vmatmul.f32.gmra.mxu3 %v6131_v56  ;;  %v5724_v54 = vpop.f32.mrf.mxu2  ;;  %v15911_v56 = vld [vmem:[#allocation172_spill] sm:$0xff]  ;;  %v15912_v12 = vld [vmem:[#allocation158_spill] sm:$0xff]  ;;  %v6141_v52 = vand.u32 4294901760, %v6140_v38  ;;  %v6147_v48 = vand.u32 4294901760, %v6146_v47  ;;  %v2878_v31 = vadd.f32 1.0, %v2814_v51  ;;  %v15915_v51 = vld [vmem:[#allocation167_spill] sm:$0xff] }
 0x497   : > { %v5304_v21 = vpop.f32.mrf.mxu0  ;;  %v5533_v7 = vpop.f32.mrf.mxu1  ;;  %v3134_v18 = vadd.f32 %v15912_v12, %v15912_v12  ;;  %v3136_v63 = vadd.f32 %v15915_v51, %v15915_v51 }
 0x498   : > { %v5924_v55 = vadd.f32 %v5882_v36, %v3288_v22  ;;  %v5305_v29 = vadd.f32 %v5304_v21, %v15910_v62  ;;  %v5885_v33 = vpop.f32.mrf.mxu3  ;;  %v15913_v36 = vld [vmem:[#allocation238_spill] sm:$0xff]  ;;  %v6148_v26 = vsub.f32 %v6146_v47, %v6147_v48  ;;  %v2816_v62 = vmul.f32 %v2752_v39, %v15900_v23 }
 0x499   : > { %v6155_v23 = vand.u32 4294901760, %v6154_v46  ;;  %v15917_v39 = vld [vmem:[#allocation194_spill] sm:$0xff] }
 0x49a   : > { %5957 = vst.msk [vmem:[%s12276_s29 + $0xe0] sm:$0xff] %vm275_vm0, %v5924_v55  ;;  %v5528_v44 = vadd.f32 %v5527_v15, %v5305_v29  ;;  %6134 = vmatmul.f32.gmra.mxu0 %v6133_v41  ;;  %6435 = vmatmul.f32.gmra.mxu1 %v12858_v57  ;;  %v2184_v15 = vmul.f32 2.0876758e-09, %v15911_v56  ;;  %v3198_v55 = vmul.f32 %v3134_v18, %v2878_v31  ;;  %v6149_v4 = vand.u32 4294901760, %v6148_v26  ;;  %v3291_v26 = vld [vmem:[%s12276_s29 + $0xf8] sm:$0xff] }
 0x49b   : > { %v2564_v41 = vmul.f32 %v2500_v61, %v15905_v59 }
 0x49c   : > { %v5725_v13 = vadd.f32 %v5724_v54, %v5528_v44  ;;  %6627 = vmatmul.f32.gmra.mxu2 %v6138_v19  ;;  %v2626_v19 = vadd.f32 0.041666668, %v2562_v8  ;;  %v2248_v49 = vadd.f32 -2.755732e-07, %v2184_v15  ;;  %v15914_v54 = vld [vmem:[#allocation184_spill] sm:$0xff]  ;;  %v12908_v50 = vand.u32 4294901760, %v3198_v55 }
 0x49d   : > { %v2880_v15 = vadd.f32 1.0, %v2816_v62  ;;  %v2628_v12 = vadd.f32 0.041666668, %v2564_v41 }
 0x49e   : > { %v5886_v16 = vadd.f32 %v5885_v33, %v5725_v13  ;;  %6835 = vmatmul.f32.gmra.mxu3 %v6139_v30  ;;  %v5728_v53 = vpop.f32.mrf.mxu2  ;;  %v2186_v30 = vmul.f32 2.0876758e-09, %v15914_v54  ;;  %v2690_v29 = vmul.f32 %v2626_v19, %v15903_v3  ;;  %v2438_v33 = vmul.f32 %v2374_v28, %v15908_v20 }
 0x49f   : > { %v5309_v6 = vpop.f32.mrf.mxu0  ;;  %v5539_v10 = vpop.f32.mrf.mxu1  ;;  %v2312_v38 = vmul.f32 %v2248_v49, %v15911_v56  ;;  %v2188_v19 = vmul.f32 2.0876758e-09, %v15917_v39  ;;  %v2692_v49 = vmul.f32 %v2628_v12, %v15905_v59  ;;  %v15919_v12 = vld [vmem:[#allocation215_spill] sm:$0xff] }
 0x4a0   : > { %v5925_v22 = vadd.f32 %v5886_v16, %v3289_v40  ;;  %v5310_v17 = vadd.f32 %v5309_v6, %v15913_v36  ;;  %v5889_v21 = vpop.f32.mrf.mxu3  ;;  %v2250_v44 = vadd.f32 -2.755732e-07, %v2186_v30  ;;  %v15916_v40 = vld [vmem:[#allocation234_spill] sm:$0xff]  ;;  %v2502_v6 = vadd.f32 -0.0013888889, %v2438_v33 }
 0x4a1   : > { %v6162_v36 = vsub.f32 %v3198_v55, %v12908_v50 }
 0x4a2   : > { %5958 = vst.msk [vmem:[%s12276_s29 + $0xe8] sm:$0xff] %vm275_vm0, %v5925_v22  ;;  %v5534_v2 = vadd.f32 %v5533_v7, %v5310_v17  ;;  %6142 = vmatmul.f32.gmra.mxu0 %v6141_v52  ;;  %6439 = vmatmul.f32.gmra.mxu1 %v12874_v14  ;;  %v3290_v7 = vld [vmem:[%s12276_s29 + $0xf0] sm:$0xff]  ;;  %v6156_v22 = vsub.f32 %v6154_v46, %v6155_v23 }
 0x4a3   : > { %v3200_v17 = vmul.f32 %v3136_v63, %v2880_v15  ;;  %v2566_v30 = vmul.f32 %v2502_v6, %v15908_v20 }
 0x4a4   : > { %v5729_v37 = vadd.f32 %v5728_v53, %v5534_v2  ;;  %6632 = vmatmul.f32.gmra.mxu2 %v6146_v47  ;;  %v2754_v47 = vadd.f32 -0.5, %v2690_v29  ;;  %v2376_v53 = vadd.f32 2.4801588e-05, %v2312_v38  ;;  %v15918_v29 = vld [vmem:[#allocation171_spill] sm:$0xff]  ;;  %v6157_v55 = vand.u32 4294901760, %v6156_v22 }
 0x4a5   : > { %v3138_v41 = vadd.f32 %v15918_v29, %v15918_v29  ;;  %v6163_v38 = vand.u32 4294901760, %v6162_v36 }
 0x4a6   : > { %v5890_v8 = vadd.f32 %v5889_v21, %v5729_v37  ;;  %6841 = vmatmul.f32.gmra.mxu3 %v6147_v48  ;;  %v5732_v13 = vpop.f32.mrf.mxu2  ;;  %v2314_v48 = vmul.f32 %v2250_v44, %v15914_v54  ;;  %v2818_v28 = vmul.f32 %v2754_v47, %v15903_v3  ;;  %v2440_v2 = vmul.f32 %v2376_v53, %v15911_v56 }
 0x4a7   : > { %v5314_v11 = vpop.f32.mrf.mxu0  ;;  %v6380_v52 = vpop.f32.mrf.mxu1  ;;  %v2756_v44 = vadd.f32 -0.5, %v2692_v49  ;;  %v6164_v53 = vsub.f32 %v6162_v36, %v6163_v38 }
 0x4a8   : > { %v5926_v18 = vadd.f32 %v5890_v8, %v3290_v7  ;;  %v5315_v16 = vadd.f32 %v5314_v11, %v15916_v40  ;;  %v5893_v31 = vpop.f32.mrf.mxu3  ;;  %v2378_v62 = vadd.f32 2.4801588e-05, %v2314_v48  ;;  %v12924_v7 = vand.u32 4294901760, %v3200_v17 }
 0x4a9   : > { %v2504_v11 = vadd.f32 -0.0013888889, %v2440_v2  ;;  %v15920_v2 = vld [vmem:[#allocation190_spill] sm:$0xff] }
 0x4aa   : > { %5959 = vst.msk [vmem:[%s12276_s29 + $0xf0] sm:$0xff] %vm275_vm0, %v5926_v18  ;;  %v5540_v61 = vadd.f32 %v5539_v10, %v5315_v16  ;;  %6150 = vmatmul.f32.gmra.mxu0 %v6149_v4  ;;  %6443 = vmatmul.f32.gmra.mxu1 %v12892_v5  ;;  %v2252_v10 = vadd.f32 -2.755732e-07, %v2188_v19  ;;  %v2630_v4 = vadd.f32 0.041666668, %v2566_v30  ;;  %v2442_v15 = vmul.f32 %v2378_v62, %v15914_v54 }
 0x4ab   : > { %v2190_v18 = vmul.f32 2.0876758e-09, %v15919_v12  ;;  %v6170_v40 = vsub.f32 %v3200_v17, %v12924_v7  ;;  %v2568_v48 = vmul.f32 %v2504_v11, %v15911_v56 }
 0x4ac   : > { %v5733_v21 = vadd.f32 %v5732_v13, %v5540_v61  ;;  %6637 = vmatmul.f32.gmra.mxu2 %v6154_v46  ;;  %v2882_v46 = vadd.f32 1.0, %v2818_v28  ;;  %v2316_v47 = vmul.f32 %v2252_v10, %v15917_v39  ;;  %v2506_v19 = vadd.f32 -0.0013888889, %v2442_v15 }
 0x4ad   : > { %v2254_v22 = vadd.f32 -2.755732e-07, %v2190_v18  ;;  %v2632_v29 = vadd.f32 0.041666668, %v2568_v48 }
 0x4ae   : > { %v5894_v37 = vadd.f32 %v5893_v31, %v5733_v21  ;;  %6847 = vmatmul.f32.gmra.mxu3 %v6155_v23  ;;  %v6558_v3 = vpop.f32.mrf.mxu2  ;;  %v3202_v16 = vmul.f32 %v3138_v41, %v2882_v46  ;;  %v2694_v31 = vmul.f32 %v2630_v4, %v15908_v20  ;;  %v2380_v61 = vadd.f32 2.4801588e-05, %v2316_v47 }
 0x4af   : > { %v6031_v33 = vpop.f32.mrf.mxu0  ;;  %v6384_v8 = vpop.f32.mrf.mxu1  ;;  %v6171_v21 = vand.u32 4294901760, %v6170_v40  ;;  %v2696_v11 = vmul.f32 %v2632_v29, %v15911_v56 }
 0x4b0   : > { %v5927_v51 = vadd.f32 %v5894_v37, %v3291_v26  ;;  %v6381_v63 = vadd.f32 %v6380_v52, %v6031_v33  ;;  %v6752_v13 = vpop.f32.mrf.mxu3  ;;  %v2820_v52 = vmul.f32 %v2756_v44, %v15905_v59  ;;  %v12938_v30 = vand.u32 4294901760, %v3202_v16 }
 0x4b1   : > { %v3140_v59 = vadd.f32 %v15920_v2, %v15920_v2  ;;  %v2758_v10 = vadd.f32 -0.5, %v2694_v31  ;;  %v2570_v37 = vmul.f32 %v2506_v19, %v15914_v54  ;;  %v6172_v44 = vsub.f32 %v6170_v40, %v6171_v21 }
 0x4b2   : > { %5960 = vst.msk [vmem:[%s12276_s29 + $0xf8] sm:$0xff] %vm275_vm0, %v5927_v51  ;;  %v6559_v23 = vadd.f32 %v6558_v3, %v6381_v63  ;;  %6158 = vmatmul.f32.gmra.mxu0 %v6157_v55  ;;  %6447 = vmatmul.f32.gmra.mxu1 %v12908_v50  ;;  %v2884_v17 = vadd.f32 1.0, %v2820_v52  ;;  %v2444_v55 = vmul.f32 %v2380_v61, %v15917_v39 }
 0x4b3   : > { %v2318_v3 = vmul.f32 %v2254_v22, %v15919_v12  ;;  %v6178_v51 = vsub.f32 %v3202_v16, %v12938_v30  ;;  %v2822_v4 = vmul.f32 %v2758_v10, %v15908_v20  ;;  %v15922_v22 = vld [vmem:[#allocation199_spill] sm:$0xff]  ;;  %v2760_v20 = vadd.f32 -0.5, %v2696_v11 }
 0x4b4   : > { %v12934_v6 = vadd.f32 %v6752_v13, %v6559_v23  ;;  %6642 = vmatmul.f32.gmra.mxu2 %v6162_v36  ;;  %v6165_v36 = vand.u32 4294901760, %v6164_v53  ;;  %v3204_v63 = vmul.f32 %v3140_v59, %v2884_v17  ;;  %v2634_v13 = vadd.f32 0.041666668, %v2570_v37 }
 0x4b5   : > { %v2508_v15 = vadd.f32 -0.0013888889, %v2444_v55  ;;  %v2382_v47 = vadd.f32 2.4801588e-05, %v2318_v3  ;;  %v6173_v53 = vand.u32 4294901760, %v6172_v44  ;;  %v6179_v31 = vand.u32 4294901760, %v6178_v51 }
 0x4b6   : > { %6853 = vmatmul.f32.gmra.mxu3 %v6163_v38  ;;  %v15921_v38 = vld [vmem:[#allocation219_spill] sm:$0xff]  ;;  %v12952_v48 = vand.u32 4294901760, %v3204_v63  ;;  %v2886_v61 = vadd.f32 1.0, %v2822_v4  ;;  %v2824_v37 = vmul.f32 %v2760_v20, %v15911_v56  ;;  %v15924_v44 = vld [vmem:[#allocation208_spill] sm:$0xff] }
 0x4b7   : > { %v6039_v28 = vpop.f32.mrf.mxu0  ;;  %v6563_v49 = vpop.f32.mrf.mxu2  ;;  %v2192_v46 = vmul.f32 2.0876758e-09, %v15921_v38  ;;  %v2446_v2 = vmul.f32 %v2382_v47, %v15919_v12  ;;  %v3144_v4 = vadd.f32 %v15924_v44, %v15924_v44 }
 0x4b8   : > { %v6385_v26 = vadd.f32 %v6384_v8, %v6039_v28  ;;  %v6388_v62 = vpop.f32.mrf.mxu1  ;;  %v6186_v29 = vsub.f32 %v3204_v63, %v12952_v48  ;;  %v2888_v63 = vadd.f32 1.0, %v2824_v37 }
 0x4b9   : > { %v6758_v41 = vpop.f32.mrf.mxu3  ;;  %v2256_v23 = vadd.f32 -2.755732e-07, %v2192_v46  ;;  %v2510_v3 = vadd.f32 -0.0013888889, %v2446_v2 }
 0x4ba   : > { %v6564_v33 = vadd.f32 %v6563_v49, %v6385_v26  ;;  %6166 = vmatmul.f32.gmra.mxu0 %v6165_v36  ;;  %6451 = vmatmul.f32.gmra.mxu1 %v12924_v7  ;;  %v2698_v49 = vmul.f32 %v2634_v13, %v15914_v54  ;;  %v6180_v26 = vsub.f32 %v6178_v51, %v6179_v31 }
 0x4bb   : > { %v2320_v59 = vmul.f32 %v2256_v23, %v15921_v38 }
 0x4bc   : > { %v12948_v8 = vadd.f32 %v6758_v41, %v6564_v33  ;;  %6647 = vmatmul.f32.gmra.mxu2 %v6170_v40  ;;  %v3142_v40 = vadd.f32 %v15922_v22, %v15922_v22  ;;  %v2762_v55 = vadd.f32 -0.5, %v2698_v49 }
 0x4bd   : > { %v2384_v46 = vadd.f32 2.4801588e-05, %v2320_v59 }
 0x4be   : > { %6859 = vmatmul.f32.gmra.mxu3 %v6171_v21  ;;  %v2572_v21 = vmul.f32 %v2508_v15, %v15917_v39  ;;  %v3206_v41 = vmul.f32 %v3142_v40, %v2886_v61  ;;  %v6181_v15 = vand.u32 4294901760, %v6180_v26  ;;  %v2826_v56 = vmul.f32 %v2762_v55, %v15914_v54  ;;  %v15925_v40 = vld [vmem:[#allocation241_spill] sm:$0xff] }
 0x4bf   : > { %v6047_v18 = vpop.f32.mrf.mxu0  ;;  %v6568_v52 = vpop.f32.mrf.mxu2  ;;  %v2574_v61 = vmul.f32 %v2510_v3, %v15919_v12  ;;  %v2448_v22 = vmul.f32 %v2384_v46, %v15921_v38  ;;  %v2196_v20 = vmul.f32 2.0876758e-09, %v15925_v40 }
 0x4c0   : > { %v6389_v16 = vadd.f32 %v6388_v62, %v6047_v18  ;;  %v6392_v19 = vpop.f32.mrf.mxu1  ;;  %v15923_v62 = vld [vmem:[#allocation232_spill] sm:$0xff]  ;;  %v2636_v33 = vadd.f32 0.041666668, %v2572_v21  ;;  %v3208_v21 = vmul.f32 %v3144_v4, %v2888_v63  ;;  %v2890_v59 = vadd.f32 1.0, %v2826_v56  ;;  %v15928_v56 = vld [vmem:[#allocation257_spill] sm:$0xff] }
 0x4c1   : > { %v6764_v28 = vpop.f32.mrf.mxu3  ;;  %v2194_v36 = vmul.f32 2.0876758e-09, %v15923_v62  ;;  %v2512_v37 = vadd.f32 -0.0013888889, %v2448_v22  ;;  %v2260_v46 = vadd.f32 -2.755732e-07, %v2196_v20 }
 0x4c2   : > { %v6569_v17 = vadd.f32 %v6568_v52, %v6389_v16  ;;  %6174 = vmatmul.f32.gmra.mxu0 %v6173_v53  ;;  %6455 = vmatmul.f32.gmra.mxu1 %v12938_v30  ;;  %v12968_v52 = vand.u32 4294901760, %v3206_v41  ;;  %v15929_v22 = vld [vmem:[#allocation236_spill] sm:$0xff] }
 0x4c3   : > { %v2258_v47 = vadd.f32 -2.755732e-07, %v2194_v36  ;;  %v2638_v36 = vadd.f32 0.041666668, %v2574_v61  ;;  %v2576_v63 = vmul.f32 %v2512_v37, %v15921_v38 }
 0x4c4   : > { %v12962_v10 = vadd.f32 %v6764_v28, %v6569_v17  ;;  %6652 = vmatmul.f32.gmra.mxu2 %v6178_v51  ;;  %v6187_v51 = vand.u32 4294901760, %v6186_v29  ;;  %v6194_v54 = vsub.f32 %v3206_v41, %v12968_v52  ;;  %v15926_v17 = vld [vmem:[#allocation223_spill] sm:$0xff] }
 0x4c5   : > { %v3146_v2 = vadd.f32 %v15926_v17, %v15926_v17 }
 0x4c6   : > { %6865 = vmatmul.f32.gmra.mxu3 %v6179_v31  ;;  %v2700_v31 = vmul.f32 %v2636_v33, %v15917_v39  ;;  %v6188_v49 = vsub.f32 %v6186_v29, %v6187_v51 }
 0x4c7   : > { %v6055_v11 = vpop.f32.mrf.mxu0  ;;  %v6573_v13 = vpop.f32.mrf.mxu2  ;;  %v3210_v4 = vmul.f32 %v3146_v2, %v2890_v59  ;;  %v2640_v2 = vadd.f32 0.041666668, %v2576_v63 }
 0x4c8   : > { %v6393_v23 = vadd.f32 %v6392_v19, %v6055_v11  ;;  %v6396_v18 = vpop.f32.mrf.mxu1  ;;  %v2322_v19 = vmul.f32 %v2258_v47, %v15923_v62  ;;  %v2764_v26 = vadd.f32 -0.5, %v2700_v31  ;;  %v2198_v31 = vmul.f32 2.0876758e-09, %v15928_v56 }
 0x4c9   : > { %v6770_v53 = vpop.f32.mrf.mxu3  ;;  %v12996_v20 = vand.u32 4294901760, %v3210_v4 }
 0x4ca   : > { %v6574_v16 = vadd.f32 %v6573_v13, %v6393_v23  ;;  %6182 = vmatmul.f32.gmra.mxu0 %v6181_v15  ;;  %6459 = vmatmul.f32.gmra.mxu1 %v12952_v48  ;;  %v2386_v3 = vadd.f32 2.4801588e-05, %v2322_v19  ;;  %v6189_v13 = vand.u32 4294901760, %v6188_v49  ;;  %v6195_v15 = vand.u32 4294901760, %v6194_v54 }
 0x4cb   : > { %v2828_v47 = vmul.f32 %v2764_v26, %v15917_v39  ;;  %v3148_v19 = vadd.f32 %v15929_v22, %v15929_v22  ;;  %15930 = vst [vmem:[#allocation239_spill] sm:$0xff] %v12996_v20 }
 0x4cc   : > { %v12977_v28 = vadd.f32 %v6770_v53, %v6574_v16  ;;  %6657 = vmatmul.f32.gmra.mxu2 %v6186_v29  ;;  %v12982_v29 = vand.u32 4294901760, %v3208_v21  ;;  %v2450_v53 = vmul.f32 %v2386_v3, %v15923_v62  ;;  %v6196_v61 = vsub.f32 %v6194_v54, %v6195_v15 }
 0x4cd   : > { %v2892_v49 = vadd.f32 1.0, %v2828_v47  ;;  %v2704_v47 = vmul.f32 %v2640_v2, %v15921_v38 }
 0x4ce   : > { %6871 = vmatmul.f32.gmra.mxu3 %v6187_v51  ;;  %15927 = vst [vmem:[#allocation41_spill] sm:$0xff] %v12982_v29  ;;  %v2702_v51 = vmul.f32 %v2638_v36, %v15919_v12  ;;  %v6202_v39 = vsub.f32 %v3208_v21, %v12982_v29  ;;  %v2514_v36 = vadd.f32 -0.0013888889, %v2450_v53  ;;  %v6210_v21 = vsub.f32 %v3210_v4, %v12996_v20  ;;  %v15931_v4 = vld [vmem:[#allocation273_spill] sm:$0xff] }
 0x4cf   : > { %v6063_v55 = vpop.f32.mrf.mxu0  ;;  %v6578_v33 = vpop.f32.mrf.mxu2 }
 0x4d0   : > { %v6397_v44 = vadd.f32 %v6396_v18, %v6063_v55  ;;  %v6400_v11 = vpop.f32.mrf.mxu1  ;;  %v2324_v18 = vmul.f32 %v2260_v46, %v15925_v40  ;;  %v2766_v17 = vadd.f32 -0.5, %v2702_v51  ;;  %v2262_v55 = vadd.f32 -2.755732e-07, %v2198_v31 }
 0x4d1   : > { %v6776_v41 = vpop.f32.mrf.mxu3  ;;  %v6197_v46 = vand.u32 4294901760, %v6196_v61  ;;  %v6211_v31 = vand.u32 4294901760, %v6210_v21 }
 0x4d2   : > { %v6579_v23 = vadd.f32 %v6578_v33, %v6397_v44  ;;  %6190 = vmatmul.f32.gmra.mxu0 %v6189_v13  ;;  %6463 = vmatmul.f32.gmra.mxu1 %v12968_v52  ;;  %v2388_v37 = vadd.f32 2.4801588e-05, %v2324_v18  ;;  %v3212_v13 = vmul.f32 %v3148_v19, %v2892_v49  ;;  %v2200_v18 = vmul.f32 2.0876758e-09, %v15931_v4 }
 0x4d3   : > { %v2768_v49 = vadd.f32 -0.5, %v2704_v47 }
 0x4d4   : > { %v12991_v16 = vadd.f32 %v6776_v41, %v6579_v23  ;;  %6662 = vmatmul.f32.gmra.mxu2 %v6194_v54  ;;  %v6203_v54 = vand.u32 4294901760, %v6202_v39  ;;  %v2578_v23 = vmul.f32 %v2514_v36, %v15923_v62  ;;  %v2452_v51 = vmul.f32 %v2388_v37, %v15925_v40 }
 0x4d5   : > { %v13008_v61 = vand.u32 4294901760, %v3212_v13  ;;  %v2832_v47 = vmul.f32 %v2768_v49, %v15921_v38 }
 0x4d6   : > { %6877 = vmatmul.f32.gmra.mxu3 %v6195_v15  ;;  %v2830_v15 = vmul.f32 %v2766_v17, %v15919_v12  ;;  %v6204_v53 = vsub.f32 %v6202_v39, %v6203_v54  ;;  %v15933_v12 = vld [vmem:[#allocation253_spill] sm:$0xff] }
 0x4d7   : > { %v6071_v59 = vpop.f32.mrf.mxu0  ;;  %v6583_v26 = vpop.f32.mrf.mxu2  ;;  %15932 = vst [vmem:[#allocation240_spill] sm:$0xff] %v13008_v61  ;;  %v3150_v19 = vadd.f32 %v15933_v12, %v15933_v12 }
 0x4d8   : > { %v6401_v33 = vadd.f32 %v6400_v11, %v6071_v59  ;;  %v6404_v3 = vpop.f32.mrf.mxu1  ;;  %v2326_v11 = vmul.f32 %v2262_v55, %v15928_v56  ;;  %v2894_v22 = vadd.f32 1.0, %v2830_v15  ;;  %v2642_v59 = vadd.f32 0.041666668, %v2578_v23 }
 0x4d9   : > { %v6782_v44 = vpop.f32.mrf.mxu3 }
 0x4da   : > { %v6584_v41 = vadd.f32 %v6583_v26, %v6401_v33  ;;  %6198 = vmatmul.f32.gmra.mxu0 %v6197_v46  ;;  %6467 = vmatmul.f32.gmra.mxu1 %v12982_v29  ;;  %v2516_v26 = vadd.f32 -0.0013888889, %v2452_v51  ;;  %v2390_v36 = vadd.f32 2.4801588e-05, %v2326_v11  ;;  %v6205_v33 = vand.u32 4294901760, %v6204_v53  ;;  %v15935_v53 = vld [vmem:[#allocation288_spill] sm:$0xff] }
 0x4db   : > { %v3214_v15 = vmul.f32 %v3150_v19, %v2894_v22  ;;  %v2706_v12 = vmul.f32 %v2642_v59, %v15923_v62  ;;  %v2896_v19 = vadd.f32 1.0, %v2832_v47 }
 0x4dc   : > { %v13005_v63 = vadd.f32 %v6782_v44, %v6584_v41  ;;  %6667 = vmatmul.f32.gmra.mxu2 %v6202_v39  ;;  %v2264_v39 = vadd.f32 -2.755732e-07, %v2200_v18  ;;  %v6212_v44 = vsub.f32 %v6210_v21, %v6211_v31  ;;  %v2580_v23 = vmul.f32 %v2516_v26, %v15925_v40 }
 0x4dd   : > { %v2202_v18 = vmul.f32 2.0876758e-09, %v15935_v53  ;;  %v2770_v49 = vadd.f32 -0.5, %v2706_v12 }
 0x4de   : > { %6883 = vmatmul.f32.gmra.mxu3 %v6203_v54  ;;  %v6218_v54 = vsub.f32 %v3212_v13, %v13008_v61  ;;  %v2328_v11 = vmul.f32 %v2264_v39, %v15931_v4  ;;  %v13022_v13 = vand.u32 4294901760, %v3214_v15  ;;  %v2644_v59 = vadd.f32 0.041666668, %v2580_v23 }
 0x4df   : > { %v6079_v17 = vpop.f32.mrf.mxu0  ;;  %v6588_v2 = vpop.f32.mrf.mxu2  ;;  %v2266_v39 = vadd.f32 -2.755732e-07, %v2202_v18  ;;  %v2834_v47 = vmul.f32 %v2770_v49, %v15923_v62 }
 0x4e0   : > { %v6405_v37 = vadd.f32 %v6404_v3, %v6079_v17  ;;  %v6408_v55 = vpop.f32.mrf.mxu1  ;;  %v2454_v3 = vmul.f32 %v2390_v36, %v15928_v56  ;;  %v6213_v17 = vand.u32 4294901760, %v6212_v44  ;;  %15936 = vst [vmem:[#allocation243_spill] sm:$0xff] %v13022_v13  ;;  %v6226_v44 = vsub.f32 %v3214_v15, %v13022_v13 }
 0x4e1   : > { %v6788_v46 = vpop.f32.mrf.mxu3  ;;  %v2708_v12 = vmul.f32 %v2644_v59, %v15925_v40  ;;  %v2330_v18 = vmul.f32 %v2266_v39, %v15935_v53 }
 0x4e2   : > { %v6589_v41 = vadd.f32 %v6588_v2, %v6405_v37  ;;  %6206 = vmatmul.f32.gmra.mxu0 %v6205_v33  ;;  %6471 = vmatmul.f32.gmra.mxu1 %v12996_v20  ;;  %v6219_v2 = vand.u32 4294901760, %v6218_v54  ;;  %v2518_v26 = vadd.f32 -0.0013888889, %v2454_v3  ;;  %v15937_v33 = vld [vmem:[#allocation258_spill] sm:$0xff]  ;;  %v6227_v59 = vand.u32 4294901760, %v6226_v44 }
 0x4e4   : > { %v13018_v51 = vadd.f32 %v6788_v46, %v6589_v41  ;;  %6672 = vmatmul.f32.gmra.mxu2 %v6210_v21  ;;  %v3152_v21 = vadd.f32 %v15937_v33, %v15937_v33  ;;  %v2392_v46 = vadd.f32 2.4801588e-05, %v2328_v11  ;;  %v2898_v33 = vadd.f32 1.0, %v2834_v47 }
 0x4e6   : > { %15934 = vst [vmem:[#allocation242_spill] sm:$0xff] %v13018_v51  ;;  %6889 = vmatmul.f32.gmra.mxu3 %v6211_v31  ;;  %v6220_v31 = vsub.f32 %v6218_v54, %v6219_v2  ;;  %v3216_v3 = vmul.f32 %v3152_v21, %v2896_v19  ;;  %v2456_v11 = vmul.f32 %v2392_v46, %v15931_v4  ;;  %v2394_v46 = vadd.f32 2.4801588e-05, %v2330_v18 }
 0x4e7   : > { %v6087_v22 = vpop.f32.mrf.mxu0  ;;  %v6593_v38 = vpop.f32.mrf.mxu2 }
 0x4e8   : > { %v6409_v37 = vadd.f32 %v6408_v55, %v6087_v22  ;;  %v6412_v36 = vpop.f32.mrf.mxu1  ;;  %v2582_v55 = vmul.f32 %v2518_v26, %v15928_v56  ;;  %v6221_v15 = vand.u32 4294901760, %v6220_v31  ;;  %v2772_v26 = vadd.f32 -0.5, %v2708_v12 }
 0x4e9   : > { %v6794_v41 = vpop.f32.mrf.mxu3  ;;  %v13038_v19 = vand.u32 4294901760, %v3216_v3  ;;  %v2520_v21 = vadd.f32 -0.0013888889, %v2456_v11  ;;  %v2458_v11 = vmul.f32 %v2394_v46, %v15935_v53 }
 0x4ea   : > { %v6594_v20 = vadd.f32 %v6593_v38, %v6409_v37  ;;  %6214 = vmatmul.f32.gmra.mxu0 %v6213_v17  ;;  %6475 = vmatmul.f32.gmra.mxu1 %v13008_v61  ;;  %v15939_v17 = vld [vmem:[#allocation231_spill] sm:$0xff]  ;;  %v15940_v38 = vld [vmem:[#allocation266_spill] sm:$0xff] }
 0x4eb   : > { %v2143_v22 = vmul.f32 2.0876758e-09, %v15939_v17  ;;  %v3154_v37 = vadd.f32 %v15940_v38, %v15940_v38  ;;  %15941 = vst [vmem:[#allocation252_spill] sm:$0xff] %v13038_v19  ;;  %v2836_v38 = vmul.f32 %v2772_v26, %v15925_v40  ;;  %v2522_v46 = vadd.f32 -0.0013888889, %v2458_v11 }
 0x4ec   : > { %v13031_v23 = vadd.f32 %v6794_v41, %v6594_v20  ;;  %6677 = vmatmul.f32.gmra.mxu2 %v6218_v54  ;;  %v2646_v20 = vadd.f32 0.041666668, %v2582_v55  ;;  %v2584_v55 = vmul.f32 %v2520_v21, %v15931_v4 }
 0x4ed   : > { %v2207_v61 = vadd.f32 -2.755732e-07, %v2143_v22  ;;  %v3218_v31 = vmul.f32 %v3154_v37, %v2898_v33  ;;  %v15943_v22 = vld [vmem:[#allocation278_spill] sm:$0xff] }
 0x4ee   : > { %15938 = vst [vmem:[#allocation245_spill] sm:$0xff] %v13031_v23  ;;  %6895 = vmatmul.f32.gmra.mxu3 %v6219_v2  ;;  %v6228_v2 = vsub.f32 %v6226_v44, %v6227_v59  ;;  %v2710_v47 = vmul.f32 %v2646_v20, %v15928_v56  ;;  %v15944_v37 = vld [vmem:[#allocation250_spill] sm:$0xff]  ;;  %v2648_v21 = vadd.f32 0.041666668, %v2584_v55 }
 0x4ef   : > { %v6095_v62 = vpop.f32.mrf.mxu0  ;;  %v6598_v49 = vpop.f32.mrf.mxu2  ;;  %v2271_v18 = vmul.f32 %v2207_v61, %v15939_v17 }
 0x4f0   : > { %v6413_v41 = vadd.f32 %v6412_v36, %v6095_v62  ;;  %v6416_v54 = vpop.f32.mrf.mxu1  ;;  %v6234_v36 = vsub.f32 %v3216_v3, %v13038_v19  ;;  %v2145_v62 = vmul.f32 2.0876758e-09, %v15944_v37  ;;  %v6229_v33 = vand.u32 4294901760, %v6228_v2 }
 0x4f1   : > { %v6800_v39 = vpop.f32.mrf.mxu3  ;;  %v2774_v26 = vadd.f32 -0.5, %v2710_v47  ;;  %v2335_v61 = vadd.f32 2.4801588e-05, %v2271_v18  ;;  %v2586_v47 = vmul.f32 %v2522_v46, %v15935_v53  ;;  %v15947_v18 = vld [vmem:[#allocation261_spill] sm:$0xff] }
 0x4f2   : > { %v6599_v23 = vadd.f32 %v6598_v49, %v6413_v41  ;;  %6222 = vmatmul.f32.gmra.mxu0 %v6221_v15  ;;  %6479 = vmatmul.f32.gmra.mxu1 %v13022_v13  ;;  %v3156_v15 = vadd.f32 %v15943_v22, %v15943_v22  ;;  %v6235_v41 = vand.u32 4294901760, %v6234_v36 }
 0x4f3   : > { %v2838_v2 = vmul.f32 %v2774_v26, %v15928_v56  ;;  %v2399_v55 = vmul.f32 %v2335_v61, %v15939_v17 }
 0x4f4   : > { %v13043_v12 = vadd.f32 %v6800_v39, %v6599_v23  ;;  %6682 = vmatmul.f32.gmra.mxu2 %v6226_v44  ;;  %v13052_v23 = vand.u32 4294901760, %v3218_v31  ;;  %v2900_v44 = vadd.f32 1.0, %v2836_v38  ;;  %v2712_v38 = vmul.f32 %v2648_v21, %v15931_v4 }
 0x4f5   : > { %v2650_v21 = vadd.f32 0.041666668, %v2586_v47 }
 0x4f6   : > { %15942 = vst [vmem:[#allocation247_spill] sm:$0xff] %v13043_v12  ;;  %6901 = vmatmul.f32.gmra.mxu3 %v6227_v59  ;;  %v2209_v59 = vadd.f32 -2.755732e-07, %v2145_v62  ;;  %v6242_v22 = vsub.f32 %v3218_v31, %v13052_v23  ;;  %v3220_v12 = vmul.f32 %v3156_v15, %v2900_v44  ;;  %v2147_v62 = vmul.f32 2.0876758e-09, %v15947_v18 }
 0x4f7   : > { %v6103_v40 = vpop.f32.mrf.mxu0  ;;  %v6603_v49 = vpop.f32.mrf.mxu2  ;;  %15945 = vst [vmem:[#allocation254_spill] sm:$0xff] %v13052_v23 }
 0x4f8   : > { %v6417_v3 = vadd.f32 %v6416_v54, %v6103_v40  ;;  %v6420_v20 = vpop.f32.mrf.mxu1  ;;  %v6236_v54 = vsub.f32 %v6234_v36, %v6235_v41  ;;  %v2273_v11 = vmul.f32 %v2209_v59, %v15944_v37  ;;  %v15948_v40 = vld [vmem:[#allocation285_spill] sm:$0xff]  ;;  %v2211_v59 = vadd.f32 -2.755732e-07, %v2147_v62 }
 0x4f9   : > { %v6806_v39 = vpop.f32.mrf.mxu3  ;;  %v3158_v31 = vadd.f32 %v15948_v40, %v15948_v40 }
 0x4fa   : > { %v6604_v13 = vadd.f32 %v6603_v49, %v6417_v3  ;;  %6230 = vmatmul.f32.gmra.mxu0 %v6229_v33  ;;  %6483 = vmatmul.f32.gmra.mxu1 %v13038_v19  ;;  %v13066_v49 = vand.u32 4294901760, %v3220_v12  ;;  %v6237_v26 = vand.u32 4294901760, %v6236_v54  ;;  %v2776_v3 = vadd.f32 -0.5, %v2712_v38 }
 0x4fb   : > { %v2337_v61 = vadd.f32 2.4801588e-05, %v2273_v11  ;;  %v2275_v47 = vmul.f32 %v2211_v59, %v15947_v18 }
 0x4fc   : > { %v13057_v51 = vadd.f32 %v6806_v39, %v6604_v13  ;;  %6687 = vmatmul.f32.gmra.mxu2 %v6234_v36  ;;  %v6243_v13 = vand.u32 4294901760, %v6242_v22  ;;  %15949 = vst [vmem:[#allocation256_spill] sm:$0xff] %v13066_v49  ;;  %v2902_v36 = vadd.f32 1.0, %v2838_v2  ;;  %v6250_v19 = vsub.f32 %v3220_v12, %v13066_v49 }
 0x4fd   : > { %v2714_v2 = vmul.f32 %v2650_v21, %v15935_v53  ;;  %v2401_v38 = vmul.f32 %v2337_v61, %v15944_v37 }
 0x4fe   : > { %15946 = vst [vmem:[#allocation263_spill] sm:$0xff] %v13057_v51  ;;  %6907 = vmatmul.f32.gmra.mxu3 %v6235_v41  ;;  %v2463_v41 = vadd.f32 -0.0013888889, %v2399_v55  ;;  %v6244_v40 = vsub.f32 %v6242_v22, %v6243_v13  ;;  %v3222_v51 = vmul.f32 %v3158_v31, %v2902_v36  ;;  %v15951_v55 = vld [vmem:[#allocation277_spill] sm:$0xff]  ;;  %v6251_v31 = vand.u32 4294901760, %v6250_v19 }
 0x4ff   : > { %v6111_v15 = vpop.f32.mrf.mxu0  ;;  %v6608_v56 = vpop.f32.mrf.mxu2  ;;  %v2149_v11 = vmul.f32 2.0876758e-09, %v15951_v55 }
 0x500   : > { %v6421_v33 = vadd.f32 %v6420_v20, %v6111_v15  ;;  %v6424_v44 = vpop.f32.mrf.mxu1  ;;  %v2840_v20 = vmul.f32 %v2776_v3, %v15931_v4  ;;  %v2527_v54 = vmul.f32 %v2463_v41, %v15939_v17  ;;  %v6245_v12 = vand.u32 4294901760, %v6244_v40  ;;  %v15954_v40 = vld [vmem:[#allocation290_spill] sm:$0xff] }
 0x501   : > { %v6812_v46 = vpop.f32.mrf.mxu3  ;;  %v2778_v3 = vadd.f32 -0.5, %v2714_v2  ;;  %v2465_v41 = vadd.f32 -0.0013888889, %v2401_v38  ;;  %v2213_v61 = vadd.f32 -2.755732e-07, %v2149_v11  ;;  %v6252_v59 = vsub.f32 %v6250_v19, %v6251_v31  ;;  %v15956_v11 = vld [vmem:[#allocation310_spill] sm:$0xff] }
 0x502   : > { %v6609_v39 = vadd.f32 %v6608_v56, %v6421_v33  ;;  %6238 = vmatmul.f32.gmra.mxu0 %v6237_v26  ;;  %6487 = vmatmul.f32.gmra.mxu1 %v13052_v23  ;;  %v13078_v56 = vand.u32 4294901760, %v3222_v51  ;;  %v2904_v4 = vadd.f32 1.0, %v2840_v20  ;;  %v15953_v33 = vld [vmem:[#allocation296_spill] sm:$0xff]  ;;  %v2591_v21 = vadd.f32 0.041666668, %v2527_v54 }
 0x503   : > { %v3160_v26 = vadd.f32 %v15953_v33, %v15953_v33  ;;  %v2151_v23 = vmul.f32 2.0876758e-09, %v15954_v40  ;;  %v2842_v2 = vmul.f32 %v2778_v3, %v15935_v53 }
 0x504   : > { %v13070_v29 = vadd.f32 %v6812_v46, %v6609_v39  ;;  %6692 = vmatmul.f32.gmra.mxu2 %v6242_v22  ;;  %15952 = vst [vmem:[#allocation255_spill] sm:$0xff] %v13078_v56  ;;  %v2339_v39 = vadd.f32 2.4801588e-05, %v2275_v47  ;;  %v2655_v54 = vmul.f32 %v2591_v21, %v15939_v17  ;;  %v2277_v47 = vmul.f32 %v2213_v61, %v15951_v55 }
 0x505   : > { %v3224_v20 = vmul.f32 %v3160_v26, %v2904_v4  ;;  %v2215_v33 = vadd.f32 -2.755732e-07, %v2151_v23  ;;  %v2906_v3 = vadd.f32 1.0, %v2842_v2 }
 0x506   : > { %15950 = vst [vmem:[#allocation259_spill] sm:$0xff] %v13070_v29  ;;  %6913 = vmatmul.f32.gmra.mxu3 %v6243_v13  ;;  %v2403_v38 = vmul.f32 %v2339_v39, %v15947_v18  ;;  %v2341_v39 = vadd.f32 2.4801588e-05, %v2277_v47 }
 0x507   : > { %v6119_v62 = vpop.f32.mrf.mxu0  ;;  %v6613_v15 = vpop.f32.mrf.mxu2  ;;  %v13094_v53 = vand.u32 4294901760, %v3224_v20  ;;  %v2279_v61 = vmul.f32 %v2215_v33, %v15954_v40 }
 0x508   : > { %v6425_v22 = vadd.f32 %v6424_v44, %v6119_v62  ;;  %v6428_v36 = vpop.f32.mrf.mxu1  ;;  %v6258_v44 = vsub.f32 %v3222_v51, %v13078_v56  ;;  %v2529_v62 = vmul.f32 %v2465_v41, %v15944_v37  ;;  %v2467_v41 = vadd.f32 -0.0013888889, %v2403_v38 }
 0x509   : > { %v6818_v13 = vpop.f32.mrf.mxu3  ;;  %15957 = vst [vmem:[#allocation268_spill] sm:$0xff] %v13094_v53  ;;  %v2405_v38 = vmul.f32 %v2341_v39, %v15951_v55  ;;  %v2343_v33 = vadd.f32 2.4801588e-05, %v2279_v61 }
 0x50a   : > { %v6614_v46 = vadd.f32 %v6613_v15, %v6425_v22  ;;  %6246 = vmatmul.f32.gmra.mxu0 %v6245_v12  ;;  %6491 = vmatmul.f32.gmra.mxu1 %v13066_v49  ;;  %v3162_v15 = vadd.f32 %v15956_v11, %v15956_v11  ;;  %v6259_v26 = vand.u32 4294901760, %v6258_v44  ;;  %v15958_v11 = vld [vmem:[#allocation298_spill] sm:$0xff]  ;;  %v15965_v49 = vld [vmem:[#allocation308_spill] sm:$0xff] }
 0x50b   : > { %v2407_v61 = vmul.f32 %v2343_v33, %v15954_v40 }
 0x50c   : > { %v13084_v29 = vadd.f32 %v6818_v13, %v6614_v46  ;;  %6697 = vmatmul.f32.gmra.mxu2 %v6250_v19  ;;  %v6253_v19 = vand.u32 4294901760, %v6252_v59  ;;  %v2719_v13 = vadd.f32 -0.5, %v2655_v54  ;;  %v2593_v46 = vadd.f32 0.041666668, %v2529_v62 }
 0x50d   : > { %v2153_v59 = vmul.f32 2.0876758e-09, %v15958_v11  ;;  %v3226_v2 = vmul.f32 %v3162_v15, %v2906_v3  ;;  %v2531_v62 = vmul.f32 %v2467_v41, %v15947_v18  ;;  %v15962_v15 = vld [vmem:[#allocation46_spill] sm:$0xff] }
 0x50e   : > { %15955 = vst [vmem:[#allocation260_spill] sm:$0xff] %v13084_v29  ;;  %6919 = vmatmul.f32.gmra.mxu3 %v6251_v31  ;;  %v2783_v54 = vmul.f32 %v2719_v13, %v15939_v17  ;;  %v2155_v29 = vmul.f32 2.0876758e-09, %v15965_v49 }
 0x50f   : > { %v6127_v12 = vpop.f32.mrf.mxu0  ;;  %v6618_v22 = vpop.f32.mrf.mxu2  ;;  %v2595_v39 = vadd.f32 0.041666668, %v2531_v62 }
 0x510   : > { %v6429_v51 = vadd.f32 %v6428_v36, %v6127_v12  ;;  %v6432_v4 = vpop.f32.mrf.mxu1  ;;  %v6260_v36 = vsub.f32 %v6258_v44, %v6259_v26  ;;  %v6266_v12 = vsub.f32 %v3224_v20, %v13094_v53  ;;  %v15961_v20 = vld [vmem:[#allocation305_spill] sm:$0xff]  ;;  %v2847_v13 = vadd.f32 1.0, %v2783_v54 }
 0x511   : > { %v6824_v31 = vpop.f32.mrf.mxu3  ;;  %v3103_v17 = vadd.f32 %v15961_v20, %v15961_v20  ;;  %v2659_v62 = vmul.f32 %v2595_v39, %v15947_v18 }
 0x512   : > { %v6619_v21 = vadd.f32 %v6618_v22, %v6429_v51  ;;  %6254 = vmatmul.f32.gmra.mxu0 %v6253_v19  ;;  %6495 = vmatmul.f32.gmra.mxu1 %v13078_v56  ;;  %v2657_v22 = vmul.f32 %v2593_v46, %v15944_v37  ;;  %v2217_v51 = vadd.f32 -2.755732e-07, %v2153_v59  ;;  %v6261_v56 = vand.u32 4294901760, %v6260_v36 }
 0x513   : > { %v3167_v54 = vmul.f32 %v3103_v17, %v2847_v13  ;;  %v2723_v39 = vadd.f32 -0.5, %v2659_v62 }
 0x514   : > { %v13099_v23 = vadd.f32 %v6824_v31, %v6619_v21  ;;  %6702 = vmatmul.f32.gmra.mxu2 %v6258_v44  ;;  %v6267_v44 = vand.u32 4294901760, %v6266_v12  ;;  %v2721_v41 = vadd.f32 -0.5, %v2657_v22  ;;  %v2281_v59 = vmul.f32 %v2217_v51, %v15958_v11 }
 0x515   : > { %v2471_v51 = vadd.f32 -0.0013888889, %v2407_v61 }
 0x516   : > { %15959 = vst [vmem:[#allocation49_spill] sm:$0xff] %v13099_v23  ;;  %6925 = vmatmul.f32.gmra.mxu3 %v6259_v26  ;;  %v13106_v23 = vand.u32 4294901760, %v3226_v2  ;;  %v13111_v26 = vand.u32 4294901760, %v15962_v15  ;;  %v2785_v22 = vmul.f32 %v2721_v41, %v15944_v37  ;;  %v13130_v37 = vand.u32 4294901760, %v3167_v54 }
 0x517   : > { %v6135_v47 = vpop.f32.mrf.mxu0  ;;  %v6623_v19 = vpop.f32.mrf.mxu2 }
 0x518   : > { %v6433_v31 = vadd.f32 %v6432_v4, %v6135_v47  ;;  %v6436_v21 = vpop.f32.mrf.mxu1  ;;  %15960 = vst [vmem:[#allocation267_spill] sm:$0xff] %v13106_v23  ;;  %v2469_v4 = vadd.f32 -0.0013888889, %v2405_v38  ;;  %v6268_v47 = vsub.f32 %v6266_v12, %v6267_v44  ;;  %v6274_v20 = vsub.f32 %v3226_v2, %v13106_v23 }
 0x519   : > { %15963 = vst [vmem:[#allocation264_spill] sm:$0xff] %v13111_v26  ;;  %v6830_v3 = vpop.f32.mrf.mxu3  ;;  %v2849_v41 = vadd.f32 1.0, %v2785_v22  ;;  %v15971_v22 = vld [vmem:[#allocation312_spill] sm:$0xff] }
 0x51a   : > { %v6624_v46 = vadd.f32 %v6623_v19, %v6433_v31  ;;  %6262 = vmatmul.f32.gmra.mxu0 %v6261_v56  ;;  %6499 = vmatmul.f32.gmra.mxu1 %v13094_v53  ;;  %v13122_v56 = vsub.f32 %v15962_v15, %v13111_v26  ;;  %v2533_v38 = vmul.f32 %v2469_v4, %v15951_v55  ;;  %v2219_v53 = vadd.f32 -2.755732e-07, %v2155_v29 }
 0x51b   : > { %15968 = vst [vmem:[#allocation272_spill] sm:$0xff] %v13130_v37  ;;  %v2157_v62 = vmul.f32 2.0876758e-09, %v15971_v22 }
 0x51c   : > { %v13116_v36 = vadd.f32 %v6830_v3, %v6624_v46  ;;  %6707 = vmatmul.f32.gmra.mxu2 %v6266_v12  ;;  %15966 = vst [vmem:[#allocation283_spill] sm:$0xff] %v13122_v56  ;;  %v2345_v12 = vadd.f32 2.4801588e-05, %v2281_v59  ;;  %v6269_v3 = vand.u32 4294901760, %v6268_v47  ;;  %v6275_v46 = vand.u32 4294901760, %v6274_v20 }
 0x51d   : > { %v2597_v4 = vadd.f32 0.041666668, %v2533_v38 }
 0x51e   : > { %15964 = vst [vmem:[#allocation270_spill] sm:$0xff] %v13116_v36  ;;  %6931 = vmatmul.f32.gmra.mxu3 %v6267_v44  ;;  %v15967_v36 = vld [vmem:[#allocation311_spill] sm:$0xff]  ;;  %v14846_v44 = vand.u32 4294901760, %v13122_v56  ;;  %v6276_v29 = vsub.f32 %v6274_v20, %v6275_v46  ;;  %v2409_v59 = vmul.f32 %v2345_v12, %v15958_v11 }
 0x51f   : > { %v6143_v19 = vpop.f32.mrf.mxu0  ;;  %v6628_v33 = vpop.f32.mrf.mxu2  ;;  %v3105_v15 = vadd.f32 %v15967_v36, %v15967_v36  ;;  %v2283_v36 = vmul.f32 %v2219_v53, %v15965_v49 }
 0x520   : > { %v6437_v31 = vadd.f32 %v6436_v21, %v6143_v19  ;;  %v6440_v2 = vpop.f32.mrf.mxu1  ;;  %v2535_v21 = vmul.f32 %v2471_v51, %v15954_v40  ;;  %v7330_v47 = vsub.f32 %v13122_v56, %v14846_v44  ;;  %v13142_v19 = vsub.f32 %v3167_v54, %v13130_v37  ;;  %v15972_v44 = vld [vmem:[#allocation313_spill] sm:$0xff] }
 0x521   : > { %v6836_v17 = vpop.f32.mrf.mxu3  ;;  %v3169_v38 = vmul.f32 %v3105_v15, %v2849_v41  ;;  %v2661_v51 = vmul.f32 %v2597_v4, %v15951_v55  ;;  %v3107_v54 = vadd.f32 %v15972_v44, %v15972_v44  ;;  %v2221_v15 = vadd.f32 -2.755732e-07, %v2157_v62 }
 0x522   : > { %v6629_v13 = vadd.f32 %v6628_v33, %v6437_v31  ;;  %6270 = vmatmul.f32.gmra.mxu0 %v6269_v3  ;;  %6503 = vmatmul.f32.gmra.mxu1 %v13106_v23  ;;  %15970 = vst [vmem:[#allocation274_spill] sm:$0xff] %v13142_v19  ;;  %v2787_v33 = vmul.f32 %v2723_v39, %v15947_v18  ;;  %v2599_v12 = vadd.f32 0.041666668, %v2535_v21  ;;  %v2347_v23 = vadd.f32 2.4801588e-05, %v2283_v36 }
 0x523   : > { %v13151_v18 = vand.u32 4294901760, %v3169_v38  ;;  %v2285_v36 = vmul.f32 %v2221_v15, %v15971_v22 }
 0x524   : > { %v13134_v61 = vadd.f32 %v6836_v17, %v6629_v13  ;;  %6712 = vmatmul.f32.gmra.mxu2 %v6274_v20  ;;  %v6277_v17 = vand.u32 4294901760, %v6276_v29  ;;  %v2473_v13 = vadd.f32 -0.0013888889, %v2409_v59  ;;  %v2851_v39 = vadd.f32 1.0, %v2787_v33 }
 0x525   : > { %v2663_v21 = vmul.f32 %v2599_v12, %v15954_v40  ;;  %v2411_v29 = vmul.f32 %v2347_v23, %v15965_v49 }
 0x526   : > { %15969 = vst [vmem:[#allocation279_spill] sm:$0xff] %v13134_v61  ;;  %6937 = vmatmul.f32.gmra.mxu3 %v6275_v46  ;;  %v7331_v61 = vand.u32 4294901760, %v7330_v47  ;;  %v14849_v46 = vand.u32 4294901760, %v13142_v19  ;;  %v2537_v44 = vmul.f32 %v2473_v13, %v15958_v11  ;;  %v15974_v47 = vld [vmem:[#allocation315_spill] sm:$0xff]  ;;  %v15975_v13 = vld [vmem:[#allocation317_spill] sm:$0xff] }
 0x527   : > { %v6151_v20 = vpop.f32.mrf.mxu0  ;;  %v6633_v31 = vpop.f32.mrf.mxu2  ;;  %v2159_v62 = vmul.f32 2.0876758e-09, %v15974_v47  ;;  %v2727_v12 = vadd.f32 -0.5, %v2663_v21  ;;  %v3109_v15 = vadd.f32 %v15975_v13, %v15975_v13 }
 0x528   : > { %v6441_v3 = vadd.f32 %v6440_v2, %v6151_v20  ;;  %v6444_v53 = vpop.f32.mrf.mxu1  ;;  %v2725_v2 = vadd.f32 -0.5, %v2661_v51  ;;  %v7338_v59 = vsub.f32 %v13142_v19, %v14849_v46  ;;  %v2349_v19 = vadd.f32 2.4801588e-05, %v2285_v36  ;;  %v15979_v36 = vld [vmem:[#allocation321_spill] sm:$0xff] }
 0x529   : > { %v6842_v56 = vpop.f32.mrf.mxu3 }
 0x52a   : > { %v6634_v41 = vadd.f32 %v6633_v31, %v6441_v3  ;;  %6278 = vmatmul.f32.gmra.mxu0 %v6277_v17  ;;  %7167 = vmatmul.f32.vlgmr.msra.gmra.mxu1 %v12558_v60  ;;  %v2789_v33 = vmul.f32 %v2725_v2, %v15951_v55  ;;  %v2601_v3 = vadd.f32 0.041666668, %v2537_v44  ;;  %v2475_v17 = vadd.f32 -0.0013888889, %v2411_v29  ;;  %v15977_v29 = vld [vmem:[#allocation8_spill] sm:$0xff] }
 0x52b   : > { %v7339_v46 = vand.u32 4294901760, %v7338_v59  ;;  %v2413_v44 = vmul.f32 %v2349_v19, %v15971_v22  ;;  %v2161_v59 = vmul.f32 2.0876758e-09, %v15977_v29 }
 0x52c   : > { %v13153_v4 = vadd.f32 %v6842_v56, %v6634_v41  ;;  %7332 = vmatmul.f32.vlgmr.msra.gmra.mxu2 %v7331_v61  ;;  %v13165_v56 = vsub.f32 %v3169_v38, %v13151_v18  ;;  %v3171_v61 = vmul.f32 %v3107_v54, %v2851_v39  ;;  %v2791_v39 = vmul.f32 %v2727_v12, %v15954_v40 }
 0x52d   : > { %v2665_v2 = vmul.f32 %v2601_v3, %v15958_v11  ;;  %v2539_v21 = vmul.f32 %v2475_v17, %v15965_v49  ;;  %v2477_v17 = vadd.f32 -0.0013888889, %v2413_v44 }
 0x52e   : > { %15973 = vst [vmem:[#allocation280_spill] sm:$0xff] %v13153_v4  ;;  %7681 = vmatmul.f32.vlgmr.msra.gmra.mxu3 %v13111_v26  ;;  %v2223_v26 = vadd.f32 -2.755732e-07, %v2159_v62  ;;  %v14857_v55 = vand.u32 4294901760, %v13165_v56  ;;  %v13173_v38 = vand.u32 4294901760, %v3171_v61  ;;  %v3111_v62 = vadd.f32 %v15979_v36, %v15979_v36 }
 0x52f   : > { %v6159_v51 = vpop.f32.mrf.mxu0  ;;  %v6638_v20 = vpop.f32.mrf.mxu2  ;;  %v2603_v12 = vadd.f32 0.041666668, %v2539_v21  ;;  %v2541_v21 = vmul.f32 %v2477_v17, %v15971_v22 }
 0x530   : > { %v6445_v31 = vadd.f32 %v6444_v53, %v6159_v51  ;;  %v6448_v23 = vpop.f32.mrf.mxu1  ;;  %15976 = vst [vmem:[#allocation294_spill] sm:$0xff] %v13173_v38  ;;  %v2853_v53 = vadd.f32 1.0, %v2789_v33 }
 0x531   : > { %v6848_v41 = vpop.f32.mrf.mxu3 }
 0x532   : > { %v6639_v4 = vadd.f32 %v6638_v20, %v6445_v31  ;;  %7006 = vmatmul.f32.vlgmr.msra.gmra.mxu0 %v12558_v60  ;;  %7171 = vmatmul.f32.gmra.mxu1 %v12577_v25  ;;  %v2287_v60 = vmul.f32 %v2223_v26, %v15974_v47  ;;  %v3173_v40 = vmul.f32 %v3109_v15, %v2853_v53  ;;  %v2855_v26 = vadd.f32 1.0, %v2791_v39 }
 0x533   : > { %v2729_v31 = vadd.f32 -0.5, %v2665_v2  ;;  %v2667_v2 = vmul.f32 %v2603_v12, %v15965_v49 }
 0x534   : > { %v13175_v54 = vadd.f32 %v6848_v41, %v6639_v4  ;;  %7340 = vmatmul.f32.gmra.mxu2 %v7339_v46  ;;  %v7346_v4 = vsub.f32 %v13165_v56, %v14857_v55  ;;  %v13188_v46 = vsub.f32 %v3171_v61, %v13173_v38  ;;  %v2351_v13 = vadd.f32 2.4801588e-05, %v2287_v60 }
 0x535   : > { %v2225_v41 = vadd.f32 -2.755732e-07, %v2161_v59  ;;  %v13195_v53 = vand.u32 4294901760, %v3173_v40  ;;  %v2793_v39 = vmul.f32 %v2729_v31, %v15958_v11  ;;  %v15982_v59 = vld [vmem:[#allocation323_spill] sm:$0xff]  ;;  %v15983_v11 = vld [vmem:[#allocation108_spill] sm:$0xff] }
 0x536   : > { %7685 = vmatmul.f32.gmra.mxu3 %v13130_v37  ;;  %15978 = vst [vmem:[#allocation282_spill] sm:$0xff] %v13188_v46  ;;  %v7347_v61 = vand.u32 4294901760, %v7346_v4  ;;  %v14856_v15 = vand.u32 4294901760, %v13188_v46  ;;  %v2415_v44 = vmul.f32 %v2351_v13, %v15974_v47  ;;  %v2163_v4 = vmul.f32 2.0876758e-09, %v15982_v59 }
 0x537   : > { %v6167_v33 = vpop.f32.mrf.mxu0  ;;  %v6643_v51 = vpop.f32.mrf.mxu2  ;;  %15980 = vst [vmem:[#allocation287_spill] sm:$0xff] %v13195_v53  ;;  %v2857_v12 = vadd.f32 1.0, %v2793_v39  ;;  %v2605_v13 = vadd.f32 0.041666668, %v2541_v21 }
 0x538   : > { %v6449_v19 = vadd.f32 %v6448_v23, %v6167_v33  ;;  %v6452_v20 = vpop.f32.mrf.mxu1  ;;  %v3175_v23 = vmul.f32 %v3111_v62, %v2855_v26  ;;  %v7354_v60 = vsub.f32 %v13188_v46, %v14856_v15  ;;  %v3113_v62 = vadd.f32 %v15983_v11, %v15983_v11 }
 0x539   : > { %v6854_v3 = vpop.f32.mrf.mxu3  ;;  %v2227_v55 = vadd.f32 -2.755732e-07, %v2163_v4  ;;  %v2669_v21 = vmul.f32 %v2605_v13, %v15971_v22 }
 0x53a   : > { %v6644_v37 = vadd.f32 %v6643_v51, %v6449_v19  ;;  %7010 = vmatmul.f32.gmra.mxu0 %v12577_v25  ;;  %7175 = vmatmul.f32.gmra.mxu1 %v12600_v42  ;;  %v2289_v25 = vmul.f32 %v2225_v41, %v15977_v29  ;;  %v13214_v31 = vand.u32 4294901760, %v3175_v23  ;;  %v2479_v41 = vadd.f32 -0.0013888889, %v2415_v44 }
 0x53b   : > { %v3177_v39 = vmul.f32 %v3113_v62, %v2857_v12 }
 0x53c   : > { %v13197_v36 = vadd.f32 %v6854_v3, %v6644_v37  ;;  %7348 = vmatmul.f32.gmra.mxu2 %v7347_v61  ;;  %v13209_v37 = vsub.f32 %v3173_v40, %v13195_v53  ;;  %15984 = vst [vmem:[#allocation289_spill] sm:$0xff] %v13214_v31  ;;  %v2731_v3 = vadd.f32 -0.5, %v2667_v2  ;;  %v2353_v61 = vadd.f32 2.4801588e-05, %v2289_v25 }
 0x53d   : > { %v7355_v40 = vand.u32 4294901760, %v7354_v60  ;;  %v2543_v44 = vmul.f32 %v2479_v41, %v15974_v47  ;;  %v2291_v25 = vmul.f32 %v2227_v55, %v15982_v59  ;;  %v15986_v60 = vld [vmem:[#allocation10_spill] sm:$0xff]  ;;  %v2733_v41 = vadd.f32 -0.5, %v2669_v21 }
 0x53e   : > { %7689 = vmatmul.f32.gmra.mxu3 %v13151_v18  ;;  %15981 = vst [vmem:[#allocation281_spill] sm:$0xff] %v13209_v37  ;;  %v14860_v11 = vand.u32 4294901760, %v13209_v37  ;;  %v2795_v2 = vmul.f32 %v2731_v3, %v15965_v49  ;;  %v13237_v3 = vand.u32 4294901760, %v3177_v39 }
 0x53f   : > { %v6175_v33 = vpop.f32.mrf.mxu0  ;;  %v6648_v51 = vpop.f32.mrf.mxu2 }
 0x540   : > { %v6453_v19 = vadd.f32 %v6452_v20, %v6175_v33  ;;  %v6456_v26 = vpop.f32.mrf.mxu1  ;;  %v13222_v20 = vsub.f32 %v3175_v23, %v13214_v31  ;;  %v2165_v23 = vmul.f32 2.0876758e-09, %v15986_v60  ;;  %v15987_v33 = vld [vmem:[#allocation13_spill] sm:$0xff]  ;;  %15988 = vst [vmem:[#allocation300_spill] sm:$0xff] %v13237_v3  ;;  %v2859_v13 = vadd.f32 1.0, %v2795_v2 }
 0x541   : > { %v6860_v17 = vpop.f32.mrf.mxu3  ;;  %v3115_v49 = vadd.f32 %v15987_v33, %v15987_v33  ;;  %v13247_v2 = vsub.f32 %v3177_v39, %v13237_v3 }
 0x542   : > { %v6649_v15 = vadd.f32 %v6648_v51, %v6453_v19  ;;  %7014 = vmatmul.f32.gmra.mxu0 %v12600_v42  ;;  %7179 = vmatmul.f32.gmra.mxu1 %v12624_v58  ;;  %15985 = vst [vmem:[#allocation291_spill] sm:$0xff] %v13222_v20  ;;  %v2417_v42 = vmul.f32 %v2353_v61, %v15977_v29  ;;  %v14865_v12 = vand.u32 4294901760, %v13222_v20  ;;  %v2607_v61 = vadd.f32 0.041666668, %v2543_v44 }
 0x543   : > { %15989 = vst [vmem:[#allocation293_spill] sm:$0xff] %v13247_v2  ;;  %v3179_v21 = vmul.f32 %v3115_v49, %v2859_v13  ;;  %v2797_v44 = vmul.f32 %v2733_v41, %v15971_v22  ;;  %v14870_v13 = vand.u32 4294901760, %v13247_v2 }
 0x544   : > { %v13219_v46 = vadd.f32 %v6860_v17, %v6649_v15  ;;  %7356 = vmatmul.f32.gmra.mxu2 %v7355_v40  ;;  %v7362_v15 = vsub.f32 %v13209_v37, %v14860_v11  ;;  %v2481_v40 = vadd.f32 -0.0013888889, %v2417_v42  ;;  %v2355_v37 = vadd.f32 2.4801588e-05, %v2291_v25  ;;  %v15990_v25 = vld [vmem:[#allocation26_spill] sm:$0xff] }
 0x546   : > { %7693 = vmatmul.f32.gmra.mxu3 %v13173_v38  ;;  %v7363_v55 = vand.u32 4294901760, %v7362_v15  ;;  %v2229_v38 = vadd.f32 -2.755732e-07, %v2165_v23  ;;  %v2545_v42 = vmul.f32 %v2481_v40, %v15977_v29  ;;  %v2167_v23 = vmul.f32 2.0876758e-09, %v15990_v25 }
 0x547   : > { %v6183_v4 = vpop.f32.mrf.mxu0  ;;  %v6653_v62 = vpop.f32.mrf.mxu2  ;;  %v2861_v40 = vadd.f32 1.0, %v2797_v44 }
 0x548   : > { %v6457_v51 = vadd.f32 %v6456_v26, %v6183_v4  ;;  %v6460_v19 = vpop.f32.mrf.mxu1  ;;  %v7370_v26 = vsub.f32 %v13222_v20, %v14865_v12  ;;  %v2293_v15 = vmul.f32 %v2229_v38, %v15986_v60 }
 0x549   : > { %v6866_v17 = vpop.f32.mrf.mxu3 }
 0x54a   : > { %v6654_v11 = vadd.f32 %v6653_v62, %v6457_v51  ;;  %7018 = vmatmul.f32.gmra.mxu0 %v12624_v58  ;;  %7183 = vmatmul.f32.gmra.mxu1 %v12658_v9  ;;  %v2671_v58 = vmul.f32 %v2607_v61, %v15974_v47  ;;  %v15991_v51 = vld [vmem:[#allocation34_spill] sm:$0xff]  ;;  %v7371_v22 = vand.u32 4294901760, %v7370_v26  ;;  %v13259_v61 = vand.u32 4294901760, %v3179_v21  ;;  %v15993_v26 = vld [vmem:[#allocation37_spill] sm:$0xff] }
 0x54b   : > { %v3117_v39 = vadd.f32 %v15991_v51, %v15991_v51  ;;  %v2357_v20 = vadd.f32 2.4801588e-05, %v2293_v15 }
 0x54c   : > { %v13241_v33 = vadd.f32 %v6866_v17, %v6654_v11  ;;  %7364 = vmatmul.f32.gmra.mxu2 %v7363_v55  ;;  %v2419_v11 = vmul.f32 %v2355_v37, %v15982_v59  ;;  %15992 = vst [vmem:[#allocation301_spill] sm:$0xff] %v13259_v61  ;;  %v2735_v55 = vadd.f32 -0.5, %v2671_v58  ;;  %v2609_v37 = vadd.f32 0.041666668, %v2545_v42 }
 0x54d   : > { %v13270_v44 = vsub.f32 %v3179_v21, %v13259_v61  ;;  %v3181_v58 = vmul.f32 %v3117_v39, %v2861_v40 }
 0x54e   : > { %7697 = vmatmul.f32.gmra.mxu3 %v13195_v53  ;;  %v2483_v38 = vadd.f32 -0.0013888889, %v2419_v11  ;;  %v2231_v53 = vadd.f32 -2.755732e-07, %v2167_v23  ;;  %v2673_v42 = vmul.f32 %v2609_v37, %v15977_v29  ;;  %v2421_v11 = vmul.f32 %v2357_v20, %v15986_v60 }
 0x54f   : > { %v6191_v4 = vpop.f32.mrf.mxu0  ;;  %v6658_v62 = vpop.f32.mrf.mxu2  ;;  %15994 = vst [vmem:[#allocation302_spill] sm:$0xff] %v13270_v44  ;;  %v13281_v37 = vand.u32 4294901760, %v3181_v58 }
 0x550   : > { %v6461_v49 = vadd.f32 %v6460_v19, %v6191_v4  ;;  %v6464_v17 = vpop.f32.mrf.mxu1  ;;  %v7378_v19 = vsub.f32 %v13247_v2, %v14870_v13  ;;  %v2169_v4 = vmul.f32 2.0876758e-09, %v15993_v26  ;;  %v2295_v15 = vmul.f32 %v2231_v53, %v15990_v25 }
 0x551   : > { %v6872_v41 = vpop.f32.mrf.mxu3  ;;  %15996 = vst [vmem:[#allocation103_spill] sm:$0xff] %v13281_v37  ;;  %v2485_v20 = vadd.f32 -0.0013888889, %v2421_v11 }
 0x552   : > { %v6659_v12 = vadd.f32 %v6658_v62, %v6461_v49  ;;  %7022 = vmatmul.f32.gmra.mxu0 %v12658_v9  ;;  %7187 = vmatmul.f32.gmra.mxu1 %v12680_v0  ;;  %v2799_v9 = vmul.f32 %v2735_v55, %v15974_v47  ;;  %v15995_v49 = vld [vmem:[#allocation52_spill] sm:$0xff]  ;;  %v7379_v39 = vand.u32 4294901760, %v7378_v19  ;;  %v2233_v40 = vadd.f32 -2.755732e-07, %v2169_v4 }
 0x553   : > { %v14875_v55 = vand.u32 4294901760, %v13270_v44  ;;  %v15997_v19 = vld [vmem:[#allocation64_spill] sm:$0xff] }
 0x554   : > { %v13263_v51 = vadd.f32 %v6872_v41, %v6659_v12  ;;  %7372 = vmatmul.f32.gmra.mxu2 %v7371_v22  ;;  %v2547_v12 = vmul.f32 %v2483_v38, %v15982_v59  ;;  %v3119_v22 = vadd.f32 %v15995_v49, %v15995_v49  ;;  %v2863_v13 = vadd.f32 1.0, %v2799_v9 }
 0x555   : > { %v2737_v38 = vadd.f32 -0.5, %v2673_v42  ;;  %v2171_v4 = vmul.f32 2.0876758e-09, %v15997_v19  ;;  %v7386_v9 = vsub.f32 %v13270_v44, %v14875_v55  ;;  %v13293_v42 = vsub.f32 %v3181_v58, %v13281_v37 }
 0x556   : > { %7701 = vmatmul.f32.gmra.mxu3 %v13214_v31  ;;  %v2611_v53 = vadd.f32 0.041666668, %v2547_v12  ;;  %v2359_v31 = vadd.f32 2.4801588e-05, %v2295_v15  ;;  %v2549_v12 = vmul.f32 %v2485_v20, %v15986_v60 }
 0x557   : > { %v6199_v23 = vpop.f32.mrf.mxu0  ;;  %v6663_v62 = vpop.f32.mrf.mxu2  ;;  %15998 = vst [vmem:[#allocation105_spill] sm:$0xff] %v13293_v42  ;;  %v2235_v55 = vadd.f32 -2.755732e-07, %v2171_v4 }
 0x558   : > { %v6465_v21 = vadd.f32 %v6464_v17, %v6199_v23  ;;  %v6468_v41 = vpop.f32.mrf.mxu1  ;;  %v2297_v17 = vmul.f32 %v2233_v40, %v15993_v26  ;;  %v2801_v23 = vmul.f32 %v2737_v38, %v15977_v29  ;;  %v2423_v11 = vmul.f32 %v2359_v31, %v15990_v25 }
 0x559   : > { %v6878_v47 = vpop.f32.mrf.mxu3  ;;  %v14880_v29 = vand.u32 4294901760, %v13293_v42  ;;  %v2613_v20 = vadd.f32 0.041666668, %v2549_v12 }
 0x55a   : > { %v6664_v2 = vadd.f32 %v6663_v62, %v6465_v21  ;;  %7026 = vmatmul.f32.gmra.mxu0 %v12680_v0  ;;  %7191 = vmatmul.f32.gmra.mxu1 %v12711_v34  ;;  %v3183_v0 = vmul.f32 %v3119_v22, %v2863_v13  ;;  %v15999_v21 = vld [vmem:[#allocation68_spill] sm:$0xff]  ;;  %v2361_v58 = vadd.f32 2.4801588e-05, %v2297_v17  ;;  %v7387_v22 = vand.u32 4294901760, %v7386_v9 }
 0x55b   : > { %v2299_v17 = vmul.f32 %v2235_v55, %v15997_v19  ;;  %v7394_v4 = vsub.f32 %v13293_v42, %v14880_v29 }
 0x55c   : > { %v13285_v49 = vadd.f32 %v6878_v47, %v6664_v2  ;;  %7380 = vmatmul.f32.gmra.mxu2 %v7379_v39  ;;  %v2675_v2 = vmul.f32 %v2611_v53, %v15982_v59  ;;  %v3121_v39 = vadd.f32 %v15999_v21, %v15999_v21  ;;  %v13303_v38 = vand.u32 4294901760, %v3183_v0 }
 0x55d   : > { %v2865_v53 = vadd.f32 1.0, %v2801_v23  ;;  %v16002_v23 = vld [vmem:[#allocation69_spill] sm:$0xff] }
 0x55e   : > { %7705 = vmatmul.f32.gmra.mxu3 %v13237_v3  ;;  %16000 = vst [vmem:[#allocation7_spill] sm:$0xff] %v13303_v38  ;;  %v2739_v31 = vadd.f32 -0.5, %v2675_v2  ;;  %v2487_v3 = vadd.f32 -0.0013888889, %v2423_v11  ;;  %v13315_v9 = vsub.f32 %v3183_v0, %v13303_v38  ;;  %v2677_v2 = vmul.f32 %v2613_v20, %v15986_v60 }
 0x55f   : > { %v6207_v15 = vpop.f32.mrf.mxu0  ;;  %v6668_v62 = vpop.f32.mrf.mxu2 }
 0x560   : > { %v6469_v40 = vadd.f32 %v6468_v41, %v6207_v15  ;;  %v6472_v47 = vpop.f32.mrf.mxu1  ;;  %v2425_v41 = vmul.f32 %v2361_v58, %v15993_v26  ;;  %16001 = vst [vmem:[#allocation113_spill] sm:$0xff] %v13315_v9  ;;  %v2173_v15 = vmul.f32 2.0876758e-09, %v16002_v23  ;;  %v2551_v12 = vmul.f32 %v2487_v3, %v15990_v25 }
 0x561   : > { %v6884_v13 = vpop.f32.mrf.mxu3  ;;  %v14885_v29 = vand.u32 4294901760, %v13315_v9  ;;  %v2741_v20 = vadd.f32 -0.5, %v2677_v2 }
 0x562   : > { %v6669_v44 = vadd.f32 %v6668_v62, %v6469_v40  ;;  %7030 = vmatmul.f32.gmra.mxu0 %v12711_v34  ;;  %7195 = vmatmul.f32.gmra.mxu1 %v12745_v27  ;;  %v3185_v34 = vmul.f32 %v3121_v39, %v2865_v53  ;;  %v16003_v62 = vld [vmem:[#allocation142_spill] sm:$0xff]  ;;  %v2489_v0 = vadd.f32 -0.0013888889, %v2425_v41  ;;  %v7395_v53 = vand.u32 4294901760, %v7394_v4 }
 0x563   : > { %v3123_v40 = vadd.f32 %v16003_v62, %v16003_v62 }
 0x564   : > { %v13307_v21 = vadd.f32 %v6884_v13, %v6669_v44  ;;  %7388 = vmatmul.f32.gmra.mxu2 %v7387_v22  ;;  %v2803_v44 = vmul.f32 %v2739_v31, %v15982_v59  ;;  %v2363_v22 = vadd.f32 2.4801588e-05, %v2299_v17  ;;  %v13325_v42 = vand.u32 4294901760, %v3185_v34  ;;  %v16006_v17 = vld [vmem:[#allocation325_spill] sm:$0xff] }
 0x565   : > { %v2237_v59 = vadd.f32 -2.755732e-07, %v2173_v15  ;;  %v2175_v4 = vmul.f32 2.0876758e-09, %v16006_v17  ;;  %v7402_v15 = vsub.f32 %v13315_v9, %v14885_v29  ;;  %v16008_v29 = vld [vmem:[#allocation327_spill] sm:$0xff] }
 0x566   : > { %7709 = vmatmul.f32.gmra.mxu3 %v13259_v61  ;;  %16004 = vst [vmem:[#allocation117_spill] sm:$0xff] %v13325_v42  ;;  %v2867_v3 = vadd.f32 1.0, %v2803_v44  ;;  %v2615_v61 = vadd.f32 0.041666668, %v2551_v12  ;;  %v2427_v41 = vmul.f32 %v2363_v22, %v15997_v19  ;;  %v2805_v12 = vmul.f32 %v2741_v20, %v15986_v60 }
 0x567   : > { %v6215_v11 = vpop.f32.mrf.mxu0  ;;  %v6673_v55 = vpop.f32.mrf.mxu2  ;;  %v2301_v44 = vmul.f32 %v2237_v59, %v16002_v23 }
 0x568   : > { %v6473_v58 = vadd.f32 %v6472_v47, %v6215_v11  ;;  %v6476_v13 = vpop.f32.mrf.mxu1  ;;  %v2553_v47 = vmul.f32 %v2489_v0, %v15993_v26  ;;  %v3187_v2 = vmul.f32 %v3123_v40, %v2867_v3  ;;  %v2679_v11 = vmul.f32 %v2615_v61, %v15990_v25 }
 0x569   : > { %v6890_v39 = vpop.f32.mrf.mxu3  ;;  %v2869_v61 = vadd.f32 1.0, %v2805_v12 }
 0x56a   : > { %v6674_v31 = vadd.f32 %v6673_v55, %v6473_v58  ;;  %7034 = vmatmul.f32.gmra.mxu0 %v12745_v27  ;;  %7199 = vmatmul.f32.gmra.mxu1 %v12764_v24  ;;  %v13338_v27 = vsub.f32 %v3185_v34, %v13325_v42  ;;  %v3125_v34 = vadd.f32 %v16008_v29, %v16008_v29  ;;  %v13349_v60 = vand.u32 4294901760, %v3187_v2 }
 0x56c   : > { %v13329_v62 = vadd.f32 %v6890_v39, %v6674_v31  ;;  %7396 = vmatmul.f32.gmra.mxu2 %v7395_v53  ;;  %16007 = vst [vmem:[#allocation316_spill] sm:$0xff] %v13338_v27  ;;  %v2617_v39 = vadd.f32 0.041666668, %v2553_v47  ;;  %v2491_v53 = vadd.f32 -0.0013888889, %v2427_v41  ;;  %v14890_v59 = vand.u32 4294901760, %v13338_v27 }
 0x56d   : > { %v2239_v31 = vadd.f32 -2.755732e-07, %v2175_v4  ;;  %v16010_v4 = vld [vmem:[#allocation331_spill] sm:$0xff] }
 0x56e   : > { %16005 = vst [vmem:[#allocation318_spill] sm:$0xff] %v13329_v62  ;;  %7713 = vmatmul.f32.gmra.mxu3 %v13281_v37  ;;  %v7403_v62 = vand.u32 4294901760, %v7402_v15  ;;  %v2365_v37 = vadd.f32 2.4801588e-05, %v2301_v44  ;;  %v2681_v20 = vmul.f32 %v2617_v39, %v15993_v26  ;;  %v2555_v29 = vmul.f32 %v2491_v53, %v15997_v19 }
 0x56f   : > { %v6223_v55 = vpop.f32.mrf.mxu0  ;;  %v6678_v58 = vpop.f32.mrf.mxu2  ;;  %v2303_v47 = vmul.f32 %v2239_v31, %v16006_v17  ;;  %v7410_v41 = vsub.f32 %v13338_v27, %v14890_v59  ;;  %v2177_v15 = vmul.f32 2.0876758e-09, %v16010_v4  ;;  %v16011_v31 = vld [vmem:[#allocation333_spill] sm:$0xff] }
 0x570   : > { %v6477_v0 = vadd.f32 %v6476_v13, %v6223_v55  ;;  %v6480_v22 = vpop.f32.mrf.mxu1  ;;  %v2743_v13 = vadd.f32 -0.5, %v2679_v11  ;;  %v2619_v39 = vadd.f32 0.041666668, %v2555_v29 }
 0x571   : > { %v6896_v9 = vpop.f32.mrf.mxu3  ;;  %v2367_v53 = vadd.f32 2.4801588e-05, %v2303_v47  ;;  %v7411_v59 = vand.u32 4294901760, %v7410_v41  ;;  %v16013_v47 = vld [vmem:[#allocation336_spill] sm:$0xff] }
 0x572   : > { %v6679_v40 = vadd.f32 %v6678_v58, %v6477_v0  ;;  %7038 = vmatmul.f32.gmra.mxu0 %v12764_v24  ;;  %7203 = vmatmul.f32.gmra.mxu1 %v12778_v45  ;;  %v2429_v24 = vmul.f32 %v2365_v37, %v16002_v23  ;;  %v2807_v44 = vmul.f32 %v2743_v13, %v15990_v25  ;;  %v2745_v0 = vadd.f32 -0.5, %v2681_v20 }
 0x573   : > { %v3127_v37 = vadd.f32 %v16011_v31, %v16011_v31  ;;  %v2683_v13 = vmul.f32 %v2619_v39, %v15997_v19  ;;  %v2431_v20 = vmul.f32 %v2367_v53, %v16006_v17  ;;  %v2179_v41 = vmul.f32 2.0876758e-09, %v16013_v47 }
 0x574   : > { %v13351_v3 = vadd.f32 %v6896_v9, %v6679_v40  ;;  %7404 = vmatmul.f32.gmra.mxu2 %v7403_v62  ;;  %v13363_v9 = vsub.f32 %v3187_v2, %v13349_v60  ;;  %v3189_v62 = vmul.f32 %v3125_v34, %v2869_v61  ;;  %v2493_v27 = vadd.f32 -0.0013888889, %v2429_v24  ;;  %v16015_v24 = vld [vmem:[#allocation337_spill] sm:$0xff] }
 0x575   : > { %v2809_v61 = vmul.f32 %v2745_v0, %v15993_v26  ;;  %v2495_v0 = vadd.f32 -0.0013888889, %v2431_v20 }
 0x576   : > { %16009 = vst [vmem:[#allocation4_spill] sm:$0xff] %v13351_v3  ;;  %7717 = vmatmul.f32.gmra.mxu3 %v13303_v38  ;;  %v2241_v38 = vadd.f32 -2.755732e-07, %v2177_v15  ;;  %v14898_v25 = vand.u32 4294901760, %v13363_v9  ;;  %v13371_v2 = vand.u32 4294901760, %v3189_v62  ;;  %v2557_v29 = vmul.f32 %v2493_v27, %v16002_v23 }
 0x577   : > { %v6231_v12 = vpop.f32.mrf.mxu0  ;;  %v6683_v11 = vpop.f32.mrf.mxu2  ;;  %v3129_v15 = vadd.f32 %v16015_v24, %v16015_v24 }
 0x578   : > { %v6481_v55 = vadd.f32 %v6480_v22, %v6231_v12  ;;  %v6484_v58 = vpop.f32.mrf.mxu1  ;;  %16012 = vst [vmem:[#allocation124_spill] sm:$0xff] %v13371_v2  ;;  %v2871_v22 = vadd.f32 1.0, %v2807_v44  ;;  %v2621_v53 = vadd.f32 0.041666668, %v2557_v29 }
 0x579   : > { %v6902_v40 = vpop.f32.mrf.mxu3 }
 0x57a   : > { %v6684_v3 = vadd.f32 %v6683_v11, %v6481_v55  ;;  %7042 = vmatmul.f32.gmra.mxu0 %v12778_v45  ;;  %7207 = vmatmul.f32.gmra.mxu1 %v12794_v1  ;;  %v2305_v45 = vmul.f32 %v2241_v38, %v16010_v4  ;;  %v3191_v26 = vmul.f32 %v3127_v37, %v2871_v22  ;;  %v2873_v38 = vadd.f32 1.0, %v2809_v61 }
 0x57b   : > { %v2747_v55 = vadd.f32 -0.5, %v2683_v13  ;;  %v2559_v13 = vmul.f32 %v2495_v0, %v16006_v17  ;;  %v2685_v20 = vmul.f32 %v2621_v53, %v16002_v23 }
 0x57c   : > { %v13373_v34 = vadd.f32 %v6902_v40, %v6684_v3  ;;  %7412 = vmatmul.f32.gmra.mxu2 %v7411_v59  ;;  %v7418_v3 = vsub.f32 %v13363_v9, %v14898_v25  ;;  %v13386_v59 = vsub.f32 %v3189_v62, %v13371_v2  ;;  %v2369_v31 = vadd.f32 2.4801588e-05, %v2305_v45 }
 0x57d   : > { %v2243_v40 = vadd.f32 -2.755732e-07, %v2179_v41  ;;  %v13393_v22 = vand.u32 4294901760, %v3191_v26  ;;  %v2811_v61 = vmul.f32 %v2747_v55, %v15997_v19  ;;  %v16018_v41 = vld [vmem:[#allocation338_spill] sm:$0xff]  ;;  %v16019_v19 = vld [vmem:[#allocation340_spill] sm:$0xff] }
 0x57e   : > { %7721 = vmatmul.f32.gmra.mxu3 %v13325_v42  ;;  %16014 = vst [vmem:[#allocation314_spill] sm:$0xff] %v13386_v59  ;;  %v7419_v62 = vand.u32 4294901760, %v7418_v3  ;;  %v14897_v37 = vand.u32 4294901760, %v13386_v59  ;;  %v2433_v29 = vmul.f32 %v2369_v31, %v16010_v4  ;;  %v2181_v3 = vmul.f32 2.0876758e-09, %v16018_v41 }
 0x57f   : > { %v6239_v44 = vpop.f32.mrf.mxu0  ;;  %v6688_v12 = vpop.f32.mrf.mxu2  ;;  %16016 = vst [vmem:[#allocation11_spill] sm:$0xff] %v13393_v22  ;;  %v2875_v0 = vadd.f32 1.0, %v2811_v61  ;;  %v2749_v31 = vadd.f32 -0.5, %v2685_v20 }
 0x580   : > { %v6485_v27 = vadd.f32 %v6484_v58, %v6239_v44  ;;  %v6488_v11 = vpop.f32.mrf.mxu1  ;;  %v3193_v58 = vmul.f32 %v3129_v15, %v2873_v38  ;;  %v7426_v45 = vsub.f32 %v13386_v59, %v14897_v37  ;;  %v3131_v15 = vadd.f32 %v16019_v19, %v16019_v19 }
 0x581   : > { %v6908_v39 = vpop.f32.mrf.mxu3  ;;  %v2245_v25 = vadd.f32 -2.755732e-07, %v2181_v3 }
 0x582   : > { %v6689_v42 = vadd.f32 %v6688_v12, %v6485_v27  ;;  %7046 = vmatmul.f32.gmra.mxu0 %v12794_v1  ;;  %7211 = vmatmul.f32.gmra.mxu1 %v12812_v32  ;;  %v2307_v1 = vmul.f32 %v2243_v40, %v16013_v47  ;;  %v13412_v55 = vand.u32 4294901760, %v3193_v58  ;;  %v2497_v40 = vadd.f32 -0.0013888889, %v2433_v29 }
 0x583   : > { %v3195_v61 = vmul.f32 %v3131_v15, %v2875_v0 }
 0x584   : > { %v13395_v24 = vadd.f32 %v6908_v39, %v6689_v42  ;;  %7420 = vmatmul.f32.gmra.mxu2 %v7419_v62  ;;  %v13407_v42 = vsub.f32 %v3191_v26, %v13393_v22  ;;  %16020 = vst [vmem:[#allocation130_spill] sm:$0xff] %v13412_v55  ;;  %v2623_v39 = vadd.f32 0.041666668, %v2559_v13  ;;  %v2371_v62 = vadd.f32 2.4801588e-05, %v2307_v1 }
 0x585   : > { %v7427_v26 = vand.u32 4294901760, %v7426_v45  ;;  %v2813_v13 = vmul.f32 %v2749_v31, %v16002_v23  ;;  %v2561_v29 = vmul.f32 %v2497_v40, %v16010_v4  ;;  %v2309_v1 = vmul.f32 %v2245_v25, %v16018_v41  ;;  %v16022_v45 = vld [vmem:[#allocation175_spill] sm:$0xff] }
 0x586   : > { %7725 = vmatmul.f32.gmra.mxu3 %v13349_v60  ;;  %16017 = vst [vmem:[#allocation9_spill] sm:$0xff] %v13407_v42  ;;  %v14901_v19 = vand.u32 4294901760, %v13407_v42  ;;  %v2687_v20 = vmul.f32 %v2623_v39, %v16006_v17  ;;  %v13435_v39 = vand.u32 4294901760, %v3195_v61 }
 0x587   : > { %v6247_v44 = vpop.f32.mrf.mxu0  ;;  %v6693_v12 = vpop.f32.mrf.mxu2  ;;  %v2877_v31 = vadd.f32 1.0, %v2813_v13 }
 0x588   : > { %v6489_v27 = vadd.f32 %v6488_v11, %v6247_v44  ;;  %v6492_v38 = vpop.f32.mrf.mxu1  ;;  %v13420_v11 = vsub.f32 %v3193_v58, %v13412_v55  ;;  %v2183_v58 = vmul.f32 2.0876758e-09, %v16022_v45  ;;  %v16023_v44 = vld [vmem:[#allocation342_spill] sm:$0xff]  ;;  %16024 = vst [vmem:[#allocation15_spill] sm:$0xff] %v13435_v39  ;;  %v2751_v40 = vadd.f32 -0.5, %v2687_v20 }
 0x589   : > { %v6914_v53 = vpop.f32.mrf.mxu3  ;;  %v3133_v23 = vadd.f32 %v16023_v44, %v16023_v44  ;;  %v13445_v13 = vsub.f32 %v3195_v61, %v13435_v39 }
 0x58a   : > { %v6694_v37 = vadd.f32 %v6693_v12, %v6489_v27  ;;  %7050 = vmatmul.f32.gmra.mxu0 %v12812_v32  ;;  %7215 = vmatmul.f32.gmra.mxu1 %v12829_v35  ;;  %16021 = vst [vmem:[#allocation320_spill] sm:$0xff] %v13420_v11  ;;  %v2435_v32 = vmul.f32 %v2371_v62, %v16013_v47  ;;  %v14906_v0 = vand.u32 4294901760, %v13420_v11  ;;  %v2625_v62 = vadd.f32 0.041666668, %v2561_v29 }
 0x58b   : > { %16025 = vst [vmem:[#allocation319_spill] sm:$0xff] %v13445_v13  ;;  %v3197_v20 = vmul.f32 %v3133_v23, %v2877_v31  ;;  %v2815_v29 = vmul.f32 %v2751_v40, %v16006_v17  ;;  %v14911_v31 = vand.u32 4294901760, %v13445_v13 }
 0x58c   : > { %v13417_v59 = vadd.f32 %v6914_v53, %v6694_v37  ;;  %7428 = vmatmul.f32.gmra.mxu2 %v7427_v26  ;;  %v7434_v37 = vsub.f32 %v13407_v42, %v14901_v19  ;;  %v2499_v26 = vadd.f32 -0.0013888889, %v2435_v32  ;;  %v2373_v42 = vadd.f32 2.4801588e-05, %v2309_v1  ;;  %v16026_v1 = vld [vmem:[#allocation183_spill] sm:$0xff] }
 0x58e   : > { %7729 = vmatmul.f32.gmra.mxu3 %v13371_v2  ;;  %v7435_v25 = vand.u32 4294901760, %v7434_v37  ;;  %v2247_v2 = vadd.f32 -2.755732e-07, %v2183_v58  ;;  %v2563_v32 = vmul.f32 %v2499_v26, %v16013_v47  ;;  %v2185_v58 = vmul.f32 2.0876758e-09, %v16026_v1 }
 0x58f   : > { %v6255_v3 = vpop.f32.mrf.mxu0  ;;  %v6698_v15 = vpop.f32.mrf.mxu2  ;;  %v2879_v26 = vadd.f32 1.0, %v2815_v29 }
 0x590   : > { %v6493_v12 = vadd.f32 %v6492_v38, %v6255_v3  ;;  %v6496_v27 = vpop.f32.mrf.mxu1  ;;  %v7442_v38 = vsub.f32 %v13420_v11, %v14906_v0  ;;  %v2311_v37 = vmul.f32 %v2247_v2, %v16022_v45 }
 0x591   : > { %v6920_v53 = vpop.f32.mrf.mxu3 }
 0x592   : > { %v6699_v19 = vadd.f32 %v6698_v15, %v6493_v12  ;;  %7054 = vmatmul.f32.gmra.mxu0 %v12829_v35  ;;  %7219 = vmatmul.f32.gmra.mxu1 %v12845_v43  ;;  %v2689_v35 = vmul.f32 %v2625_v62, %v16010_v4  ;;  %v16027_v12 = vld [vmem:[#allocation345_spill] sm:$0xff]  ;;  %v7443_v17 = vand.u32 4294901760, %v7442_v38  ;;  %v13457_v62 = vand.u32 4294901760, %v3197_v20  ;;  %v16028_v38 = vld [vmem:[#allocation346_spill] sm:$0xff] }
 0x593   : > { %v3135_v61 = vadd.f32 %v16027_v12, %v16027_v12  ;;  %v2375_v11 = vadd.f32 2.4801588e-05, %v2311_v37 }
 0x594   : > { %v13439_v44 = vadd.f32 %v6920_v53, %v6699_v19  ;;  %7436 = vmatmul.f32.gmra.mxu2 %v7435_v25  ;;  %v2437_v19 = vmul.f32 %v2373_v42, %v16018_v41  ;;  %v2753_v25 = vadd.f32 -0.5, %v2689_v35  ;;  %v2627_v42 = vadd.f32 0.041666668, %v2563_v32 }
 0x595   : > { %v13468_v29 = vsub.f32 %v3197_v20, %v13457_v62  ;;  %v3199_v35 = vmul.f32 %v3135_v61, %v2879_v26 }
 0x596   : > { %7733 = vmatmul.f32.gmra.mxu3 %v13393_v22  ;;  %v2501_v2 = vadd.f32 -0.0013888889, %v2437_v19  ;;  %v2249_v22 = vadd.f32 -2.755732e-07, %v2185_v58  ;;  %v2691_v32 = vmul.f32 %v2627_v42, %v16013_v47  ;;  %v2439_v19 = vmul.f32 %v2375_v11, %v16022_v45 }
 0x597   : > { %v6263_v3 = vpop.f32.mrf.mxu0  ;;  %v6703_v15 = vpop.f32.mrf.mxu2  ;;  %16029 = vst [vmem:[#allocation14_spill] sm:$0xff] %v13468_v29  ;;  %v13479_v42 = vand.u32 4294901760, %v3199_v35 }
 0x598   : > { %v6497_v23 = vadd.f32 %v6496_v27, %v6263_v3  ;;  %v6500_v53 = vpop.f32.mrf.mxu1  ;;  %v7450_v27 = vsub.f32 %v13445_v13, %v14911_v31  ;;  %v2187_v3 = vmul.f32 2.0876758e-09, %v16028_v38  ;;  %v2313_v37 = vmul.f32 %v2249_v22, %v16026_v1 }
 0x599   : > { %v6926_v40 = vpop.f32.mrf.mxu3  ;;  %16031 = vst [vmem:[#allocation12_spill] sm:$0xff] %v13479_v42  ;;  %v2503_v11 = vadd.f32 -0.0013888889, %v2439_v19 }
 0x59a   : > { %v6704_v0 = vadd.f32 %v6703_v15, %v6497_v23  ;;  %7058 = vmatmul.f32.gmra.mxu0 %v12845_v43  ;;  %7223 = vmatmul.f32.gmra.mxu1 %v12858_v57  ;;  %v2817_v43 = vmul.f32 %v2753_v25, %v16010_v4  ;;  %v16030_v23 = vld [vmem:[#allocation348_spill] sm:$0xff]  ;;  %v7451_v61 = vand.u32 4294901760, %v7450_v27  ;;  %v2251_v26 = vadd.f32 -2.755732e-07, %v2187_v3  ;;  %v16032_v27 = vld [vmem:[#allocation349_spill] sm:$0xff] }
 0x59b   : > { %v14916_v25 = vand.u32 4294901760, %v13468_v29  ;;  %v2189_v3 = vmul.f32 2.0876758e-09, %v16032_v27 }
 0x59c   : > { %v13461_v12 = vadd.f32 %v6926_v40, %v6704_v0  ;;  %7444 = vmatmul.f32.gmra.mxu2 %v7443_v17  ;;  %v2565_v0 = vmul.f32 %v2501_v2, %v16018_v41  ;;  %v3137_v17 = vadd.f32 %v16030_v23, %v16030_v23  ;;  %v2881_v31 = vadd.f32 1.0, %v2817_v43 }
 0x59d   : > { %v2755_v2 = vadd.f32 -0.5, %v2691_v32  ;;  %v7458_v43 = vsub.f32 %v13468_v29, %v14916_v25  ;;  %v13491_v32 = vsub.f32 %v3199_v35, %v13479_v42  ;;  %v2253_v25 = vadd.f32 -2.755732e-07, %v2189_v3  ;;  %v16036_v3 = vld [vmem:[#allocation176_spill] sm:$0xff] }
 0x59e   : > { %7737 = vmatmul.f32.gmra.mxu3 %v13412_v55  ;;  %v2629_v22 = vadd.f32 0.041666668, %v2565_v0  ;;  %v2377_v55 = vadd.f32 2.4801588e-05, %v2313_v37  ;;  %v2567_v0 = vmul.f32 %v2503_v11, %v16022_v45 }
 0x59f   : > { %v6271_v58 = vpop.f32.mrf.mxu0  ;;  %v6708_v15 = vpop.f32.mrf.mxu2  ;;  %16033 = vst [vmem:[#allocation134_spill] sm:$0xff] %v13491_v32 }
 0x5a0   : > { %v6501_v20 = vadd.f32 %v6500_v53, %v6271_v58  ;;  %v6504_v40 = vpop.f32.mrf.mxu1  ;;  %v2315_v53 = vmul.f32 %v2251_v26, %v16028_v38  ;;  %v2819_v58 = vmul.f32 %v2755_v2, %v16013_v47  ;;  %v2441_v19 = vmul.f32 %v2377_v55, %v16026_v1 }
 0x5a1   : > { %v6932_v4 = vpop.f32.mrf.mxu3  ;;  %v14921_v47 = vand.u32 4294901760, %v13491_v32  ;;  %v2631_v11 = vadd.f32 0.041666668, %v2567_v0 }
 0x5a2   : > { %v6709_v13 = vadd.f32 %v6708_v15, %v6501_v20  ;;  %7062 = vmatmul.f32.gmra.mxu0 %v12858_v57  ;;  %7227 = vmatmul.f32.gmra.mxu1 %v12874_v14  ;;  %v3201_v57 = vmul.f32 %v3137_v17, %v2881_v31  ;;  %v16034_v20 = vld [vmem:[#allocation351_spill] sm:$0xff]  ;;  %v2379_v35 = vadd.f32 2.4801588e-05, %v2315_v53  ;;  %v7459_v17 = vand.u32 4294901760, %v7458_v43 }
 0x5a3   : > { %v2317_v53 = vmul.f32 %v2253_v25, %v16032_v27  ;;  %v2191_v43 = vmul.f32 2.0876758e-09, %v16036_v3 }
 0x5a4   : > { %v13483_v23 = vadd.f32 %v6932_v4, %v6709_v13  ;;  %7452 = vmatmul.f32.gmra.mxu2 %v7451_v61  ;;  %v2693_v13 = vmul.f32 %v2629_v22, %v16018_v41  ;;  %v3139_v61 = vadd.f32 %v16034_v20, %v16034_v20  ;;  %v13501_v2 = vand.u32 4294901760, %v3201_v57 }
 0x5a5   : > { %v2883_v22 = vadd.f32 1.0, %v2819_v58  ;;  %v7466_v58 = vsub.f32 %v13491_v32, %v14921_v47  ;;  %v16038_v47 = vld [vmem:[#allocation352_spill] sm:$0xff] }
 0x5a6   : > { %7741 = vmatmul.f32.gmra.mxu3 %v13435_v39  ;;  %16035 = vst [vmem:[#allocation137_spill] sm:$0xff] %v13501_v2  ;;  %v2757_v55 = vadd.f32 -0.5, %v2693_v13  ;;  %v2505_v39 = vadd.f32 -0.0013888889, %v2441_v19  ;;  %v2695_v13 = vmul.f32 %v2631_v11, %v16022_v45 }
 0x5a7   : > { %v6279_v37 = vpop.f32.mrf.mxu0  ;;  %v6713_v15 = vpop.f32.mrf.mxu2 }
 0x5a8   : > { %v6505_v26 = vadd.f32 %v6504_v40, %v6279_v37  ;;  %v7168_v4 = vpop.f32.mrf.mxu1  ;;  %v2443_v40 = vmul.f32 %v2379_v35, %v16028_v38  ;;  %v3203_v37 = vmul.f32 %v3139_v61, %v2883_v22  ;;  %v2569_v0 = vmul.f32 %v2505_v39, %v16026_v1 }
 0x5a9   : > { %v6938_v31 = vpop.f32.mrf.mxu3  ;;  %v7467_v22 = vand.u32 4294901760, %v7466_v58 }
 0x5aa   : > { %v6714_v29 = vadd.f32 %v6713_v15, %v6505_v26  ;;  %7066 = vmatmul.f32.gmra.mxu0 %v12874_v14  ;;  %7231 = vmatmul.f32.gmra.mxu1 %v12892_v5  ;;  %v13514_v14 = vsub.f32 %v3201_v57, %v13501_v2  ;;  %v2507_v35 = vadd.f32 -0.0013888889, %v2443_v40  ;;  %v3141_v57 = vadd.f32 %v16038_v47, %v16038_v47 }
 0x5ab   : > { %v2633_v11 = vadd.f32 0.041666668, %v2569_v0 }
 0x5ac   : > { %v13505_v20 = vadd.f32 %v6938_v31, %v6714_v29  ;;  %7460 = vmatmul.f32.gmra.mxu2 %v7459_v17  ;;  %16037 = vst [vmem:[#allocation21_spill] sm:$0xff] %v13514_v14  ;;  %v2821_v29 = vmul.f32 %v2757_v55, %v16018_v41  ;;  %v2381_v31 = vadd.f32 2.4801588e-05, %v2317_v53  ;;  %v2255_v17 = vadd.f32 -2.755732e-07, %v2191_v43 }
 0x5ad   : > { %v14924_v32 = vand.u32 4294901760, %v13514_v14  ;;  %v13524_v41 = vand.u32 4294901760, %v3203_v37  ;;  %v2571_v53 = vmul.f32 %v2507_v35, %v16028_v38 }
 0x5ae   : > { %7745 = vmatmul.f32.gmra.mxu3 %v13457_v62  ;;  %v2885_v39 = vadd.f32 1.0, %v2821_v29  ;;  %v2445_v47 = vmul.f32 %v2381_v31, %v16032_v27  ;;  %v2319_v43 = vmul.f32 %v2255_v17, %v16036_v3 }
 0x5af   : > { %v7007_v19 = vpop.f32.mrf.mxu0  ;;  %v7333_v25 = vpop.f32.mrf.mxu2  ;;  %v7474_v58 = vsub.f32 %v13514_v14, %v14924_v32  ;;  %v16041_v32 = vld [vmem:[#allocation235_spill] sm:$0xff] }
 0x5b0   : > { %v7008_v15 = vadd.f32 %v7007_v19, %v12934_v6  ;;  %v7172_v26 = vpop.f32.mrf.mxu1  ;;  %v2759_v6 = vadd.f32 -0.5, %v2695_v13  ;;  %v3205_v13 = vmul.f32 %v3141_v57, %v2885_v39  ;;  %v3143_v14 = vadd.f32 %v16041_v32, %v16041_v32 }
 0x5b1   : > { %v7682_v61 = vpop.f32.mrf.mxu3 }
 0x5b2   : > { %v7169_v55 = vadd.f32 %v7168_v4, %v7008_v15  ;;  %7070 = vmatmul.f32.gmra.mxu0 %v12892_v5  ;;  %7235 = vmatmul.f32.gmra.mxu1 %v12908_v50  ;;  %v13535_v4 = vsub.f32 %v3203_v37, %v13524_v41  ;;  %v16040_v5 = vld [vmem:[#allocation157_spill] sm:$0xff]  ;;  %v2823_v0 = vmul.f32 %v2759_v6, %v16022_v45  ;;  %v2383_v37 = vadd.f32 2.4801588e-05, %v2319_v43  ;;  %v16042_v43 = vld [vmem:[#allocation186_spill] sm:$0xff] }
 0x5b3   : > { %v2193_v19 = vmul.f32 2.0876758e-09, %v16040_v5  ;;  %v13549_v45 = vand.u32 4294901760, %v3205_v13 }
 0x5b4   : > { %v7334_v40 = vadd.f32 %v7333_v25, %v7169_v55  ;;  %7468 = vmatmul.f32.gmra.mxu2 %v7467_v22  ;;  %16039 = vst [vmem:[#allocation16_spill] sm:$0xff] %v13535_v4  ;;  %v2697_v25 = vmul.f32 %v2633_v11, %v16026_v1  ;;  %v2635_v22 = vadd.f32 0.041666668, %v2571_v53  ;;  %v2509_v55 = vadd.f32 -0.0013888889, %v2445_v47 }
 0x5b5   : > { %v2257_v57 = vadd.f32 -2.755732e-07, %v2193_v19  ;;  %v2447_v47 = vmul.f32 %v2383_v37, %v16036_v3 }
 0x5b6   : > { %v13538_v29 = vadd.f32 %v7682_v61, %v7334_v40  ;;  %7749 = vmatmul.f32.gmra.mxu3 %v13479_v42  ;;  %v7475_v40 = vand.u32 4294901760, %v7474_v58  ;;  %v14929_v42 = vand.u32 4294901760, %v13535_v4  ;;  %v2761_v6 = vadd.f32 -0.5, %v2697_v25 }
 0x5b7   : > { %v7011_v15 = vpop.f32.mrf.mxu0  ;;  %v7341_v35 = vpop.f32.mrf.mxu2  ;;  %v2699_v53 = vmul.f32 %v2635_v22, %v16028_v38  ;;  %v2573_v32 = vmul.f32 %v2509_v55, %v16032_v27  ;;  %v2195_v58 = vmul.f32 2.0876758e-09, %v16042_v43 }
 0x5b8   : > { %v7012_v31 = vadd.f32 %v7011_v15, %v12948_v8  ;;  %v7176_v17 = vpop.f32.mrf.mxu1  ;;  %v2887_v8 = vadd.f32 1.0, %v2823_v0  ;;  %v13563_v0 = vsub.f32 %v3205_v13, %v13549_v45  ;;  %v2825_v15 = vmul.f32 %v2761_v6, %v16026_v1 }
 0x5b9   : > { %v7686_v61 = vpop.f32.mrf.mxu3  ;;  %v2763_v37 = vadd.f32 -0.5, %v2699_v53 }
 0x5ba   : > { %v7173_v39 = vadd.f32 %v7172_v26, %v7012_v31  ;;  %7074 = vmatmul.f32.gmra.mxu0 %v12908_v50  ;;  %7239 = vmatmul.f32.gmra.mxu1 %v12924_v7  ;;  %v7482_v26 = vsub.f32 %v13535_v4, %v14929_v42  ;;  %v2321_v50 = vmul.f32 %v2257_v57, %v16040_v5  ;;  %v2511_v57 = vadd.f32 -0.0013888889, %v2447_v47 }
 0x5bb   : > { %v3207_v25 = vmul.f32 %v3143_v14, %v2887_v8  ;;  %v14934_v1 = vand.u32 4294901760, %v13563_v0  ;;  %v2827_v6 = vmul.f32 %v2763_v37, %v16028_v38 }
 0x5bc   : > { %v7342_v11 = vadd.f32 %v7341_v35, %v7173_v39  ;;  %7476 = vmatmul.f32.gmra.mxu2 %v7475_v40  ;;  %v2637_v40 = vadd.f32 0.041666668, %v2573_v32  ;;  %v16043_v39 = vld [vmem:[#allocation193_spill] sm:$0xff]  ;;  %v7483_v42 = vand.u32 4294901760, %v7482_v26  ;;  %v2385_v4 = vadd.f32 2.4801588e-05, %v2321_v50 }
 0x5bd   : > { %v13572_v14 = vand.u32 4294901760, %v3207_v25  ;;  %v2575_v32 = vmul.f32 %v2511_v57, %v16036_v3  ;;  %v2891_v37 = vadd.f32 1.0, %v2827_v6 }
 0x5be   : > { %v13559_v19 = vadd.f32 %v7686_v61, %v7342_v11  ;;  %7753 = vmatmul.f32.gmra.mxu3 %v13501_v2  ;;  %v3145_v61 = vadd.f32 %v16043_v39, %v16043_v39  ;;  %v2259_v2 = vadd.f32 -2.755732e-07, %v2195_v58  ;;  %v2701_v53 = vmul.f32 %v2637_v40, %v16032_v27 }
 0x5bf   : > { %v7015_v35 = vpop.f32.mrf.mxu0  ;;  %v7349_v31 = vpop.f32.mrf.mxu2  ;;  %16044 = vst [vmem:[#allocation144_spill] sm:$0xff] %v13572_v14  ;;  %v2449_v47 = vmul.f32 %v2385_v4, %v16040_v5  ;;  %v13587_v38 = vsub.f32 %v3207_v25, %v13572_v14  ;;  %v2639_v57 = vadd.f32 0.041666668, %v2575_v32 }
 0x5c0   : > { %v7016_v22 = vadd.f32 %v7015_v35, %v12962_v10  ;;  %v7180_v55 = vpop.f32.mrf.mxu1  ;;  %v2889_v10 = vadd.f32 1.0, %v2825_v15  ;;  %v16047_v15 = vld [vmem:[#allocation198_spill] sm:$0xff]  ;;  %v2765_v40 = vadd.f32 -0.5, %v2701_v53 }
 0x5c1   : > { %v7690_v11 = vpop.f32.mrf.mxu3  ;;  %16046 = vst [vmem:[#allocation18_spill] sm:$0xff] %v13587_v38  ;;  %v3147_v35 = vadd.f32 %v16047_v15, %v16047_v15  ;;  %v2703_v53 = vmul.f32 %v2639_v57, %v16036_v3 }
 0x5c2   : > { %v7177_v13 = vadd.f32 %v7176_v17, %v7016_v22  ;;  %7078 = vmatmul.f32.gmra.mxu0 %v12924_v7  ;;  %7243 = vmatmul.f32.gmra.mxu1 %v12938_v30  ;;  %v2323_v17 = vmul.f32 %v2259_v2, %v16042_v43  ;;  %v16045_v7 = vld [vmem:[#allocation248_spill] sm:$0xff]  ;;  %v3209_v58 = vmul.f32 %v3145_v61, %v2889_v10  ;;  %v14935_v61 = vand.u32 4294901760, %v13587_v38 }
 0x5c3   : > { %v2197_v26 = vmul.f32 2.0876758e-09, %v16045_v7  ;;  %v2829_v6 = vmul.f32 %v2765_v40, %v16032_v27  ;;  %v16050_v27 = vld [vmem:[#allocation203_spill] sm:$0xff] }
 0x5c4   : > { %v7350_v8 = vadd.f32 %v7349_v31, %v7177_v13  ;;  %7484 = vmatmul.f32.gmra.mxu2 %v7483_v42  ;;  %v7490_v42 = vsub.f32 %v13563_v0, %v14934_v1  ;;  %v2387_v13 = vadd.f32 2.4801588e-05, %v2323_v17  ;;  %v13595_v10 = vand.u32 4294901760, %v3209_v58 }
 0x5c5   : > { %v2893_v57 = vadd.f32 1.0, %v2829_v6 }
 0x5c6   : > { %v13580_v50 = vadd.f32 %v7690_v11, %v7350_v8  ;;  %7757 = vmatmul.f32.gmra.mxu3 %v13524_v41  ;;  %v2513_v11 = vadd.f32 -0.0013888889, %v2449_v47  ;;  %v2261_v8 = vadd.f32 -2.755732e-07, %v2197_v26  ;;  %v7491_v25 = vand.u32 4294901760, %v7490_v42  ;;  %16048 = vst [vmem:[#allocation104_spill] sm:$0xff] %v13595_v10 }
 0x5c7   : > { %v7019_v4 = vpop.f32.mrf.mxu0  ;;  %v7357_v31 = vpop.f32.mrf.mxu2  ;;  %v13609_v17 = vsub.f32 %v3209_v58, %v13595_v10  ;;  %v2199_v26 = vmul.f32 2.0876758e-09, %v16050_v27  ;;  %v16051_v42 = vld [vmem:[#allocation262_spill] sm:$0xff] }
 0x5c8   : > { %v7020_v2 = vadd.f32 %v7019_v4, %v12977_v28  ;;  %v7184_v22 = vpop.f32.mrf.mxu1  ;;  %v3211_v28 = vmul.f32 %v3147_v35, %v2891_v37  ;;  %v2577_v32 = vmul.f32 %v2513_v11, %v16040_v5  ;;  %v3149_v35 = vadd.f32 %v16051_v42, %v16051_v42 }
 0x5c9   : > { %v7694_v39 = vpop.f32.mrf.mxu3  ;;  %16049 = vst [vmem:[#allocation19_spill] sm:$0xff] %v13609_v17  ;;  %v14938_v42 = vand.u32 4294901760, %v13609_v17 }
 0x5ca   : > { %v7181_v1 = vadd.f32 %v7180_v55, %v7020_v2  ;;  %7082 = vmatmul.f32.gmra.mxu0 %v12938_v30  ;;  %7247 = vmatmul.f32.gmra.mxu1 %v12952_v48  ;;  %v2451_v55 = vmul.f32 %v2387_v13, %v16042_v43  ;;  %v2325_v30 = vmul.f32 %v2261_v8, %v16045_v7  ;;  %v13615_v40 = vand.u32 4294901760, %v3211_v28 }
 0x5cb   : > { %v2641_v13 = vadd.f32 0.041666668, %v2577_v32  ;;  %v3213_v6 = vmul.f32 %v3149_v35, %v2893_v57 }
 0x5cc   : > { %v7358_v15 = vadd.f32 %v7357_v31, %v7181_v1  ;;  %7492 = vmatmul.f32.gmra.mxu2 %v7491_v25  ;;  %v7498_v1 = vsub.f32 %v13587_v38, %v14935_v61  ;;  %v2515_v8 = vadd.f32 -0.0013888889, %v2451_v55  ;;  %v2389_v25 = vadd.f32 2.4801588e-05, %v2325_v30 }
 0x5cd   : > { %v2263_v61 = vadd.f32 -2.755732e-07, %v2199_v26  ;;  %v2705_v32 = vmul.f32 %v2641_v13, %v16040_v5  ;;  %v7506_v30 = vsub.f32 %v13609_v17, %v14938_v42 }
 0x5ce   : > { %v13602_v47 = vadd.f32 %v7694_v39, %v7358_v15  ;;  %7761 = vmatmul.f32.gmra.mxu3 %v13549_v45  ;;  %v2767_v39 = vadd.f32 -0.5, %v2703_v53  ;;  %v7499_v15 = vand.u32 4294901760, %v7498_v1  ;;  %v16053_v1 = vld [vmem:[#allocation204_spill] sm:$0xff] }
 0x5cf   : > { %v7023_v4 = vpop.f32.mrf.mxu0  ;;  %v7365_v31 = vpop.f32.mrf.mxu2  ;;  %v2201_v26 = vmul.f32 2.0876758e-09, %v16053_v1  ;;  %v7507_v42 = vand.u32 4294901760, %v7506_v30  ;;  %v16057_v30 = vld [vmem:[#allocation205_spill] sm:$0xff] }
 0x5d0   : > { %v7024_v2 = vadd.f32 %v7023_v4, %v12991_v16  ;;  %v7188_v37 = vpop.f32.mrf.mxu1  ;;  %v13621_v16 = vsub.f32 %v3211_v28, %v13615_v40  ;;  %v2831_v53 = vmul.f32 %v2767_v39, %v16036_v3  ;;  %v2327_v28 = vmul.f32 %v2263_v61, %v16050_v27  ;;  %v16054_v4 = vld [vmem:[#allocation211_spill] sm:$0xff] }
 0x5d1   : > { %v7698_v11 = vpop.f32.mrf.mxu3  ;;  %v13639_v39 = vand.u32 4294901760, %v3213_v6 }
 0x5d2   : > { %v7185_v58 = vadd.f32 %v7184_v22, %v7024_v2  ;;  %7086 = vmatmul.f32.gmra.mxu0 %v12952_v48  ;;  %7251 = vmatmul.f32.gmra.mxu1 %v12968_v52  ;;  %16052 = vst [vmem:[#allocation149_spill] sm:$0xff] %v13621_v16  ;;  %v2579_v22 = vmul.f32 %v2515_v8, %v16042_v43  ;;  %v2895_v13 = vadd.f32 1.0, %v2831_v53  ;;  %v2769_v8 = vadd.f32 -0.5, %v2705_v32 }
 0x5d3   : > { %v2453_v48 = vmul.f32 %v2389_v25, %v16045_v7  ;;  %v2391_v17 = vadd.f32 2.4801588e-05, %v2327_v28  ;;  %v2203_v28 = vmul.f32 2.0876758e-09, %v16057_v30 }
 0x5d4   : > { %v7366_v38 = vadd.f32 %v7365_v31, %v7185_v58  ;;  %7500 = vmatmul.f32.gmra.mxu2 %v7499_v15  ;;  %v3151_v31 = vadd.f32 %v16054_v4, %v16054_v4  ;;  %v2643_v25 = vadd.f32 0.041666668, %v2579_v22  ;;  %v16055_v15 = vld [vmem:[#allocation41_spill] sm:$0xff]  ;;  %v2265_v4 = vadd.f32 -2.755732e-07, %v2201_v26 }
 0x5d5   : > { %v2517_v58 = vadd.f32 -0.0013888889, %v2453_v48  ;;  %v2833_v32 = vmul.f32 %v2769_v8, %v16040_v5  ;;  %v16059_v5 = vld [vmem:[#allocation242_spill] sm:$0xff] }
 0x5d6   : > { %v13627_v55 = vadd.f32 %v7698_v11, %v7366_v38  ;;  %7765 = vmatmul.f32.gmra.mxu3 %v13572_v14  ;;  %v14943_v38 = vand.u32 4294901760, %v13621_v16  ;;  %v3215_v53 = vmul.f32 %v3151_v31, %v2895_v13  ;;  %v2329_v48 = vmul.f32 %v2265_v4, %v16053_v1 }
 0x5d7   : > { %v7027_v35 = vpop.f32.mrf.mxu0  ;;  %v7373_v3 = vpop.f32.mrf.mxu2 }
 0x5d8   : > { %v7028_v2 = vadd.f32 %v7027_v35, %v13005_v63  ;;  %v7192_v57 = vpop.f32.mrf.mxu1  ;;  %v7514_v63 = vsub.f32 %v13621_v16, %v14943_v38  ;;  %v13647_v35 = vsub.f32 %v3213_v6, %v13639_v39  ;;  %v16060_v38 = vld [vmem:[#allocation239_spill] sm:$0xff] }
 0x5d9   : > { %v7702_v11 = vpop.f32.mrf.mxu3 }
 0x5da   : > { %v7189_v61 = vadd.f32 %v7188_v37, %v7028_v2  ;;  %7090 = vmatmul.f32.gmra.mxu0 %v12968_v52  ;;  %7255 = vmatmul.f32.gmra.mxu1 %v16055_v15  ;;  %v2707_v37 = vmul.f32 %v2643_v25, %v16042_v43  ;;  %v2581_v52 = vmul.f32 %v2517_v58, %v16045_v7  ;;  %v7515_v8 = vand.u32 4294901760, %v7514_v63 }
 0x5db   : > { %v13662_v25 = vand.u32 4294901760, %v3215_v53  ;;  %v2897_v58 = vadd.f32 1.0, %v2833_v32 }
 0x5dc   : > { %v7374_v14 = vadd.f32 %v7373_v3, %v7189_v61  ;;  %7508 = vmatmul.f32.gmra.mxu2 %v7507_v42  ;;  %v2455_v42 = vmul.f32 %v2391_v17, %v16050_v27  ;;  %v16058_v3 = vld [vmem:[#allocation276_spill] sm:$0xff]  ;;  %v2771_v17 = vadd.f32 -0.5, %v2707_v37  ;;  %v2645_v61 = vadd.f32 0.041666668, %v2581_v52 }
 0x5dd   : > { %v3153_v31 = vadd.f32 %v16058_v3, %v16058_v3  ;;  %v2267_v3 = vadd.f32 -2.755732e-07, %v2203_v28 }
 0x5de   : > { %v13652_v22 = vadd.f32 %v7702_v11, %v7374_v14  ;;  %7769 = vmatmul.f32.gmra.mxu3 %v13595_v10  ;;  %v14948_v14 = vand.u32 4294901760, %v13647_v35  ;;  %v2519_v16 = vadd.f32 -0.0013888889, %v2455_v42  ;;  %v2393_v10 = vadd.f32 2.4801588e-05, %v2329_v48 }
 0x5df   : > { %v7031_v26 = vpop.f32.mrf.mxu0  ;;  %v7381_v6 = vpop.f32.mrf.mxu2  ;;  %v3217_v32 = vmul.f32 %v3153_v31, %v2897_v58  ;;  %v2835_v37 = vmul.f32 %v2771_v17, %v16042_v43  ;;  %v2331_v48 = vmul.f32 %v2267_v3, %v16057_v30  ;;  %v16063_v31 = vld [vmem:[#allocation245_spill] sm:$0xff] }
 0x5e0   : > { %16056 = vst [vmem:[#allocation79_spill] sm:$0xff] %v13652_v22  ;;  %v7032_v2 = vadd.f32 %v7031_v26, %v16059_v5  ;;  %v7196_v13 = vpop.f32.mrf.mxu1  ;;  %v7522_v63 = vsub.f32 %v13647_v35, %v14948_v14  ;;  %v13670_v26 = vsub.f32 %v3215_v53, %v13662_v25  ;;  %v2583_v52 = vmul.f32 %v2519_v16, %v16050_v27  ;;  %v16062_v5 = vld [vmem:[#allocation213_spill] sm:$0xff] }
 0x5e1   : > { %v7706_v11 = vpop.f32.mrf.mxu3  ;;  %v2457_v42 = vmul.f32 %v2393_v10, %v16053_v1  ;;  %v3155_v53 = vadd.f32 %v16062_v5, %v16062_v5  ;;  %v2899_v17 = vadd.f32 1.0, %v2835_v37  ;;  %v16064_v10 = vld [vmem:[#allocation240_spill] sm:$0xff]  ;;  %v2395_v14 = vadd.f32 2.4801588e-05, %v2331_v48 }
 0x5e2   : > { %v7193_v4 = vadd.f32 %v7192_v57, %v7032_v2  ;;  %7094 = vmatmul.f32.gmra.mxu0 %v16055_v15  ;;  %7259 = vmatmul.f32.gmra.mxu1 %v16060_v38  ;;  %16061 = vst [vmem:[#allocation154_spill] sm:$0xff] %v13670_v26  ;;  %v2709_v57 = vmul.f32 %v2645_v61, %v16045_v7 }
 0x5e3   : > { %v2521_v3 = vadd.f32 -0.0013888889, %v2457_v42 }
 0x5e4   : > { %v7382_v22 = vadd.f32 %v7381_v6, %v7193_v4  ;;  %7516 = vmatmul.f32.gmra.mxu2 %v7515_v8  ;;  %v7523_v8 = vand.u32 4294901760, %v7522_v63  ;;  %v2773_v16 = vadd.f32 -0.5, %v2709_v57  ;;  %v2647_v4 = vadd.f32 0.041666668, %v2583_v52 }
 0x5e5   : > { %v2585_v57 = vmul.f32 %v2521_v3, %v16053_v1  ;;  %v2459_v52 = vmul.f32 %v2395_v14, %v16057_v30  ;;  %v16067_v3 = vld [vmem:[#allocation243_spill] sm:$0xff] }
 0x5e6   : > { %v13674_v15 = vadd.f32 %v7706_v11, %v7382_v22  ;;  %7773 = vmatmul.f32.gmra.mxu3 %v13615_v40  ;;  %v14949_v22 = vand.u32 4294901760, %v13670_v26  ;;  %v13684_v11 = vand.u32 4294901760, %v3217_v32  ;;  %v2837_v37 = vmul.f32 %v2773_v16, %v16045_v7 }
 0x5e7   : > { %v7035_v28 = vpop.f32.mrf.mxu0  ;;  %v7389_v6 = vpop.f32.mrf.mxu2 }
 0x5e8   : > { %v7036_v2 = vadd.f32 %v7035_v28, %v16063_v31  ;;  %v7200_v43 = vpop.f32.mrf.mxu1  ;;  %v7530_v63 = vsub.f32 %v13670_v26, %v14949_v22  ;;  %v13692_v28 = vsub.f32 %v3217_v32, %v13684_v11  ;;  %v3219_v31 = vmul.f32 %v3155_v53, %v2899_v17  ;;  %v16066_v32 = vld [vmem:[#allocation247_spill] sm:$0xff] }
 0x5e9   : > { %v7710_v58 = vpop.f32.mrf.mxu3  ;;  %v2523_v22 = vadd.f32 -0.0013888889, %v2459_v52  ;;  %v16069_v52 = vld [vmem:[#allocation263_spill] sm:$0xff] }
 0x5ea   : > { %v7197_v61 = vadd.f32 %v7196_v13, %v7036_v2  ;;  %7098 = vmatmul.f32.gmra.mxu0 %v16060_v38  ;;  %7263 = vmatmul.f32.gmra.mxu1 %v16064_v10  ;;  %v2711_v38 = vmul.f32 %v2647_v4, %v16050_v27  ;;  %v7531_v7 = vand.u32 4294901760, %v7530_v63  ;;  %v13705_v16 = vand.u32 4294901760, %v3219_v31 }
 0x5ec   : > { %v7390_v5 = vadd.f32 %v7389_v6, %v7197_v61  ;;  %7524 = vmatmul.f32.gmra.mxu2 %v7523_v8  ;;  %v16065_v6 = vld [vmem:[#allocation200_spill] sm:$0xff]  ;;  %v2901_v61 = vadd.f32 1.0, %v2837_v37  ;;  %v2775_v14 = vadd.f32 -0.5, %v2711_v38  ;;  %v13713_v63 = vsub.f32 %v3219_v31, %v13705_v16 }
 0x5ed   : > { %v3157_v2 = vadd.f32 %v16065_v6, %v16065_v6  ;;  %v2587_v37 = vmul.f32 %v2523_v22, %v16057_v30 }
 0x5ee   : > { %v13695_v13 = vadd.f32 %v7710_v58, %v7390_v5  ;;  %7777 = vmatmul.f32.gmra.mxu3 %v13639_v39  ;;  %v14952_v58 = vand.u32 4294901760, %v13692_v28  ;;  %v2649_v5 = vadd.f32 0.041666668, %v2585_v57  ;;  %16068 = vst [vmem:[#allocation24_spill] sm:$0xff] %v13713_v63 }
 0x5ef   : > { %v7039_v42 = vpop.f32.mrf.mxu0  ;;  %v7397_v48 = vpop.f32.mrf.mxu2  ;;  %v3221_v6 = vmul.f32 %v3157_v2, %v2901_v61 }
 0x5f0   : > { %v7040_v8 = vadd.f32 %v7039_v42, %v16066_v32  ;;  %v7204_v53 = vpop.f32.mrf.mxu1  ;;  %v7538_v42 = vsub.f32 %v13692_v28, %v14952_v58 }
 0x5f1   : > { %v7714_v17 = vpop.f32.mrf.mxu3 }
 0x5f2   : > { %v7201_v4 = vadd.f32 %v7200_v43, %v7040_v8  ;;  %7102 = vmatmul.f32.gmra.mxu0 %v16064_v10  ;;  %7267 = vmatmul.f32.gmra.mxu1 %v16067_v3  ;;  %v2839_v43 = vmul.f32 %v2775_v14, %v16050_v27  ;;  %v2713_v10 = vmul.f32 %v2649_v5, %v16053_v1  ;;  %v7539_v2 = vand.u32 4294901760, %v7538_v42  ;;  %v16071_v27 = vld [vmem:[#allocation252_spill] sm:$0xff] }
 0x5f3   : > { %v2651_v5 = vadd.f32 0.041666668, %v2587_v37 }
 0x5f4   : > { %v7398_v26 = vadd.f32 %v7397_v48, %v7201_v4  ;;  %7532 = vmatmul.f32.gmra.mxu2 %v7531_v7  ;;  %v16070_v7 = vld [vmem:[#allocation216_spill] sm:$0xff]  ;;  %v2903_v22 = vadd.f32 1.0, %v2839_v43  ;;  %v2777_v14 = vadd.f32 -0.5, %v2713_v10 }
 0x5f5   : > { %v3159_v31 = vadd.f32 %v16070_v7, %v16070_v7  ;;  %v2715_v43 = vmul.f32 %v2651_v5, %v16057_v30 }
 0x5f6   : > { %v13715_v32 = vadd.f32 %v7714_v17, %v7398_v26  ;;  %7781 = vmatmul.f32.gmra.mxu3 %v13662_v25  ;;  %v14953_v26 = vand.u32 4294901760, %v13713_v63  ;;  %v13725_v17 = vand.u32 4294901760, %v3221_v6 }
 0x5f7   : > { %v7043_v38 = vpop.f32.mrf.mxu0  ;;  %v7405_v57 = vpop.f32.mrf.mxu2 }
 0x5f8   : > { %v7044_v48 = vadd.f32 %v7043_v38, %v16069_v52  ;;  %v7208_v8 = vpop.f32.mrf.mxu1  ;;  %v7546_v38 = vsub.f32 %v13713_v63, %v14953_v26  ;;  %v13733_v42 = vsub.f32 %v3221_v6, %v13725_v17 }
 0x5f9   : > { %v7718_v4 = vpop.f32.mrf.mxu3 }
 0x5fa   : > { %v7205_v61 = vadd.f32 %v7204_v53, %v7044_v48  ;;  %7106 = vmatmul.f32.gmra.mxu0 %v16067_v3  ;;  %7271 = vmatmul.f32.gmra.mxu1 %v16071_v27  ;;  %16072 = vst [vmem:[#allocation161_spill] sm:$0xff] %v13733_v42  ;;  %v3223_v53 = vmul.f32 %v3159_v31, %v2903_v22  ;;  %v7547_v6 = vand.u32 4294901760, %v7546_v38  ;;  %v16075_v31 = vld [vmem:[#allocation254_spill] sm:$0xff] }
 0x5fb   : > { %v2841_v3 = vmul.f32 %v2777_v14, %v16053_v1  ;;  %v2779_v14 = vadd.f32 -0.5, %v2715_v43 }
 0x5fc   : > { %v7406_v58 = vadd.f32 %v7405_v57, %v7205_v61  ;;  %7540 = vmatmul.f32.gmra.mxu2 %v7539_v2  ;;  %v16073_v57 = vld [vmem:[#allocation259_spill] sm:$0xff]  ;;  %v16074_v2 = vld [vmem:[#allocation212_spill] sm:$0xff]  ;;  %v13746_v1 = vand.u32 4294901760, %v3223_v53 }
 0x5fd   : > { %v3161_v61 = vadd.f32 %v16074_v2, %v16074_v2  ;;  %v2905_v22 = vadd.f32 1.0, %v2841_v3  ;;  %v2843_v38 = vmul.f32 %v2779_v14, %v16057_v30  ;;  %v16077_v3 = vld [vmem:[#allocation260_spill] sm:$0xff] }
 0x5fe   : > { %v13735_v52 = vadd.f32 %v7718_v4, %v7406_v58  ;;  %7785 = vmatmul.f32.gmra.mxu3 %v13684_v11  ;;  %v14956_v58 = vand.u32 4294901760, %v13733_v42 }
 0x5ff   : > { %v7047_v10 = vpop.f32.mrf.mxu0  ;;  %v7413_v37 = vpop.f32.mrf.mxu2  ;;  %v2907_v30 = vadd.f32 1.0, %v2843_v38 }
 0x600   : > { %v7048_v48 = vadd.f32 %v7047_v10, %v16073_v57  ;;  %v7212_v7 = vpop.f32.mrf.mxu1  ;;  %v7554_v10 = vsub.f32 %v13733_v42, %v14956_v58 }
 0x601   : > { %v7722_v26 = vpop.f32.mrf.mxu3 }
 0x602   : > { %v7209_v4 = vadd.f32 %v7208_v8, %v7048_v48  ;;  %7110 = vmatmul.f32.gmra.mxu0 %v16071_v27  ;;  %7275 = vmatmul.f32.gmra.mxu1 %v16075_v31  ;;  %v13755_v8 = vsub.f32 %v3223_v53, %v13746_v1  ;;  %v3225_v27 = vmul.f32 %v3161_v61, %v2905_v22  ;;  %v7555_v58 = vand.u32 4294901760, %v7554_v10 }
 0x604   : > { %v7414_v5 = vadd.f32 %v7413_v37, %v7209_v4  ;;  %7548 = vmatmul.f32.gmra.mxu2 %v7547_v6  ;;  %16076 = vst [vmem:[#allocation322_spill] sm:$0xff] %v13755_v8  ;;  %v16078_v6 = vld [vmem:[#allocation207_spill] sm:$0xff]  ;;  %v14959_v53 = vand.u32 4294901760, %v13755_v8  ;;  %v13764_v61 = vand.u32 4294901760, %v3225_v27 }
 0x605   : > { %v3163_v4 = vadd.f32 %v16078_v6, %v16078_v6 }
 0x606   : > { %v13751_v57 = vadd.f32 %v7722_v26, %v7414_v5  ;;  %7789 = vmatmul.f32.gmra.mxu3 %v13705_v16  ;;  %v16079_v5 = vld [vmem:[#allocation256_spill] sm:$0xff]  ;;  %16080 = vst [vmem:[#allocation3_spill] sm:$0xff] %v13764_v61  ;;  %v7562_v10 = vsub.f32 %v13755_v8, %v14959_v53 }
 0x607   : > { %v7051_v48 = vpop.f32.mrf.mxu0  ;;  %v7421_v2 = vpop.f32.mrf.mxu2 }
 0x608   : > { %v7052_v43 = vadd.f32 %v7051_v48, %v16077_v3  ;;  %v7216_v37 = vpop.f32.mrf.mxu1 }
 0x609   : > { %v7726_v63 = vpop.f32.mrf.mxu3 }
 0x60a   : > { %v7213_v26 = vadd.f32 %v7212_v7, %v7052_v43  ;;  %7114 = vmatmul.f32.gmra.mxu0 %v16075_v31  ;;  %7279 = vmatmul.f32.gmra.mxu1 %v16079_v5  ;;  %v13773_v7 = vsub.f32 %v3225_v27, %v13764_v61  ;;  %v3227_v31 = vmul.f32 %v3163_v4, %v2907_v30  ;;  %v16082_v43 = vld [vmem:[#allocation49_spill] sm:$0xff] }
 0x60c   : > { %v7422_v22 = vadd.f32 %v7421_v2, %v7213_v26  ;;  %7556 = vmatmul.f32.gmra.mxu2 %v7555_v58  ;;  %16081 = vst [vmem:[#allocation324_spill] sm:$0xff] %v13773_v7  ;;  %v7563_v58 = vand.u32 4294901760, %v7562_v10  ;;  %v14962_v26 = vand.u32 4294901760, %v13773_v7  ;;  %v16085_v10 = vld [vmem:[#allocation270_spill] sm:$0xff] }
 0x60e   : > { %v13766_v14 = vadd.f32 %v7726_v63, %v7422_v22  ;;  %7793 = vmatmul.f32.gmra.mxu3 %v13725_v17  ;;  %v16083_v63 = vld [vmem:[#allocation255_spill] sm:$0xff]  ;;  %v13779_v22 = vand.u32 4294901760, %v3227_v31  ;;  %v7570_v4 = vsub.f32 %v13773_v7, %v14962_v26 }
 0x60f   : > { %v7055_v48 = vpop.f32.mrf.mxu0  ;;  %v7429_v3 = vpop.f32.mrf.mxu2 }
 0x610   : > { %v7056_v6 = vadd.f32 %v7055_v48, %v16082_v43  ;;  %v7220_v42 = vpop.f32.mrf.mxu1 }
 0x611   : > { %v7730_v38 = vpop.f32.mrf.mxu3 }
 0x612   : > { %v7217_v2 = vadd.f32 %v7216_v37, %v7056_v6  ;;  %7118 = vmatmul.f32.gmra.mxu0 %v16079_v5  ;;  %7283 = vmatmul.f32.gmra.mxu1 %v16083_v63  ;;  %v13788_v37 = vsub.f32 %v3227_v31, %v13779_v22 }
 0x614   : > { %v7430_v53 = vadd.f32 %v7429_v3, %v7217_v2  ;;  %7564 = vmatmul.f32.gmra.mxu2 %v7563_v58  ;;  %16084 = vst [vmem:[#allocation25_spill] sm:$0xff] %v13788_v37  ;;  %v7571_v3 = vand.u32 4294901760, %v7570_v4  ;;  %v16088_v4 = vld [vmem:[#allocation267_spill] sm:$0xff] }
 0x616   : > { %v13781_v27 = vadd.f32 %v7730_v38, %v7430_v53  ;;  %7797 = vmatmul.f32.gmra.mxu3 %v13746_v1  ;;  %v16086_v53 = vld [vmem:[#allocation268_spill] sm:$0xff]  ;;  %v14965_v38 = vand.u32 4294901760, %v13788_v37 }
 0x617   : > { %v7059_v5 = vpop.f32.mrf.mxu0  ;;  %v7437_v30 = vpop.f32.mrf.mxu2 }
 0x618   : > { %v7060_v48 = vadd.f32 %v7059_v5, %v16085_v10  ;;  %v7224_v43 = vpop.f32.mrf.mxu1  ;;  %v7578_v31 = vsub.f32 %v13788_v37, %v14965_v38  ;;  %v16089_v38 = vld [vmem:[#allocation280_spill] sm:$0xff] }
 0x619   : > { %v7734_v6 = vpop.f32.mrf.mxu3 }
 0x61a   : > { %v7221_v8 = vadd.f32 %v7220_v42, %v7060_v48  ;;  %7122 = vmatmul.f32.gmra.mxu0 %v16083_v63  ;;  %7287 = vmatmul.f32.gmra.mxu1 %v16086_v53  ;;  %v16087_v42 = vld [vmem:[#allocation279_spill] sm:$0xff] }
 0x61c   : > { %v7438_v2 = vadd.f32 %v7437_v30, %v7221_v8  ;;  %7572 = vmatmul.f32.gmra.mxu2 %v7571_v3  ;;  %v7579_v8 = vand.u32 4294901760, %v7578_v31 }
 0x61e   : > { %v13794_v58 = vadd.f32 %v7734_v6, %v7438_v2  ;;  %7801 = vmatmul.f32.gmra.mxu3 %v13764_v61 }
 0x61f   : > { %v7063_v5 = vpop.f32.mrf.mxu0  ;;  %v7445_v10 = vpop.f32.mrf.mxu2 }
 0x620   : > { %v7064_v48 = vadd.f32 %v7063_v5, %v16087_v42  ;;  %v7228_v63 = vpop.f32.mrf.mxu1 }
 0x621   : > { %v7738_v26 = vpop.f32.mrf.mxu3 }
 0x622   : > { %v7225_v7 = vadd.f32 %v7224_v43, %v7064_v48  ;;  %7126 = vmatmul.f32.gmra.mxu0 %v16086_v53  ;;  %7291 = vmatmul.f32.gmra.mxu1 %v16088_v4  ;;  %v16090_v43 = vld [vmem:[#allocation283_spill] sm:$0xff] }
 0x623   : > { %v16091_v53 = vand.u32 4294901760, %v16090_v43 }
 0x624   : > { %v7446_v30 = vadd.f32 %v7445_v10, %v7225_v7  ;;  %7580 = vmatmul.f32.gmra.mxu2 %v7579_v8  ;;  %v16092_v7 = vld [vmem:[#allocation264_spill] sm:$0xff] }
 0x626   : > { %v13803_v6 = vadd.f32 %v7738_v26, %v7446_v30  ;;  %7805 = vmatmul.f32.gmra.mxu3 %v13779_v22 }
 0x627   : > { %v7067_v3 = vpop.f32.mrf.mxu0  ;;  %v7453_v2 = vpop.f32.mrf.mxu2 }
 0x628   : > { %v7068_v37 = vadd.f32 %v7067_v3, %v16089_v38  ;;  %v7232_v61 = vpop.f32.mrf.mxu1 }
 0x629   : > { %v7742_v5 = vpop.f32.mrf.mxu3 }
 0x62a   : > { %v7229_v42 = vadd.f32 %v7228_v63, %v7068_v37  ;;  %7130 = vmatmul.f32.gmra.mxu0 %v16088_v4  ;;  %8053 = vmatmul.f32.vlgmr.msrb.gmra.mxu1 %v16091_v53  ;;  %v16093_v63 = vld [vmem:[#allocation274_spill] sm:$0xff] }
 0x62b   : > { %v16094_v4 = vand.u32 4294901760, %v16093_v63 }
 0x62c   : > { %v7454_v31 = vadd.f32 %v7453_v2, %v7229_v42  ;;  %8308 = vmatmul.f32.vlgmr.msrb.gmra.mxu2 %v16092_v7  ;;  %v16095_v2 = vld [vmem:[#allocation272_spill] sm:$0xff] }
 0x62e   : > { %v13811_v26 = vadd.f32 %v7742_v5, %v7454_v31  ;;  %8469 = vmatmul.f32.vlgmr.msrb.gmra.mxu3 %v16092_v7  ;;  %v16096_v5 = vmov 0.0  }
 0x62f   : > { %v7071_v10 = vpop.f32.mrf.mxu0  ;;  %v7461_v48 = vpop.f32.mrf.mxu2  ;;  %308 = vst.msk [vmem:[%s13823_s6] sm:$0xff] %vm275_vm0, %v16096_v5 }
 0x630   : > { %v7072_v38 = vadd.f32 %v7071_v10, %v13175_v54  ;;  %v7236_v8 = vpop.f32.mrf.mxu1  ;;  %309 = vst.msk [vmem:[%s13823_s6 + $0x8] sm:$0xff] %vm275_vm0, %v16096_v5  ;;  %v16097_v10 = vand.u32 4294901760, %v13165_v56 }
 0x631   : > { %v7746_v30 = vpop.f32.mrf.mxu3  ;;  %310 = vst.msk [vmem:[%s13823_s6 + $0x10] sm:$0xff] %vm275_vm0, %v16096_v5 }
 0x632   : > { %v7233_v37 = vadd.f32 %v7232_v61, %v7072_v38  ;;  %7859 = vmatmul.f32.vlgmr.msrb.gmra.mxu0 %v16090_v43  ;;  %8059 = vmatmul.f32.gmra.mxu1 %v16094_v4  ;;  %311 = vst.msk [vmem:[%s13823_s6 + $0x18] sm:$0xff] %vm275_vm0, %v16096_v5  ;;  %v16098_v4 = vld [vmem:[#allocation282_spill] sm:$0xff] }
 0x633   : > { %312 = vst.msk [vmem:[%s13823_s6 + $0x20] sm:$0xff] %vm275_vm0, %v16096_v5 }
 0x634   : > { %v7462_v3 = vadd.f32 %v7461_v48, %v7233_v37  ;;  %8312 = vmatmul.f32.gmra.mxu2 %v16095_v2  ;;  %313 = vst.msk [vmem:[%s13823_s6 + $0x28] sm:$0xff] %vm275_vm0, %v16096_v5 }
 0x635   : > { %314 = vst.msk [vmem:[%s13823_s6 + $0x30] sm:$0xff] %vm275_vm0, %v16096_v5 }
 0x636   : > { %v13828_v54 = vadd.f32 %v7746_v30, %v7462_v3  ;;  %8473 = vmatmul.f32.gmra.mxu3 %v16095_v2  ;;  %315 = vst.msk [vmem:[%s13823_s6 + $0x38] sm:$0xff] %vm275_vm0, %v16096_v5  ;;  %v16099_v3 = vand.u32 4294901760, %v16098_v4  ;;  %v16100_v2 = vld [vmem:[#allocation294_spill] sm:$0xff] }
 0x637   : > { %v7075_v61 = vpop.f32.mrf.mxu0  ;;  %v7469_v42 = vpop.f32.mrf.mxu2  ;;  %316 = vst.msk [vmem:[%s13823_s6 + $0x40] sm:$0xff] %vm275_vm0, %v16096_v5 }
 0x638   : > { %v7076_v43 = vadd.f32 %v7075_v61, %v13197_v36  ;;  %v7240_v53 = vpop.f32.mrf.mxu1  ;;  %317 = vst.msk [vmem:[%s13823_s6 + $0x48] sm:$0xff] %vm275_vm0, %v16096_v5 }
 0x639   : > { %v7750_v31 = vpop.f32.mrf.mxu3  ;;  %318 = vst.msk [vmem:[%s13823_s6 + $0x50] sm:$0xff] %vm275_vm0, %v16096_v5 }
 0x63a   : > { %v7237_v7 = vadd.f32 %v7236_v8, %v7076_v43  ;;  %7864 = vmatmul.f32.gmra.mxu0 %v16093_v63  ;;  %8065 = vmatmul.f32.gmra.mxu1 %v16097_v10  ;;  %319 = vst.msk [vmem:[%s13823_s6 + $0x58] sm:$0xff] %vm275_vm0, %v16096_v5  ;;  %v16101_v10 = vld [vmem:[#allocation281_spill] sm:$0xff] }
 0x63b   : > { %320 = vst.msk [vmem:[%s13823_s6 + $0x60] sm:$0xff] %vm275_vm0, %v16096_v5 }
 0x63c   : > { %v7470_v36 = vadd.f32 %v7469_v42, %v7237_v7  ;;  %8316 = vmatmul.f32.gmra.mxu2 %v13151_v18  ;;  %321 = vst.msk [vmem:[%s13823_s6 + $0x68] sm:$0xff] %vm275_vm0, %v16096_v5 }
 0x63d   : > { %322 = vst.msk [vmem:[%s13823_s6 + $0x70] sm:$0xff] %vm275_vm0, %v16096_v5 }
 0x63e   : > { %v13860_v48 = vadd.f32 %v7750_v31, %v7470_v36  ;;  %8477 = vmatmul.f32.gmra.mxu3 %v13151_v18  ;;  %323 = vst.msk [vmem:[%s13823_s6 + $0x78] sm:$0xff] %vm275_vm0, %v16096_v5  ;;  %v16102_v36 = vand.u32 4294901760, %v16101_v10 }
 0x63f   : > { %v7079_v38 = vpop.f32.mrf.mxu0  ;;  %v7477_v8 = vpop.f32.mrf.mxu2  ;;  %324 = vst.msk [vmem:[%s13823_s6 + $0x80] sm:$0xff] %vm275_vm0, %v16096_v5 }
 0x640   : > { %v7080_v30 = vadd.f32 %v7079_v38, %v13219_v46  ;;  %v7244_v37 = vpop.f32.mrf.mxu1  ;;  %325 = vst.msk [vmem:[%s13823_s6 + $0x88] sm:$0xff] %vm275_vm0, %v16096_v5  ;;  %v16103_v38 = vld [vmem:[#allocation287_spill] sm:$0xff] }
 0x641   : > { %v7754_v63 = vpop.f32.mrf.mxu3  ;;  %326 = vst.msk [vmem:[%s13823_s6 + $0x90] sm:$0xff] %vm275_vm0, %v16096_v5 }
 0x642   : > { %v7241_v18 = vadd.f32 %v7240_v53, %v7080_v30  ;;  %7869 = vmatmul.f32.gmra.mxu0 %v13165_v56  ;;  %8071 = vmatmul.f32.gmra.mxu1 %v16099_v3  ;;  %327 = vst.msk [vmem:[%s13823_s6 + $0x98] sm:$0xff] %vm275_vm0, %v16096_v5 }
 0x643   : > { %328 = vst.msk [vmem:[%s13823_s6 + $0xa0] sm:$0xff] %vm275_vm0, %v16096_v5 }
 0x644   : > { %v7478_v46 = vadd.f32 %v7477_v8, %v7241_v18  ;;  %8320 = vmatmul.f32.gmra.mxu2 %v16100_v2  ;;  %329 = vst.msk [vmem:[%s13823_s6 + $0xa8] sm:$0xff] %vm275_vm0, %v16096_v5 }
 0x645   : > { %330 = vst.msk [vmem:[%s13823_s6 + $0xb0] sm:$0xff] %vm275_vm0, %v16096_v5 }
 0x646   : > { %v13892_v56 = vadd.f32 %v7754_v63, %v7478_v46  ;;  %8481 = vmatmul.f32.gmra.mxu3 %v16100_v2  ;;  %331 = vst.msk [vmem:[%s13823_s6 + $0xb8] sm:$0xff] %vm275_vm0, %v16096_v5  ;;  %v16104_v46 = vld [vmem:[#allocation291_spill] sm:$0xff] }
 0x647   : > { %v7083_v61 = vpop.f32.mrf.mxu0  ;;  %v7485_v42 = vpop.f32.mrf.mxu2  ;;  %332 = vst.msk [vmem:[%s13823_s6 + $0xc0] sm:$0xff] %vm275_vm0, %v16096_v5  ;;  %v16105_v2 = vand.u32 4294901760, %v16104_v46 }
 0x648   : > { %v7084_v43 = vadd.f32 %v7083_v61, %v13241_v33  ;;  %v7248_v53 = vpop.f32.mrf.mxu1  ;;  %333 = vst.msk [vmem:[%s13823_s6 + $0xc8] sm:$0xff] %vm275_vm0, %v16096_v5  ;;  %v16106_v61 = vld [vmem:[#allocation289_spill] sm:$0xff] }
 0x649   : > { %v7758_v31 = vpop.f32.mrf.mxu3  ;;  %334 = vst.msk [vmem:[%s13823_s6 + $0xd0] sm:$0xff] %vm275_vm0, %v16096_v5 }
 0x64a   : > { %v7245_v7 = vadd.f32 %v7244_v37, %v7084_v43  ;;  %7874 = vmatmul.f32.gmra.mxu0 %v16098_v4  ;;  %8077 = vmatmul.f32.gmra.mxu1 %v16102_v36  ;;  %335 = vst.msk [vmem:[%s13823_s6 + $0xd8] sm:$0xff] %vm275_vm0, %v16096_v5 }
 0x64b   : > { %336 = vst.msk [vmem:[%s13823_s6 + $0xe0] sm:$0xff] %vm275_vm0, %v16096_v5 }
 0x64c   : > { %v7486_v33 = vadd.f32 %v7485_v42, %v7245_v7  ;;  %8324 = vmatmul.f32.gmra.mxu2 %v16103_v38  ;;  %337 = vst.msk [vmem:[%s13823_s6 + $0xe8] sm:$0xff] %vm275_vm0, %v16096_v5 }
 0x64d   : > { %338 = vst.msk [vmem:[%s13823_s6 + $0xf0] sm:$0xff] %vm275_vm0, %v16096_v5 }
 0x64e   : > { %v13924_v8 = vadd.f32 %v7758_v31, %v7486_v33  ;;  %8485 = vmatmul.f32.gmra.mxu3 %v16103_v38  ;;  %339 = vst.msk [vmem:[%s13823_s6 + $0xf8] sm:$0xff] %vm275_vm0, %v16096_v5  ;;  %v16107_v33 = vld [vmem:[#allocation293_spill] sm:$0xff] }
 0x64f   : > { %v7087_v30 = vpop.f32.mrf.mxu0  ;;  %v7493_v37 = vpop.f32.mrf.mxu2  ;;  %v16108_v38 = vand.u32 4294901760, %v16107_v33 }
 0x650   : > { %v7088_v63 = vadd.f32 %v7087_v30, %v13263_v51  ;;  %v7252_v18 = vpop.f32.mrf.mxu1 }
 0x651   : > { %v7762_v4 = vpop.f32.mrf.mxu3 }
 0x652   : > { %v7249_v3 = vadd.f32 %v7248_v53, %v7088_v63  ;;  %7879 = vmatmul.f32.gmra.mxu0 %v16101_v10  ;;  %8083 = vmatmul.f32.gmra.mxu1 %v16105_v2 }
 0x654   : > { %v7494_v51 = vadd.f32 %v7493_v37, %v7249_v3  ;;  %8328 = vmatmul.f32.gmra.mxu2 %v16106_v61  ;;  %v16109_v37 = vld [vmem:[#allocation300_spill] sm:$0xff] }
 0x656   : > { %v13953_v42 = vadd.f32 %v7762_v4, %v7494_v51  ;;  %8489 = vmatmul.f32.gmra.mxu3 %v16106_v61 }
 0x657   : > { %v7091_v43 = vpop.f32.mrf.mxu0  ;;  %v7501_v53 = vpop.f32.mrf.mxu2 }
 0x658   : > { %v7092_v31 = vadd.f32 %v7091_v43, %v13285_v49  ;;  %v7256_v7 = vpop.f32.mrf.mxu1  ;;  %v16112_v43 = vld [vmem:[#allocation301_spill] sm:$0xff] }
 0x659   : > { %v7766_v10 = vpop.f32.mrf.mxu3 }
 0x65a   : > { %v7253_v36 = vadd.f32 %v7252_v18, %v7092_v31  ;;  %7884 = vmatmul.f32.gmra.mxu0 %v16104_v46  ;;  %8089 = vmatmul.f32.gmra.mxu1 %v16108_v38  ;;  %v16110_v18 = vld [vmem:[#allocation302_spill] sm:$0xff] }
 0x65b   : > { %v16111_v46 = vand.u32 4294901760, %v16110_v18 }
 0x65c   : > { %v7502_v30 = vadd.f32 %v7501_v53, %v7253_v36  ;;  %8332 = vmatmul.f32.gmra.mxu2 %v16109_v37  ;;  %v16113_v36 = vld [vmem:[#allocation318_spill] sm:$0xff] }
 0x65e   : > { %v13961_v5 = vadd.f32 %v7766_v10, %v7502_v30  ;;  %8493 = vmatmul.f32.gmra.mxu3 %v16109_v37 }
 0x65f   : > { %v7095_v63 = vpop.f32.mrf.mxu0  ;;  %v7509_v4 = vpop.f32.mrf.mxu2 }
 0x660   : > { %v7096_v3 = vadd.f32 %v7095_v63, %v13307_v21  ;;  %v7260_v49 = vpop.f32.mrf.mxu1 }
 0x661   : > { %v7770_v2 = vpop.f32.mrf.mxu3 }
 0x662   : > { %v7257_v51 = vadd.f32 %v7256_v7, %v7096_v3  ;;  %7889 = vmatmul.f32.gmra.mxu0 %v16107_v33  ;;  %8095 = vmatmul.f32.gmra.mxu1 %v16111_v46  ;;  %v16114_v7 = vld [vmem:[#allocation105_spill] sm:$0xff]  ;;  %v16117_v46 = vld [vmem:[#allocation4_spill] sm:$0xff] }
 0x663   : > { %v16115_v33 = vand.u32 4294901760, %v16114_v7 }
 0x664   : > { %v7510_v61 = vadd.f32 %v7509_v4, %v7257_v51  ;;  %8336 = vmatmul.f32.gmra.mxu2 %v16112_v43  ;;  %v16116_v4 = vld [vmem:[#allocation103_spill] sm:$0xff] }
 0x666   : > { %v13969_v53 = vadd.f32 %v7770_v2, %v7510_v61  ;;  %8497 = vmatmul.f32.gmra.mxu3 %v16112_v43 }
 0x667   : > { %v7099_v31 = vpop.f32.mrf.mxu0  ;;  %v7517_v10 = vpop.f32.mrf.mxu2 }
 0x668   : > { %v7100_v38 = vadd.f32 %v7099_v31, %v16113_v36  ;;  %v7264_v21 = vpop.f32.mrf.mxu1 }
 0x669   : > { %v7774_v30 = vpop.f32.mrf.mxu3 }
 0x66a   : > { %v7261_v37 = vadd.f32 %v7260_v49, %v7100_v38  ;;  %7894 = vmatmul.f32.gmra.mxu0 %v16110_v18  ;;  %8101 = vmatmul.f32.gmra.mxu1 %v16115_v33  ;;  %v16118_v49 = vld [vmem:[#allocation113_spill] sm:$0xff] }
 0x66b   : > { %v16119_v18 = vand.u32 4294901760, %v16118_v49 }
 0x66c   : > { %v7518_v63 = vadd.f32 %v7517_v10, %v7261_v37  ;;  %8340 = vmatmul.f32.gmra.mxu2 %v16116_v4  ;;  %v16120_v10 = vld [vmem:[#allocation7_spill] sm:$0xff] }
 0x66e   : > { %v13977_v3 = vadd.f32 %v7774_v30, %v7518_v63  ;;  %8501 = vmatmul.f32.gmra.mxu3 %v16116_v4 }
 0x66f   : > { %v7103_v2 = vpop.f32.mrf.mxu0  ;;  %v7525_v51 = vpop.f32.mrf.mxu2 }
 0x670   : > { %v7104_v61 = vadd.f32 %v7103_v2, %v16117_v46  ;;  %v7268_v43 = vpop.f32.mrf.mxu1 }
 0x671   : > { %v7778_v31 = vpop.f32.mrf.mxu3 }
 0x672   : > { %v7265_v36 = vadd.f32 %v7264_v21, %v7104_v61  ;;  %7899 = vmatmul.f32.gmra.mxu0 %v16114_v7  ;;  %8107 = vmatmul.f32.gmra.mxu1 %v16119_v18  ;;  %v16121_v21 = vld [vmem:[#allocation316_spill] sm:$0xff] }
 0x673   : > { %v16122_v7 = vand.u32 4294901760, %v16121_v21 }
 0x674   : > { %v7526_v38 = vadd.f32 %v7525_v51, %v7265_v36  ;;  %8344 = vmatmul.f32.gmra.mxu2 %v16120_v10  ;;  %v16123_v51 = vld [vmem:[#allocation117_spill] sm:$0xff] }
 0x676   : > { %v13985_v37 = vadd.f32 %v7778_v31, %v7526_v38  ;;  %8505 = vmatmul.f32.gmra.mxu3 %v16120_v10 }
 0x677   : > { %v7107_v30 = vpop.f32.mrf.mxu0  ;;  %v7533_v33 = vpop.f32.mrf.mxu2 }
 0x678   : > { %v7108_v63 = vadd.f32 %v7107_v30, %v13373_v34  ;;  %v7272_v4 = vpop.f32.mrf.mxu1 }
 0x679   : > { %v7782_v2 = vpop.f32.mrf.mxu3 }
 0x67a   : > { %v7269_v46 = vadd.f32 %v7268_v43, %v7108_v63  ;;  %7904 = vmatmul.f32.gmra.mxu0 %v16118_v49  ;;  %8113 = vmatmul.f32.gmra.mxu1 %v16122_v7  ;;  %v16124_v43 = vand.u32 4294901760, %v13363_v9 }
 0x67c   : > { %v7534_v61 = vadd.f32 %v7533_v33, %v7269_v46  ;;  %8348 = vmatmul.f32.gmra.mxu2 %v16123_v51 }
 0x67e   : > { %v13993_v36 = vadd.f32 %v7782_v2, %v7534_v61  ;;  %8509 = vmatmul.f32.gmra.mxu3 %v16123_v51 }
 0x67f   : > { %v7111_v31 = vpop.f32.mrf.mxu0  ;;  %v7541_v18 = vpop.f32.mrf.mxu2 }
 0x680   : > { %v7112_v38 = vadd.f32 %v7111_v31, %v13395_v24  ;;  %v7276_v34 = vpop.f32.mrf.mxu1  ;;  %v16127_v31 = vld [vmem:[#allocation124_spill] sm:$0xff] }
 0x681   : > { %v7786_v10 = vpop.f32.mrf.mxu3 }
 0x682   : > { %v7273_v30 = vadd.f32 %v7272_v4, %v7112_v38  ;;  %7909 = vmatmul.f32.gmra.mxu0 %v16121_v21  ;;  %8119 = vmatmul.f32.gmra.mxu1 %v16124_v43  ;;  %v16125_v4 = vld [vmem:[#allocation314_spill] sm:$0xff] }
 0x683   : > { %v16126_v21 = vand.u32 4294901760, %v16125_v4 }
 0x684   : > { %v7542_v49 = vadd.f32 %v7541_v18, %v7273_v30  ;;  %8352 = vmatmul.f32.gmra.mxu2 %v13349_v60 }
 0x686   : > { %v14001_v33 = vadd.f32 %v7786_v10, %v7542_v49  ;;  %8513 = vmatmul.f32.gmra.mxu3 %v13349_v60 }
 0x687   : > { %v7115_v63 = vpop.f32.mrf.mxu0  ;;  %v7549_v2 = vpop.f32.mrf.mxu2 }
 0x688   : > { %v7116_v46 = vadd.f32 %v7115_v63, %v13417_v59  ;;  %v7280_v24 = vpop.f32.mrf.mxu1  ;;  %v16130_v63 = vld [vmem:[#allocation11_spill] sm:$0xff] }
 0x689   : > { %v7790_v7 = vpop.f32.mrf.mxu3 }
 0x68a   : > { %v7277_v61 = vadd.f32 %v7276_v34, %v7116_v46  ;;  %7914 = vmatmul.f32.gmra.mxu0 %v13363_v9  ;;  %8125 = vmatmul.f32.gmra.mxu1 %v16126_v21  ;;  %v16128_v9 = vld [vmem:[#allocation9_spill] sm:$0xff] }
 0x68b   : > { %v16129_v34 = vand.u32 4294901760, %v16128_v9 }
 0x68c   : > { %v7550_v51 = vadd.f32 %v7549_v2, %v7277_v61  ;;  %8356 = vmatmul.f32.gmra.mxu2 %v16127_v31 }
 0x68e   : > { %v14009_v18 = vadd.f32 %v7790_v7, %v7550_v51  ;;  %8517 = vmatmul.f32.gmra.mxu3 %v16127_v31 }
 0x68f   : > { %v7119_v60 = vpop.f32.mrf.mxu0  ;;  %v7557_v38 = vpop.f32.mrf.mxu2 }
 0x690   : > { %v7120_v10 = vadd.f32 %v7119_v60, %v13439_v44  ;;  %v7284_v59 = vpop.f32.mrf.mxu1  ;;  %v16133_v60 = vld [vmem:[#allocation130_spill] sm:$0xff] }
 0x691   : > { %v7794_v30 = vpop.f32.mrf.mxu3 }
 0x692   : > { %v7281_v43 = vadd.f32 %v7280_v24, %v7120_v10  ;;  %7919 = vmatmul.f32.gmra.mxu0 %v16125_v4  ;;  %8131 = vmatmul.f32.gmra.mxu1 %v16129_v34  ;;  %v16131_v24 = vld [vmem:[#allocation320_spill] sm:$0xff] }
 0x693   : > { %v16132_v4 = vand.u32 4294901760, %v16131_v24 }
 0x694   : > { %v7558_v49 = vadd.f32 %v7557_v38, %v7281_v43  ;;  %8360 = vmatmul.f32.gmra.mxu2 %v16130_v63 }
 0x696   : > { %v14017_v2 = vadd.f32 %v7794_v30, %v7558_v49  ;;  %8521 = vmatmul.f32.gmra.mxu3 %v16130_v63 }
 0x697   : > { %v7123_v46 = vpop.f32.mrf.mxu0  ;;  %v7565_v7 = vpop.f32.mrf.mxu2 }
 0x698   : > { %v7124_v61 = vadd.f32 %v7123_v46, %v13461_v12  ;;  %v7288_v44 = vpop.f32.mrf.mxu1  ;;  %v16136_v46 = vld [vmem:[#allocation15_spill] sm:$0xff] }
 0x699   : > { %v7798_v21 = vpop.f32.mrf.mxu3 }
 0x69a   : > { %v7285_v51 = vadd.f32 %v7284_v59, %v7124_v61  ;;  %7924 = vmatmul.f32.gmra.mxu0 %v16128_v9  ;;  %8137 = vmatmul.f32.gmra.mxu1 %v16132_v4  ;;  %v16134_v59 = vld [vmem:[#allocation319_spill] sm:$0xff] }
 0x69b   : > { %v16135_v9 = vand.u32 4294901760, %v16134_v59 }
 0x69c   : > { %v7566_v31 = vadd.f32 %v7565_v7, %v7285_v51  ;;  %8364 = vmatmul.f32.gmra.mxu2 %v16133_v60 }
 0x69e   : > { %v14025_v38 = vadd.f32 %v7798_v21, %v7566_v31  ;;  %8525 = vmatmul.f32.gmra.mxu3 %v16133_v60 }
 0x69f   : > { %v7127_v10 = vpop.f32.mrf.mxu0  ;;  %v7573_v30 = vpop.f32.mrf.mxu2 }
 0x6a0   : > { %v7128_v43 = vadd.f32 %v7127_v10, %v13483_v23  ;;  %v7292_v12 = vpop.f32.mrf.mxu1 }
 0x6a1   : > { %v7802_v34 = vpop.f32.mrf.mxu3 }
 0x6a2   : > { %v7289_v49 = vadd.f32 %v7288_v44, %v7128_v43  ;;  %7929 = vmatmul.f32.gmra.mxu0 %v16131_v24  ;;  %8143 = vmatmul.f32.gmra.mxu1 %v16135_v9  ;;  %v16137_v44 = vld [vmem:[#allocation14_spill] sm:$0xff] }
 0x6a3   : > { %v16138_v24 = vand.u32 4294901760, %v16137_v44 }
 0x6a4   : > { %v7574_v63 = vadd.f32 %v7573_v30, %v7289_v49  ;;  %8368 = vmatmul.f32.gmra.mxu2 %v16136_v46 }
 0x6a6   : > { %v14033_v7 = vadd.f32 %v7802_v34, %v7574_v63  ;;  %8529 = vmatmul.f32.gmra.mxu3 %v16136_v46  ;;  %v16141_v46 = vld [vmem:[#allocation12_spill] sm:$0xff] }
 0x6a7   : > { %v7131_v61 = vpop.f32.mrf.mxu0  ;;  %v7581_v21 = vpop.f32.mrf.mxu2 }
 0x6a8   : > { %v7132_v51 = vadd.f32 %v7131_v61, %v13505_v20  ;;  %v8054_v23 = vpop.f32.mrf.mxu1  ;;  %v5961_v61 = vld [vmem:[%s13823_s6] sm:$0xff] }
 0x6a9   : > { %v7806_v4 = vpop.f32.mrf.mxu3 }
 0x6aa   : > { %v7293_v31 = vadd.f32 %v7292_v12, %v7132_v51  ;;  %7934 = vmatmul.f32.gmra.mxu0 %v16134_v59  ;;  %8149 = vmatmul.f32.gmra.mxu1 %v16138_v24  ;;  %v16139_v59 = vld [vmem:[#allocation134_spill] sm:$0xff]  ;;  %v16142_v24 = vld [vmem:[#allocation21_spill] sm:$0xff] }
 0x6ab   : > { %v16140_v9 = vand.u32 4294901760, %v16139_v59 }
 0x6ac   : > { %v7582_v60 = vadd.f32 %v7581_v21, %v7293_v31  ;;  %8372 = vmatmul.f32.gmra.mxu2 %v13457_v62 }
 0x6ae   : > { %v14041_v10 = vadd.f32 %v7806_v4, %v7582_v60  ;;  %8533 = vmatmul.f32.gmra.mxu3 %v13457_v62  ;;  %v16143_v60 = vand.u32 4294901760, %v16142_v24 }
 0x6af   : > { %v7860_v30 = vpop.f32.mrf.mxu0  ;;  %v8309_v43 = vpop.f32.mrf.mxu2 }
 0x6b0   : > { %v7861_v20 = vadd.f32 %v7860_v30, %v13538_v29  ;;  %v8060_v34 = vpop.f32.mrf.mxu1 }
 0x6b1   : > { %v8470_v12 = vpop.f32.mrf.mxu3 }
 0x6b2   : > { %v8055_v49 = vadd.f32 %v8054_v23, %v7861_v20  ;;  %7939 = vmatmul.f32.gmra.mxu0 %v16137_v44  ;;  %8155 = vmatmul.f32.gmra.mxu1 %v16140_v9  ;;  %v5962_v20 = vld [vmem:[%s13823_s6 + $0x8] sm:$0xff] }
 0x6b4   : > { %v8310_v63 = vadd.f32 %v8309_v43, %v8055_v49  ;;  %8376 = vmatmul.f32.gmra.mxu2 %v16141_v46  ;;  %v16144_v43 = vld [vmem:[#allocation137_spill] sm:$0xff] }
 0x6b6   : > { %v8471_v21 = vadd.f32 %v8470_v12, %v8310_v63  ;;  %8537 = vmatmul.f32.gmra.mxu3 %v16141_v46 }
 0x6b7   : > { %v7865_v62 = vpop.f32.mrf.mxu0  ;;  %v8313_v51 = vpop.f32.mrf.mxu2 }
 0x6b8   : > { %v8597_v29 = vadd.f32 %v8471_v21, %v5961_v61  ;;  %v7866_v4 = vadd.f32 %v7865_v62, %v13559_v19  ;;  %v8066_v31 = vpop.f32.mrf.mxu1  ;;  %v16145_v61 = vld [vmem:[#allocation16_spill] sm:$0xff] }
 0x6b9   : > { %v8474_v23 = vpop.f32.mrf.mxu3  ;;  %v16146_v21 = vand.u32 4294901760, %v16145_v61 }
 0x6ba   : > { %8629 = vst.msk [vmem:[%s13823_s6] sm:$0xff] %vm275_vm0, %v8597_v29  ;;  %v8061_v44 = vadd.f32 %v8060_v34, %v7866_v4  ;;  %7944 = vmatmul.f32.gmra.mxu0 %v16139_v59  ;;  %8161 = vmatmul.f32.gmra.mxu1 %v16143_v60 }
 0x6bc   : > { %v8314_v30 = vadd.f32 %v8313_v51, %v8061_v44  ;;  %8380 = vmatmul.f32.gmra.mxu2 %v16144_v43  ;;  %v5963_v51 = vld [vmem:[%s13823_s6 + $0x10] sm:$0xff] }
 0x6be   : > { %v8475_v12 = vadd.f32 %v8474_v23, %v8314_v30  ;;  %8541 = vmatmul.f32.gmra.mxu3 %v16144_v43  ;;  %v16147_v30 = vand.u32 4294901760, %v13563_v0 }
 0x6bf   : > { %v7870_v19 = vpop.f32.mrf.mxu0  ;;  %v8317_v49 = vpop.f32.mrf.mxu2 }
 0x6c0   : > { %v8598_v9 = vadd.f32 %v8475_v12, %v5962_v20  ;;  %v7871_v63 = vadd.f32 %v7870_v19, %v13580_v50  ;;  %v8072_v46 = vpop.f32.mrf.mxu1 }
 0x6c1   : > { %v8478_v34 = vpop.f32.mrf.mxu3 }
 0x6c2   : > { %8630 = vst.msk [vmem:[%s13823_s6 + $0x8] sm:$0xff] %vm275_vm0, %v8598_v9  ;;  %v8067_v59 = vadd.f32 %v8066_v31, %v7871_v63  ;;  %7949 = vmatmul.f32.gmra.mxu0 %v16142_v24  ;;  %8167 = vmatmul.f32.gmra.mxu1 %v16146_v21  ;;  %v16150_v21 = vld [vmem:[#allocation144_spill] sm:$0xff] }
 0x6c4   : > { %v8318_v62 = vadd.f32 %v8317_v49, %v8067_v59  ;;  %8384 = vmatmul.f32.gmra.mxu2 %v13524_v41 }
 0x6c6   : > { %v8479_v29 = vadd.f32 %v8478_v34, %v8318_v62  ;;  %8545 = vmatmul.f32.gmra.mxu3 %v13524_v41  ;;  %v5964_v41 = vld [vmem:[%s13823_s6 + $0x18] sm:$0xff]  ;;  %v16148_v34 = vld [vmem:[#allocation18_spill] sm:$0xff] }
 0x6c7   : > { %v7875_v50 = vpop.f32.mrf.mxu0  ;;  %v8321_v4 = vpop.f32.mrf.mxu2  ;;  %v16149_v59 = vand.u32 4294901760, %v16148_v34 }
 0x6c8   : > { %v8599_v23 = vadd.f32 %v8479_v29, %v5963_v51  ;;  %v7876_v44 = vadd.f32 %v7875_v50, %v13602_v47  ;;  %v8078_v60 = vpop.f32.mrf.mxu1  ;;  %v16151_v50 = vld [vmem:[#allocation79_spill] sm:$0xff] }
 0x6c9   : > { %v8482_v31 = vpop.f32.mrf.mxu3 }
 0x6ca   : > { %8631 = vst.msk [vmem:[%s13823_s6 + $0x10] sm:$0xff] %vm275_vm0, %v8599_v23  ;;  %v8073_v24 = vadd.f32 %v8072_v46, %v7876_v44  ;;  %7954 = vmatmul.f32.gmra.mxu0 %v16145_v61  ;;  %8173 = vmatmul.f32.gmra.mxu1 %v16147_v30  ;;  %v16154_v30 = vld [vmem:[#allocation104_spill] sm:$0xff] }
 0x6cc   : > { %v8322_v43 = vadd.f32 %v8321_v4, %v8073_v24  ;;  %8388 = vmatmul.f32.gmra.mxu2 %v13549_v45 }
 0x6ce   : > { %v8483_v20 = vadd.f32 %v8482_v31, %v8322_v43  ;;  %8549 = vmatmul.f32.gmra.mxu3 %v13549_v45  ;;  %v5965_v45 = vld [vmem:[%s13823_s6 + $0x20] sm:$0xff]  ;;  %v5966_v43 = vld [vmem:[%s13823_s6 + $0x28] sm:$0xff] }
 0x6cf   : > { %v7880_v47 = vpop.f32.mrf.mxu0  ;;  %v8325_v12 = vpop.f32.mrf.mxu2 }
 0x6d0   : > { %v8600_v19 = vadd.f32 %v8483_v20, %v5964_v41  ;;  %v7881_v49 = vadd.f32 %v7880_v47, %v13627_v55  ;;  %v8084_v9 = vpop.f32.mrf.mxu1 }
 0x6d1   : > { %v8486_v63 = vpop.f32.mrf.mxu3 }
 0x6d2   : > { %8632 = vst.msk [vmem:[%s13823_s6 + $0x18] sm:$0xff] %vm275_vm0, %v8600_v19  ;;  %v8079_v46 = vadd.f32 %v8078_v60, %v7881_v49  ;;  %7959 = vmatmul.f32.gmra.mxu0 %v13563_v0  ;;  %8179 = vmatmul.f32.gmra.mxu1 %v16149_v59  ;;  %v16152_v60 = vld [vmem:[#allocation19_spill] sm:$0xff] }
 0x6d3   : > { %v16153_v31 = vand.u32 4294901760, %v16152_v60 }
 0x6d4   : > { %v8326_v61 = vadd.f32 %v8325_v12, %v8079_v46  ;;  %8392 = vmatmul.f32.gmra.mxu2 %v16150_v21  ;;  %v16155_v46 = vld [vmem:[#allocation149_spill] sm:$0xff] }
 0x6d6   : > { %v8487_v62 = vadd.f32 %v8486_v63, %v8326_v61  ;;  %8553 = vmatmul.f32.gmra.mxu3 %v16150_v21  ;;  %v5967_v61 = vld [vmem:[%s13823_s6 + $0x30] sm:$0xff] }
 0x6d7   : > { %v7885_v55 = vpop.f32.mrf.mxu0  ;;  %v8329_v51 = vpop.f32.mrf.mxu2 }
 0x6d8   : > { %v8601_v29 = vadd.f32 %v8487_v62, %v5965_v45  ;;  %v7886_v4 = vadd.f32 %v7885_v55, %v16151_v50  ;;  %v8090_v23 = vpop.f32.mrf.mxu1 }
 0x6d9   : > { %v8490_v44 = vpop.f32.mrf.mxu3 }
 0x6da   : > { %8633 = vst.msk [vmem:[%s13823_s6 + $0x20] sm:$0xff] %vm275_vm0, %v8601_v29  ;;  %v8085_v0 = vadd.f32 %v8084_v9, %v7886_v4  ;;  %7964 = vmatmul.f32.gmra.mxu0 %v16148_v34  ;;  %8185 = vmatmul.f32.gmra.mxu1 %v16153_v31  ;;  %v16156_v34 = vand.u32 4294901760, %v16155_v46  ;;  %v16157_v4 = vand.u32 4294901760, %v13647_v35 }
 0x6dc   : > { %v8330_v24 = vadd.f32 %v8329_v51, %v8085_v0  ;;  %8396 = vmatmul.f32.gmra.mxu2 %v16154_v30 }
 0x6de   : > { %v8491_v41 = vadd.f32 %v8490_v44, %v8330_v24  ;;  %8557 = vmatmul.f32.gmra.mxu3 %v16154_v30 }
 0x6df   : > { %v7890_v20 = vpop.f32.mrf.mxu0  ;;  %v8333_v47 = vpop.f32.mrf.mxu2 }
 0x6e0   : > { %v8602_v12 = vadd.f32 %v8491_v41, %v5966_v43  ;;  %v7891_v19 = vadd.f32 %v7890_v20, %v13674_v15  ;;  %v8096_v49 = vpop.f32.mrf.mxu1  ;;  %v16158_v41 = vld [vmem:[#allocation154_spill] sm:$0xff] }
 0x6e1   : > { %v8494_v9 = vpop.f32.mrf.mxu3  ;;  %v16159_v20 = vand.u32 4294901760, %v16158_v41 }
 0x6e2   : > { %8634 = vst.msk [vmem:[%s13823_s6 + $0x28] sm:$0xff] %vm275_vm0, %v8602_v12  ;;  %v8091_v63 = vadd.f32 %v8090_v23, %v7891_v19  ;;  %7969 = vmatmul.f32.gmra.mxu0 %v16152_v60  ;;  %8191 = vmatmul.f32.gmra.mxu1 %v16156_v34  ;;  %v16160_v34 = vand.u32 4294901760, %v13692_v28 }
 0x6e4   : > { %v8334_v59 = vadd.f32 %v8333_v47, %v8091_v63  ;;  %8400 = vmatmul.f32.gmra.mxu2 %v13615_v40 }
 0x6e6   : > { %v8495_v21 = vadd.f32 %v8494_v9, %v8334_v59  ;;  %8561 = vmatmul.f32.gmra.mxu3 %v13615_v40  ;;  %v5968_v40 = vld [vmem:[%s13823_s6 + $0x38] sm:$0xff] }
 0x6e7   : > { %v7895_v15 = vpop.f32.mrf.mxu0  ;;  %v8337_v45 = vpop.f32.mrf.mxu2 }
 0x6e8   : > { %v8603_v62 = vadd.f32 %v8495_v21, %v5967_v61  ;;  %v7896_v55 = vadd.f32 %v7895_v15, %v13695_v13  ;;  %v8102_v51 = vpop.f32.mrf.mxu1 }
 0x6e9   : > { %v8498_v29 = vpop.f32.mrf.mxu3 }
 0x6ea   : > { %8635 = vst.msk [vmem:[%s13823_s6 + $0x30] sm:$0xff] %vm275_vm0, %v8603_v62  ;;  %v8097_v50 = vadd.f32 %v8096_v49, %v7896_v55  ;;  %7974 = vmatmul.f32.gmra.mxu0 %v16155_v46  ;;  %8197 = vmatmul.f32.gmra.mxu1 %v16157_v4 }
 0x6ec   : > { %v8338_v23 = vadd.f32 %v8337_v45, %v8097_v50  ;;  %8404 = vmatmul.f32.gmra.mxu2 %v13639_v39 }
 0x6ee   : > { %v8499_v44 = vadd.f32 %v8498_v29, %v8338_v23  ;;  %8565 = vmatmul.f32.gmra.mxu3 %v13639_v39  ;;  %v5969_v39 = vld [vmem:[%s13823_s6 + $0x40] sm:$0xff]  ;;  %v16161_v29 = vld [vmem:[#allocation24_spill] sm:$0xff] }
 0x6ef   : > { %v7900_v13 = vpop.f32.mrf.mxu0  ;;  %v8341_v0 = vpop.f32.mrf.mxu2  ;;  %v16162_v50 = vand.u32 4294901760, %v16161_v29 }
 0x6f0   : > { %v8604_v60 = vadd.f32 %v8499_v44, %v5968_v40  ;;  %v7901_v31 = vadd.f32 %v7900_v13, %v13715_v32  ;;  %v8108_v24 = vpop.f32.mrf.mxu1 }
 0x6f1   : > { %v8502_v30 = vpop.f32.mrf.mxu3 }
 0x6f2   : > { %8636 = vst.msk [vmem:[%s13823_s6 + $0x38] sm:$0xff] %vm275_vm0, %v8604_v60  ;;  %v8103_v43 = vadd.f32 %v8102_v51, %v7901_v31  ;;  %7979 = vmatmul.f32.gmra.mxu0 %v13647_v35  ;;  %8203 = vmatmul.f32.gmra.mxu1 %v16159_v20  ;;  %v16163_v31 = vld [vmem:[#allocation161_spill] sm:$0xff] }
 0x6f4   : > { %v8342_v47 = vadd.f32 %v8341_v0, %v8103_v43  ;;  %8408 = vmatmul.f32.gmra.mxu2 %v13662_v25 }
 0x6f6   : > { %v8503_v12 = vadd.f32 %v8502_v30, %v8342_v47  ;;  %8569 = vmatmul.f32.gmra.mxu3 %v13662_v25  ;;  %v5970_v25 = vld [vmem:[%s13823_s6 + $0x48] sm:$0xff] }
 0x6f7   : > { %v7905_v32 = vpop.f32.mrf.mxu0  ;;  %v8345_v19 = vpop.f32.mrf.mxu2 }
 0x6f8   : > { %v8605_v49 = vadd.f32 %v8503_v12, %v5969_v39  ;;  %v7906_v9 = vadd.f32 %v7905_v32, %v13735_v52  ;;  %v8114_v63 = vpop.f32.mrf.mxu1 }
 0x6f9   : > { %v8506_v46 = vpop.f32.mrf.mxu3 }
 0x6fa   : > { %8637 = vst.msk [vmem:[%s13823_s6 + $0x40] sm:$0xff] %vm275_vm0, %v8605_v49  ;;  %v8109_v35 = vadd.f32 %v8108_v24, %v7906_v9  ;;  %7984 = vmatmul.f32.gmra.mxu0 %v16158_v41  ;;  %8209 = vmatmul.f32.gmra.mxu1 %v16160_v34  ;;  %v16164_v24 = vand.u32 4294901760, %v16163_v31 }
 0x6fc   : > { %v8346_v59 = vadd.f32 %v8345_v19, %v8109_v35  ;;  %8412 = vmatmul.f32.gmra.mxu2 %v13684_v11  ;;  %v16165_v19 = vld [vmem:[#allocation322_spill] sm:$0xff] }
 0x6fd   : > { %v16166_v49 = vand.u32 4294901760, %v16165_v19 }
 0x6fe   : > { %v8507_v61 = vadd.f32 %v8506_v46, %v8346_v59  ;;  %8573 = vmatmul.f32.gmra.mxu3 %v13684_v11  ;;  %v5971_v11 = vld [vmem:[%s13823_s6 + $0x50] sm:$0xff] }
 0x6ff   : > { %v7910_v52 = vpop.f32.mrf.mxu0  ;;  %v8349_v21 = vpop.f32.mrf.mxu2 }
 0x700   : > { %v8606_v15 = vadd.f32 %v8507_v61, %v5970_v25  ;;  %v7911_v45 = vadd.f32 %v7910_v52, %v13751_v57  ;;  %v8120_v62 = vpop.f32.mrf.mxu1  ;;  %v16167_v52 = vld [vmem:[#allocation324_spill] sm:$0xff] }
 0x701   : > { %v8510_v55 = vpop.f32.mrf.mxu3 }
 0x702   : > { %8638 = vst.msk [vmem:[%s13823_s6 + $0x48] sm:$0xff] %vm275_vm0, %v8606_v15  ;;  %v8115_v51 = vadd.f32 %v8114_v63, %v7911_v45  ;;  %7989 = vmatmul.f32.gmra.mxu0 %v13692_v28  ;;  %8215 = vmatmul.f32.gmra.mxu1 %v16162_v50  ;;  %v16169_v45 = vld [vmem:[#allocation3_spill] sm:$0xff] }
 0x704   : > { %v8350_v4 = vadd.f32 %v8349_v21, %v8115_v51  ;;  %8416 = vmatmul.f32.gmra.mxu2 %v13705_v16  ;;  %v16168_v21 = vand.u32 4294901760, %v16167_v52 }
 0x706   : > { %v8511_v23 = vadd.f32 %v8510_v55, %v8350_v4  ;;  %8577 = vmatmul.f32.gmra.mxu3 %v13705_v16  ;;  %v5972_v16 = vld [vmem:[%s13823_s6 + $0x58] sm:$0xff] }
 0x707   : > { %v7915_v57 = vpop.f32.mrf.mxu0  ;;  %v8353_v40 = vpop.f32.mrf.mxu2 }
 0x708   : > { %v8607_v44 = vadd.f32 %v8511_v23, %v5971_v11  ;;  %v7916_v13 = vadd.f32 %v7915_v57, %v13766_v14  ;;  %v8126_v0 = vpop.f32.mrf.mxu1  ;;  %v16170_v23 = vld [vmem:[#allocation25_spill] sm:$0xff] }
 0x709   : > { %v8514_v60 = vpop.f32.mrf.mxu3  ;;  %v16171_v57 = vand.u32 4294901760, %v16170_v23 }
 0x70a   : > { %8639 = vst.msk [vmem:[%s13823_s6 + $0x50] sm:$0xff] %vm275_vm0, %v8607_v44  ;;  %v8121_v28 = vadd.f32 %v8120_v62, %v7916_v13  ;;  %7994 = vmatmul.f32.gmra.mxu0 %v16161_v29  ;;  %8221 = vmatmul.f32.gmra.mxu1 %v16164_v24  ;;  %v5975_v44 = vld [vmem:[%s13823_s6 + $0x70] sm:$0xff] }
 0x70c   : > { %v8354_v30 = vadd.f32 %v8353_v40, %v8121_v28  ;;  %8420 = vmatmul.f32.gmra.mxu2 %v13725_v17 }
 0x70e   : > { %v8515_v43 = vadd.f32 %v8514_v60, %v8354_v30  ;;  %8581 = vmatmul.f32.gmra.mxu3 %v13725_v17  ;;  %v5973_v17 = vld [vmem:[%s13823_s6 + $0x60] sm:$0xff] }
 0x70f   : > { %v7920_v14 = vpop.f32.mrf.mxu0  ;;  %v8357_v41 = vpop.f32.mrf.mxu2 }
 0x710   : > { %v8608_v20 = vadd.f32 %v8515_v43, %v5972_v16  ;;  %v7921_v47 = vadd.f32 %v7920_v14, %v13781_v27  ;;  %v8132_v39 = vpop.f32.mrf.mxu1  ;;  %v5976_v43 = vld [vmem:[%s13823_s6 + $0x78] sm:$0xff] }
 0x711   : > { %v8518_v12 = vpop.f32.mrf.mxu3 }
 0x712   : > { %8640 = vst.msk [vmem:[%s13823_s6 + $0x58] sm:$0xff] %vm275_vm0, %v8608_v20  ;;  %v8127_v32 = vadd.f32 %v8126_v0, %v7921_v47  ;;  %7999 = vmatmul.f32.gmra.mxu0 %v16163_v31  ;;  %8227 = vmatmul.f32.gmra.mxu1 %v16166_v49 }
 0x714   : > { %v8358_v9 = vadd.f32 %v8357_v41, %v8127_v32  ;;  %8424 = vmatmul.f32.gmra.mxu2 %v13746_v1 }
 0x716   : > { %v8519_v63 = vadd.f32 %v8518_v12, %v8358_v9  ;;  %8585 = vmatmul.f32.gmra.mxu3 %v13746_v1  ;;  %v5974_v1 = vld [vmem:[%s13823_s6 + $0x68] sm:$0xff] }
 0x717   : > { %v7925_v27 = vpop.f32.mrf.mxu0  ;;  %v8361_v46 = vpop.f32.mrf.mxu2 }
 0x718   : > { %v8609_v35 = vadd.f32 %v8519_v63, %v5973_v17  ;;  %v7926_v34 = vadd.f32 %v7925_v27, %v13794_v58  ;;  %v8138_v59 = vpop.f32.mrf.mxu1 }
 0x719   : > { %v8522_v25 = vpop.f32.mrf.mxu3 }
 0x71a   : > { %8641 = vst.msk [vmem:[%s13823_s6 + $0x60] sm:$0xff] %vm275_vm0, %v8609_v35  ;;  %v8133_v61 = vadd.f32 %v8132_v39, %v7926_v34  ;;  %8004 = vmatmul.f32.gmra.mxu0 %v16165_v19  ;;  %8233 = vmatmul.f32.gmra.mxu1 %v16168_v21  ;;  %v5977_v19 = vld [vmem:[%s13823_s6 + $0x80] sm:$0xff] }
 0x71c   : > { %v8362_v15 = vadd.f32 %v8361_v46, %v8133_v61  ;;  %8428 = vmatmul.f32.gmra.mxu2 %v16169_v45 }
 0x71e   : > { %v8523_v62 = vadd.f32 %v8522_v25, %v8362_v15  ;;  %8589 = vmatmul.f32.gmra.mxu3 %v16169_v45 }
 0x71f   : > { %v7930_v58 = vpop.f32.mrf.mxu0  ;;  %v8365_v55 = vpop.f32.mrf.mxu2 }
 0x720   : > { %v8610_v51 = vadd.f32 %v8523_v62, %v5974_v1  ;;  %v7931_v29 = vadd.f32 %v7930_v58, %v13803_v6  ;;  %v8144_v50 = vpop.f32.mrf.mxu1  ;;  %v5979_v58 = vld [vmem:[%s13823_s6 + $0x90] sm:$0xff] }
 0x721   : > { %v8526_v4 = vpop.f32.mrf.mxu3 }
 0x722   : > { %8642 = vst.msk [vmem:[%s13823_s6 + $0x68] sm:$0xff] %vm275_vm0, %v8610_v51  ;;  %v8139_v11 = vadd.f32 %v8138_v59, %v7931_v29  ;;  %8009 = vmatmul.f32.gmra.mxu0 %v16167_v52  ;;  %8239 = vmatmul.f32.gmra.mxu1 %v16171_v57  ;;  %v5978_v59 = vld [vmem:[%s13823_s6 + $0x88] sm:$0xff] }
 0x724   : > { %v8366_v40 = vadd.f32 %v8365_v55, %v8139_v11  ;;  %8432 = vmatmul.f32.gmra.mxu2 %v13779_v22 }
 0x726   : > { %v8527_v13 = vadd.f32 %v8526_v4, %v8366_v40  ;;  %8593 = vmatmul.f32.gmra.mxu3 %v13779_v22  ;;  %v5980_v40 = vld [vmem:[%s13823_s6 + $0x98] sm:$0xff] }
 0x727   : > { %v7935_v6 = vpop.f32.mrf.mxu0  ;;  %v8369_v0 = vpop.f32.mrf.mxu2 }
 0x728   : > { %v8611_v60 = vadd.f32 %v8527_v13, %v5975_v44  ;;  %v7936_v28 = vadd.f32 %v7935_v6, %v13811_v26  ;;  %v8150_v31 = vpop.f32.mrf.mxu1 }
 0x729   : > { %v8530_v24 = vpop.f32.mrf.mxu3 }
 0x72a   : > { %8643 = vst.msk [vmem:[%s13823_s6 + $0x70] sm:$0xff] %vm275_vm0, %v8611_v60  ;;  %v8145_v30 = vadd.f32 %v8144_v50, %v7936_v28  ;;  %8014 = vmatmul.f32.gmra.mxu0 %v16170_v23 }
 0x72c   : > { %v8370_v16 = vadd.f32 %v8369_v0, %v8145_v30  ;;  %v5981_v30 = vld [vmem:[%s13823_s6 + $0xa0] sm:$0xff] }
 0x72e   : > { %v8531_v14 = vadd.f32 %v8530_v24, %v8370_v16 }
 0x72f   : > { %v7940_v41 = vpop.f32.mrf.mxu0  ;;  %v8373_v20 = vpop.f32.mrf.mxu2 }
 0x730   : > { %v8612_v22 = vadd.f32 %v8531_v14, %v5976_v43  ;;  %v7941_v47 = vadd.f32 %v7940_v41, %v13828_v54  ;;  %v8156_v39 = vpop.f32.mrf.mxu1 }
 0x731   : > { %v8534_v26 = vpop.f32.mrf.mxu3 }
 0x732   : > { %8644 = vst.msk [vmem:[%s13823_s6 + $0x78] sm:$0xff] %vm275_vm0, %v8612_v22  ;;  %v8151_v12 = vadd.f32 %v8150_v31, %v7941_v47 }
 0x734   : > { %v8374_v32 = vadd.f32 %v8373_v20, %v8151_v12 }
 0x736   : > { %v8535_v49 = vadd.f32 %v8534_v26, %v8374_v32  ;;  %v5982_v26 = vld [vmem:[%s13823_s6 + $0xa8] sm:$0xff] }
 0x737   : > { %v7945_v9 = vpop.f32.mrf.mxu0  ;;  %v8377_v17 = vpop.f32.mrf.mxu2 }
 0x738   : > { %v8613_v63 = vadd.f32 %v8535_v49, %v5977_v19  ;;  %v7946_v27 = vadd.f32 %v7945_v9, %v13860_v48  ;;  %v8162_v46 = vpop.f32.mrf.mxu1 }
 0x739   : > { %v8538_v35 = vpop.f32.mrf.mxu3 }
 0x73a   : > { %8645 = vst.msk [vmem:[%s13823_s6 + $0x80] sm:$0xff] %vm275_vm0, %v8613_v63  ;;  %v8157_v54 = vadd.f32 %v8156_v39, %v7946_v27 }
 0x73c   : > { %v8378_v34 = vadd.f32 %v8377_v17, %v8157_v54 }
 0x73e   : > { %v8539_v25 = vadd.f32 %v8538_v35, %v8378_v34 }
 0x73f   : > { %v7950_v61 = vpop.f32.mrf.mxu0  ;;  %v8381_v52 = vpop.f32.mrf.mxu2 }
 0x740   : > { %v8614_v21 = vadd.f32 %v8539_v25, %v5978_v59  ;;  %v7951_v15 = vadd.f32 %v7950_v61, %v13892_v56  ;;  %v8168_v45 = vpop.f32.mrf.mxu1 }
 0x741   : > { %v8542_v1 = vpop.f32.mrf.mxu3 }
 0x742   : > { %8646 = vst.msk [vmem:[%s13823_s6 + $0x88] sm:$0xff] %vm275_vm0, %v8614_v21  ;;  %v8163_v48 = vadd.f32 %v8162_v46, %v7951_v15  ;;  %v5983_v46 = vld [vmem:[%s13823_s6 + $0xb0] sm:$0xff]  ;;  %v5984_v15 = vld [vmem:[%s13823_s6 + $0xb8] sm:$0xff] }
 0x744   : > { %v8382_v62 = vadd.f32 %v8381_v52, %v8163_v48 }
 0x746   : > { %v8543_v55 = vadd.f32 %v8542_v1, %v8382_v62 }
 0x747   : > { %v7955_v51 = vpop.f32.mrf.mxu0  ;;  %v8385_v29 = vpop.f32.mrf.mxu2 }
 0x748   : > { %v8615_v50 = vadd.f32 %v8543_v55, %v5979_v58  ;;  %v7956_v4 = vadd.f32 %v7955_v51, %v13924_v8  ;;  %v8174_v11 = vpop.f32.mrf.mxu1 }
 0x749   : > { %v8546_v23 = vpop.f32.mrf.mxu3 }
 0x74a   : > { %8647 = vst.msk [vmem:[%s13823_s6 + $0x90] sm:$0xff] %vm275_vm0, %v8615_v50  ;;  %v8169_v56 = vadd.f32 %v8168_v45, %v7956_v4  ;;  %v5985_v50 = vld [vmem:[%s13823_s6 + $0xc0] sm:$0xff] }
 0x74c   : > { %v8386_v57 = vadd.f32 %v8385_v29, %v8169_v56 }
 0x74e   : > { %v8547_v44 = vadd.f32 %v8546_v23, %v8386_v57 }
 0x74f   : > { %v7960_v13 = vpop.f32.mrf.mxu0  ;;  %v8389_v6 = vpop.f32.mrf.mxu2 }
 0x750   : > { %v8616_v0 = vadd.f32 %v8547_v44, %v5980_v40  ;;  %v7961_v60 = vadd.f32 %v7960_v13, %v13953_v42  ;;  %v8180_v28 = vpop.f32.mrf.mxu1 }
 0x751   : > { %v8550_v31 = vpop.f32.mrf.mxu3 }
 0x752   : > { %8648 = vst.msk [vmem:[%s13823_s6 + $0x98] sm:$0xff] %vm275_vm0, %v8616_v0  ;;  %v8175_v8 = vadd.f32 %v8174_v11, %v7961_v60 }
 0x754   : > { %v8390_v24 = vadd.f32 %v8389_v6, %v8175_v8  ;;  %v5986_v6 = vld [vmem:[%s13823_s6 + $0xc8] sm:$0xff] }
 0x756   : > { %v8551_v16 = vadd.f32 %v8550_v31, %v8390_v24 }
 0x757   : > { %v7965_v43 = vpop.f32.mrf.mxu0  ;;  %v8393_v14 = vpop.f32.mrf.mxu2 }
 0x758   : > { %v8617_v41 = vadd.f32 %v8551_v16, %v5981_v30  ;;  %v7966_v20 = vadd.f32 %v7965_v43, %v13961_v5  ;;  %v8186_v22 = vpop.f32.mrf.mxu1  ;;  %v5987_v43 = vld [vmem:[%s13823_s6 + $0xd0] sm:$0xff] }
 0x759   : > { %v8554_v47 = vpop.f32.mrf.mxu3 }
 0x75a   : > { %8649 = vst.msk [vmem:[%s13823_s6 + $0xa0] sm:$0xff] %vm275_vm0, %v8617_v41  ;;  %v8181_v42 = vadd.f32 %v8180_v28, %v7966_v20 }
 0x75c   : > { %v8394_v39 = vadd.f32 %v8393_v14, %v8181_v42 }
 0x75e   : > { %v8555_v12 = vadd.f32 %v8554_v47, %v8394_v39 }
 0x75f   : > { %v7970_v32 = vpop.f32.mrf.mxu0  ;;  %v8397_v19 = vpop.f32.mrf.mxu2 }
 0x760   : > { %v8618_v49 = vadd.f32 %v8555_v12, %v5982_v26  ;;  %v7971_v9 = vadd.f32 %v7970_v32, %v13969_v53  ;;  %v8192_v17 = vpop.f32.mrf.mxu1  ;;  %v5988_v12 = vld [vmem:[%s13823_s6 + $0xd8] sm:$0xff] }
 0x761   : > { %v8558_v63 = vpop.f32.mrf.mxu3 }
 0x762   : > { %8650 = vst.msk [vmem:[%s13823_s6 + $0xa8] sm:$0xff] %vm275_vm0, %v8618_v49  ;;  %v8187_v5 = vadd.f32 %v8186_v22, %v7971_v9 }
 0x764   : > { %v8398_v27 = vadd.f32 %v8397_v19, %v8187_v5 }
 0x766   : > { %v8559_v35 = vadd.f32 %v8558_v63, %v8398_v27 }
 0x767   : > { %v7975_v54 = vpop.f32.mrf.mxu0  ;;  %v8401_v34 = vpop.f32.mrf.mxu2 }
 0x768   : > { %v8619_v59 = vadd.f32 %v8559_v35, %v5983_v46  ;;  %v7976_v25 = vadd.f32 %v7975_v54, %v13977_v3  ;;  %v8198_v61 = vpop.f32.mrf.mxu1  ;;  %v5989_v46 = vld [vmem:[%s13823_s6 + $0xe0] sm:$0xff] }
 0x769   : > { %v8562_v52 = vpop.f32.mrf.mxu3 }
 0x76a   : > { %8651 = vst.msk [vmem:[%s13823_s6 + $0xb0] sm:$0xff] %vm275_vm0, %v8619_v59  ;;  %v8193_v53 = vadd.f32 %v8192_v17, %v7976_v25 }
 0x76c   : > { %v8402_v21 = vadd.f32 %v8401_v34, %v8193_v53  ;;  %v5990_v53 = vld [vmem:[%s13823_s6 + $0xe8] sm:$0xff] }
 0x76e   : > { %v8563_v45 = vadd.f32 %v8562_v52, %v8402_v21 }
 0x76f   : > { %v7980_v1 = vpop.f32.mrf.mxu0  ;;  %v8405_v48 = vpop.f32.mrf.mxu2 }
 0x770   : > { %v8620_v62 = vadd.f32 %v8563_v45, %v5984_v15  ;;  %v7981_v58 = vadd.f32 %v7980_v1, %v13985_v37  ;;  %v8204_v55 = vpop.f32.mrf.mxu1 }
 0x771   : > { %v8566_v51 = vpop.f32.mrf.mxu3 }
 0x772   : > { %8652 = vst.msk [vmem:[%s13823_s6 + $0xb8] sm:$0xff] %vm275_vm0, %v8620_v62  ;;  %v8199_v3 = vadd.f32 %v8198_v61, %v7981_v58 }
 0x774   : > { %v8406_v29 = vadd.f32 %v8405_v48, %v8199_v3 }
 0x776   : > { %v8567_v4 = vadd.f32 %v8566_v51, %v8406_v29  ;;  %v5991_v51 = vld [vmem:[%s13823_s6 + $0xf0] sm:$0xff] }
 0x777   : > { %v7985_v11 = vpop.f32.mrf.mxu0  ;;  %v8409_v23 = vpop.f32.mrf.mxu2 }
 0x778   : > { %v8621_v56 = vadd.f32 %v8567_v4, %v5985_v50  ;;  %v7986_v57 = vadd.f32 %v7985_v11, %v13993_v36  ;;  %v8210_v40 = vpop.f32.mrf.mxu1 }
 0x779   : > { %v8570_v44 = vpop.f32.mrf.mxu3 }
 0x77a   : > { %8653 = vst.msk [vmem:[%s13823_s6 + $0xc0] sm:$0xff] %vm275_vm0, %v8621_v56  ;;  %v8205_v37 = vadd.f32 %v8204_v55, %v7986_v57  ;;  %v5992_v57 = vld [vmem:[%s13823_s6 + $0xf8] sm:$0xff] }
 0x77c   : > { %v8410_v13 = vadd.f32 %v8409_v23, %v8205_v37 }
 0x77e   : > { %v8571_v0 = vadd.f32 %v8570_v44, %v8410_v13 }
 0x77f   : > { %v7990_v60 = vpop.f32.mrf.mxu0  ;;  %v8413_v28 = vpop.f32.mrf.mxu2 }
 0x780   : > { %v8622_v31 = vadd.f32 %v8571_v0, %v5986_v6  ;;  %v7991_v8 = vadd.f32 %v7990_v60, %v14001_v33  ;;  %v8216_v24 = vpop.f32.mrf.mxu1 }
 0x781   : > { %v8574_v30 = vpop.f32.mrf.mxu3 }
 0x782   : > { %8654 = vst.msk [vmem:[%s13823_s6 + $0xc8] sm:$0xff] %vm275_vm0, %v8622_v31  ;;  %v8211_v36 = vadd.f32 %v8210_v40, %v7991_v8 }
 0x784   : > { %v8414_v16 = vadd.f32 %v8413_v28, %v8211_v36 }
 0x786   : > { %v8575_v14 = vadd.f32 %v8574_v30, %v8414_v16 }
 0x787   : > { %v7995_v41 = vpop.f32.mrf.mxu0  ;;  %v8417_v20 = vpop.f32.mrf.mxu2 }
 0x788   : > { %v8623_v22 = vadd.f32 %v8575_v14, %v5987_v43  ;;  %v7996_v47 = vadd.f32 %v7995_v41, %v14009_v18  ;;  %v8222_v39 = vpop.f32.mrf.mxu1 }
 0x789   : > { %v8578_v42 = vpop.f32.mrf.mxu3 }
 0x78a   : > { %8655 = vst.msk [vmem:[%s13823_s6 + $0xd0] sm:$0xff] %vm275_vm0, %v8623_v22  ;;  %v8217_v33 = vadd.f32 %v8216_v24, %v7996_v47 }
 0x78c   : > { %v8418_v26 = vadd.f32 %v8417_v20, %v8217_v33 }
 0x78e   : > { %v8579_v32 = vadd.f32 %v8578_v42, %v8418_v26 }
 0x78f   : > { %v8000_v19 = vpop.f32.mrf.mxu0  ;;  %v8421_v49 = vpop.f32.mrf.mxu2 }
 0x790   : > { %v8624_v9 = vadd.f32 %v8579_v32, %v5988_v12  ;;  %v8001_v17 = vadd.f32 %v8000_v19, %v14017_v2  ;;  %v8228_v27 = vpop.f32.mrf.mxu1 }
 0x791   : > { %v8582_v63 = vpop.f32.mrf.mxu3 }
 0x792   : > { %8656 = vst.msk [vmem:[%s13823_s6 + $0xd8] sm:$0xff] %vm275_vm0, %v8624_v9  ;;  %v8223_v18 = vadd.f32 %v8222_v39, %v8001_v17 }
 0x794   : > { %v8422_v5 = vadd.f32 %v8421_v49, %v8223_v18 }
 0x796   : > { %v8583_v35 = vadd.f32 %v8582_v63, %v8422_v5 }
 0x797   : > { %v8005_v54 = vpop.f32.mrf.mxu0  ;;  %v8425_v34 = vpop.f32.mrf.mxu2 }
 0x798   : > { %v8625_v59 = vadd.f32 %v8583_v35, %v5989_v46  ;;  %v8006_v25 = vadd.f32 %v8005_v54, %v14025_v38  ;;  %v8234_v15 = vpop.f32.mrf.mxu1 }
 0x799   : > { %v8586_v61 = vpop.f32.mrf.mxu3 }
 0x79a   : > { %8657 = vst.msk [vmem:[%s13823_s6 + $0xe0] sm:$0xff] %vm275_vm0, %v8625_v59  ;;  %v8229_v2 = vadd.f32 %v8228_v27, %v8006_v25 }
 0x79c   : > { %v8426_v52 = vadd.f32 %v8425_v34, %v8229_v2 }
 0x79e   : > { %v8587_v21 = vadd.f32 %v8586_v61, %v8426_v52 }
 0x79f   : > { %v8010_v45 = vpop.f32.mrf.mxu0  ;;  %v8429_v62 = vpop.f32.mrf.mxu2 }
 0x7a0   : > { %v8626_v1 = vadd.f32 %v8587_v21, %v5990_v53  ;;  %v8011_v48 = vadd.f32 %v8010_v45, %v14033_v7  ;;  %v8240_v11 = vpop.f32.mrf.mxu1 }
 0x7a1   : > { %v8590_v38 = vpop.f32.mrf.mxu3 }
 0x7a2   : > { %8658 = vst.msk [vmem:[%s13823_s6 + $0xe8] sm:$0xff] %vm275_vm0, %v8626_v1  ;;  %v8235_v58 = vadd.f32 %v8234_v15, %v8011_v48 }
 0x7a4   : > { %v8430_v55 = vadd.f32 %v8429_v62, %v8235_v58 }
 0x7a6   : > { %v8591_v3 = vadd.f32 %v8590_v38, %v8430_v55 }
 0x7a7   : > { %v8015_v29 = vpop.f32.mrf.mxu0  ;;  %v8433_v56 = vpop.f32.mrf.mxu2 }
 0x7a8   : > { %v8627_v50 = vadd.f32 %v8591_v3, %v5991_v51  ;;  %v8016_v4 = vadd.f32 %v8015_v29, %v14041_v10 }
 0x7a9   : > { %v8594_v40 = vpop.f32.mrf.mxu3 }
 0x7aa   : > { %8659 = vst.msk [vmem:[%s13823_s6 + $0xf0] sm:$0xff] %vm275_vm0, %v8627_v50  ;;  %v8241_v23 = vadd.f32 %v8240_v11, %v8016_v4 }
 0x7ac   : > { %v8434_v7 = vadd.f32 %v8433_v56, %v8241_v23 }
 0x7ae   : > { %v8595_v44 = vadd.f32 %v8594_v40, %v8434_v7 }
 0x7b0   : > { %v8628_v37 = vadd.f32 %v8595_v44, %v5992_v57 }
 0x7b2   : > { %8660 = vst.msk [vmem:[%s13823_s6 + $0xf8] sm:$0xff] %vm275_vm0, %v8628_v37 }
 0x7b3 PF: > { %s15_s17 = sadd.s32 1, %s8912_s17   ;;  %s16172_s15 = smov %s8908_s16 }
 0x7b4   : > { %p12_p5 = scmp.ge.s32.totalorder %s15_s17, 4   ;;  %s16173_s16 = smov %s16175_s18 }
 0x7b6   :  { %14 = sbr.rel (!%p12_p5) target bundleno = 2 (0x2), region = 84 }

</bundles_post_ra>
